<compile_context>
chip_gen: v5e
topology: v5e:2x2
jax: 0.10.0
libtpu: 0.0.40
codegen_flags: <defaults>
</compile_context>

<pallas_src>
import jax
import jax.numpy as jnp
from jax import lax
from jax.experimental import pallas as pl
from jax.experimental.pallas import tpu as pltpu

EPS = 1e-5  # both InstanceNorm eps and the module's self.eps


# ----------------------------- Pallas kernels -------------------------------

def _in_relu(acc):
    # acc: (Cout, HW) f32 conv result -> InstanceNorm2d (no affine, biased
    # variance over spatial) fused with ReLU; stats over the lane (HW) axis.
    inv_hw = 1.0 / acc.shape[1]
    mean = jnp.sum(acc, axis=1, keepdims=True) * inv_hw
    ex2 = jnp.sum(acc * acc, axis=1, keepdims=True) * inv_hw
    var = jnp.maximum(ex2 - mean * mean, 0.0)
    return jnp.maximum((acc - mean) * lax.rsqrt(var + EPS), 0.0)


def conv_in_relu_kernel(taps_ref, w_ref, o_ref):
    # taps_ref: (B, 9*Cin, HW) bf16   (im2col taps, channels on sublanes)
    # w_ref:    (Cout, 9*Cin)  bf16
    # o_ref:    (B, Cout, HW)  bf16
    for b in range(taps_ref.shape[0]):
        acc = jnp.dot(w_ref[...], taps_ref[b], preferred_element_type=jnp.float32)
        o_ref[b] = _in_relu(acc).astype(o_ref.dtype)


def _dec_stage_body(tx_ref, ts_ref, m_ref, sel_ref, wx_ref, ws_ref,
                    fcw_ref, fcb_ref, o_ref, s_ref):
    # Fused decoder stage: conv3x3 (two accumulated halves: x + skip) +
    # InstanceNorm + ReLU, then masked spatial pooling (one MXU contraction)
    # + 1x1 Conv1d + Tanh -- all on the f32 activation resident in VMEM.
    # tx_ref: (B, 9*Cx, HW) bf16 ; ts_ref: (B, 9*Cs, HW) bf16 or None
    # m_ref:  (B, HW, nmc) f32   ; sel_ref: (Cout, nmc) f32 0/1 selector
    # wx_ref: (Cout, 9*Cx) bf16  ; ws_ref: (Cout, 9*Cs) bf16 or None
    # fcw_ref: (Dout, Cout) f32  ; fcb_ref: (Dout, 1) f32
    # o_ref:  (B, Cout, HW) bf16 ; s_ref: (B, Dout, 1) f32
    sel = sel_ref[...]
    for b in range(tx_ref.shape[0]):
        acc = jnp.dot(wx_ref[...], tx_ref[b], preferred_element_type=jnp.float32)
        if ts_ref is not None:
            acc = acc + jnp.dot(ws_ref[...], ts_ref[b],
                                preferred_element_type=jnp.float32)
        y = _in_relu(acc)                                          # (Cout, HW) f32
        o_ref[b] = y.astype(o_ref.dtype)

        # masked pooling: per-channel sum against each mask group on the MXU,
        # then repeat_interleave realized by the tiny 0/1 selector.
        m_b = m_ref[b]                                             # (HW, nmc)
        p = jnp.dot(y, m_b, preferred_element_type=jnp.float32)    # (Cout, nmc)
        den_g = jnp.sum(m_b, axis=0, keepdims=True)                # (1, nmc)
        num = jnp.sum(p * sel, axis=1, keepdims=True)              # (Cout, 1)
        den = jnp.sum(sel * den_g, axis=1, keepdims=True)          # (Cout, 1)
        h = num / (den + EPS)                                      # (Cout, 1)
        s = jnp.dot(fcw_ref[...], h, preferred_element_type=jnp.float32)
        s_ref[b] = jnp.tanh(s + fcb_ref[...])


def dec_stage_kernel_skip(tx, ts, m, sel, wx, ws, fcw, fcb, o, s):
    _dec_stage_body(tx, ts, m, sel, wx, ws, fcw, fcb, o, s)


def dec_stage_kernel_noskip(tx, m, sel, wx, fcw, fcb, o, s):
    _dec_stage_body(tx, None, m, sel, wx, None, fcw, fcb, o, s)


# ----------------------------- kernel wrappers -------------------------------

def _im2col_t(x, ho, wo, stride):
    # x: (N, C, H, W) bf16 (unpadded). Returns channel-major taps (N, 9*C, HW);
    # K-axis order = (dy, dx) major, input channel minor.
    n, c, h, w = x.shape
    xp = jnp.pad(x, ((0, 0), (0, 0), (1, 1), (1, 1)))
    taps = []
    for dy in range(3):
        for dx in range(3):
            t = lax.slice(xp, (0, 0, dy, dx),
                          (n, c, dy + stride * (ho - 1) + 1,
                           dx + stride * (wo - 1) + 1),
                          (1, 1, stride, stride))
            taps.append(t.reshape(n, c, ho * wo))
    return jnp.concatenate(taps, axis=1)


def _conv_weight_2d(w):
    # (Cout, Cin, 3, 3) -> (Cout, 9*Cin) bf16, matching _im2col_t K ordering.
    cout, cin = w.shape[0], w.shape[1]
    return jnp.transpose(w, (0, 2, 3, 1)).reshape(cout, 9 * cin).astype(jnp.bfloat16)


def _grid_for(n, hw):
    # Fold the batch into one block for tiny deep layers (removes pipeline
    # prologue/epilogue); keep grid=(N,) parallel where each TC gets real work.
    bb = n if hw <= 64 else 1
    sem = ("parallel",) if bb == 1 else ("arbitrary",)
    return bb, (n // bb,), sem


def conv3x3_in_relu(x, w, *, stride):
    # x: (N, Cin, H, W) bf16 ; w: (Cout, Cin, 3, 3) f32 param
    n, cin, h, wd = x.shape
    cout = w.shape[0]
    ho = (h + 2 - 3) // stride + 1
    wo = (wd + 2 - 3) // stride + 1
    hw = ho * wo
    taps = _im2col_t(x, ho, wo, stride)
    wk = _conv_weight_2d(w)
    bb, grid, sem = _grid_for(n, hw)
    cost = pl.CostEstimate(
        flops=2 * n * cout * 9 * cin * hw + 8 * n * cout * hw,
        transcendentals=n * cout,
        bytes_accessed=2 * (taps.size + wk.size + n * cout * hw))
    out = pl.pallas_call(
        conv_in_relu_kernel,
        out_shape=jax.ShapeDtypeStruct((n, cout, hw), jnp.bfloat16),
        grid=grid,
        in_specs=[pl.BlockSpec((bb, 9 * cin, hw), lambda i: (i, 0, 0)),
                  pl.BlockSpec((cout, 9 * cin), lambda i: (0, 0))],
        out_specs=pl.BlockSpec((bb, cout, hw), lambda i: (i, 0, 0)),
        compiler_params=pltpu.CompilerParams(dimension_semantics=sem),
        cost_estimate=cost,
    )(taps, wk)
    return out.reshape(n, cout, ho, wo)


def dec_stage(x, skip, mask_small, wx, ws, fc_w, fc_b, nmc):
    # x:    (N, Cx, H, W) bf16 upsampled previous decoder/encoder output
    # skip: (N, Cs, H, W) bf16 upsampled encoder skip, or None (first stage)
    # mask_small: (N, nmc, H, W) f32 ; wx/ws: (Cout, C*, 3, 3)
    # fc_w: (Dout, Cout) ; fc_b: (Dout,)
    n, cx, h, wd = x.shape
    cout, dout = wx.shape[0], fc_w.shape[0]
    assert cout % nmc == 0, "repeat_interleave selector needs Cout % nmc == 0"
    hw = h * wd
    has_skip = skip is not None

    taps_x = _im2col_t(x, h, wd, 1)
    wxk = _conv_weight_2d(wx)
    rep = cout // nmc
    sel = (jnp.arange(cout)[:, None] // rep
           == jnp.arange(nmc)[None, :]).astype(jnp.float32)          # (Cout, nmc)
    m_t = jnp.transpose(mask_small.reshape(n, nmc, hw), (0, 2, 1))   # (N, HW, nmc)
    fcb2 = fc_b.reshape(dout, 1)

    bb, grid, sem = _grid_for(n, hw)

    inputs = [taps_x]
    in_specs = [pl.BlockSpec((bb, 9 * cx, hw), lambda i: (i, 0, 0))]
    cs = 0
    if has_skip:
        cs = skip.shape[1]
        inputs.append(_im2col_t(skip, h, wd, 1))
        in_specs.append(pl.BlockSpec((bb, 9 * cs, hw), lambda i: (i, 0, 0)))
    inputs += [m_t, sel, wxk]
    in_specs += [pl.BlockSpec((bb, hw, nmc), lambda i: (i, 0, 0)),
                 pl.BlockSpec((cout, nmc), lambda i: (0, 0)),
                 pl.BlockSpec((cout, 9 * cx), lambda i: (0, 0))]
    if has_skip:
        inputs.append(_conv_weight_2d(ws))
        in_specs.append(pl.BlockSpec((cout, 9 * cs), lambda i: (0, 0)))
    inputs += [fc_w, fcb2]
    in_specs += [pl.BlockSpec((dout, cout), lambda i: (0, 0)),
                 pl.BlockSpec((dout, 1), lambda i: (0, 0))]

    cost = pl.CostEstimate(
        flops=(2 * n * cout * 9 * (cx + cs) * hw
               + 2 * n * cout * hw * nmc + 2 * n * dout * cout),
        transcendentals=n * (cout + dout),
        bytes_accessed=(2 * (taps_x.size + n * 9 * cs * hw)
                        + 4 * m_t.size + 2 * n * cout * hw + 4 * n * dout))

    kernel = dec_stage_kernel_skip if has_skip else dec_stage_kernel_noskip
    y, s = pl.pallas_call(
        kernel,
        out_shape=(jax.ShapeDtypeStruct((n, cout, hw), jnp.bfloat16),
                   jax.ShapeDtypeStruct((n, dout, 1), jnp.float32)),
        grid=grid,
        in_specs=in_specs,
        out_specs=(pl.BlockSpec((bb, cout, hw), lambda i: (i, 0, 0)),
                   pl.BlockSpec((bb, dout, 1), lambda i: (i, 0, 0))),
        compiler_params=pltpu.CompilerParams(dimension_semantics=sem),
        cost_estimate=cost,
    )(*inputs)
    return y.reshape(n, cout, h, wd), s.reshape(n, dout)


# ----------------------------- plain-JAX glue --------------------------------

def upsample2x_bilinear(x):
    # nn.Upsample(scale_factor=2, mode='bilinear', align_corners=False), NCHW.
    def interp(a, axis):
        s = a.shape[axis]
        idx = jnp.arange(s)
        prev = jnp.take(a, jnp.maximum(idx - 1, 0), axis=axis)
        nxt = jnp.take(a, jnp.minimum(idx + 1, s - 1), axis=axis)
        even = 0.75 * a + 0.25 * prev     # output 2i
        odd = 0.75 * a + 0.25 * nxt       # output 2i+1
        st = jnp.stack([even, odd], axis=axis + 1)
        shape = list(a.shape)
        shape[axis] = 2 * s
        return st.reshape(shape)
    return interp(interp(x, 2), 3)


def resize_nearest(mask, h, w):
    # F.interpolate(mode='nearest'): src = floor(dst * in_size / out_size)
    _, _, hm, wm = mask.shape
    rows = (jnp.arange(h) * hm) // h
    cols = (jnp.arange(w) * wm) // w
    return mask[:, :, rows][:, :, :, cols]


# ----------------------------- params / forward ------------------------------

def init_params(key, cfg):
    ic, nmc, nd, nu, nf, od = (cfg['input_channels'], cfg['nmc'],
                               cfg['num_downsample'], cfg['num_upsample'],
                               cfg['num_feat'], cfg['output_dim'])
    kernels = [(nmc * nf * 2 ** i, nmc * nf * 2 ** (i + 1)) for i in range(nd)]
    params = {}
    counter = [0]

    def nk():
        counter[0] += 1
        return jax.random.fold_in(key, counter[0])

    def conv_w(cout, cin):
        # Conv biases omitted: they cancel exactly under affine-free InstanceNorm.
        return 0.1 * jax.random.normal(nk(), (cout, cin, 3, 3), jnp.float32)

    params['first_w'] = conv_w(kernels[0][0], ic)
    for i, (cin, cout) in enumerate(kernels):
        params[f'enc_{i}_w'] = conv_w(cout, cin)
    dout = od * nmc
    for j in range(nu):
        i = nd - 1 - j
        cout, cx = kernels[i][0], kernels[i][1]
        params[f'dec_{j}_wx'] = conv_w(cout, cx)      # half acting on prev output
        if j > 0:
            params[f'dec_{j}_ws'] = conv_w(cout, cx)  # half acting on the skip
        params[f'out_{j}_w'] = 0.1 * jax.random.normal(nk(), (dout, cout), jnp.float32)
        params[f'out_{j}_b'] = 0.1 * jax.random.normal(nk(), (dout,), jnp.float32)
    return params


def forward(params, x_nchw, mask_nchw, cfg):
    nmc, nd, nu, od = (cfg['nmc'], cfg['num_downsample'],
                       cfg['num_upsample'], cfg['output_dim'])
    x = x_nchw.astype(jnp.bfloat16)
    mask = mask_nchw.astype(jnp.float32)

    # Encoder
    x = conv3x3_in_relu(x, params['first_w'], stride=1)
    enc_feat = []
    for i in range(nd):
        x = conv3x3_in_relu(x, params[f'enc_{i}_w'], stride=2)
        enc_feat.append(x)

    # Decoder + fused per-region style heads.  The PyTorch cat([x, enc_feat])
    # is realized as two weight halves accumulating into the same conv acc.
    dec_style = []
    skip = None
    for j in range(nu):
        xu = upsample2x_bilinear(x)
        su = upsample2x_bilinear(skip) if skip is not None else None
        n, _, sh, sw = xu.shape
        m = resize_nearest(mask, sh, sw)                          # (N, nmc, sh, sw)
        x, s = dec_stage(xu, su, m, params[f'dec_{j}_wx'],
                         params.get(f'dec_{j}_ws'), params[f'out_{j}_w'],
                         params[f'out_{j}_b'], nmc)
        dec_style.append(s.reshape(n, nmc, od))
        skip = enc_feat[nu - 1 - j]
    # elegant_solution=True -> concat along the mask-channel axis
    return jnp.concatenate(dec_style, axis=1)


if __name__ == "__main__":
    cfg = dict(input_channels=3, nmc=2, num_downsample=4, num_upsample=3,
               num_feat=2, output_dim=8)
    key = jax.random.PRNGKey(0)
    params = init_params(jax.random.fold_in(key, 1), cfg)

    N, H, W = 2, 32, 32
    kx, km = jax.random.split(jax.random.fold_in(key, 2))
    x = jax.random.normal(kx, (N, cfg['input_channels'], H, W), jnp.float32)
    labels = jax.random.randint(km, (N, 1, H, W), 0, cfg['nmc'])
    mask = (labels == jnp.arange(cfg['nmc']).reshape(1, cfg['nmc'], 1, 1)
            ).astype(jnp.float32)

    fwd = jax.jit(lambda p, xi, mi: forward(p, xi, mi, cfg))
    out = jax.block_until_ready(fwd(params, x, mask))
    assert out.shape == (N, cfg['num_upsample'] * cfg['nmc'], cfg['output_dim']), out.shape
    assert bool(jnp.all(jnp.isfinite(out)))
    print("KERNEL_OK")
</pallas_src>

<mosaic_0001>
module attributes {stable_mosaic.version = 11 : i64} {
  func.func @conv_in_relu_kernel(%arg0: i32, %arg1: memref<1x27x1024xbf16, #tpu.memory_space<vmem>>, %arg2: memref<4x27xbf16, #tpu.memory_space<vmem>>, %arg3: memref<1x4x1024xbf16, #tpu.memory_space<vmem>>) attributes {dimension_semantics = [#tpu.dimension_semantics<parallel>], iteration_bounds = array<i64: 2>, scalar_prefetch = 0 : i64, scratch_operands = 0 : i64, tpu.core_type = #tpu.core_type<tc>, window_params = [{transform_indices = @transform_0, window_bounds = array<i64: 1, 27, 1024>}, {pipeline_mode = #tpu.pipeline_mode<synchronous>, transform_indices = @transform_1, window_bounds = array<i64: 4, 27>}, {transform_indices = @transform_2, window_bounds = array<i64: 1, 4, 1024>}]} {
    %c0 = arith.constant 0 : index
    %c0_0 = arith.constant 0 : index
    %0 = vector.load %arg2[%c0, %c0_0] : memref<4x27xbf16, #tpu.memory_space<vmem>>, vector<4x27xbf16>
    %c0_1 = arith.constant 0 : index
    %c0_2 = arith.constant 0 : index
    %c0_3 = arith.constant 0 : index
    %1 = vector.load %arg1[%c0_1, %c0_2, %c0_3] : memref<1x27x1024xbf16, #tpu.memory_space<vmem>>, vector<1x27x1024xbf16>
    %2 = vector.shape_cast %1 : vector<1x27x1024xbf16> to vector<27x1024xbf16>
    %cst = arith.constant dense<0.000000e+00> : vector<4x1024xf32>
    %3 = tpu.matmul %0, %2, %cst {dimension_numbers = #tpu.dot_dimension_numbers<[1], [0], [0], [1], [0, 0, 1, 1], [], []>} : vector<4x27xbf16>, vector<27x1024xbf16>, vector<4x1024xf32> -> vector<4x1024xf32>
    %cst_4 = arith.constant dense<0.000000e+00> : vector<4xf32>
    %4 = vector.multi_reduction <add>, %3, %cst_4 [1] : vector<4x1024xf32> to vector<4xf32>
    %5 = vector.shape_cast %4 : vector<4xf32> to vector<4x1xf32>
    %cst_5 = arith.constant 9.765625E-4 : f32
    %6 = vector.broadcast %cst_5 : f32 to vector<4x1xf32>
    %7 = arith.mulf %5, %6 : vector<4x1xf32>
    %8 = arith.mulf %3, %3 : vector<4x1024xf32>
    %cst_6 = arith.constant dense<0.000000e+00> : vector<4xf32>
    %9 = vector.multi_reduction <add>, %8, %cst_6 [1] : vector<4x1024xf32> to vector<4xf32>
    %10 = vector.shape_cast %9 : vector<4xf32> to vector<4x1xf32>
    %cst_7 = arith.constant 9.765625E-4 : f32
    %11 = vector.broadcast %cst_7 : f32 to vector<4x1xf32>
    %12 = arith.mulf %10, %11 : vector<4x1xf32>
    %13 = arith.mulf %7, %7 : vector<4x1xf32>
    %14 = arith.subf %12, %13 : vector<4x1xf32>
    %cst_8 = arith.constant 0.000000e+00 : f32
    %15 = vector.broadcast %cst_8 : f32 to vector<4x1xf32>
    %16 = arith.maximumf %14, %15 : vector<4x1xf32>
    %17 = vector.broadcast %7 : vector<4x1xf32> to vector<4x1024xf32>
    %18 = arith.subf %3, %17 : vector<4x1024xf32>
    %cst_9 = arith.constant 9.99999974E-6 : f32
    %19 = vector.broadcast %cst_9 : f32 to vector<4x1xf32>
    %20 = arith.addf %16, %19 : vector<4x1xf32>
    %21 = math.rsqrt %20 : vector<4x1xf32>
    %22 = vector.broadcast %21 : vector<4x1xf32> to vector<4x1024xf32>
    %23 = arith.mulf %18, %22 : vector<4x1024xf32>
    %cst_10 = arith.constant 0.000000e+00 : f32
    %24 = vector.broadcast %cst_10 : f32 to vector<4x1024xf32>
    %25 = arith.maximumf %23, %24 : vector<4x1024xf32>
    %26 = arith.truncf %25 : vector<4x1024xf32> to vector<4x1024xbf16>
    %c0_11 = arith.constant 0 : index
    %c0_12 = arith.constant 0 : index
    %c0_13 = arith.constant 0 : index
    %27 = vector.load %arg3[%c0_11, %c0_12, %c0_13] : memref<1x4x1024xbf16, #tpu.memory_space<vmem>>, vector<1x4x1024xbf16>
    %28 = vector.shape_cast %27 : vector<1x4x1024xbf16> to vector<4x1024xbf16>
    %29 = vector.shape_cast %26 : vector<4x1024xbf16> to vector<1x4x1024xbf16>
    tpu.vector_store %arg3[%c0_11, %c0_12, %c0_13], %29 {strides = array<i32>} : memref<1x4x1024xbf16, #tpu.memory_space<vmem>>, vector<1x4x1024xbf16>,
    return
  }
  func.func @transform_0(%arg0: i32) -> (i32, i32, i32) {
    %c0_i32 = arith.constant 0 : i32
    %c0_i32_0 = arith.constant 0 : i32
    %c0_i32_1 = arith.constant 0 : i32
    return %arg0, %c0_i32, %c0_i32_0 : i32, i32, i32
  }
  func.func @transform_1(%arg0: i32) -> (i32, i32) {
    %c0_i32 = arith.constant 0 : i32
    %c0_i32_0 = arith.constant 0 : i32
    %c0_i32_1 = arith.constant 0 : i32
    return %c0_i32, %c0_i32_0 : i32, i32
  }
  func.func @transform_2(%arg0: i32) -> (i32, i32, i32) {
    %c0_i32 = arith.constant 0 : i32
    %c0_i32_0 = arith.constant 0 : i32
    %c0_i32_1 = arith.constant 0 : i32
    return %arg0, %c0_i32, %c0_i32_0 : i32, i32, i32
  }
}

module attributes {stable_mosaic.version = 11 : i64} {
  func.func @conv_in_relu_kernel(%arg0: i32, %arg1: memref<1x36x256xbf16, #tpu.memory_space<vmem>>, %arg2: memref<8x36xbf16, #tpu.memory_space<vmem>>, %arg3: memref<1x8x256xbf16, #tpu.memory_space<vmem>>) attributes {dimension_semantics = [#tpu.dimension_semantics<parallel>], iteration_bounds = array<i64: 2>, scalar_prefetch = 0 : i64, scratch_operands = 0 : i64, tpu.core_type = #tpu.core_type<tc>, window_params = [{transform_indices = @transform_0, window_bounds = array<i64: 1, 36, 256>}, {pipeline_mode = #tpu.pipeline_mode<synchronous>, transform_indices = @transform_1, window_bounds = array<i64: 8, 36>}, {transform_indices = @transform_2, window_bounds = array<i64: 1, 8, 256>}]} {
    %c0 = arith.constant 0 : index
    %c0_0 = arith.constant 0 : index
    %0 = vector.load %arg2[%c0, %c0_0] : memref<8x36xbf16, #tpu.memory_space<vmem>>, vector<8x36xbf16>
    %c0_1 = arith.constant 0 : index
    %c0_2 = arith.constant 0 : index
    %c0_3 = arith.constant 0 : index
    %1 = vector.load %arg1[%c0_1, %c0_2, %c0_3] : memref<1x36x256xbf16, #tpu.memory_space<vmem>>, vector<1x36x256xbf16>
    %2 = vector.shape_cast %1 : vector<1x36x256xbf16> to vector<36x256xbf16>
    %cst = arith.constant dense<0.000000e+00> : vector<8x256xf32>
    %3 = tpu.matmul %0, %2, %cst {dimension_numbers = #tpu.dot_dimension_numbers<[1], [0], [0], [1], [0, 0, 1, 1], [], []>} : vector<8x36xbf16>, vector<36x256xbf16>, vector<8x256xf32> -> vector<8x256xf32>
    %cst_4 = arith.constant dense<0.000000e+00> : vector<8xf32>
    %4 = vector.multi_reduction <add>, %3, %cst_4 [1] : vector<8x256xf32> to vector<8xf32>
    %5 = vector.shape_cast %4 : vector<8xf32> to vector<8x1xf32>
    %cst_5 = arith.constant 3.906250e-03 : f32
    %6 = vector.broadcast %cst_5 : f32 to vector<8x1xf32>
    %7 = arith.mulf %5, %6 : vector<8x1xf32>
    %8 = arith.mulf %3, %3 : vector<8x256xf32>
    %cst_6 = arith.constant dense<0.000000e+00> : vector<8xf32>
    %9 = vector.multi_reduction <add>, %8, %cst_6 [1] : vector<8x256xf32> to vector<8xf32>
    %10 = vector.shape_cast %9 : vector<8xf32> to vector<8x1xf32>
    %cst_7 = arith.constant 3.906250e-03 : f32
    %11 = vector.broadcast %cst_7 : f32 to vector<8x1xf32>
    %12 = arith.mulf %10, %11 : vector<8x1xf32>
    %13 = arith.mulf %7, %7 : vector<8x1xf32>
    %14 = arith.subf %12, %13 : vector<8x1xf32>
    %cst_8 = arith.constant 0.000000e+00 : f32
    %15 = vector.broadcast %cst_8 : f32 to vector<8x1xf32>
    %16 = arith.maximumf %14, %15 : vector<8x1xf32>
    %17 = vector.broadcast %7 : vector<8x1xf32> to vector<8x256xf32>
    %18 = arith.subf %3, %17 : vector<8x256xf32>
    %cst_9 = arith.constant 9.99999974E-6 : f32
    %19 = vector.broadcast %cst_9 : f32 to vector<8x1xf32>
    %20 = arith.addf %16, %19 : vector<8x1xf32>
    %21 = math.rsqrt %20 : vector<8x1xf32>
    %22 = vector.broadcast %21 : vector<8x1xf32> to vector<8x256xf32>
    %23 = arith.mulf %18, %22 : vector<8x256xf32>
    %cst_10 = arith.constant 0.000000e+00 : f32
    %24 = vector.broadcast %cst_10 : f32 to vector<8x256xf32>
    %25 = arith.maximumf %23, %24 : vector<8x256xf32>
    %26 = arith.truncf %25 : vector<8x256xf32> to vector<8x256xbf16>
    %c0_11 = arith.constant 0 : index
    %c0_12 = arith.constant 0 : index
    %c0_13 = arith.constant 0 : index
    %27 = vector.load %arg3[%c0_11, %c0_12, %c0_13] : memref<1x8x256xbf16, #tpu.memory_space<vmem>>, vector<1x8x256xbf16>
    %28 = vector.shape_cast %27 : vector<1x8x256xbf16> to vector<8x256xbf16>
    %29 = vector.shape_cast %26 : vector<8x256xbf16> to vector<1x8x256xbf16>
    tpu.vector_store %arg3[%c0_11, %c0_12, %c0_13], %29 {strides = array<i32>} : memref<1x8x256xbf16, #tpu.memory_space<vmem>>, vector<1x8x256xbf16>,
    return
  }
  func.func @transform_0(%arg0: i32) -> (i32, i32, i32) {
    %c0_i32 = arith.constant 0 : i32
    %c0_i32_0 = arith.constant 0 : i32
    %c0_i32_1 = arith.constant 0 : i32
    return %arg0, %c0_i32, %c0_i32_0 : i32, i32, i32
  }
  func.func @transform_1(%arg0: i32) -> (i32, i32) {
    %c0_i32 = arith.constant 0 : i32
    %c0_i32_0 = arith.constant 0 : i32
    %c0_i32_1 = arith.constant 0 : i32
    return %c0_i32, %c0_i32_0 : i32, i32
  }
  func.func @transform_2(%arg0: i32) -> (i32, i32, i32) {
    %c0_i32 = arith.constant 0 : i32
    %c0_i32_0 = arith.constant 0 : i32
    %c0_i32_1 = arith.constant 0 : i32
    return %arg0, %c0_i32, %c0_i32_0 : i32, i32, i32
  }
}

module attributes {stable_mosaic.version = 11 : i64} {
  func.func @conv_in_relu_kernel(%arg0: i32, %arg1: memref<2x72x64xbf16, #tpu.memory_space<vmem>>, %arg2: memref<16x72xbf16, #tpu.memory_space<vmem>>, %arg3: memref<2x16x64xbf16, #tpu.memory_space<vmem>>) attributes {dimension_semantics = [#tpu.dimension_semantics<arbitrary>], iteration_bounds = array<i64: 1>, scalar_prefetch = 0 : i64, scratch_operands = 0 : i64, tpu.core_type = #tpu.core_type<tc>, window_params = [{transform_indices = @transform_0, window_bounds = array<i64: 2, 72, 64>}, {pipeline_mode = #tpu.pipeline_mode<synchronous>, transform_indices = @transform_1, window_bounds = array<i64: 16, 72>}, {transform_indices = @transform_2, window_bounds = array<i64: 2, 16, 64>}]} {
    %c0 = arith.constant 0 : index
    %c0_0 = arith.constant 0 : index
    %0 = vector.load %arg2[%c0, %c0_0] : memref<16x72xbf16, #tpu.memory_space<vmem>>, vector<16x72xbf16>
    %c0_1 = arith.constant 0 : index
    %c0_2 = arith.constant 0 : index
    %c0_3 = arith.constant 0 : index
    %1 = vector.load %arg1[%c0_1, %c0_2, %c0_3] : memref<2x72x64xbf16, #tpu.memory_space<vmem>>, vector<1x72x64xbf16>
    %2 = vector.shape_cast %1 : vector<1x72x64xbf16> to vector<72x64xbf16>
    %cst = arith.constant dense<0.000000e+00> : vector<16x64xf32>
    %3 = tpu.matmul %0, %2, %cst {dimension_numbers = #tpu.dot_dimension_numbers<[1], [0], [0], [1], [0, 0, 1, 1], [], []>} : vector<16x72xbf16>, vector<72x64xbf16>, vector<16x64xf32> -> vector<16x64xf32>
    %cst_4 = arith.constant dense<0.000000e+00> : vector<16xf32>
    %4 = vector.multi_reduction <add>, %3, %cst_4 [1] : vector<16x64xf32> to vector<16xf32>
    %5 = vector.shape_cast %4 : vector<16xf32> to vector<16x1xf32>
    %cst_5 = arith.constant 1.562500e-02 : f32
    %6 = vector.broadcast %cst_5 : f32 to vector<16x1xf32>
    %7 = arith.mulf %5, %6 : vector<16x1xf32>
    %8 = arith.mulf %3, %3 : vector<16x64xf32>
    %cst_6 = arith.constant dense<0.000000e+00> : vector<16xf32>
    %9 = vector.multi_reduction <add>, %8, %cst_6 [1] : vector<16x64xf32> to vector<16xf32>
    %10 = vector.shape_cast %9 : vector<16xf32> to vector<16x1xf32>
    %cst_7 = arith.constant 1.562500e-02 : f32
    %11 = vector.broadcast %cst_7 : f32 to vector<16x1xf32>
    %12 = arith.mulf %10, %11 : vector<16x1xf32>
    %13 = arith.mulf %7, %7 : vector<16x1xf32>
    %14 = arith.subf %12, %13 : vector<16x1xf32>
    %cst_8 = arith.constant 0.000000e+00 : f32
    %15 = vector.broadcast %cst_8 : f32 to vector<16x1xf32>
    %16 = arith.maximumf %14, %15 : vector<16x1xf32>
    %17 = vector.broadcast %7 : vector<16x1xf32> to vector<16x64xf32>
    %18 = arith.subf %3, %17 : vector<16x64xf32>
    %cst_9 = arith.constant 9.99999974E-6 : f32
    %19 = vector.broadcast %cst_9 : f32 to vector<16x1xf32>
    %20 = arith.addf %16, %19 : vector<16x1xf32>
    %21 = math.rsqrt %20 : vector<16x1xf32>
    %22 = vector.broadcast %21 : vector<16x1xf32> to vector<16x64xf32>
    %23 = arith.mulf %18, %22 : vector<16x64xf32>
    %cst_10 = arith.constant 0.000000e+00 : f32
    %24 = vector.broadcast %cst_10 : f32 to vector<16x64xf32>
    %25 = arith.maximumf %23, %24 : vector<16x64xf32>
    %26 = arith.truncf %25 : vector<16x64xf32> to vector<16x64xbf16>
    %c0_11 = arith.constant 0 : index
    %c0_12 = arith.constant 0 : index
    %c0_13 = arith.constant 0 : index
    %27 = vector.load %arg3[%c0_11, %c0_12, %c0_13] : memref<2x16x64xbf16, #tpu.memory_space<vmem>>, vector<1x16x64xbf16>
    %28 = vector.shape_cast %27 : vector<1x16x64xbf16> to vector<16x64xbf16>
    %29 = vector.shape_cast %26 : vector<16x64xbf16> to vector<1x16x64xbf16>
    tpu.vector_store %arg3[%c0_11, %c0_12, %c0_13], %29 {strides = array<i32>} : memref<2x16x64xbf16, #tpu.memory_space<vmem>>, vector<1x16x64xbf16>,
    %c0_14 = arith.constant 0 : index
    %c0_15 = arith.constant 0 : index
    %30 = vector.load %arg2[%c0_14, %c0_15] : memref<16x72xbf16, #tpu.memory_space<vmem>>, vector<16x72xbf16>
    %c1 = arith.constant 1 : index
    %c0_16 = arith.constant 0 : index
    %c0_17 = arith.constant 0 : index
    %31 = vector.load %arg1[%c1, %c0_16, %c0_17] : memref<2x72x64xbf16, #tpu.memory_space<vmem>>, vector<1x72x64xbf16>
    %32 = vector.shape_cast %31 : vector<1x72x64xbf16> to vector<72x64xbf16>
    %cst_18 = arith.constant dense<0.000000e+00> : vector<16x64xf32>
    %33 = tpu.matmul %30, %32, %cst_18 {dimension_numbers = #tpu.dot_dimension_numbers<[1], [0], [0], [1], [0, 0, 1, 1], [], []>} : vector<16x72xbf16>, vector<72x64xbf16>, vector<16x64xf32> -> vector<16x64xf32>
    %cst_19 = arith.constant dense<0.000000e+00> : vector<16xf32>
    %34 = vector.multi_reduction <add>, %33, %cst_19 [1] : vector<16x64xf32> to vector<16xf32>
    %35 = vector.shape_cast %34 : vector<16xf32> to vector<16x1xf32>
    %cst_20 = arith.constant 1.562500e-02 : f32
    %36 = vector.broadcast %cst_20 : f32 to vector<16x1xf32>
    %37 = arith.mulf %35, %36 : vector<16x1xf32>
    %38 = arith.mulf %33, %33 : vector<16x64xf32>
    %cst_21 = arith.constant dense<0.000000e+00> : vector<16xf32>
    %39 = vector.multi_reduction <add>, %38, %cst_21 [1] : vector<16x64xf32> to vector<16xf32>
    %40 = vector.shape_cast %39 : vector<16xf32> to vector<16x1xf32>
    %cst_22 = arith.constant 1.562500e-02 : f32
    %41 = vector.broadcast %cst_22 : f32 to vector<16x1xf32>
    %42 = arith.mulf %40, %41 : vector<16x1xf32>
    %43 = arith.mulf %37, %37 : vector<16x1xf32>
    %44 = arith.subf %42, %43 : vector<16x1xf32>
    %cst_23 = arith.constant 0.000000e+00 : f32
    %45 = vector.broadcast %cst_23 : f32 to vector<16x1xf32>
    %46 = arith.maximumf %44, %45 : vector<16x1xf32>
    %47 = vector.broadcast %37 : vector<16x1xf32> to vector<16x64xf32>
    %48 = arith.subf %33, %47 : vector<16x64xf32>
    %cst_24 = arith.constant 9.99999974E-6 : f32
    %49 = vector.broadcast %cst_24 : f32 to vector<16x1xf32>
    %50 = arith.addf %46, %49 : vector<16x1xf32>
    %51 = math.rsqrt %50 : vector<16x1xf32>
    %52 = vector.broadcast %51 : vector<16x1xf32> to vector<16x64xf32>
    %53 = arith.mulf %48, %52 : vector<16x64xf32>
    %cst_25 = arith.constant 0.000000e+00 : f32
    %54 = vector.broadcast %cst_25 : f32 to vector<16x64xf32>
    %55 = arith.maximumf %53, %54 : vector<16x64xf32>
    %56 = arith.truncf %55 : vector<16x64xf32> to vector<16x64xbf16>
    %c1_26 = arith.constant 1 : index
    %c0_27 = arith.constant 0 : index
    %c0_28 = arith.constant 0 : index
    %57 = vector.load %arg3[%c1_26, %c0_27, %c0_28] : memref<2x16x64xbf16, #tpu.memory_space<vmem>>, vector<1x16x64xbf16>
    %58 = vector.shape_cast %57 : vector<1x16x64xbf16> to vector<16x64xbf16>
    %59 = vector.shape_cast %56 : vector<16x64xbf16> to vector<1x16x64xbf16>
    tpu.vector_store %arg3[%c1_26, %c0_27, %c0_28], %59 {strides = array<i32>} : memref<2x16x64xbf16, #tpu.memory_space<vmem>>, vector<1x16x64xbf16>,
    return
  }
  func.func @transform_0(%arg0: i32) -> (i32, i32, i32) {
    %c0_i32 = arith.constant 0 : i32
    %c0_i32_0 = arith.constant 0 : i32
    %c0_i32_1 = arith.constant 0 : i32
    return %arg0, %c0_i32, %c0_i32_0 : i32, i32, i32
  }
  func.func @transform_1(%arg0: i32) -> (i32, i32) {
    %c0_i32 = arith.constant 0 : i32
    %c0_i32_0 = arith.constant 0 : i32
    %c0_i32_1 = arith.constant 0 : i32
    return %c0_i32, %c0_i32_0 : i32, i32
  }
  func.func @transform_2(%arg0: i32) -> (i32, i32, i32) {
    %c0_i32 = arith.constant 0 : i32
    %c0_i32_0 = arith.constant 0 : i32
    %c0_i32_1 = arith.constant 0 : i32
    return %arg0, %c0_i32, %c0_i32_0 : i32, i32, i32
  }
}

module attributes {stable_mosaic.version = 11 : i64} {
  func.func @conv_in_relu_kernel(%arg0: i32, %arg1: memref<2x144x16xbf16, #tpu.memory_space<vmem>>, %arg2: memref<32x144xbf16, #tpu.memory_space<vmem>>, %arg3: memref<2x32x16xbf16, #tpu.memory_space<vmem>>) attributes {dimension_semantics = [#tpu.dimension_semantics<arbitrary>], iteration_bounds = array<i64: 1>, scalar_prefetch = 0 : i64, scratch_operands = 0 : i64, tpu.core_type = #tpu.core_type<tc>, window_params = [{transform_indices = @transform_0, window_bounds = array<i64: 2, 144, 16>}, {pipeline_mode = #tpu.pipeline_mode<synchronous>, transform_indices = @transform_1, window_bounds = array<i64: 32, 144>}, {transform_indices = @transform_2, window_bounds = array<i64: 2, 32, 16>}]} {
    %c0 = arith.constant 0 : index
    %c0_0 = arith.constant 0 : index
    %0 = vector.load %arg2[%c0, %c0_0] : memref<32x144xbf16, #tpu.memory_space<vmem>>, vector<32x144xbf16>
    %c0_1 = arith.constant 0 : index
    %c0_2 = arith.constant 0 : index
    %c0_3 = arith.constant 0 : index
    %1 = vector.load %arg1[%c0_1, %c0_2, %c0_3] : memref<2x144x16xbf16, #tpu.memory_space<vmem>>, vector<1x144x16xbf16>
    %2 = vector.shape_cast %1 : vector<1x144x16xbf16> to vector<144x16xbf16>
    %cst = arith.constant dense<0.000000e+00> : vector<32x16xf32>
    %3 = tpu.matmul %0, %2, %cst {dimension_numbers = #tpu.dot_dimension_numbers<[1], [0], [0], [1], [0, 0, 1, 1], [], []>} : vector<32x144xbf16>, vector<144x16xbf16>, vector<32x16xf32> -> vector<32x16xf32>
    %cst_4 = arith.constant dense<0.000000e+00> : vector<32xf32>
    %4 = vector.multi_reduction <add>, %3, %cst_4 [1] : vector<32x16xf32> to vector<32xf32>
    %5 = vector.shape_cast %4 : vector<32xf32> to vector<32x1xf32>
    %cst_5 = arith.constant 6.250000e-02 : f32
    %6 = vector.broadcast %cst_5 : f32 to vector<32x1xf32>
    %7 = arith.mulf %5, %6 : vector<32x1xf32>
    %8 = arith.mulf %3, %3 : vector<32x16xf32>
    %cst_6 = arith.constant dense<0.000000e+00> : vector<32xf32>
    %9 = vector.multi_reduction <add>, %8, %cst_6 [1] : vector<32x16xf32> to vector<32xf32>
    %10 = vector.shape_cast %9 : vector<32xf32> to vector<32x1xf32>
    %cst_7 = arith.constant 6.250000e-02 : f32
    %11 = vector.broadcast %cst_7 : f32 to vector<32x1xf32>
    %12 = arith.mulf %10, %11 : vector<32x1xf32>
    %13 = arith.mulf %7, %7 : vector<32x1xf32>
    %14 = arith.subf %12, %13 : vector<32x1xf32>
    %cst_8 = arith.constant 0.000000e+00 : f32
    %15 = vector.broadcast %cst_8 : f32 to vector<32x1xf32>
    %16 = arith.maximumf %14, %15 : vector<32x1xf32>
    %17 = vector.broadcast %7 : vector<32x1xf32> to vector<32x16xf32>
    %18 = arith.subf %3, %17 : vector<32x16xf32>
    %cst_9 = arith.constant 9.99999974E-6 : f32
    %19 = vector.broadcast %cst_9 : f32 to vector<32x1xf32>
    %20 = arith.addf %16, %19 : vector<32x1xf32>
    %21 = math.rsqrt %20 : vector<32x1xf32>
    %22 = vector.broadcast %21 : vector<32x1xf32> to vector<32x16xf32>
    %23 = arith.mulf %18, %22 : vector<32x16xf32>
    %cst_10 = arith.constant 0.000000e+00 : f32
    %24 = vector.broadcast %cst_10 : f32 to vector<32x16xf32>
    %25 = arith.maximumf %23, %24 : vector<32x16xf32>
    %26 = arith.truncf %25 : vector<32x16xf32> to vector<32x16xbf16>
    %c0_11 = arith.constant 0 : index
    %c0_12 = arith.constant 0 : index
    %c0_13 = arith.constant 0 : index
    %27 = vector.load %arg3[%c0_11, %c0_12, %c0_13] : memref<2x32x16xbf16, #tpu.memory_space<vmem>>, vector<1x32x16xbf16>
    %28 = vector.shape_cast %27 : vector<1x32x16xbf16> to vector<32x16xbf16>
    %29 = vector.shape_cast %26 : vector<32x16xbf16> to vector<1x32x16xbf16>
    tpu.vector_store %arg3[%c0_11, %c0_12, %c0_13], %29 {strides = array<i32>} : memref<2x32x16xbf16, #tpu.memory_space<vmem>>, vector<1x32x16xbf16>,
    %c0_14 = arith.constant 0 : index
    %c0_15 = arith.constant 0 : index
    %30 = vector.load %arg2[%c0_14, %c0_15] : memref<32x144xbf16, #tpu.memory_space<vmem>>, vector<32x144xbf16>
    %c1 = arith.constant 1 : index
    %c0_16 = arith.constant 0 : index
    %c0_17 = arith.constant 0 : index
    %31 = vector.load %arg1[%c1, %c0_16, %c0_17] : memref<2x144x16xbf16, #tpu.memory_space<vmem>>, vector<1x144x16xbf16>
    %32 = vector.shape_cast %31 : vector<1x144x16xbf16> to vector<144x16xbf16>
    %cst_18 = arith.constant dense<0.000000e+00> : vector<32x16xf32>
    %33 = tpu.matmul %30, %32, %cst_18 {dimension_numbers = #tpu.dot_dimension_numbers<[1], [0], [0], [1], [0, 0, 1, 1], [], []>} : vector<32x144xbf16>, vector<144x16xbf16>, vector<32x16xf32> -> vector<32x16xf32>
    %cst_19 = arith.constant dense<0.000000e+00> : vector<32xf32>
    %34 = vector.multi_reduction <add>, %33, %cst_19 [1] : vector<32x16xf32> to vector<32xf32>
    %35 = vector.shape_cast %34 : vector<32xf32> to vector<32x1xf32>
    %cst_20 = arith.constant 6.250000e-02 : f32
    %36 = vector.broadcast %cst_20 : f32 to vector<32x1xf32>
    %37 = arith.mulf %35, %36 : vector<32x1xf32>
    %38 = arith.mulf %33, %33 : vector<32x16xf32>
    %cst_21 = arith.constant dense<0.000000e+00> : vector<32xf32>
    %39 = vector.multi_reduction <add>, %38, %cst_21 [1] : vector<32x16xf32> to vector<32xf32>
    %40 = vector.shape_cast %39 : vector<32xf32> to vector<32x1xf32>
    %cst_22 = arith.constant 6.250000e-02 : f32
    %41 = vector.broadcast %cst_22 : f32 to vector<32x1xf32>
    %42 = arith.mulf %40, %41 : vector<32x1xf32>
    %43 = arith.mulf %37, %37 : vector<32x1xf32>
    %44 = arith.subf %42, %43 : vector<32x1xf32>
    %cst_23 = arith.constant 0.000000e+00 : f32
    %45 = vector.broadcast %cst_23 : f32 to vector<32x1xf32>
    %46 = arith.maximumf %44, %45 : vector<32x1xf32>
    %47 = vector.broadcast %37 : vector<32x1xf32> to vector<32x16xf32>
    %48 = arith.subf %33, %47 : vector<32x16xf32>
    %cst_24 = arith.constant 9.99999974E-6 : f32
    %49 = vector.broadcast %cst_24 : f32 to vector<32x1xf32>
    %50 = arith.addf %46, %49 : vector<32x1xf32>
    %51 = math.rsqrt %50 : vector<32x1xf32>
    %52 = vector.broadcast %51 : vector<32x1xf32> to vector<32x16xf32>
    %53 = arith.mulf %48, %52 : vector<32x16xf32>
    %cst_25 = arith.constant 0.000000e+00 : f32
    %54 = vector.broadcast %cst_25 : f32 to vector<32x16xf32>
    %55 = arith.maximumf %53, %54 : vector<32x16xf32>
    %56 = arith.truncf %55 : vector<32x16xf32> to vector<32x16xbf16>
    %c1_26 = arith.constant 1 : index
    %c0_27 = arith.constant 0 : index
    %c0_28 = arith.constant 0 : index
    %57 = vector.load %arg3[%c1_26, %c0_27, %c0_28] : memref<2x32x16xbf16, #tpu.memory_space<vmem>>, vector<1x32x16xbf16>
    %58 = vector.shape_cast %57 : vector<1x32x16xbf16> to vector<32x16xbf16>
    %59 = vector.shape_cast %56 : vector<32x16xbf16> to vector<1x32x16xbf16>
    tpu.vector_store %arg3[%c1_26, %c0_27, %c0_28], %59 {strides = array<i32>} : memref<2x32x16xbf16, #tpu.memory_space<vmem>>, vector<1x32x16xbf16>,
    return
  }
  func.func @transform_0(%arg0: i32) -> (i32, i32, i32) {
    %c0_i32 = arith.constant 0 : i32
    %c0_i32_0 = arith.constant 0 : i32
    %c0_i32_1 = arith.constant 0 : i32
    return %arg0, %c0_i32, %c0_i32_0 : i32, i32, i32
  }
  func.func @transform_1(%arg0: i32) -> (i32, i32) {
    %c0_i32 = arith.constant 0 : i32
    %c0_i32_0 = arith.constant 0 : i32
    %c0_i32_1 = arith.constant 0 : i32
    return %c0_i32, %c0_i32_0 : i32, i32
  }
  func.func @transform_2(%arg0: i32) -> (i32, i32, i32) {
    %c0_i32 = arith.constant 0 : i32
    %c0_i32_0 = arith.constant 0 : i32
    %c0_i32_1 = arith.constant 0 : i32
    return %arg0, %c0_i32, %c0_i32_0 : i32, i32, i32
  }
}

module attributes {stable_mosaic.version = 11 : i64} {
  func.func @conv_in_relu_kernel(%arg0: i32, %arg1: memref<2x288x4xbf16, #tpu.memory_space<vmem>>, %arg2: memref<64x288xbf16, #tpu.memory_space<vmem>>, %arg3: memref<2x64x4xbf16, #tpu.memory_space<vmem>>) attributes {dimension_semantics = [#tpu.dimension_semantics<arbitrary>], iteration_bounds = array<i64: 1>, scalar_prefetch = 0 : i64, scratch_operands = 0 : i64, tpu.core_type = #tpu.core_type<tc>, window_params = [{transform_indices = @transform_0, window_bounds = array<i64: 2, 288, 4>}, {pipeline_mode = #tpu.pipeline_mode<synchronous>, transform_indices = @transform_1, window_bounds = array<i64: 64, 288>}, {transform_indices = @transform_2, window_bounds = array<i64: 2, 64, 4>}]} {
    %c0 = arith.constant 0 : index
    %c0_0 = arith.constant 0 : index
    %0 = vector.load %arg2[%c0, %c0_0] : memref<64x288xbf16, #tpu.memory_space<vmem>>, vector<64x288xbf16>
    %c0_1 = arith.constant 0 : index
    %c0_2 = arith.constant 0 : index
    %c0_3 = arith.constant 0 : index
    %1 = vector.load %arg1[%c0_1, %c0_2, %c0_3] : memref<2x288x4xbf16, #tpu.memory_space<vmem>>, vector<1x288x4xbf16>
    %2 = vector.shape_cast %1 : vector<1x288x4xbf16> to vector<288x4xbf16>
    %cst = arith.constant dense<0.000000e+00> : vector<64x4xf32>
    %3 = tpu.matmul %0, %2, %cst {dimension_numbers = #tpu.dot_dimension_numbers<[1], [0], [0], [1], [0, 0, 1, 1], [], []>} : vector<64x288xbf16>, vector<288x4xbf16>, vector<64x4xf32> -> vector<64x4xf32>
    %cst_4 = arith.constant dense<0.000000e+00> : vector<64xf32>
    %4 = vector.multi_reduction <add>, %3, %cst_4 [1] : vector<64x4xf32> to vector<64xf32>
    %5 = vector.shape_cast %4 : vector<64xf32> to vector<64x1xf32>
    %cst_5 = arith.constant 2.500000e-01 : f32
    %6 = vector.broadcast %cst_5 : f32 to vector<64x1xf32>
    %7 = arith.mulf %5, %6 : vector<64x1xf32>
    %8 = arith.mulf %3, %3 : vector<64x4xf32>
    %cst_6 = arith.constant dense<0.000000e+00> : vector<64xf32>
    %9 = vector.multi_reduction <add>, %8, %cst_6 [1] : vector<64x4xf32> to vector<64xf32>
    %10 = vector.shape_cast %9 : vector<64xf32> to vector<64x1xf32>
    %cst_7 = arith.constant 2.500000e-01 : f32
    %11 = vector.broadcast %cst_7 : f32 to vector<64x1xf32>
    %12 = arith.mulf %10, %11 : vector<64x1xf32>
    %13 = arith.mulf %7, %7 : vector<64x1xf32>
    %14 = arith.subf %12, %13 : vector<64x1xf32>
    %cst_8 = arith.constant 0.000000e+00 : f32
    %15 = vector.broadcast %cst_8 : f32 to vector<64x1xf32>
    %16 = arith.maximumf %14, %15 : vector<64x1xf32>
    %17 = vector.broadcast %7 : vector<64x1xf32> to vector<64x4xf32>
    %18 = arith.subf %3, %17 : vector<64x4xf32>
    %cst_9 = arith.constant 9.99999974E-6 : f32
    %19 = vector.broadcast %cst_9 : f32 to vector<64x1xf32>
    %20 = arith.addf %16, %19 : vector<64x1xf32>
    %21 = math.rsqrt %20 : vector<64x1xf32>
    %22 = vector.broadcast %21 : vector<64x1xf32> to vector<64x4xf32>
    %23 = arith.mulf %18, %22 : vector<64x4xf32>
    %cst_10 = arith.constant 0.000000e+00 : f32
    %24 = vector.broadcast %cst_10 : f32 to vector<64x4xf32>
    %25 = arith.maximumf %23, %24 : vector<64x4xf32>
    %26 = arith.truncf %25 : vector<64x4xf32> to vector<64x4xbf16>
    %c0_11 = arith.constant 0 : index
    %c0_12 = arith.constant 0 : index
    %c0_13 = arith.constant 0 : index
    %27 = vector.load %arg3[%c0_11, %c0_12, %c0_13] : memref<2x64x4xbf16, #tpu.memory_space<vmem>>, vector<1x64x4xbf16>
    %28 = vector.shape_cast %27 : vector<1x64x4xbf16> to vector<64x4xbf16>
    %29 = vector.shape_cast %26 : vector<64x4xbf16> to vector<1x64x4xbf16>
    tpu.vector_store %arg3[%c0_11, %c0_12, %c0_13], %29 {strides = array<i32>} : memref<2x64x4xbf16, #tpu.memory_space<vmem>>, vector<1x64x4xbf16>,
    %c0_14 = arith.constant 0 : index
    %c0_15 = arith.constant 0 : index
    %30 = vector.load %arg2[%c0_14, %c0_15] : memref<64x288xbf16, #tpu.memory_space<vmem>>, vector<64x288xbf16>
    %c1 = arith.constant 1 : index
    %c0_16 = arith.constant 0 : index
    %c0_17 = arith.constant 0 : index
    %31 = vector.load %arg1[%c1, %c0_16, %c0_17] : memref<2x288x4xbf16, #tpu.memory_space<vmem>>, vector<1x288x4xbf16>
    %32 = vector.shape_cast %31 : vector<1x288x4xbf16> to vector<288x4xbf16>
    %cst_18 = arith.constant dense<0.000000e+00> : vector<64x4xf32>
    %33 = tpu.matmul %30, %32, %cst_18 {dimension_numbers = #tpu.dot_dimension_numbers<[1], [0], [0], [1], [0, 0, 1, 1], [], []>} : vector<64x288xbf16>, vector<288x4xbf16>, vector<64x4xf32> -> vector<64x4xf32>
    %cst_19 = arith.constant dense<0.000000e+00> : vector<64xf32>
    %34 = vector.multi_reduction <add>, %33, %cst_19 [1] : vector<64x4xf32> to vector<64xf32>
    %35 = vector.shape_cast %34 : vector<64xf32> to vector<64x1xf32>
    %cst_20 = arith.constant 2.500000e-01 : f32
    %36 = vector.broadcast %cst_20 : f32 to vector<64x1xf32>
    %37 = arith.mulf %35, %36 : vector<64x1xf32>
    %38 = arith.mulf %33, %33 : vector<64x4xf32>
    %cst_21 = arith.constant dense<0.000000e+00> : vector<64xf32>
    %39 = vector.multi_reduction <add>, %38, %cst_21 [1] : vector<64x4xf32> to vector<64xf32>
    %40 = vector.shape_cast %39 : vector<64xf32> to vector<64x1xf32>
    %cst_22 = arith.constant 2.500000e-01 : f32
    %41 = vector.broadcast %cst_22 : f32 to vector<64x1xf32>
    %42 = arith.mulf %40, %41 : vector<64x1xf32>
    %43 = arith.mulf %37, %37 : vector<64x1xf32>
    %44 = arith.subf %42, %43 : vector<64x1xf32>
    %cst_23 = arith.constant 0.000000e+00 : f32
    %45 = vector.broadcast %cst_23 : f32 to vector<64x1xf32>
    %46 = arith.maximumf %44, %45 : vector<64x1xf32>
    %47 = vector.broadcast %37 : vector<64x1xf32> to vector<64x4xf32>
    %48 = arith.subf %33, %47 : vector<64x4xf32>
    %cst_24 = arith.constant 9.99999974E-6 : f32
    %49 = vector.broadcast %cst_24 : f32 to vector<64x1xf32>
    %50 = arith.addf %46, %49 : vector<64x1xf32>
    %51 = math.rsqrt %50 : vector<64x1xf32>
    %52 = vector.broadcast %51 : vector<64x1xf32> to vector<64x4xf32>
    %53 = arith.mulf %48, %52 : vector<64x4xf32>
    %cst_25 = arith.constant 0.000000e+00 : f32
    %54 = vector.broadcast %cst_25 : f32 to vector<64x4xf32>
    %55 = arith.maximumf %53, %54 : vector<64x4xf32>
    %56 = arith.truncf %55 : vector<64x4xf32> to vector<64x4xbf16>
    %c1_26 = arith.constant 1 : index
    %c0_27 = arith.constant 0 : index
    %c0_28 = arith.constant 0 : index
    %57 = vector.load %arg3[%c1_26, %c0_27, %c0_28] : memref<2x64x4xbf16, #tpu.memory_space<vmem>>, vector<1x64x4xbf16>
    %58 = vector.shape_cast %57 : vector<1x64x4xbf16> to vector<64x4xbf16>
    %59 = vector.shape_cast %56 : vector<64x4xbf16> to vector<1x64x4xbf16>
    tpu.vector_store %arg3[%c1_26, %c0_27, %c0_28], %59 {strides = array<i32>} : memref<2x64x4xbf16, #tpu.memory_space<vmem>>, vector<1x64x4xbf16>,
    return
  }
  func.func @transform_0(%arg0: i32) -> (i32, i32, i32) {
    %c0_i32 = arith.constant 0 : i32
    %c0_i32_0 = arith.constant 0 : i32
    %c0_i32_1 = arith.constant 0 : i32
    return %arg0, %c0_i32, %c0_i32_0 : i32, i32, i32
  }
  func.func @transform_1(%arg0: i32) -> (i32, i32) {
    %c0_i32 = arith.constant 0 : i32
    %c0_i32_0 = arith.constant 0 : i32
    %c0_i32_1 = arith.constant 0 : i32
    return %c0_i32, %c0_i32_0 : i32, i32
  }
  func.func @transform_2(%arg0: i32) -> (i32, i32, i32) {
    %c0_i32 = arith.constant 0 : i32
    %c0_i32_0 = arith.constant 0 : i32
    %c0_i32_1 = arith.constant 0 : i32
    return %arg0, %c0_i32, %c0_i32_0 : i32, i32, i32
  }
}

module attributes {stable_mosaic.version = 11 : i64} {
  func.func @dec_stage_kernel_noskip(%arg0: i32, %arg1: memref<2x576x16xbf16, #tpu.memory_space<vmem>>, %arg2: memref<2x16x2xf32, #tpu.memory_space<vmem>>, %arg3: memref<32x2xf32, #tpu.memory_space<vmem>>, %arg4: memref<32x576xbf16, #tpu.memory_space<vmem>>, %arg5: memref<16x32xf32, #tpu.memory_space<vmem>>, %arg6: memref<16x1xf32, #tpu.memory_space<vmem>>, %arg7: memref<2x32x16xbf16, #tpu.memory_space<vmem>>, %arg8: memref<2x16x1xf32, #tpu.memory_space<vmem>>) attributes {dimension_semantics = [#tpu.dimension_semantics<arbitrary>], iteration_bounds = array<i64: 1>, scalar_prefetch = 0 : i64, scratch_operands = 0 : i64, tpu.core_type = #tpu.core_type<tc>, window_params = [{transform_indices = @transform_0, window_bounds = array<i64: 2, 576, 16>}, {transform_indices = @transform_1, window_bounds = array<i64: 2, 16, 2>}, {pipeline_mode = #tpu.pipeline_mode<synchronous>, transform_indices = @transform_2, window_bounds = array<i64: 32, 2>}, {pipeline_mode = #tpu.pipeline_mode<synchronous>, transform_indices = @transform_3, window_bounds = array<i64: 32, 576>}, {pipeline_mode = #tpu.pipeline_mode<synchronous>, transform_indices = @transform_4, window_bounds = array<i64: 16, 32>}, {pipeline_mode = #tpu.pipeline_mode<synchronous>, transform_indices = @transform_5, window_bounds = array<i64: 16, 1>}, {transform_indices = @transform_6, window_bounds = array<i64: 2, 32, 16>}, {transform_indices = @transform_7, window_bounds = array<i64: 2, 16, 1>}]} {
    %c0 = arith.constant 0 : index
    %c0_0 = arith.constant 0 : index
    %0 = vector.load %arg3[%c0, %c0_0] : memref<32x2xf32, #tpu.memory_space<vmem>>, vector<32x2xf32>
    %c0_1 = arith.constant 0 : index
    %c0_2 = arith.constant 0 : index
    %1 = vector.load %arg4[%c0_1, %c0_2] : memref<32x576xbf16, #tpu.memory_space<vmem>>, vector<32x576xbf16>
    %c0_3 = arith.constant 0 : index
    %c0_4 = arith.constant 0 : index
    %c0_5 = arith.constant 0 : index
    %2 = vector.load %arg1[%c0_3, %c0_4, %c0_5] : memref<2x576x16xbf16, #tpu.memory_space<vmem>>, vector<1x576x16xbf16>
    %3 = vector.shape_cast %2 : vector<1x576x16xbf16> to vector<576x16xbf16>
    %cst = arith.constant dense<0.000000e+00> : vector<32x16xf32>
    %4 = tpu.matmul %1, %3, %cst {dimension_numbers = #tpu.dot_dimension_numbers<[1], [0], [0], [1], [0, 0, 1, 1], [], []>} : vector<32x576xbf16>, vector<576x16xbf16>, vector<32x16xf32> -> vector<32x16xf32>
    %cst_6 = arith.constant dense<0.000000e+00> : vector<32xf32>
    %5 = vector.multi_reduction <add>, %4, %cst_6 [1] : vector<32x16xf32> to vector<32xf32>
    %6 = vector.shape_cast %5 : vector<32xf32> to vector<32x1xf32>
    %cst_7 = arith.constant 6.250000e-02 : f32
    %7 = vector.broadcast %cst_7 : f32 to vector<32x1xf32>
    %8 = arith.mulf %6, %7 : vector<32x1xf32>
    %9 = arith.mulf %4, %4 : vector<32x16xf32>
    %cst_8 = arith.constant dense<0.000000e+00> : vector<32xf32>
    %10 = vector.multi_reduction <add>, %9, %cst_8 [1] : vector<32x16xf32> to vector<32xf32>
    %11 = vector.shape_cast %10 : vector<32xf32> to vector<32x1xf32>
    %cst_9 = arith.constant 6.250000e-02 : f32
    %12 = vector.broadcast %cst_9 : f32 to vector<32x1xf32>
    %13 = arith.mulf %11, %12 : vector<32x1xf32>
    %14 = arith.mulf %8, %8 : vector<32x1xf32>
    %15 = arith.subf %13, %14 : vector<32x1xf32>
    %cst_10 = arith.constant 0.000000e+00 : f32
    %16 = vector.broadcast %cst_10 : f32 to vector<32x1xf32>
    %17 = arith.maximumf %15, %16 : vector<32x1xf32>
    %18 = vector.broadcast %8 : vector<32x1xf32> to vector<32x16xf32>
    %19 = arith.subf %4, %18 : vector<32x16xf32>
    %cst_11 = arith.constant 9.99999974E-6 : f32
    %20 = vector.broadcast %cst_11 : f32 to vector<32x1xf32>
    %21 = arith.addf %17, %20 : vector<32x1xf32>
    %22 = math.rsqrt %21 : vector<32x1xf32>
    %23 = vector.broadcast %22 : vector<32x1xf32> to vector<32x16xf32>
    %24 = arith.mulf %19, %23 : vector<32x16xf32>
    %cst_12 = arith.constant 0.000000e+00 : f32
    %25 = vector.broadcast %cst_12 : f32 to vector<32x16xf32>
    %26 = arith.maximumf %24, %25 : vector<32x16xf32>
    %27 = arith.truncf %26 : vector<32x16xf32> to vector<32x16xbf16>
    %c0_13 = arith.constant 0 : index
    %c0_14 = arith.constant 0 : index
    %c0_15 = arith.constant 0 : index
    %28 = vector.load %arg7[%c0_13, %c0_14, %c0_15] : memref<2x32x16xbf16, #tpu.memory_space<vmem>>, vector<1x32x16xbf16>
    %29 = vector.shape_cast %28 : vector<1x32x16xbf16> to vector<32x16xbf16>
    %30 = vector.shape_cast %27 : vector<32x16xbf16> to vector<1x32x16xbf16>
    tpu.vector_store %arg7[%c0_13, %c0_14, %c0_15], %30 {strides = array<i32>} : memref<2x32x16xbf16, #tpu.memory_space<vmem>>, vector<1x32x16xbf16>,
    %c0_16 = arith.constant 0 : index
    %c0_17 = arith.constant 0 : index
    %c0_18 = arith.constant 0 : index
    %31 = vector.load %arg2[%c0_16, %c0_17, %c0_18] : memref<2x16x2xf32, #tpu.memory_space<vmem>>, vector<1x16x2xf32>
    %32 = vector.shape_cast %31 : vector<1x16x2xf32> to vector<16x2xf32>
    %cst_19 = arith.constant dense<0.000000e+00> : vector<32x2xf32>
    %33 = tpu.matmul %26, %32, %cst_19 {dimension_numbers = #tpu.dot_dimension_numbers<[1], [0], [0], [1], [0, 0, 1, 1], [], []>} : vector<32x16xf32>, vector<16x2xf32>, vector<32x2xf32> -> vector<32x2xf32>
    %cst_20 = arith.constant dense<0.000000e+00> : vector<2xf32>
    %34 = vector.multi_reduction <add>, %32, %cst_20 [0] : vector<16x2xf32> to vector<2xf32>
    %35 = vector.shape_cast %34 : vector<2xf32> to vector<1x2xf32>
    %36 = arith.mulf %33, %0 : vector<32x2xf32>
    %cst_21 = arith.constant dense<0.000000e+00> : vector<32xf32>
    %37 = vector.multi_reduction <add>, %36, %cst_21 [1] : vector<32x2xf32> to vector<32xf32>
    %38 = vector.shape_cast %37 : vector<32xf32> to vector<32x1xf32>
    %39 = vector.broadcast %35 : vector<1x2xf32> to vector<32x2xf32>
    %40 = arith.mulf %0, %39 : vector<32x2xf32>
    %cst_22 = arith.constant dense<0.000000e+00> : vector<32xf32>
    %41 = vector.multi_reduction <add>, %40, %cst_22 [1] : vector<32x2xf32> to vector<32xf32>
    %42 = vector.shape_cast %41 : vector<32xf32> to vector<32x1xf32>
    %cst_23 = arith.constant 9.99999974E-6 : f32
    %43 = vector.broadcast %cst_23 : f32 to vector<32x1xf32>
    %44 = arith.addf %42, %43 : vector<32x1xf32>
    %45 = arith.divf %38, %44 : vector<32x1xf32>
    %c0_24 = arith.constant 0 : index
    %c0_25 = arith.constant 0 : index
    %46 = vector.load %arg5[%c0_24, %c0_25] : memref<16x32xf32, #tpu.memory_space<vmem>>, vector<16x32xf32>
    %cst_26 = arith.constant dense<0.000000e+00> : vector<16x1xf32>
    %47 = tpu.matmul %46, %45, %cst_26 {dimension_numbers = #tpu.dot_dimension_numbers<[1], [0], [0], [1], [0, 0, 1, 1], [], []>} : vector<16x32xf32>, vector<32x1xf32>, vector<16x1xf32> -> vector<16x1xf32>
    %c0_27 = arith.constant 0 : index
    %c0_28 = arith.constant 0 : index
    %48 = vector.load %arg6[%c0_27, %c0_28] : memref<16x1xf32, #tpu.memory_space<vmem>>, vector<16x1xf32>
    %49 = arith.addf %47, %48 : vector<16x1xf32>
    %50 = math.tanh %49 : vector<16x1xf32>
    %c0_29 = arith.constant 0 : index
    %c0_30 = arith.constant 0 : index
    %c0_31 = arith.constant 0 : index
    %51 = vector.load %arg8[%c0_29, %c0_30, %c0_31] : memref<2x16x1xf32, #tpu.memory_space<vmem>>, vector<1x16x1xf32>
    %52 = vector.shape_cast %51 : vector<1x16x1xf32> to vector<16x1xf32>
    %53 = vector.shape_cast %50 : vector<16x1xf32> to vector<1x16x1xf32>
    tpu.vector_store %arg8[%c0_29, %c0_30, %c0_31], %53 {strides = array<i32>} : memref<2x16x1xf32, #tpu.memory_space<vmem>>, vector<1x16x1xf32>,
    %c0_32 = arith.constant 0 : index
    %c0_33 = arith.constant 0 : index
    %54 = vector.load %arg4[%c0_32, %c0_33] : memref<32x576xbf16, #tpu.memory_space<vmem>>, vector<32x576xbf16>
    %c1 = arith.constant 1 : index
    %c0_34 = arith.constant 0 : index
    %c0_35 = arith.constant 0 : index
    %55 = vector.load %arg1[%c1, %c0_34, %c0_35] : memref<2x576x16xbf16, #tpu.memory_space<vmem>>, vector<1x576x16xbf16>
    %56 = vector.shape_cast %55 : vector<1x576x16xbf16> to vector<576x16xbf16>
    %cst_36 = arith.constant dense<0.000000e+00> : vector<32x16xf32>
    %57 = tpu.matmul %54, %56, %cst_36 {dimension_numbers = #tpu.dot_dimension_numbers<[1], [0], [0], [1], [0, 0, 1, 1], [], []>} : vector<32x576xbf16>, vector<576x16xbf16>, vector<32x16xf32> -> vector<32x16xf32>
    %cst_37 = arith.constant dense<0.000000e+00> : vector<32xf32>
    %58 = vector.multi_reduction <add>, %57, %cst_37 [1] : vector<32x16xf32> to vector<32xf32>
    %59 = vector.shape_cast %58 : vector<32xf32> to vector<32x1xf32>
    %cst_38 = arith.constant 6.250000e-02 : f32
    %60 = vector.broadcast %cst_38 : f32 to vector<32x1xf32>
    %61 = arith.mulf %59, %60 : vector<32x1xf32>
    %62 = arith.mulf %57, %57 : vector<32x16xf32>
    %cst_39 = arith.constant dense<0.000000e+00> : vector<32xf32>
    %63 = vector.multi_reduction <add>, %62, %cst_39 [1] : vector<32x16xf32> to vector<32xf32>
    %64 = vector.shape_cast %63 : vector<32xf32> to vector<32x1xf32>
    %cst_40 = arith.constant 6.250000e-02 : f32
    %65 = vector.broadcast %cst_40 : f32 to vector<32x1xf32>
    %66 = arith.mulf %64, %65 : vector<32x1xf32>
    %67 = arith.mulf %61, %61 : vector<32x1xf32>
    %68 = arith.subf %66, %67 : vector<32x1xf32>
    %cst_41 = arith.constant 0.000000e+00 : f32
    %69 = vector.broadcast %cst_41 : f32 to vector<32x1xf32>
    %70 = arith.maximumf %68, %69 : vector<32x1xf32>
    %71 = vector.broadcast %61 : vector<32x1xf32> to vector<32x16xf32>
    %72 = arith.subf %57, %71 : vector<32x16xf32>
    %cst_42 = arith.constant 9.99999974E-6 : f32
    %73 = vector.broadcast %cst_42 : f32 to vector<32x1xf32>
    %74 = arith.addf %70, %73 : vector<32x1xf32>
    %75 = math.rsqrt %74 : vector<32x1xf32>
    %76 = vector.broadcast %75 : vector<32x1xf32> to vector<32x16xf32>
    %77 = arith.mulf %72, %76 : vector<32x16xf32>
    %cst_43 = arith.constant 0.000000e+00 : f32
    %78 = vector.broadcast %cst_43 : f32 to vector<32x16xf32>
    %79 = arith.maximumf %77, %78 : vector<32x16xf32>
    %80 = arith.truncf %79 : vector<32x16xf32> to vector<32x16xbf16>
    %c1_44 = arith.constant 1 : index
    %c0_45 = arith.constant 0 : index
    %c0_46 = arith.constant 0 : index
    %81 = vector.load %arg7[%c1_44, %c0_45, %c0_46] : memref<2x32x16xbf16, #tpu.memory_space<vmem>>, vector<1x32x16xbf16>
    %82 = vector.shape_cast %81 : vector<1x32x16xbf16> to vector<32x16xbf16>
    %83 = vector.shape_cast %80 : vector<32x16xbf16> to vector<1x32x16xbf16>
    tpu.vector_store %arg7[%c1_44, %c0_45, %c0_46], %83 {strides = array<i32>} : memref<2x32x16xbf16, #tpu.memory_space<vmem>>, vector<1x32x16xbf16>,
    %c1_47 = arith.constant 1 : index
    %c0_48 = arith.constant 0 : index
    %c0_49 = arith.constant 0 : index
    %84 = vector.load %arg2[%c1_47, %c0_48, %c0_49] : memref<2x16x2xf32, #tpu.memory_space<vmem>>, vector<1x16x2xf32>
    %85 = vector.shape_cast %84 : vector<1x16x2xf32> to vector<16x2xf32>
    %cst_50 = arith.constant dense<0.000000e+00> : vector<32x2xf32>
    %86 = tpu.matmul %79, %85, %cst_50 {dimension_numbers = #tpu.dot_dimension_numbers<[1], [0], [0], [1], [0, 0, 1, 1], [], []>} : vector<32x16xf32>, vector<16x2xf32>, vector<32x2xf32> -> vector<32x2xf32>
    %cst_51 = arith.constant dense<0.000000e+00> : vector<2xf32>
    %87 = vector.multi_reduction <add>, %85, %cst_51 [0] : vector<16x2xf32> to vector<2xf32>
    %88 = vector.shape_cast %87 : vector<2xf32> to vector<1x2xf32>
    %89 = arith.mulf %86, %0 : vector<32x2xf32>
    %cst_52 = arith.constant dense<0.000000e+00> : vector<32xf32>
    %90 = vector.multi_reduction <add>, %89, %cst_52 [1] : vector<32x2xf32> to vector<32xf32>
    %91 = vector.shape_cast %90 : vector<32xf32> to vector<32x1xf32>
    %92 = vector.broadcast %88 : vector<1x2xf32> to vector<32x2xf32>
    %93 = arith.mulf %0, %92 : vector<32x2xf32>
    %cst_53 = arith.constant dense<0.000000e+00> : vector<32xf32>
    %94 = vector.multi_reduction <add>, %93, %cst_53 [1] : vector<32x2xf32> to vector<32xf32>
    %95 = vector.shape_cast %94 : vector<32xf32> to vector<32x1xf32>
    %cst_54 = arith.constant 9.99999974E-6 : f32
    %96 = vector.broadcast %cst_54 : f32 to vector<32x1xf32>
    %97 = arith.addf %95, %96 : vector<32x1xf32>
    %98 = arith.divf %91, %97 : vector<32x1xf32>
    %c0_55 = arith.constant 0 : index
    %c0_56 = arith.constant 0 : index
    %99 = vector.load %arg5[%c0_55, %c0_56] : memref<16x32xf32, #tpu.memory_space<vmem>>, vector<16x32xf32>
    %cst_57 = arith.constant dense<0.000000e+00> : vector<16x1xf32>
    %100 = tpu.matmul %99, %98, %cst_57 {dimension_numbers = #tpu.dot_dimension_numbers<[1], [0], [0], [1], [0, 0, 1, 1], [], []>} : vector<16x32xf32>, vector<32x1xf32>, vector<16x1xf32> -> vector<16x1xf32>
    %c0_58 = arith.constant 0 : index
    %c0_59 = arith.constant 0 : index
    %101 = vector.load %arg6[%c0_58, %c0_59] : memref<16x1xf32, #tpu.memory_space<vmem>>, vector<16x1xf32>
    %102 = arith.addf %100, %101 : vector<16x1xf32>
    %103 = math.tanh %102 : vector<16x1xf32>
    %c1_60 = arith.constant 1 : index
    %c0_61 = arith.constant 0 : index
    %c0_62 = arith.constant 0 : index
    %104 = vector.load %arg8[%c1_60, %c0_61, %c0_62] : memref<2x16x1xf32, #tpu.memory_space<vmem>>, vector<1x16x1xf32>
    %105 = vector.shape_cast %104 : vector<1x16x1xf32> to vector<16x1xf32>
    %106 = vector.shape_cast %103 : vector<16x1xf32> to vector<1x16x1xf32>
    tpu.vector_store %arg8[%c1_60, %c0_61, %c0_62], %106 {strides = array<i32>} : memref<2x16x1xf32, #tpu.memory_space<vmem>>, vector<1x16x1xf32>,
    return
  }
  func.func @transform_0(%arg0: i32) -> (i32, i32, i32) {
    %c0_i32 = arith.constant 0 : i32
    %c0_i32_0 = arith.constant 0 : i32
    %c0_i32_1 = arith.constant 0 : i32
    return %arg0, %c0_i32, %c0_i32_0 : i32, i32, i32
  }
  func.func @transform_1(%arg0: i32) -> (i32, i32, i32) {
    %c0_i32 = arith.constant 0 : i32
    %c0_i32_0 = arith.constant 0 : i32
    %c0_i32_1 = arith.constant 0 : i32
    return %arg0, %c0_i32, %c0_i32_0 : i32, i32, i32
  }
  func.func @transform_2(%arg0: i32) -> (i32, i32) {
    %c0_i32 = arith.constant 0 : i32
    %c0_i32_0 = arith.constant 0 : i32
    %c0_i32_1 = arith.constant 0 : i32
    return %c0_i32, %c0_i32_0 : i32, i32
  }
  func.func @transform_3(%arg0: i32) -> (i32, i32) {
    %c0_i32 = arith.constant 0 : i32
    %c0_i32_0 = arith.constant 0 : i32
    %c0_i32_1 = arith.constant 0 : i32
    return %c0_i32, %c0_i32_0 : i32, i32
  }
  func.func @transform_4(%arg0: i32) -> (i32, i32) {
    %c0_i32 = arith.constant 0 : i32
    %c0_i32_0 = arith.constant 0 : i32
    %c0_i32_1 = arith.constant 0 : i32
    return %c0_i32, %c0_i32_0 : i32, i32
  }
  func.func @transform_5(%arg0: i32) -> (i32, i32) {
    %c0_i32 = arith.constant 0 : i32
    %c0_i32_0 = arith.constant 0 : i32
    %c0_i32_1 = arith.constant 0 : i32
    return %c0_i32, %c0_i32_0 : i32, i32
  }
  func.func @transform_6(%arg0: i32) -> (i32, i32, i32) {
    %c0_i32 = arith.constant 0 : i32
    %c0_i32_0 = arith.constant 0 : i32
    %c0_i32_1 = arith.constant 0 : i32
    return %arg0, %c0_i32, %c0_i32_0 : i32, i32, i32
  }
  func.func @transform_7(%arg0: i32) -> (i32, i32, i32) {
    %c0_i32 = arith.constant 0 : i32
    %c0_i32_0 = arith.constant 0 : i32
    %c0_i32_1 = arith.constant 0 : i32
    return %arg0, %c0_i32, %c0_i32_0 : i32, i32, i32
  }
}

module attributes {stable_mosaic.version = 11 : i64} {
  func.func @dec_stage_kernel_skip(%arg0: i32, %arg1: memref<2x288x64xbf16, #tpu.memory_space<vmem>>, %arg2: memref<2x288x64xbf16, #tpu.memory_space<vmem>>, %arg3: memref<2x64x2xf32, #tpu.memory_space<vmem>>, %arg4: memref<16x2xf32, #tpu.memory_space<vmem>>, %arg5: memref<16x288xbf16, #tpu.memory_space<vmem>>, %arg6: memref<16x288xbf16, #tpu.memory_space<vmem>>, %arg7: memref<16x16xf32, #tpu.memory_space<vmem>>, %arg8: memref<16x1xf32, #tpu.memory_space<vmem>>, %arg9: memref<2x16x64xbf16, #tpu.memory_space<vmem>>, %arg10: memref<2x16x1xf32, #tpu.memory_space<vmem>>) attributes {dimension_semantics = [#tpu.dimension_semantics<arbitrary>], iteration_bounds = array<i64: 1>, scalar_prefetch = 0 : i64, scratch_operands = 0 : i64, tpu.core_type = #tpu.core_type<tc>, window_params = [{transform_indices = @transform_0, window_bounds = array<i64: 2, 288, 64>}, {transform_indices = @transform_1, window_bounds = array<i64: 2, 288, 64>}, {transform_indices = @transform_2, window_bounds = array<i64: 2, 64, 2>}, {pipeline_mode = #tpu.pipeline_mode<synchronous>, transform_indices = @transform_3, window_bounds = array<i64: 16, 2>}, {pipeline_mode = #tpu.pipeline_mode<synchronous>, transform_indices = @transform_4, window_bounds = array<i64: 16, 288>}, {pipeline_mode = #tpu.pipeline_mode<synchronous>, transform_indices = @transform_5, window_bounds = array<i64: 16, 288>}, {pipeline_mode = #tpu.pipeline_mode<synchronous>, transform_indices = @transform_6, window_bounds = array<i64: 16, 16>}, {pipeline_mode = #tpu.pipeline_mode<synchronous>, transform_indices = @transform_7, window_bounds = array<i64: 16, 1>}, {transform_indices = @transform_8, window_bounds = array<i64: 2, 16, 64>}, {transform_indices = @transform_9, window_bounds = array<i64: 2, 16, 1>}]} {
    %c0 = arith.constant 0 : index
    %c0_0 = arith.constant 0 : index
    %0 = vector.load %arg4[%c0, %c0_0] : memref<16x2xf32, #tpu.memory_space<vmem>>, vector<16x2xf32>
    %c0_1 = arith.constant 0 : index
    %c0_2 = arith.constant 0 : index
    %1 = vector.load %arg5[%c0_1, %c0_2] : memref<16x288xbf16, #tpu.memory_space<vmem>>, vector<16x288xbf16>
    %c0_3 = arith.constant 0 : index
    %c0_4 = arith.constant 0 : index
    %c0_5 = arith.constant 0 : index
    %2 = vector.load %arg1[%c0_3, %c0_4, %c0_5] : memref<2x288x64xbf16, #tpu.memory_space<vmem>>, vector<1x288x64xbf16>
    %3 = vector.shape_cast %2 : vector<1x288x64xbf16> to vector<288x64xbf16>
    %cst = arith.constant dense<0.000000e+00> : vector<16x64xf32>
    %4 = tpu.matmul %1, %3, %cst {dimension_numbers = #tpu.dot_dimension_numbers<[1], [0], [0], [1], [0, 0, 1, 1], [], []>} : vector<16x288xbf16>, vector<288x64xbf16>, vector<16x64xf32> -> vector<16x64xf32>
    %c0_6 = arith.constant 0 : index
    %c0_7 = arith.constant 0 : index
    %5 = vector.load %arg6[%c0_6, %c0_7] : memref<16x288xbf16, #tpu.memory_space<vmem>>, vector<16x288xbf16>
    %c0_8 = arith.constant 0 : index
    %c0_9 = arith.constant 0 : index
    %c0_10 = arith.constant 0 : index
    %6 = vector.load %arg2[%c0_8, %c0_9, %c0_10] : memref<2x288x64xbf16, #tpu.memory_space<vmem>>, vector<1x288x64xbf16>
    %7 = vector.shape_cast %6 : vector<1x288x64xbf16> to vector<288x64xbf16>
    %cst_11 = arith.constant dense<0.000000e+00> : vector<16x64xf32>
    %8 = tpu.matmul %5, %7, %cst_11 {dimension_numbers = #tpu.dot_dimension_numbers<[1], [0], [0], [1], [0, 0, 1, 1], [], []>} : vector<16x288xbf16>, vector<288x64xbf16>, vector<16x64xf32> -> vector<16x64xf32>
    %9 = arith.addf %4, %8 : vector<16x64xf32>
    %cst_12 = arith.constant dense<0.000000e+00> : vector<16xf32>
    %10 = vector.multi_reduction <add>, %9, %cst_12 [1] : vector<16x64xf32> to vector<16xf32>
    %11 = vector.shape_cast %10 : vector<16xf32> to vector<16x1xf32>
    %cst_13 = arith.constant 1.562500e-02 : f32
    %12 = vector.broadcast %cst_13 : f32 to vector<16x1xf32>
    %13 = arith.mulf %11, %12 : vector<16x1xf32>
    %14 = arith.mulf %9, %9 : vector<16x64xf32>
    %cst_14 = arith.constant dense<0.000000e+00> : vector<16xf32>
    %15 = vector.multi_reduction <add>, %14, %cst_14 [1] : vector<16x64xf32> to vector<16xf32>
    %16 = vector.shape_cast %15 : vector<16xf32> to vector<16x1xf32>
    %cst_15 = arith.constant 1.562500e-02 : f32
    %17 = vector.broadcast %cst_15 : f32 to vector<16x1xf32>
    %18 = arith.mulf %16, %17 : vector<16x1xf32>
    %19 = arith.mulf %13, %13 : vector<16x1xf32>
    %20 = arith.subf %18, %19 : vector<16x1xf32>
    %cst_16 = arith.constant 0.000000e+00 : f32
    %21 = vector.broadcast %cst_16 : f32 to vector<16x1xf32>
    %22 = arith.maximumf %20, %21 : vector<16x1xf32>
    %23 = vector.broadcast %13 : vector<16x1xf32> to vector<16x64xf32>
    %24 = arith.subf %9, %23 : vector<16x64xf32>
    %cst_17 = arith.constant 9.99999974E-6 : f32
    %25 = vector.broadcast %cst_17 : f32 to vector<16x1xf32>
    %26 = arith.addf %22, %25 : vector<16x1xf32>
    %27 = math.rsqrt %26 : vector<16x1xf32>
    %28 = vector.broadcast %27 : vector<16x1xf32> to vector<16x64xf32>
    %29 = arith.mulf %24, %28 : vector<16x64xf32>
    %cst_18 = arith.constant 0.000000e+00 : f32
    %30 = vector.broadcast %cst_18 : f32 to vector<16x64xf32>
    %31 = arith.maximumf %29, %30 : vector<16x64xf32>
    %32 = arith.truncf %31 : vector<16x64xf32> to vector<16x64xbf16>
    %c0_19 = arith.constant 0 : index
    %c0_20 = arith.constant 0 : index
    %c0_21 = arith.constant 0 : index
    %33 = vector.load %arg9[%c0_19, %c0_20, %c0_21] : memref<2x16x64xbf16, #tpu.memory_space<vmem>>, vector<1x16x64xbf16>
    %34 = vector.shape_cast %33 : vector<1x16x64xbf16> to vector<16x64xbf16>
    %35 = vector.shape_cast %32 : vector<16x64xbf16> to vector<1x16x64xbf16>
    tpu.vector_store %arg9[%c0_19, %c0_20, %c0_21], %35 {strides = array<i32>} : memref<2x16x64xbf16, #tpu.memory_space<vmem>>, vector<1x16x64xbf16>,
    %c0_22 = arith.constant 0 : index
    %c0_23 = arith.constant 0 : index
    %c0_24 = arith.constant 0 : index
    %36 = vector.load %arg3[%c0_22, %c0_23, %c0_24] : memref<2x64x2xf32, #tpu.memory_space<vmem>>, vector<1x64x2xf32>
    %37 = vector.shape_cast %36 : vector<1x64x2xf32> to vector<64x2xf32>
    %cst_25 = arith.constant dense<0.000000e+00> : vector<16x2xf32>
    %38 = tpu.matmul %31, %37, %cst_25 {dimension_numbers = #tpu.dot_dimension_numbers<[1], [0], [0], [1], [0, 0, 1, 1], [], []>} : vector<16x64xf32>, vector<64x2xf32>, vector<16x2xf32> -> vector<16x2xf32>
    %cst_26 = arith.constant dense<0.000000e+00> : vector<2xf32>
    %39 = vector.multi_reduction <add>, %37, %cst_26 [0] : vector<64x2xf32> to vector<2xf32>
    %40 = vector.shape_cast %39 : vector<2xf32> to vector<1x2xf32>
    %41 = arith.mulf %38, %0 : vector<16x2xf32>
    %cst_27 = arith.constant dense<0.000000e+00> : vector<16xf32>
    %42 = vector.multi_reduction <add>, %41, %cst_27 [1] : vector<16x2xf32> to vector<16xf32>
    %43 = vector.shape_cast %42 : vector<16xf32> to vector<16x1xf32>
    %44 = vector.broadcast %40 : vector<1x2xf32> to vector<16x2xf32>
    %45 = arith.mulf %0, %44 : vector<16x2xf32>
    %cst_28 = arith.constant dense<0.000000e+00> : vector<16xf32>
    %46 = vector.multi_reduction <add>, %45, %cst_28 [1] : vector<16x2xf32> to vector<16xf32>
    %47 = vector.shape_cast %46 : vector<16xf32> to vector<16x1xf32>
    %cst_29 = arith.constant 9.99999974E-6 : f32
    %48 = vector.broadcast %cst_29 : f32 to vector<16x1xf32>
    %49 = arith.addf %47, %48 : vector<16x1xf32>
    %50 = arith.divf %43, %49 : vector<16x1xf32>
    %c0_30 = arith.constant 0 : index
    %c0_31 = arith.constant 0 : index
    %51 = vector.load %arg7[%c0_30, %c0_31] : memref<16x16xf32, #tpu.memory_space<vmem>>, vector<16x16xf32>
    %cst_32 = arith.constant dense<0.000000e+00> : vector<16x1xf32>
    %52 = tpu.matmul %51, %50, %cst_32 {dimension_numbers = #tpu.dot_dimension_numbers<[1], [0], [0], [1], [0, 0, 1, 1], [], []>} : vector<16x16xf32>, vector<16x1xf32>, vector<16x1xf32> -> vector<16x1xf32>
    %c0_33 = arith.constant 0 : index
    %c0_34 = arith.constant 0 : index
    %53 = vector.load %arg8[%c0_33, %c0_34] : memref<16x1xf32, #tpu.memory_space<vmem>>, vector<16x1xf32>
    %54 = arith.addf %52, %53 : vector<16x1xf32>
    %55 = math.tanh %54 : vector<16x1xf32>
    %c0_35 = arith.constant 0 : index
    %c0_36 = arith.constant 0 : index
    %c0_37 = arith.constant 0 : index
    %56 = vector.load %arg10[%c0_35, %c0_36, %c0_37] : memref<2x16x1xf32, #tpu.memory_space<vmem>>, vector<1x16x1xf32>
    %57 = vector.shape_cast %56 : vector<1x16x1xf32> to vector<16x1xf32>
    %58 = vector.shape_cast %55 : vector<16x1xf32> to vector<1x16x1xf32>
    tpu.vector_store %arg10[%c0_35, %c0_36, %c0_37], %58 {strides = array<i32>} : memref<2x16x1xf32, #tpu.memory_space<vmem>>, vector<1x16x1xf32>,
    %c0_38 = arith.constant 0 : index
    %c0_39 = arith.constant 0 : index
    %59 = vector.load %arg5[%c0_38, %c0_39] : memref<16x288xbf16, #tpu.memory_space<vmem>>, vector<16x288xbf16>
    %c1 = arith.constant 1 : index
    %c0_40 = arith.constant 0 : index
    %c0_41 = arith.constant 0 : index
    %60 = vector.load %arg1[%c1, %c0_40, %c0_41] : memref<2x288x64xbf16, #tpu.memory_space<vmem>>, vector<1x288x64xbf16>
    %61 = vector.shape_cast %60 : vector<1x288x64xbf16> to vector<288x64xbf16>
    %cst_42 = arith.constant dense<0.000000e+00> : vector<16x64xf32>
    %62 = tpu.matmul %59, %61, %cst_42 {dimension_numbers = #tpu.dot_dimension_numbers<[1], [0], [0], [1], [0, 0, 1, 1], [], []>} : vector<16x288xbf16>, vector<288x64xbf16>, vector<16x64xf32> -> vector<16x64xf32>
    %c0_43 = arith.constant 0 : index
    %c0_44 = arith.constant 0 : index
    %63 = vector.load %arg6[%c0_43, %c0_44] : memref<16x288xbf16, #tpu.memory_space<vmem>>, vector<16x288xbf16>
    %c1_45 = arith.constant 1 : index
    %c0_46 = arith.constant 0 : index
    %c0_47 = arith.constant 0 : index
    %64 = vector.load %arg2[%c1_45, %c0_46, %c0_47] : memref<2x288x64xbf16, #tpu.memory_space<vmem>>, vector<1x288x64xbf16>
    %65 = vector.shape_cast %64 : vector<1x288x64xbf16> to vector<288x64xbf16>
    %cst_48 = arith.constant dense<0.000000e+00> : vector<16x64xf32>
    %66 = tpu.matmul %63, %65, %cst_48 {dimension_numbers = #tpu.dot_dimension_numbers<[1], [0], [0], [1], [0, 0, 1, 1], [], []>} : vector<16x288xbf16>, vector<288x64xbf16>, vector<16x64xf32> -> vector<16x64xf32>
    %67 = arith.addf %62, %66 : vector<16x64xf32>
    %cst_49 = arith.constant dense<0.000000e+00> : vector<16xf32>
    %68 = vector.multi_reduction <add>, %67, %cst_49 [1] : vector<16x64xf32> to vector<16xf32>
    %69 = vector.shape_cast %68 : vector<16xf32> to vector<16x1xf32>
    %cst_50 = arith.constant 1.562500e-02 : f32
    %70 = vector.broadcast %cst_50 : f32 to vector<16x1xf32>
    %71 = arith.mulf %69, %70 : vector<16x1xf32>
    %72 = arith.mulf %67, %67 : vector<16x64xf32>
    %cst_51 = arith.constant dense<0.000000e+00> : vector<16xf32>
    %73 = vector.multi_reduction <add>, %72, %cst_51 [1] : vector<16x64xf32> to vector<16xf32>
    %74 = vector.shape_cast %73 : vector<16xf32> to vector<16x1xf32>
    %cst_52 = arith.constant 1.562500e-02 : f32
    %75 = vector.broadcast %cst_52 : f32 to vector<16x1xf32>
    %76 = arith.mulf %74, %75 : vector<16x1xf32>
    %77 = arith.mulf %71, %71 : vector<16x1xf32>
    %78 = arith.subf %76, %77 : vector<16x1xf32>
    %cst_53 = arith.constant 0.000000e+00 : f32
    %79 = vector.broadcast %cst_53 : f32 to vector<16x1xf32>
    %80 = arith.maximumf %78, %79 : vector<16x1xf32>
    %81 = vector.broadcast %71 : vector<16x1xf32> to vector<16x64xf32>
    %82 = arith.subf %67, %81 : vector<16x64xf32>
    %cst_54 = arith.constant 9.99999974E-6 : f32
    %83 = vector.broadcast %cst_54 : f32 to vector<16x1xf32>
    %84 = arith.addf %80, %83 : vector<16x1xf32>
    %85 = math.rsqrt %84 : vector<16x1xf32>
    %86 = vector.broadcast %85 : vector<16x1xf32> to vector<16x64xf32>
    %87 = arith.mulf %82, %86 : vector<16x64xf32>
    %cst_55 = arith.constant 0.000000e+00 : f32
    %88 = vector.broadcast %cst_55 : f32 to vector<16x64xf32>
    %89 = arith.maximumf %87, %88 : vector<16x64xf32>
    %90 = arith.truncf %89 : vector<16x64xf32> to vector<16x64xbf16>
    %c1_56 = arith.constant 1 : index
    %c0_57 = arith.constant 0 : index
    %c0_58 = arith.constant 0 : index
    %91 = vector.load %arg9[%c1_56, %c0_57, %c0_58] : memref<2x16x64xbf16, #tpu.memory_space<vmem>>, vector<1x16x64xbf16>
    %92 = vector.shape_cast %91 : vector<1x16x64xbf16> to vector<16x64xbf16>
    %93 = vector.shape_cast %90 : vector<16x64xbf16> to vector<1x16x64xbf16>
    tpu.vector_store %arg9[%c1_56, %c0_57, %c0_58], %93 {strides = array<i32>} : memref<2x16x64xbf16, #tpu.memory_space<vmem>>, vector<1x16x64xbf16>,
    %c1_59 = arith.constant 1 : index
    %c0_60 = arith.constant 0 : index
    %c0_61 = arith.constant 0 : index
    %94 = vector.load %arg3[%c1_59, %c0_60, %c0_61] : memref<2x64x2xf32, #tpu.memory_space<vmem>>, vector<1x64x2xf32>
    %95 = vector.shape_cast %94 : vector<1x64x2xf32> to vector<64x2xf32>
    %cst_62 = arith.constant dense<0.000000e+00> : vector<16x2xf32>
    %96 = tpu.matmul %89, %95, %cst_62 {dimension_numbers = #tpu.dot_dimension_numbers<[1], [0], [0], [1], [0, 0, 1, 1], [], []>} : vector<16x64xf32>, vector<64x2xf32>, vector<16x2xf32> -> vector<16x2xf32>
    %cst_63 = arith.constant dense<0.000000e+00> : vector<2xf32>
    %97 = vector.multi_reduction <add>, %95, %cst_63 [0] : vector<64x2xf32> to vector<2xf32>
    %98 = vector.shape_cast %97 : vector<2xf32> to vector<1x2xf32>
    %99 = arith.mulf %96, %0 : vector<16x2xf32>
    %cst_64 = arith.constant dense<0.000000e+00> : vector<16xf32>
    %100 = vector.multi_reduction <add>, %99, %cst_64 [1] : vector<16x2xf32> to vector<16xf32>
    %101 = vector.shape_cast %100 : vector<16xf32> to vector<16x1xf32>
    %102 = vector.broadcast %98 : vector<1x2xf32> to vector<16x2xf32>
    %103 = arith.mulf %0, %102 : vector<16x2xf32>
    %cst_65 = arith.constant dense<0.000000e+00> : vector<16xf32>
    %104 = vector.multi_reduction <add>, %103, %cst_65 [1] : vector<16x2xf32> to vector<16xf32>
    %105 = vector.shape_cast %104 : vector<16xf32> to vector<16x1xf32>
    %cst_66 = arith.constant 9.99999974E-6 : f32
    %106 = vector.broadcast %cst_66 : f32 to vector<16x1xf32>
    %107 = arith.addf %105, %106 : vector<16x1xf32>
    %108 = arith.divf %101, %107 : vector<16x1xf32>
    %c0_67 = arith.constant 0 : index
    %c0_68 = arith.constant 0 : index
    %109 = vector.load %arg7[%c0_67, %c0_68] : memref<16x16xf32, #tpu.memory_space<vmem>>, vector<16x16xf32>
    %cst_69 = arith.constant dense<0.000000e+00> : vector<16x1xf32>
    %110 = tpu.matmul %109, %108, %cst_69 {dimension_numbers = #tpu.dot_dimension_numbers<[1], [0], [0], [1], [0, 0, 1, 1], [], []>} : vector<16x16xf32>, vector<16x1xf32>, vector<16x1xf32> -> vector<16x1xf32>
    %c0_70 = arith.constant 0 : index
    %c0_71 = arith.constant 0 : index
    %111 = vector.load %arg8[%c0_70, %c0_71] : memref<16x1xf32, #tpu.memory_space<vmem>>, vector<16x1xf32>
    %112 = arith.addf %110, %111 : vector<16x1xf32>
    %113 = math.tanh %112 : vector<16x1xf32>
    %c1_72 = arith.constant 1 : index
    %c0_73 = arith.constant 0 : index
    %c0_74 = arith.constant 0 : index
    %114 = vector.load %arg10[%c1_72, %c0_73, %c0_74] : memref<2x16x1xf32, #tpu.memory_space<vmem>>, vector<1x16x1xf32>
    %115 = vector.shape_cast %114 : vector<1x16x1xf32> to vector<16x1xf32>
    %116 = vector.shape_cast %113 : vector<16x1xf32> to vector<1x16x1xf32>
    tpu.vector_store %arg10[%c1_72, %c0_73, %c0_74], %116 {strides = array<i32>} : memref<2x16x1xf32, #tpu.memory_space<vmem>>, vector<1x16x1xf32>,
    return
  }
  func.func @transform_0(%arg0: i32) -> (i32, i32, i32) {
    %c0_i32 = arith.constant 0 : i32
    %c0_i32_0 = arith.constant 0 : i32
    %c0_i32_1 = arith.constant 0 : i32
    return %arg0, %c0_i32, %c0_i32_0 : i32, i32, i32
  }
  func.func @transform_1(%arg0: i32) -> (i32, i32, i32) {
    %c0_i32 = arith.constant 0 : i32
    %c0_i32_0 = arith.constant 0 : i32
    %c0_i32_1 = arith.constant 0 : i32
    return %arg0, %c0_i32, %c0_i32_0 : i32, i32, i32
  }
  func.func @transform_2(%arg0: i32) -> (i32, i32, i32) {
    %c0_i32 = arith.constant 0 : i32
    %c0_i32_0 = arith.constant 0 : i32
    %c0_i32_1 = arith.constant 0 : i32
    return %arg0, %c0_i32, %c0_i32_0 : i32, i32, i32
  }
  func.func @transform_3(%arg0: i32) -> (i32, i32) {
    %c0_i32 = arith.constant 0 : i32
    %c0_i32_0 = arith.constant 0 : i32
    %c0_i32_1 = arith.constant 0 : i32
    return %c0_i32, %c0_i32_0 : i32, i32
  }
  func.func @transform_4(%arg0: i32) -> (i32, i32) {
    %c0_i32 = arith.constant 0 : i32
    %c0_i32_0 = arith.constant 0 : i32
    %c0_i32_1 = arith.constant 0 : i32
    return %c0_i32, %c0_i32_0 : i32, i32
  }
  func.func @transform_5(%arg0: i32) -> (i32, i32) {
    %c0_i32 = arith.constant 0 : i32
    %c0_i32_0 = arith.constant 0 : i32
    %c0_i32_1 = arith.constant 0 : i32
    return %c0_i32, %c0_i32_0 : i32, i32
  }
  func.func @transform_6(%arg0: i32) -> (i32, i32) {
    %c0_i32 = arith.constant 0 : i32
    %c0_i32_0 = arith.constant 0 : i32
    %c0_i32_1 = arith.constant 0 : i32
    return %c0_i32, %c0_i32_0 : i32, i32
  }
  func.func @transform_7(%arg0: i32) -> (i32, i32) {
    %c0_i32 = arith.constant 0 : i32
    %c0_i32_0 = arith.constant 0 : i32
    %c0_i32_1 = arith.constant 0 : i32
    return %c0_i32, %c0_i32_0 : i32, i32
  }
  func.func @transform_8(%arg0: i32) -> (i32, i32, i32) {
    %c0_i32 = arith.constant 0 : i32
    %c0_i32_0 = arith.constant 0 : i32
    %c0_i32_1 = arith.constant 0 : i32
    return %arg0, %c0_i32, %c0_i32_0 : i32, i32, i32
  }
  func.func @transform_9(%arg0: i32) -> (i32, i32, i32) {
    %c0_i32 = arith.constant 0 : i32
    %c0_i32_0 = arith.constant 0 : i32
    %c0_i32_1 = arith.constant 0 : i32
    return %arg0, %c0_i32, %c0_i32_0 : i32, i32, i32
  }
}

module attributes {stable_mosaic.version = 11 : i64} {
  func.func @dec_stage_kernel_skip(%arg0: i32, %arg1: memref<1x144x256xbf16, #tpu.memory_space<vmem>>, %arg2: memref<1x144x256xbf16, #tpu.memory_space<vmem>>, %arg3: memref<1x256x2xf32, #tpu.memory_space<vmem>>, %arg4: memref<8x2xf32, #tpu.memory_space<vmem>>, %arg5: memref<8x144xbf16, #tpu.memory_space<vmem>>, %arg6: memref<8x144xbf16, #tpu.memory_space<vmem>>, %arg7: memref<16x8xf32, #tpu.memory_space<vmem>>, %arg8: memref<16x1xf32, #tpu.memory_space<vmem>>, %arg9: memref<1x8x256xbf16, #tpu.memory_space<vmem>>, %arg10: memref<1x16x1xf32, #tpu.memory_space<vmem>>) attributes {dimension_semantics = [#tpu.dimension_semantics<parallel>], iteration_bounds = array<i64: 2>, scalar_prefetch = 0 : i64, scratch_operands = 0 : i64, tpu.core_type = #tpu.core_type<tc>, window_params = [{transform_indices = @transform_0, window_bounds = array<i64: 1, 144, 256>}, {transform_indices = @transform_1, window_bounds = array<i64: 1, 144, 256>}, {transform_indices = @transform_2, window_bounds = array<i64: 1, 256, 2>}, {pipeline_mode = #tpu.pipeline_mode<synchronous>, transform_indices = @transform_3, window_bounds = array<i64: 8, 2>}, {pipeline_mode = #tpu.pipeline_mode<synchronous>, transform_indices = @transform_4, window_bounds = array<i64: 8, 144>}, {pipeline_mode = #tpu.pipeline_mode<synchronous>, transform_indices = @transform_5, window_bounds = array<i64: 8, 144>}, {pipeline_mode = #tpu.pipeline_mode<synchronous>, transform_indices = @transform_6, window_bounds = array<i64: 16, 8>}, {pipeline_mode = #tpu.pipeline_mode<synchronous>, transform_indices = @transform_7, window_bounds = array<i64: 16, 1>}, {transform_indices = @transform_8, window_bounds = array<i64: 1, 8, 256>}, {transform_indices = @transform_9, window_bounds = array<i64: 1, 16, 1>}]} {
    %c0 = arith.constant 0 : index
    %c0_0 = arith.constant 0 : index
    %0 = vector.load %arg4[%c0, %c0_0] : memref<8x2xf32, #tpu.memory_space<vmem>>, vector<8x2xf32>
    %c0_1 = arith.constant 0 : index
    %c0_2 = arith.constant 0 : index
    %1 = vector.load %arg5[%c0_1, %c0_2] : memref<8x144xbf16, #tpu.memory_space<vmem>>, vector<8x144xbf16>
    %c0_3 = arith.constant 0 : index
    %c0_4 = arith.constant 0 : index
    %c0_5 = arith.constant 0 : index
    %2 = vector.load %arg1[%c0_3, %c0_4, %c0_5] : memref<1x144x256xbf16, #tpu.memory_space<vmem>>, vector<1x144x256xbf16>
    %3 = vector.shape_cast %2 : vector<1x144x256xbf16> to vector<144x256xbf16>
    %cst = arith.constant dense<0.000000e+00> : vector<8x256xf32>
    %4 = tpu.matmul %1, %3, %cst {dimension_numbers = #tpu.dot_dimension_numbers<[1], [0], [0], [1], [0, 0, 1, 1], [], []>} : vector<8x144xbf16>, vector<144x256xbf16>, vector<8x256xf32> -> vector<8x256xf32>
    %c0_6 = arith.constant 0 : index
    %c0_7 = arith.constant 0 : index
    %5 = vector.load %arg6[%c0_6, %c0_7] : memref<8x144xbf16, #tpu.memory_space<vmem>>, vector<8x144xbf16>
    %c0_8 = arith.constant 0 : index
    %c0_9 = arith.constant 0 : index
    %c0_10 = arith.constant 0 : index
    %6 = vector.load %arg2[%c0_8, %c0_9, %c0_10] : memref<1x144x256xbf16, #tpu.memory_space<vmem>>, vector<1x144x256xbf16>
    %7 = vector.shape_cast %6 : vector<1x144x256xbf16> to vector<144x256xbf16>
    %cst_11 = arith.constant dense<0.000000e+00> : vector<8x256xf32>
    %8 = tpu.matmul %5, %7, %cst_11 {dimension_numbers = #tpu.dot_dimension_numbers<[1], [0], [0], [1], [0, 0, 1, 1], [], []>} : vector<8x144xbf16>, vector<144x256xbf16>, vector<8x256xf32> -> vector<8x256xf32>
    %9 = arith.addf %4, %8 : vector<8x256xf32>
    %cst_12 = arith.constant dense<0.000000e+00> : vector<8xf32>
    %10 = vector.multi_reduction <add>, %9, %cst_12 [1] : vector<8x256xf32> to vector<8xf32>
    %11 = vector.shape_cast %10 : vector<8xf32> to vector<8x1xf32>
    %cst_13 = arith.constant 3.906250e-03 : f32
    %12 = vector.broadcast %cst_13 : f32 to vector<8x1xf32>
    %13 = arith.mulf %11, %12 : vector<8x1xf32>
    %14 = arith.mulf %9, %9 : vector<8x256xf32>
    %cst_14 = arith.constant dense<0.000000e+00> : vector<8xf32>
    %15 = vector.multi_reduction <add>, %14, %cst_14 [1] : vector<8x256xf32> to vector<8xf32>
    %16 = vector.shape_cast %15 : vector<8xf32> to vector<8x1xf32>
    %cst_15 = arith.constant 3.906250e-03 : f32
    %17 = vector.broadcast %cst_15 : f32 to vector<8x1xf32>
    %18 = arith.mulf %16, %17 : vector<8x1xf32>
    %19 = arith.mulf %13, %13 : vector<8x1xf32>
    %20 = arith.subf %18, %19 : vector<8x1xf32>
    %cst_16 = arith.constant 0.000000e+00 : f32
    %21 = vector.broadcast %cst_16 : f32 to vector<8x1xf32>
    %22 = arith.maximumf %20, %21 : vector<8x1xf32>
    %23 = vector.broadcast %13 : vector<8x1xf32> to vector<8x256xf32>
    %24 = arith.subf %9, %23 : vector<8x256xf32>
    %cst_17 = arith.constant 9.99999974E-6 : f32
    %25 = vector.broadcast %cst_17 : f32 to vector<8x1xf32>
    %26 = arith.addf %22, %25 : vector<8x1xf32>
    %27 = math.rsqrt %26 : vector<8x1xf32>
    %28 = vector.broadcast %27 : vector<8x1xf32> to vector<8x256xf32>
    %29 = arith.mulf %24, %28 : vector<8x256xf32>
    %cst_18 = arith.constant 0.000000e+00 : f32
    %30 = vector.broadcast %cst_18 : f32 to vector<8x256xf32>
    %31 = arith.maximumf %29, %30 : vector<8x256xf32>
    %32 = arith.truncf %31 : vector<8x256xf32> to vector<8x256xbf16>
    %c0_19 = arith.constant 0 : index
    %c0_20 = arith.constant 0 : index
    %c0_21 = arith.constant 0 : index
    %33 = vector.load %arg9[%c0_19, %c0_20, %c0_21] : memref<1x8x256xbf16, #tpu.memory_space<vmem>>, vector<1x8x256xbf16>
    %34 = vector.shape_cast %33 : vector<1x8x256xbf16> to vector<8x256xbf16>
    %35 = vector.shape_cast %32 : vector<8x256xbf16> to vector<1x8x256xbf16>
    tpu.vector_store %arg9[%c0_19, %c0_20, %c0_21], %35 {strides = array<i32>} : memref<1x8x256xbf16, #tpu.memory_space<vmem>>, vector<1x8x256xbf16>,
    %c0_22 = arith.constant 0 : index
    %c0_23 = arith.constant 0 : index
    %c0_24 = arith.constant 0 : index
    %36 = vector.load %arg3[%c0_22, %c0_23, %c0_24] : memref<1x256x2xf32, #tpu.memory_space<vmem>>, vector<1x256x2xf32>
    %37 = vector.shape_cast %36 : vector<1x256x2xf32> to vector<256x2xf32>
    %cst_25 = arith.constant dense<0.000000e+00> : vector<8x2xf32>
    %38 = tpu.matmul %31, %37, %cst_25 {dimension_numbers = #tpu.dot_dimension_numbers<[1], [0], [0], [1], [0, 0, 1, 1], [], []>} : vector<8x256xf32>, vector<256x2xf32>, vector<8x2xf32> -> vector<8x2xf32>
    %cst_26 = arith.constant dense<0.000000e+00> : vector<2xf32>
    %39 = vector.multi_reduction <add>, %37, %cst_26 [0] : vector<256x2xf32> to vector<2xf32>
    %40 = vector.shape_cast %39 : vector<2xf32> to vector<1x2xf32>
    %41 = arith.mulf %38, %0 : vector<8x2xf32>
    %cst_27 = arith.constant dense<0.000000e+00> : vector<8xf32>
    %42 = vector.multi_reduction <add>, %41, %cst_27 [1] : vector<8x2xf32> to vector<8xf32>
    %43 = vector.shape_cast %42 : vector<8xf32> to vector<8x1xf32>
    %44 = vector.broadcast %40 : vector<1x2xf32> to vector<8x2xf32>
    %45 = arith.mulf %0, %44 : vector<8x2xf32>
    %cst_28 = arith.constant dense<0.000000e+00> : vector<8xf32>
    %46 = vector.multi_reduction <add>, %45, %cst_28 [1] : vector<8x2xf32> to vector<8xf32>
    %47 = vector.shape_cast %46 : vector<8xf32> to vector<8x1xf32>
    %cst_29 = arith.constant 9.99999974E-6 : f32
    %48 = vector.broadcast %cst_29 : f32 to vector<8x1xf32>
    %49 = arith.addf %47, %48 : vector<8x1xf32>
    %50 = arith.divf %43, %49 : vector<8x1xf32>
    %c0_30 = arith.constant 0 : index
    %c0_31 = arith.constant 0 : index
    %51 = vector.load %arg7[%c0_30, %c0_31] : memref<16x8xf32, #tpu.memory_space<vmem>>, vector<16x8xf32>
    %cst_32 = arith.constant dense<0.000000e+00> : vector<16x1xf32>
    %52 = tpu.matmul %51, %50, %cst_32 {dimension_numbers = #tpu.dot_dimension_numbers<[1], [0], [0], [1], [0, 0, 1, 1], [], []>} : vector<16x8xf32>, vector<8x1xf32>, vector<16x1xf32> -> vector<16x1xf32>
    %c0_33 = arith.constant 0 : index
    %c0_34 = arith.constant 0 : index
    %53 = vector.load %arg8[%c0_33, %c0_34] : memref<16x1xf32, #tpu.memory_space<vmem>>, vector<16x1xf32>
    %54 = arith.addf %52, %53 : vector<16x1xf32>
    %55 = math.tanh %54 : vector<16x1xf32>
    %c0_35 = arith.constant 0 : index
    %c0_36 = arith.constant 0 : index
    %c0_37 = arith.constant 0 : index
    %56 = vector.load %arg10[%c0_35, %c0_36, %c0_37] : memref<1x16x1xf32, #tpu.memory_space<vmem>>, vector<1x16x1xf32>
    %57 = vector.shape_cast %56 : vector<1x16x1xf32> to vector<16x1xf32>
    %58 = vector.shape_cast %55 : vector<16x1xf32> to vector<1x16x1xf32>
    tpu.vector_store %arg10[%c0_35, %c0_36, %c0_37], %58 {strides = array<i32>} : memref<1x16x1xf32, #tpu.memory_space<vmem>>, vector<1x16x1xf32>,
    return
  }
  func.func @transform_0(%arg0: i32) -> (i32, i32, i32) {
    %c0_i32 = arith.constant 0 : i32
    %c0_i32_0 = arith.constant 0 : i32
    %c0_i32_1 = arith.constant 0 : i32
    return %arg0, %c0_i32, %c0_i32_0 : i32, i32, i32
  }
  func.func @transform_1(%arg0: i32) -> (i32, i32, i32) {
    %c0_i32 = arith.constant 0 : i32
    %c0_i32_0 = arith.constant 0 : i32
    %c0_i32_1 = arith.constant 0 : i32
    return %arg0, %c0_i32, %c0_i32_0 : i32, i32, i32
  }
  func.func @transform_2(%arg0: i32) -> (i32, i32, i32) {
    %c0_i32 = arith.constant 0 : i32
    %c0_i32_0 = arith.constant 0 : i32
    %c0_i32_1 = arith.constant 0 : i32
    return %arg0, %c0_i32, %c0_i32_0 : i32, i32, i32
  }
  func.func @transform_3(%arg0: i32) -> (i32, i32) {
    %c0_i32 = arith.constant 0 : i32
    %c0_i32_0 = arith.constant 0 : i32
    %c0_i32_1 = arith.constant 0 : i32
    return %c0_i32, %c0_i32_0 : i32, i32
  }
  func.func @transform_4(%arg0: i32) -> (i32, i32) {
    %c0_i32 = arith.constant 0 : i32
    %c0_i32_0 = arith.constant 0 : i32
    %c0_i32_1 = arith.constant 0 : i32
    return %c0_i32, %c0_i32_0 : i32, i32
  }
  func.func @transform_5(%arg0: i32) -> (i32, i32) {
    %c0_i32 = arith.constant 0 : i32
    %c0_i32_0 = arith.constant 0 : i32
    %c0_i32_1 = arith.constant 0 : i32
    return %c0_i32, %c0_i32_0 : i32, i32
  }
  func.func @transform_6(%arg0: i32) -> (i32, i32) {
    %c0_i32 = arith.constant 0 : i32
    %c0_i32_0 = arith.constant 0 : i32
    %c0_i32_1 = arith.constant 0 : i32
    return %c0_i32, %c0_i32_0 : i32, i32
  }
  func.func @transform_7(%arg0: i32) -> (i32, i32) {
    %c0_i32 = arith.constant 0 : i32
    %c0_i32_0 = arith.constant 0 : i32
    %c0_i32_1 = arith.constant 0 : i32
    return %c0_i32, %c0_i32_0 : i32, i32
  }
  func.func @transform_8(%arg0: i32) -> (i32, i32, i32) {
    %c0_i32 = arith.constant 0 : i32
    %c0_i32_0 = arith.constant 0 : i32
    %c0_i32_1 = arith.constant 0 : i32
    return %arg0, %c0_i32, %c0_i32_0 : i32, i32, i32
  }
  func.func @transform_9(%arg0: i32) -> (i32, i32, i32) {
    %c0_i32 = arith.constant 0 : i32
    %c0_i32_0 = arith.constant 0 : i32
    %c0_i32_1 = arith.constant 0 : i32
    return %arg0, %c0_i32, %c0_i32_0 : i32, i32, i32
  }
}

</mosaic_0001>

<bundles_post_ra>
// kernel: _lambda_.8
= control target key start
LH: loop header
LB: loop body
LE: loop exit
PB: predicated region body
PF: predicated region fallthrough
CT: control target
= control target key end

     0   :  { %s678_s9 = smov 0   ;;  %s798_s0 = inlined_call_operand.vmem [shape: bf16[2,27,1024], index: 0, kind: input, shape index: {}]   ;;  %s799_s1 = inlined_call_operand.vmem [shape: bf16[4,27], index: 1, kind: input, shape index: {}]   ;;  %s800_s2 = inlined_call_operand.vmem [shape: bf16[2,4,1024], index: 2, kind: output, shape index: {}]  }
   0x1 LB: > { %s542_s10 = sadd.s32 4294967295, %s660_s9   ;;  %p546_p0 = scmp.ge.s32.totalorder %s660_s9, 1  ;;  %s660_s9 = sphi %s678_s9, %s12_s9  }
   0x2   : > { %p112_p1 = scmp.lt.s32.totalorder %s660_s9, 3 }
   0x4   : > { %p113_p2 = pnand %p546_p0, %p112_p1 }
   0x5   : > { %p134_p3 = scmp.lt.s32.totalorder (!%p113_p2), %s542_s10, 1 }
   0x6   : > { %116 = sbr.rel (%p113_p2) target bundleno = 343 (0x157), region = 28 }
   0xb   : > { %vm238_vm0 = vcmask 1044480   ;;  %s802_s10 = smov (!%p134_p3, %s542_s10), 1  ;;  %vm239_vm1 = vcmask 1045504   ;;  %v662_v0 = vmov 65535   ;;  %v145_v41 = vld [vmem:[%s799_s1] sm:$0x3] }
   0xc   : > { %v240_v1 = vsel %vm238_vm0, 4294967295, %v662_v0  ;;  %s625_s11 = sshll.u32 %s802_s10, 7  ;;  %vm234_vm2 = vcmask 220160   ;;  %vm370_vm3 = vcmask 1043456   ;;  %s626_s17 = sshll.u32 %s802_s10, 4  ;;  %vm467_vm7 = vcmask 1041408  }
   0xd   : > { %s692_s14 = scalar_lea.vmem %s798_s0, %s625_s11  ;;  %v241_v2 = vsel %vm239_vm1, %v240_v1, 0  ;;  %vm471_vm8 = vcmask 1045508   ;;  %s143_s20 = scalar_lea.vmem %s800_s2, %s626_s17 }
   0xe   : > { %v585_v3 = vld [vmem:[%s692_s14 + $0x40] sm:$0xf]  ;;  %v635_v5 = vld [vmem:[%s692_s14 + $0x44] sm:$0xf]  ;;  %v593_v8 = vld [vmem:[%s692_s14 + $0x48] sm:$0xf] }
   0xf   : > { %v639_v4 = vld [vmem:[%s692_s14 + $0x5c] sm:$0x30]  ;;  %v587_v7 = vld [vmem:[%s692_s14 + $0x60] sm:$0x30]  ;;  %v640_v9 = vld [vmem:[%s692_s14 + $0x64] sm:$0x30] }
  0x10   : > { %v586_v6 = vor.u32 %v639_v4, %v585_v3  ;;  %v590_v10 = vor.u32 %v635_v5, %v587_v7  ;;  %v594_v11 = vor.u32 %v640_v9, %v593_v8  ;;  %v636_v12 = vld [vmem:[%s692_s14 + $0x4c] sm:$0xf]  ;;  %v553_v14 = vld [vmem:[%s692_s14] sm:$0xf]  ;;  %v627_v18 = vld [vmem:[%s692_s14 + $0x4] sm:$0xf] }
  0x11   : > { %v595_v13 = vld [vmem:[%s692_s14 + $0x68] sm:$0x30]  ;;  %v631_v17 = vld [vmem:[%s692_s14 + $0x1c] sm:$0xf0]  ;;  %v555_v19 = vld [vmem:[%s692_s14 + $0x20] sm:$0xf0] }
  0x12   : > { %v243_v15 = vand.u32 %v586_v6, %v241_v2  ;;  %v598_v16 = vor.u32 %v636_v12, %v595_v13  ;;  %v246_v20 = vand.u32 %v590_v10, %v241_v2  ;;  %v249_v21 = vand.u32 %v594_v11, %v241_v2  ;;  %v561_v22 = vld [vmem:[%s692_s14 + $0x8] sm:$0xf]  ;;  %v628_v24 = vld [vmem:[%s692_s14 + $0xc] sm:$0xf]  ;;  %v609_v28 = vld [vmem:[%s692_s14 + $0x58] sm:$0xf] }
  0x13   : > { %v632_v23 = vld [vmem:[%s692_s14 + $0x24] sm:$0xf0]  ;;  %v554_v26 = vor.u32 %v631_v17, %v553_v14  ;;  %v563_v27 = vld [vmem:[%s692_s14 + $0x28] sm:$0xf0]  ;;  %v642_v29 = vld [vmem:[%s692_s14 + $0x74] sm:$0x30]  ;;  %v558_v30 = vor.u32 %v627_v18, %v555_v19 }
  0x14   : > { %272 = vmatpush.bf16.msra.mxu0 %v243_v15  ;;  %v252_v25 = vand.u32 %v598_v16, %v241_v2  ;;  %285 = vmatpush.bf16.msra.mxu1 %v246_v20  ;;  %v562_v31 = vor.u32 %v632_v23, %v561_v22  ;;  %v610_v32 = vor.u32 %v642_v29, %v609_v28  ;;  %v601_v33 = vld [vmem:[%s692_s14 + $0x50] sm:$0xf]  ;;  %v638_v35 = vld [vmem:[%s692_s14 + $0x5c] sm:$0xf]  ;;  %v637_v39 = vld [vmem:[%s692_s14 + $0x54] sm:$0xf] }
  0x15   : > { %298 = vmatpush.bf16.msra.mxu2 %v249_v21  ;;  %v641_v34 = vld [vmem:[%s692_s14 + $0x6c] sm:$0x30]  ;;  %v566_v36 = vor.u32 %v628_v24, %v563_v27  ;;  %v611_v38 = vld [vmem:[%s692_s14 + $0x78] sm:$0x30]  ;;  %v603_v40 = vld [vmem:[%s692_s14 + $0x70] sm:$0x30] }
  0x16   : > { %311 = vmatpush.bf16.msra.mxu3 %v252_v25  ;;  %v602_v37 = vor.u32 %v641_v34, %v601_v33  ;;  %v261_v42 = vand.u32 %v610_v32, %v241_v2  ;;  %v614_v43 = vor.u32 %v638_v35, %v611_v38  ;;  %v606_v44 = vor.u32 %v637_v39, %v603_v40  ;;  %v577_v45 = vld [vmem:[%s692_s14 + $0x18] sm:$0xf]  ;;  %v630_v47 = vld [vmem:[%s692_s14 + $0x1c] sm:$0xf]  ;;  %v569_v53 = vld [vmem:[%s692_s14 + $0x10] sm:$0xf] }
  0x17   : > { %v634_v46 = vld [vmem:[%s692_s14 + $0x34] sm:$0xf0]  ;;  %v579_v48 = vld [vmem:[%s692_s14 + $0x38] sm:$0xf0]  ;;  %v633_v54 = vld [vmem:[%s692_s14 + $0x2c] sm:$0xf0] }
  0x18   : > { %273 = vmatpush.bf16.msra.mxu0 %v554_v26  ;;  %286 = vmatpush.bf16.msra.mxu1 %v558_v30  ;;  %v255_v49 = vand.u32 %v602_v37, %v241_v2  ;;  %v264_v50 = vand.u32 %v614_v43, %v241_v2  ;;  %v258_v51 = vand.u32 %v606_v44, %v241_v2  ;;  %v629_v56 = vld [vmem:[%s692_s14 + $0x14] sm:$0xf] }
  0x19   : > { %299 = vmatpush.bf16.msra.mxu2 %v562_v31  ;;  %v578_v52 = vor.u32 %v634_v46, %v577_v45  ;;  %v582_v55 = vor.u32 %v630_v47, %v579_v48  ;;  %v571_v57 = vld [vmem:[%s692_s14 + $0x30] sm:$0xf0]  ;;  %v570_v58 = vor.u32 %v633_v54, %v569_v53 }
  0x1a   : > { %312 = vmatpush.bf16.msra.mxu3 %v566_v36  ;;  %v574_v59 = vor.u32 %v629_v56, %v571_v57 }
  0x1b   : > { %615 = vmatmul.msk.bf16.vlgmr.msra.gmra.mxu0 %vm234_vm2, %v145_v41  ;;  %616 = vmatmul.msk.bf16.vlgmr.msra.gmra.mxu1 %vm234_vm2, %v145_v41 }
  0x1c   : > { %617 = vmatmul.msk.bf16.vlgmr.msra.gmra.mxu2 %vm234_vm2, %v145_v41  ;;  %324 = vmatpush.bf16.msrb.mxu0 %v255_v49 }
  0x1d   : > { %350 = vmatpush.bf16.msrb.mxu2 %v261_v42  ;;  %618 = vmatmul.msk.bf16.vlgmr.msra.gmra.mxu3 %vm234_vm2, %v145_v41 }
  0x1e   : > { %363 = vmatpush.bf16.msrb.mxu3 %v264_v50  ;;  %337 = vmatpush.bf16.msrb.mxu1 %v258_v51 }
  0x20   : > { %325 = vmatpush.bf16.msrb.mxu0 %v570_v58 }
  0x21   : > { %351 = vmatpush.bf16.msrb.mxu2 %v578_v52 }
  0x22   : > { %364 = vmatpush.bf16.msrb.mxu3 %v582_v55  ;;  %338 = vmatpush.bf16.msrb.mxu1 %v574_v59 }
  0x2b   : > { %619 = vmatmul.msk.bf16.vlgmr.msrb.gmra.mxu0 %vm234_vm2, %v145_v41  ;;  %620 = vmatmul.msk.bf16.vlgmr.msrb.gmra.mxu1 %vm234_vm2, %v145_v41 }
  0x2c   : > { %621 = vmatmul.msk.bf16.vlgmr.msrb.gmra.mxu2 %vm234_vm2, %v145_v41 }
  0x2d   : > { %622 = vmatmul.msk.bf16.vlgmr.msrb.gmra.mxu3 %vm234_vm2, %v145_v41 }
  0x98   : > { %v737_v60 = vpop.f32.mrf.mxu0  ;;  %v739_v61 = vpop.f32.mrf.mxu1 }
  0x99   : > { %v371_v63 = vsel %vm370_vm3, %v737_v60, 0.0  ;;  %v372_v0 = vsel %vm370_vm3, %v739_v61, 0.0  ;;  %v389_v4 = vmul.f32 %v737_v60, %v737_v60  ;;  %v390_v5 = vmul.f32 %v739_v61, %v739_v61 }
  0x9a   : > { %v373_v7 = vadd.f32 %v372_v0, %v371_v63 }
  0x9b   : > { %v397_v10 = vsel %vm370_vm3, %v389_v4, 0.0  ;;  %v398_v11 = vsel %vm370_vm3, %v390_v5, 0.0 }
  0x9c   : > { %v399_v18 = vadd.f32 %v398_v11, %v397_v10 }
  0x9f   : > { %v741_v62 = vpop.f32.mrf.mxu2 }
  0xa0   : > { %v747_v1 = vpop.f32.mrf.mxu3  ;;  %v277_v2 = vpop.f32.mrf.mxu0  ;;  %v374_v6 = vsel %vm370_vm3, %v741_v62, 0.0  ;;  %v391_v8 = vmul.f32 %v741_v62, %v741_v62 }
  0xa1   : > { %v290_v3 = vpop.f32.mrf.mxu1  ;;  %v375_v9 = vadd.f32 %v374_v6, %v373_v7  ;;  %v376_v12 = vsel %vm370_vm3, %v747_v1, 0.0  ;;  %v392_v15 = vmul.f32 %v747_v1, %v747_v1 }
  0xa2   : > { %v400_v14 = vsel %vm370_vm3, %v391_v8, 0.0 }
  0xa3   : > { %v377_v19 = vadd.f32 %v376_v12, %v375_v9  ;;  %v401_v23 = vadd.f32 %v400_v14, %v399_v18  ;;  %v402_v25 = vsel %vm370_vm3, %v392_v15, 0.0 }
  0xa5   : > { %v403_v29 = vadd.f32 %v402_v25, %v401_v23 }
  0xa7   : > { %v303_v13 = vpop.f32.mrf.mxu2 }
  0xa8   : > { %v316_v16 = vpop.f32.mrf.mxu3  ;;  %v764_v17 = vpop.f32.mrf.mxu0 }
  0xa9   : > { %v378_v20 = vsel %vm370_vm3, %v764_v17, 0.0  ;;  %v768_v21 = vpop.f32.mrf.mxu1  ;;  %v393_v22 = vmul.f32 %v764_v17, %v764_v17 }
  0xaa   : > { %v379_v24 = vadd.f32 %v378_v20, %v377_v19  ;;  %v380_v26 = vsel %vm370_vm3, %v768_v21, 0.0  ;;  %v394_v28 = vmul.f32 %v768_v21, %v768_v21 }
  0xab   : > { %v404_v27 = vsel %vm370_vm3, %v393_v22, 0.0 }
  0xac   : > { %v381_v31 = vadd.f32 %v380_v26, %v379_v24  ;;  %v405_v36 = vadd.f32 %v404_v27, %v403_v29  ;;  %v406_v40 = vsel %vm370_vm3, %v394_v28, 0.0 }
  0xae   : > { %v407_v44 = vadd.f32 %v406_v40, %v405_v36 }
  0xaf   : > { %v353_v30 = vpop.f32.mrf.mxu2 }
  0xb0   : > { %v395_v32 = vmul.f32 %v353_v30, %v353_v30  ;;  %v366_v33 = vpop.f32.mrf.mxu3  ;;  %v329_v34 = vpop.f32.mrf.mxu0  ;;  %v382_v35 = vsel %vm370_vm3, %v353_v30, 0.0 }
  0xb1   : > { %v342_v37 = vpop.f32.mrf.mxu1  ;;  %v383_v38 = vadd.f32 %v382_v35, %v381_v31  ;;  %v384_v39 = vsel %vm370_vm3, %v366_v33, 0.0  ;;  %v396_v42 = vmul.f32 %v366_v33, %v366_v33 }
  0xb2   : > { %v408_v43 = vsel %vm370_vm3, %v395_v32, 0.0 }
  0xb3   : > { %v385_v41 = vadd.f32 %v384_v39, %v383_v38  ;;  %v409_v46 = vadd.f32 %v408_v43, %v407_v44  ;;  %v410_v48 = vsel %vm370_vm3, %v396_v42, 0.0 }
  0xb5   : > { %386 = vadd.xlane.f32.xlu0 %v385_v41  ;;  %v411_v49 = vadd.f32 %v410_v48, %v409_v46 }
  0xb7   : > { %v355_v45 = vpop.f32.mrf.mxu2 }
  0xb8   : > { %v368_v47 = vpop.f32.mrf.mxu3 }
  0xbd   : > { %412 = vadd.xlane.f32.xlu0 %v411_v49 }
 0x128   : > { %v387_v50 = vpop.xlane.xlu0 %386 }
 0x129   : > { %v388_v51 = vmul.f32 0.0009765625, %v387_v50 }
 0x12b   : > { %v415_v53 = vmul.f32 %v388_v51, %v388_v51  ;;  %v418_v3 = vsub.f32 %v737_v60, %v388_v51  ;;  %v419_v5 = vsub.f32 %v739_v61, %v388_v51  ;;  %v420_v6 = vsub.f32 %v741_v62, %v388_v51 }
 0x12c   : > { %v421_v7 = vsub.f32 %v747_v1, %v388_v51  ;;  %v422_v8 = vsub.f32 %v764_v17, %v388_v51  ;;  %v423_v9 = vsub.f32 %v768_v21, %v388_v51  ;;  %v424_v10 = vsub.f32 %v353_v30, %v388_v51 }
 0x12d   : > { %v425_v11 = vsub.f32 %v366_v33, %v388_v51 }
 0x130   : > { %v413_v52 = vpop.xlane.xlu0 %412 }
 0x131   : > { %v414_v54 = vmul.f32 0.0009765625, %v413_v52 }
 0x133   : > { %v416_v55 = vsub.f32 %v414_v54, %v415_v53 }
 0x135   : > { %v417_v56 = vmax.f32 %v416_v55, 0.0 }
 0x137   : > { %v426_v57 = vadd.f32 1e-05, %v417_v56 }
 0x139   : > { %652 = vrsqrt.f32 %v426_v57  ;;  %vm433_vm5 = vweird.f32 %v426_v57 }
 0x13f   : > { %v653_v58 = vpop.eup %652 }
 0x140   : > { %v428_v59 = vmul.f32 %v653_v58, %v426_v57  ;;  %vm434_vm4 = vweird.f32 %v653_v58 }
 0x141   : > { %vm435_vm6 = vmor %vm433_vm5, %vm434_vm4 }
 0x142   : > { %v429_v63 = vmul.f32 %v653_v58, %v428_v59 }
 0x144   : > { %v430_v0 = vmul.f32 0.5, %v429_v63 }
 0x146   : > { %v431_v2 = vsub.f32 1.5, %v430_v0 }
 0x148   : > { %v432_v4 = vmul.f32 %v653_v58, %v431_v2 }
 0x14a   : > { %v436_v12 = vsel %vm435_vm6, %v653_v58, %v432_v4 }
 0x14b   : > { %v437_v13 = vmul.f32 %v436_v12, %v418_v3  ;;  %v438_v14 = vmul.f32 %v436_v12, %v419_v5  ;;  %v439_v60 = vmul.f32 %v436_v12, %v420_v6  ;;  %v440_v15 = vmul.f32 %v436_v12, %v421_v7 }
 0x14c   : > { %v441_v16 = vmul.f32 %v436_v12, %v422_v8  ;;  %v442_v18 = vmul.f32 %v436_v12, %v423_v9  ;;  %v443_v61 = vmul.f32 %v436_v12, %v424_v10  ;;  %v444_v19 = vmul.f32 %v436_v12, %v425_v11 }
 0x14d   : > { %v445_v62 = vmax.f32 %v437_v13, 0.0  ;;  %v446_v20 = vmax.f32 %v438_v14, 0.0  ;;  %v447_v1 = vmax.f32 %v439_v60, 0.0  ;;  %v448_v22 = vmax.f32 %v440_v15, 0.0 }
 0x14e   : > { %v449_v17 = vmax.f32 %v441_v16, 0.0  ;;  %v450_v23 = vmax.f32 %v442_v18, 0.0  ;;  %v451_v24 = vmax.f32 %v443_v61, 0.0  ;;  %v452_v21 = vmax.f32 %v444_v19, 0.0 }
 0x14f   : > { %v453_v25 = vpack.c.bf16 %v446_v20, %v445_v62  ;;  %v454_v26 = vpack.c.bf16 %v448_v22, %v447_v1 }
 0x150   : > { %v455_v27 = vpack.c.bf16 %v450_v23, %v449_v17  ;;  %v456_v28 = vpack.c.bf16 %v452_v21, %v451_v24 }
 0x151   : > { %v461_v29 = vrot.slane %v453_v25, 2  ;;  %v462_v30 = vrot.slane %v454_v26, 4  ;;  %v463_v31 = vrot.slane %v454_v26, 6 }
 0x152   : > { %v464_v32 = vrot.slane %v455_v27, 2  ;;  %v465_v33 = vrot.slane %v456_v28, 4  ;;  %v466_v34 = vrot.slane %v456_v28, 6 }
 0x153   : > { %v470_v35 = vsel %vm467_vm7, %v453_v25, %v461_v29  ;;  %v474_v36 = vsel %vm471_vm8, %v462_v30, %v463_v31 }
 0x154   : > { %v475_v37 = vsel %vm370_vm3, %v470_v35, %v474_v36  ;;  %v478_v38 = vsel %vm467_vm7, %v455_v27, %v464_v32  ;;  %v481_v39 = vsel %vm471_vm8, %v465_v33, %v466_v34 }
 0x155   : > { %v482_v40 = vsel %vm370_vm3, %v478_v38, %v481_v39  ;;  %485 = vst [vmem:[%s143_s20] sm:$0xff] %v475_v37 }
 0x156   : > { %486 = vst [vmem:[%s143_s20 + $0x8] sm:$0xff] %v482_v40 }
 0x157 PF: > { %s12_s9 = sadd.s32 1, %s660_s9  }
 0x158   : > { %p9_p4 = scmp.ge.s32.totalorder %s12_s9, 4  }
 0x15a   :  { %11 = sbr.rel (!%p9_p4) target bundleno = 1 (0x1), region = 58 }

// kernel: _lambda_.9
= control target key start
LH: loop header
LB: loop body
LE: loop exit
PB: predicated region body
PF: predicated region fallthrough
CT: control target
= control target key end

     0   :  { %s367_s9 = smov 0   ;;  %s391_s0 = inlined_call_operand.vmem [shape: bf16[2,36,256], index: 0, kind: input, shape index: {}]   ;;  %s392_s1 = inlined_call_operand.vmem [shape: bf16[8,36], index: 1, kind: input, shape index: {}]   ;;  %s393_s2 = inlined_call_operand.vmem [shape: bf16[2,8,256], index: 2, kind: output, shape index: {}]  }
   0x1 LB: > { %s300_s10 = sadd.s32 4294967295, %s350_s9   ;;  %p304_p0 = scmp.ge.s32.totalorder %s350_s9, 1  ;;  %s350_s9 = sphi %s367_s9, %s12_s9  }
   0x2   : > { %p112_p1 = scmp.lt.s32.totalorder %s350_s9, 3 }
   0x4   : > { %p113_p2 = pnand %p304_p0, %p112_p1 }
   0x5   : > { %p134_p3 = scmp.lt.s32.totalorder (!%p113_p2), %s300_s10, 1 }
   0x6   : > { %116 = sbr.rel (%p113_p2) target bundleno = 317 (0x13d), region = 28 }
   0xb   : > { %s395_s10 = smov (!%p134_p3, %s300_s10), 1  ;;  %vm180_vm0 = vcmask 1041408   ;;  %v145_v19 = vld [vmem:[%s392_s1] sm:$0xf]  ;;  %vm176_vm1 = vcmask 293888  }
   0xc   : > { %s333_s11 = smul.u32 40, %s395_s10  ;;  %s328_s17 = sshll.u32 %s395_s10, 3 }
   0xd   : > { %s143_s20 = scalar_lea.vmem %s393_s2, %s328_s17 }
   0xe   : > { %s138_s14 = scalar_lea.vmem %s391_s0, %s333_s11 }
   0xf   : > { %v150_v0 = vld [vmem:[%s138_s14 + $0x20] sm:$0x33]  ;;  %v318_v3 = vld [vmem:[%s138_s14 + $0x10] sm:$0xf]  ;;  %v332_v6 = vld [vmem:[%s138_s14 + $0x14] sm:$0xf0] }
  0x10   : > { %v164_v1 = vunpack.c.l.b16 %v150_v0  ;;  %v165_v2 = vunpack.c.h.b16 %v150_v0  ;;  %v331_v7 = vld [vmem:[%s138_s14 + $0x14] sm:$0xf]  ;;  %v320_v8 = vld [vmem:[%s138_s14 + $0x18] sm:$0xf0]  ;;  %v319_v11 = vor.u32 %v332_v6, %v318_v3  ;;  %v310_v13 = vld [vmem:[%s138_s14] sm:$0xf] }
  0x11   : > { %v323_v12 = vor.u32 %v331_v7, %v320_v8  ;;  %v330_v14 = vld [vmem:[%s138_s14 + $0x4] sm:$0xf0]  ;;  %v329_v15 = vld [vmem:[%s138_s14 + $0x4] sm:$0xf]  ;;  %v312_v16 = vld [vmem:[%s138_s14 + $0x8] sm:$0xf0] }
  0x12   : > { %v170_v4 = vpack.c.b16 %v164_v1, %v164_v1  ;;  %v171_v5 = vpack.c.b16 %v165_v2, %v165_v2  ;;  %v311_v17 = vor.u32 %v330_v14, %v310_v13  ;;  %v315_v18 = vor.u32 %v329_v15, %v312_v16 }
  0x14   : > { %v182_v9 = vsel %vm180_vm0, %v170_v4, 0  ;;  %v185_v10 = vsel %vm180_vm0, %v171_v5, 0 }
  0x15   : > { %192 = vmatpush.bf16.msra.mxu0 %v182_v9  ;;  %205 = vmatpush.bf16.msra.mxu1 %v185_v10 }
  0x19   : > { %193 = vmatpush.bf16.msra.mxu0 %v319_v11  ;;  %206 = vmatpush.bf16.msra.mxu1 %v323_v12 }
  0x1d   : > { %194 = vmatpush.bf16.msra.mxu0 %v311_v17  ;;  %207 = vmatpush.bf16.msra.mxu1 %v315_v18 }
  0x20   : > { %324 = vmatmul.msk.bf16.vlgmr.msra.gmra.mxu0 %vm176_vm1, %v145_v19  ;;  %325 = vmatmul.msk.bf16.vlgmr.msra.gmra.mxu1 %vm176_vm1, %v145_v19 }
  0x9d   : > { %v196_v20 = vpop.f32.mrf.mxu0  ;;  %v209_v21 = vpop.f32.mrf.mxu1 }
  0x9e   : > { %v213_v22 = vadd.f32 %v209_v21, %v196_v20  ;;  %v217_v23 = vmul.f32 %v196_v20, %v196_v20  ;;  %v218_v24 = vmul.f32 %v209_v21, %v209_v21 }
  0xa0   : > { %214 = vadd.xlane.f32.xlu0 %v213_v22  ;;  %v219_v27 = vadd.f32 %v218_v24, %v217_v23 }
  0xa5   : > { %v198_v25 = vpop.f32.mrf.mxu0  ;;  %v211_v26 = vpop.f32.mrf.mxu1 }
  0xa8   : > { %220 = vadd.xlane.f32.xlu0 %v219_v27 }
 0x113   : > { %v215_v28 = vpop.xlane.xlu0 %214 }
 0x114   : > { %v216_v29 = vmul.f32 0.00390625, %v215_v28 }
 0x116   : > { %v223_v31 = vmul.f32 %v216_v29, %v216_v29  ;;  %v226_v42 = vsub.f32 %v196_v20, %v216_v29  ;;  %v227_v43 = vsub.f32 %v209_v21, %v216_v29 }
 0x11b   : > { %v221_v30 = vpop.xlane.xlu0 %220 }
 0x11c   : > { %v222_v32 = vmul.f32 0.00390625, %v221_v30 }
 0x11e   : > { %v224_v33 = vsub.f32 %v222_v32, %v223_v31 }
 0x120   : > { %v225_v34 = vmax.f32 %v224_v33, 0.0 }
 0x122   : > { %v228_v35 = vadd.f32 1e-05, %v225_v34 }
 0x124   : > { %342 = vrsqrt.f32 %v228_v35  ;;  %vm235_vm3 = vweird.f32 %v228_v35 }
 0x12a   : > { %v343_v36 = vpop.eup %342 }
 0x12b   : > { %v230_v37 = vmul.f32 %v343_v36, %v228_v35  ;;  %vm236_vm2 = vweird.f32 %v343_v36 }
 0x12c   : > { %vm237_vm4 = vmor %vm235_vm3, %vm236_vm2 }
 0x12d   : > { %v231_v38 = vmul.f32 %v343_v36, %v230_v37 }
 0x12f   : > { %v232_v39 = vmul.f32 0.5, %v231_v38 }
 0x131   : > { %v233_v40 = vsub.f32 1.5, %v232_v39 }
 0x133   : > { %v234_v41 = vmul.f32 %v343_v36, %v233_v40 }
 0x135   : > { %v238_v44 = vsel %vm237_vm4, %v343_v36, %v234_v41 }
 0x136   : > { %v239_v45 = vmul.f32 %v238_v44, %v226_v42  ;;  %v240_v46 = vmul.f32 %v238_v44, %v227_v43 }
 0x138   : > { %v241_v47 = vmax.f32 %v239_v45, 0.0  ;;  %v242_v48 = vmax.f32 %v240_v46, 0.0 }
 0x13a   : > { %v243_v49 = vpack.c.bf16 %v242_v48, %v241_v47 }
 0x13c   : > { %244 = vst [vmem:[%s143_s20] sm:$0xff] %v243_v49 }
 0x13d PF: > { %s12_s9 = sadd.s32 1, %s350_s9  }
 0x13e   : > { %p9_p4 = scmp.ge.s32.totalorder %s12_s9, 4  }
 0x140   :  { %11 = sbr.rel (!%p9_p4) target bundleno = 1 (0x1), region = 58 }

// kernel: _lambda_.10
= control target key start
LH: loop header
LB: loop body
LE: loop exit
PB: predicated region body
PF: predicated region fallthrough
CT: control target
= control target key end

     0   :  { %vm59_vm0 = vcmask 1043456   ;;  %vm55_vm1 = vcmask 588800   ;;  %vm77_vm2 = vcmask 523264   ;;  %vm132_vm6 = vcmask 519168   ;;  %s445_s0 = inlined_call_operand.vmem [shape: bf16[2,72,64], index: 0, kind: input, shape index: {}]   ;;  %s446_s1 = inlined_call_operand.vmem [shape: bf16[16,72], index: 1, kind: input, shape index: {}]   ;;  %s447_s2 = inlined_call_operand.vmem [shape: bf16[2,16,64], index: 2, kind: output, shape index: {}]  }
   0x1   :  { %v22_v0 = vld [vmem:[%s445_s0 + $0x20] sm:$0xf]  ;;  %v289_v1 = vld [vmem:[%s445_s0 + $0x44] sm:$0xf]  ;;  %v317_v8 = vld [vmem:[%s445_s0 + $0x18] sm:$0xff] }
   0x2   :  { %v45_v2 = vunpack.c.l.b16 %v22_v0  ;;  %v169_v3 = vunpack.c.l.b16 %v289_v1  ;;  %v322_v9 = vld [vmem:[%s445_s0 + $0x3c] sm:$0xff]  ;;  %v316_v10 = vld [vmem:[%s445_s0 + $0x10] sm:$0xff]  ;;  %v315_v12 = vld [vmem:[%s445_s0 + $0x8] sm:$0xff] }
   0x3   :  { %v321_v11 = vld [vmem:[%s445_s0 + $0x34] sm:$0xff]  ;;  %v320_v13 = vld [vmem:[%s445_s0 + $0x2c] sm:$0xff]  ;;  %v314_v14 = vld [vmem:[%s445_s0] sm:$0xff] }
   0x4   :  { %v50_v4 = vpack.c.b16 %v45_v2, %v45_v2  ;;  %v174_v5 = vpack.c.b16 %v169_v3, %v169_v3  ;;  %v319_v15 = vld [vmem:[%s445_s0 + $0x24] sm:$0xff] }
   0x5   :  { %v313_v16 = vld [vmem:[%s446_s1] sm:$0xff] }
   0x6   :  { %v61_v6 = vsel %vm59_vm0, %v50_v4, 0  ;;  %v183_v7 = vsel %vm59_vm0, %v174_v5, 0  ;;  %v318_v17 = vld [vmem:[%s446_s1] sm:$0xff] }
   0x7   :  { %66 = vmatpush.bf16.msra.mxu0 %v61_v6  ;;  %188 = vmatpush.bf16.msra.mxu1 %v183_v7 }
   0xb   :  { %67 = vmatpush.bf16.msra.mxu0 %v317_v8  ;;  %189 = vmatpush.bf16.msra.mxu1 %v322_v9 }
   0xf   :  { %68 = vmatpush.bf16.msra.mxu0 %v316_v10  ;;  %190 = vmatpush.bf16.msra.mxu1 %v321_v11 }
  0x13   :  { %69 = vmatpush.bf16.msra.mxu0 %v315_v12  ;;  %191 = vmatpush.bf16.msra.mxu1 %v320_v13 }
  0x17   :  { %70 = vmatpush.bf16.msra.mxu0 %v314_v14  ;;  %192 = vmatpush.bf16.msra.mxu1 %v319_v15 }
  0x1a   :  { %280 = vmatmul.msk.bf16.vlgmr.msra.gmra.mxu0 %vm55_vm1, %v313_v16  ;;  %310 = vmatmul.msk.bf16.vlgmr.msra.gmra.mxu1 %vm55_vm1, %v318_v17 }
  0x97   :  { %v382_v18 = vpop.f32.mrf.mxu0  ;;  %v384_v19 = vpop.f32.mrf.mxu1 }
  0x98   :  { %v199_v20 = vsel %vm77_vm2, %v384_v19, 0.0  ;;  %v78_v21 = vsel %vm77_vm2, %v382_v18, 0.0  ;;  %v86_v22 = vmul.f32 %v382_v18, %v382_v18  ;;  %v207_v31 = vmul.f32 %v384_v19, %v384_v19 }
  0x99   :  { %200 = vadd.xlane.f32.xlu1 %v199_v20  ;;  %79 = vadd.xlane.f32.xlu0 %v78_v21 }
  0x9a   :  { %v88_v23 = vsel %vm77_vm2, %v86_v22, 0.0  ;;  %v209_v33 = vsel %vm77_vm2, %v207_v31, 0.0 }
  0x9b   :  { %89 = vadd.xlane.f32.xlu2 %v88_v23 }
  0x9f   :  { %v393_v24 = vpop.f32.mrf.mxu0  ;;  %v395_v25 = vpop.f32.mrf.mxu1 }
  0xa0   :  { %v87_v26 = vmul.f32 %v393_v24, %v393_v24  ;;  %v202_v27 = vsel %vm77_vm2, %v395_v25, 0.0  ;;  %v81_v28 = vsel %vm77_vm2, %v393_v24, 0.0  ;;  %v208_v30 = vmul.f32 %v395_v25, %v395_v25 }
  0xa1   :  { %203 = vadd.xlane.f32.xlu1 %v202_v27  ;;  %82 = vadd.xlane.f32.xlu0 %v81_v28 }
  0xa2   :  { %v91_v29 = vsel %vm77_vm2, %v87_v26, 0.0  ;;  %v212_v32 = vsel %vm77_vm2, %v208_v30, 0.0 }
  0xa3   :  { %92 = vadd.xlane.f32.xlu2 %v91_v29 }
  0xa9   :  { %213 = vadd.xlane.f32.xlu1 %v212_v32  ;;  %210 = vadd.xlane.f32.xlu0 %v209_v33 }
 0x10c   :  { %v201_v34 = vpop.xlane.xlu1 %200  ;;  %v80_v35 = vpop.xlane.xlu0 %79 }
 0x10d   :  { %v84_v36 = vmul.f32 0.015625, %v80_v35  ;;  %v414_v49 = vmul.f32 0.015625, %v201_v34 }
 0x10e   :  { %v90_v37 = vpop.xlane.xlu2 %89 }
 0x10f   :  { %v96_v38 = vmul.f32 %v84_v36, %v84_v36  ;;  %v94_v39 = vmul.f32 0.015625, %v90_v37  ;;  %v217_v55 = vmul.f32 %v414_v49, %v414_v49  ;;  %v102_v10 = vsub.f32 %v382_v18, %v84_v36 }
 0x111   :  { %v98_v40 = vsub.f32 %v94_v39, %v96_v38 }
 0x113   :  { %v100_v41 = vmax.f32 %v98_v40, 0.0 }
 0x114   :  { %v204_v42 = vpop.xlane.xlu1 %203  ;;  %v83_v43 = vpop.xlane.xlu0 %82 }
 0x115   :  { %v410_v44 = vmul.f32 0.015625, %v83_v43  ;;  %v104_v45 = vadd.f32 1e-05, %v100_v41  ;;  %v416_v50 = vmul.f32 0.015625, %v204_v42 }
 0x116   :  { %v93_v46 = vpop.xlane.xlu2 %92 }
 0x117   :  { %v97_v47 = vmul.f32 %v410_v44, %v410_v44  ;;  %323 = vrsqrt.f32 %v104_v45  ;;  %v95_v48 = vmul.f32 0.015625, %v93_v46  ;;  %v218_v56 = vmul.f32 %v416_v50, %v416_v50 }
 0x118   :  { %vm112_vm4 = vweird.f32 %v104_v45  ;;  %v103_v18 = vsub.f32 %v393_v24, %v410_v44  ;;  %v224_v37 = vsub.f32 %v395_v25, %v416_v50  ;;  %v223_v24 = vsub.f32 %v384_v19, %v414_v49 }
 0x119   :  { %v99_v51 = vsub.f32 %v95_v48, %v97_v47 }
 0x11b   :  { %v101_v52 = vmax.f32 %v99_v51, 0.0 }
 0x11c   :  { %v214_v53 = vpop.xlane.xlu1 %213  ;;  %v211_v54 = vpop.xlane.xlu0 %210 }
 0x11d   :  { %v216_v57 = vmul.f32 0.015625, %v214_v53  ;;  %v215_v58 = vmul.f32 0.015625, %v211_v54  ;;  %v324_v59 = vpop.eup %323  ;;  %v105_v60 = vadd.f32 1e-05, %v101_v52 }
 0x11e   :  { %v107_v61 = vmul.f32 %v324_v59, %v104_v45  ;;  %vm113_vm3 = vweird.f32 %v324_v59 }
 0x11f   :  { %v220_v62 = vsub.f32 %v216_v57, %v218_v56  ;;  %v219_v63 = vsub.f32 %v215_v58, %v217_v55  ;;  %325 = vrsqrt.f32 %v105_v60  ;;  %vm114_vm5 = vmor %vm112_vm4, %vm113_vm3  ;;  %vm122_vm8 = vweird.f32 %v105_v60 }
 0x120   :  { %v108_v0 = vmul.f32 %v324_v59, %v107_v61 }
 0x121   :  { %v222_v1 = vmax.f32 %v220_v62, 0.0  ;;  %v221_v2 = vmax.f32 %v219_v63, 0.0 }
 0x122   :  { %v109_v3 = vmul.f32 0.5, %v108_v0 }
 0x123   :  { %v226_v4 = vadd.f32 1e-05, %v222_v1  ;;  %v225_v5 = vadd.f32 1e-05, %v221_v2 }
 0x124   :  { %v110_v6 = vsub.f32 1.5, %v109_v3 }
 0x125   :  { %327 = vrsqrt.f32 %v226_v4  ;;  %v326_v7 = vpop.eup %325  ;;  %vm243_vm12 = vweird.f32 %v226_v4  ;;  %vm233_vm14 = vweird.f32 %v225_v5 }
 0x126   :  { %329 = vrsqrt.f32 %v225_v5  ;;  %v111_v8 = vmul.f32 %v324_v59, %v110_v6  ;;  %v117_v9 = vmul.f32 %v326_v7, %v105_v60  ;;  %vm123_vm7 = vweird.f32 %v326_v7 }
 0x127   :  { %vm124_vm9 = vmor %vm122_vm8, %vm123_vm7 }
 0x128   :  { %v115_v11 = vsel %vm114_vm5, %v324_v59, %v111_v8  ;;  %v118_v12 = vmul.f32 %v326_v7, %v117_v9 }
 0x129   :  { %v126_v13 = vmul.f32 %v115_v11, %v102_v10 }
 0x12a   :  { %v119_v15 = vmul.f32 0.5, %v118_v12 }
 0x12b   :  { %v328_v14 = vpop.eup %327  ;;  %v128_v17 = vmax.f32 %v126_v13, 0.0 }
 0x12c   :  { %v330_v16 = vpop.eup %329  ;;  %v238_v20 = vmul.f32 %v328_v14, %v226_v4  ;;  %v120_v21 = vsub.f32 1.5, %v119_v15  ;;  %vm244_vm10 = vweird.f32 %v328_v14 }
 0x12d   :  { %v228_v22 = vmul.f32 %v330_v16, %v225_v5  ;;  %v130_v23 = vpack.c.bf16 %v128_v17, %v128_v17  ;;  %vm234_vm11 = vweird.f32 %v330_v16  ;;  %vm245_vm13 = vmor %vm243_vm12, %vm244_vm10 }
 0x12e   :  { %v239_v26 = vmul.f32 %v328_v14, %v238_v20  ;;  %v121_v27 = vmul.f32 %v326_v7, %v120_v21  ;;  %vm235_vm15 = vmor %vm233_vm14, %vm234_vm11 }
 0x12f   :  { %v229_v28 = vmul.f32 %v330_v16, %v228_v22  ;;  %133 = vst.msk [vmem:[%s447_s2] sm:$0xf] %vm132_vm6, %v130_v23 }
 0x130   :  { %v240_v29 = vmul.f32 0.5, %v239_v26  ;;  %v125_v30 = vsel %vm124_vm9, %v326_v7, %v121_v27 }
 0x131   :  { %v230_v31 = vmul.f32 0.5, %v229_v28  ;;  %v127_v32 = vmul.f32 %v125_v30, %v103_v18 }
 0x132   :  { %v241_v33 = vsub.f32 1.5, %v240_v29 }
 0x133   :  { %v231_v34 = vsub.f32 1.5, %v230_v31  ;;  %v129_v35 = vmax.f32 %v127_v32, 0.0 }
 0x134   :  { %v242_v36 = vmul.f32 %v328_v14, %v241_v33 }
 0x135   :  { %v232_v38 = vmul.f32 %v330_v16, %v231_v34  ;;  %v131_v39 = vpack.c.bf16 %v129_v35, %v129_v35 }
 0x136   :  { %v246_v40 = vsel %vm245_vm13, %v328_v14, %v242_v36 }
 0x137   :  { %v248_v41 = vmul.f32 %v246_v40, %v224_v37  ;;  %v236_v42 = vsel %vm235_vm15, %v330_v16, %v232_v38  ;;  %134 = vst.msk [vmem:[%s447_s2 + $0x4] sm:$0xf] %vm132_vm6, %v131_v39 }
 0x138   :  { %v247_v43 = vmul.f32 %v236_v42, %v223_v24 }
 0x139   :  { %v250_v44 = vmax.f32 %v248_v41, 0.0 }
 0x13a   :  { %v249_v45 = vmax.f32 %v247_v43, 0.0 }
 0x13b   :  { %v252_v25 = vpack.c.bf16 %v250_v44, %v250_v44 }
 0x13c   :  { %v251_v46 = vpack.c.bf16 %v249_v45, %v249_v45 }
 0x13d   :  { %312 = vst.msk [vmem:[%s447_s2 + $0xc] sm:$0xf] %vm132_vm6, %v252_v25 }
 0x13e   :  { %311 = vst.msk [vmem:[%s447_s2 + $0x8] sm:$0xf] %vm132_vm6, %v251_v46 }

// kernel: _lambda_.11
= control target key start
LH: loop header
LB: loop body
LE: loop exit
PB: predicated region body
PF: predicated region fallthrough
CT: control target
= control target key end

     0   :  { %vm106_vm0 = vcmask 130048   ;;  %vm259_vm4 = vcmask 125952   ;;  %s967_s0 = inlined_call_operand.vmem [shape: bf16[2,144,16], index: 0, kind: input, shape index: {}]   ;;  %s968_s1 = inlined_call_operand.vmem [shape: bf16[32,144], index: 1, kind: input, shape index: {}]   ;;  %s969_s2 = inlined_call_operand.vmem [shape: bf16[2,32,16], index: 2, kind: output, shape index: {}]  }
   0x1   :  { %v661_v0 = vld [vmem:[%s967_s0 + $0x38] sm:$0xff]  ;;  %v674_v1 = vld [vmem:[%s967_s0 + $0x80] sm:$0xff]  ;;  %v660_v2 = vld [vmem:[%s967_s0 + $0x30] sm:$0xff] }
   0x2   :  { %113 = vmatpush.bf16.msra.mxu0 %v661_v0  ;;  %365 = vmatpush.bf16.msra.mxu2 %v674_v1  ;;  %v673_v3 = vld [vmem:[%s967_s0 + $0x78] sm:$0xff]  ;;  %v662_v4 = vld [vmem:[%s967_s0 + $0x40] sm:$0xff]  ;;  %v524_v6 = vld [vmem:[%s968_s1 + $0x8] sm:$0xf0] }
   0x3   :  { %v650_v5 = vld [vmem:[%s968_s1 + $0x4] sm:$0xf]  ;;  %139 = vmatpush.bf16.msra.mxu1 %v662_v4  ;;  %v659_v8 = vld [vmem:[%s967_s0 + $0x28] sm:$0xff]  ;;  %v672_v9 = vld [vmem:[%s967_s0 + $0x70] sm:$0xff] }
   0x4   :  { %v527_v7 = vor.u32 %v650_v5, %v524_v6  ;;  %v675_v10 = vld [vmem:[%s967_s0 + $0x88] sm:$0xff]  ;;  %v663_v11 = vld [vmem:[%s968_s1 + $0x4] sm:$0xf]  ;;  %v657_v16 = vld [vmem:[%s967_s0 + $0x18] sm:$0xff] }
   0x5   :  { %391 = vmatpush.bf16.msra.mxu3 %v675_v10  ;;  %v596_v12 = vld [vmem:[%s968_s1 + $0x8] sm:$0xf0]  ;;  %v658_v14 = vld [vmem:[%s967_s0 + $0x20] sm:$0xff]  ;;  %v652_v18 = vld [vmem:[%s968_s1 + $0x14] sm:$0xf] }
   0x6   :  { %114 = vmatpush.bf16.msra.mxu0 %v660_v2  ;;  %366 = vmatpush.bf16.msra.mxu2 %v673_v3  ;;  %v599_v13 = vor.u32 %v663_v11, %v596_v12  ;;  %v671_v15 = vld [vmem:[%s967_s0 + $0x68] sm:$0xff]  ;;  %v670_v17 = vld [vmem:[%s967_s0 + $0x60] sm:$0xff]  ;;  %v532_v19 = vld [vmem:[%s968_s1 + $0x18] sm:$0xf0] }
   0x7   :  { %572 = vmatmul.msk.bf16.vlgmr.msra.gmra.mxu1 %vm106_vm0, %v527_v7  ;;  %v656_v20 = vld [vmem:[%s967_s0 + $0x10] sm:$0xff]  ;;  %v669_v21 = vld [vmem:[%s967_s0 + $0x58] sm:$0xff]  ;;  %v535_v22 = vor.u32 %v652_v18, %v532_v19  ;;  %v655_v25 = vld [vmem:[%s967_s0 + $0x8] sm:$0xff] }
   0x8   :  { %644 = vmatmul.msk.bf16.vlgmr.msra.gmra.mxu3 %vm106_vm0, %v599_v13  ;;  %v665_v23 = vld [vmem:[%s968_s1 + $0x14] sm:$0xf]  ;;  %v604_v24 = vld [vmem:[%s968_s1 + $0x18] sm:$0xf0]  ;;  %v654_v28 = vld [vmem:[%s967_s0] sm:$0xff] }
   0x9   :  { %v668_v26 = vld [vmem:[%s967_s0 + $0x50] sm:$0xff]  ;;  %v607_v27 = vor.u32 %v665_v23, %v604_v24  ;;  %v667_v29 = vld [vmem:[%s967_s0 + $0x48] sm:$0xff]  ;;  %v522_v30 = vld [vmem:[%s968_s1] sm:$0xf] }
   0xa   :  { %115 = vmatpush.bf16.msra.mxu0 %v659_v8  ;;  %367 = vmatpush.bf16.msra.mxu2 %v672_v9  ;;  %v651_v31 = vld [vmem:[%s968_s1 + $0x4] sm:$0xf0]  ;;  %v594_v32 = vld [vmem:[%s968_s1] sm:$0xf]  ;;  %v530_v36 = vld [vmem:[%s968_s1 + $0x10] sm:$0xf] }
   0xb   :  { %v664_v33 = vld [vmem:[%s968_s1 + $0x4] sm:$0xf0]  ;;  %v523_v34 = vor.u32 %v651_v31, %v522_v30  ;;  %v653_v37 = vld [vmem:[%s968_s1 + $0x14] sm:$0xf0]  ;;  %v602_v38 = vld [vmem:[%s968_s1 + $0x10] sm:$0xf] }
   0xc   :  { %v595_v35 = vor.u32 %v664_v33, %v594_v32  ;;  %v666_v39 = vld [vmem:[%s968_s1 + $0x14] sm:$0xf0]  ;;  %v531_v40 = vor.u32 %v653_v37, %v530_v36 }
   0xd   :  { %v603_v41 = vor.u32 %v666_v39, %v602_v38 }
   0xe   :  { %116 = vmatpush.bf16.msra.mxu0 %v658_v14  ;;  %368 = vmatpush.bf16.msra.mxu2 %v671_v15 }
  0x12   :  { %117 = vmatpush.bf16.msra.mxu0 %v657_v16  ;;  %369 = vmatpush.bf16.msra.mxu2 %v670_v17 }
  0x16   :  { %118 = vmatpush.bf16.msra.mxu0 %v656_v20  ;;  %370 = vmatpush.bf16.msra.mxu2 %v669_v21 }
  0x17   :  { %573 = vmatmul.msk.bf16.gmra.mxu1 %vm106_vm0, %v535_v22 }
  0x18   :  { %645 = vmatmul.msk.bf16.gmra.mxu3 %vm106_vm0, %v607_v27 }
  0x1a   :  { %119 = vmatpush.bf16.msra.mxu0 %v655_v25  ;;  %371 = vmatpush.bf16.msra.mxu2 %v668_v26 }
  0x1e   :  { %120 = vmatpush.bf16.msra.mxu0 %v654_v28  ;;  %372 = vmatpush.bf16.msra.mxu2 %v667_v29 }
  0x21   :  { %121 = vmatmul.bf16.vlgmr.msra.gmra.mxu0 %v523_v34  ;;  %373 = vmatmul.bf16.vlgmr.msra.gmra.mxu2 %v595_v35 }
  0x31   :  { %126 = vmatmul.bf16.gmra.mxu0 %v531_v40  ;;  %378 = vmatmul.bf16.gmra.mxu2 %v603_v41 }
  0x84   :  { %v141_v42 = vpop.f32.mrf.mxu1 }
  0x8b   :  { %v393_v45 = vpop.f32.mrf.mxu3 }
  0x8c   :  { %v143_v48 = vpop.f32.mrf.mxu1 }
  0x93   :  { %v395_v56 = vpop.f32.mrf.mxu3 }
  0x94   :  { %v146_v58 = vpop.f32.mrf.mxu1 }
  0x9b   :  { %v398_v3 = vpop.f32.mrf.mxu3 }
  0x9c   :  { %v148_v6 = vpop.f32.mrf.mxu1 }
  0x9e   :  { %v122_v43 = vpop.f32.mrf.mxu0 }
  0x9f   :  { %v813_v44 = vadd.f32 %v141_v42, %v122_v43 }
  0xa1   :  { %v151_v46 = vsel %vm106_vm0, %v813_v44, 0.0  ;;  %v167_v47 = vmul.f32 %v813_v44, %v813_v44 }
  0xa2   :  { %152 = vadd.xlane.f32.xlu0 %v151_v46 }
  0xa3   :  { %v171_v49 = vsel %vm106_vm0, %v167_v47, 0.0  ;;  %v400_v16 = vpop.f32.mrf.mxu3 }
  0xa4   :  { %172 = vadd.xlane.f32.xlu2 %v171_v49  ;;  %v374_v50 = vpop.f32.mrf.mxu2 }
  0xa5   :  { %v820_v51 = vadd.f32 %v393_v45, %v374_v50 }
  0xa6   :  { %v124_v52 = vpop.f32.mrf.mxu0 }
  0xa7   :  { %v822_v53 = vadd.f32 %v143_v48, %v124_v52  ;;  %v403_v55 = vsel %vm106_vm0, %v820_v51, 0.0  ;;  %v419_v57 = vmul.f32 %v820_v51, %v820_v51 }
  0xa9   :  { %v154_v54 = vsel %vm106_vm0, %v822_v53, 0.0  ;;  %v423_v63 = vsel %vm106_vm0, %v419_v57, 0.0  ;;  %v168_v4 = vmul.f32 %v822_v53, %v822_v53 }
  0xaa   :  { %155 = vadd.xlane.f32.xlu0 %v154_v54 }
  0xab   :  { %v174_v10 = vsel %vm106_vm0, %v168_v4, 0.0 }
  0xac   :  { %404 = vadd.xlane.f32.xlu2 %v403_v55  ;;  %v376_v59 = vpop.f32.mrf.mxu2 }
  0xad   :  { %v832_v62 = vadd.f32 %v395_v56, %v376_v59 }
  0xae   :  { %v127_v60 = vpop.f32.mrf.mxu0 }
  0xaf   :  { %v830_v61 = vadd.f32 %v146_v58, %v127_v60  ;;  %v406_v1 = vsel %vm106_vm0, %v832_v62, 0.0  ;;  %v420_v24 = vmul.f32 %v832_v62, %v832_v62 }
  0xb1   :  { %v157_v0 = vsel %vm106_vm0, %v830_v61, 0.0  ;;  %v169_v5 = vmul.f32 %v830_v61, %v830_v61  ;;  %v426_v25 = vsel %vm106_vm0, %v420_v24, 0.0 }
  0xb2   :  { %424 = vadd.xlane.f32.xlu0 %v423_v63  ;;  %158 = vadd.xlane.f32.xlu1 %v157_v0 }
  0xb3   :  { %v177_v11 = vsel %vm106_vm0, %v169_v5, 0.0 }
  0xb4   :  { %407 = vadd.xlane.f32.xlu2 %v406_v1  ;;  %v379_v2 = vpop.f32.mrf.mxu2 }
  0xb5   :  { %v845_v9 = vadd.f32 %v398_v3, %v379_v2 }
  0xb6   :  { %v129_v7 = vpop.f32.mrf.mxu0 }
  0xb7   :  { %v843_v8 = vadd.f32 %v148_v6, %v129_v7  ;;  %v421_v14 = vmul.f32 %v845_v9, %v845_v9  ;;  %v409_v17 = vsel %vm106_vm0, %v845_v9, 0.0 }
  0xb9   :  { %v170_v12 = vmul.f32 %v843_v8, %v843_v8  ;;  %v160_v19 = vsel %vm106_vm0, %v843_v8, 0.0  ;;  %v429_v20 = vsel %vm106_vm0, %v421_v14, 0.0 }
  0xba   :  { %175 = vadd.xlane.f32.xlu0 %v174_v10  ;;  %178 = vadd.xlane.f32.xlu1 %v177_v11 }
  0xbb   :  { %v180_v13 = vsel %vm106_vm0, %v170_v12, 0.0 }
  0xbc   :  { %181 = vadd.xlane.f32.xlu2 %v180_v13  ;;  %v381_v15 = vpop.f32.mrf.mxu2 }
  0xbd   :  { %v856_v18 = vadd.f32 %v400_v16, %v381_v15 }
  0xbf   :  { %v422_v21 = vmul.f32 %v856_v18, %v856_v18  ;;  %v412_v23 = vsel %vm106_vm0, %v856_v18, 0.0 }
  0xc1   :  { %v432_v22 = vsel %vm106_vm0, %v422_v21, 0.0 }
  0xc2   :  { %410 = vadd.xlane.f32.xlu0 %v409_v17  ;;  %161 = vadd.xlane.f32.xlu1 %v160_v19 }
  0xc4   :  { %430 = vadd.xlane.f32.xlu2 %v429_v20 }
  0xca   :  { %433 = vadd.xlane.f32.xlu0 %v432_v22  ;;  %413 = vadd.xlane.f32.xlu1 %v412_v23 }
  0xd2   :  { %427 = vadd.xlane.f32.xlu1 %v426_v25 }
 0x115   :  { %v153_v26 = vpop.xlane.xlu0 %152 }
 0x116   :  { %v163_v27 = vmul.f32 0.0625, %v153_v26 }
 0x117   :  { %v173_v28 = vpop.xlane.xlu2 %172 }
 0x118   :  { %v187_v29 = vmul.f32 %v163_v27, %v163_v27  ;;  %v183_v30 = vmul.f32 0.0625, %v173_v28  ;;  %v199_v1 = vsub.f32 %v813_v44, %v163_v27 }
 0x11a   :  { %v191_v31 = vsub.f32 %v183_v30, %v187_v29 }
 0x11c   :  { %v195_v32 = vmax.f32 %v191_v31, 0.0 }
 0x11d   :  { %v156_v33 = vpop.xlane.xlu0 %155 }
 0x11e   :  { %v203_v34 = vadd.f32 1e-05, %v195_v32  ;;  %v875_v47 = vmul.f32 0.0625, %v156_v33 }
 0x11f   :  { %v405_v35 = vpop.xlane.xlu2 %404 }
 0x120   :  { %676 = vrsqrt.f32 %v203_v34  ;;  %v869_v36 = vmul.f32 0.0625, %v405_v35  ;;  %v188_v55 = vmul.f32 %v875_v47, %v875_v47  ;;  %vm213_vm2 = vweird.f32 %v203_v34 }
 0x122   :  { %v439_v37 = vmul.f32 %v869_v36, %v869_v36 }
 0x125   :  { %v425_v38 = vpop.xlane.xlu0 %424  ;;  %v159_v39 = vpop.xlane.xlu1 %158 }
 0x126   :  { %v677_v40 = vpop.eup %676  ;;  %v435_v41 = vmul.f32 0.0625, %v425_v38  ;;  %v877_v49 = vmul.f32 0.0625, %v159_v39 }
 0x127   :  { %v208_v42 = vmul.f32 %v677_v40, %v203_v34  ;;  %v873_v43 = vpop.xlane.xlu2 %407  ;;  %vm214_vm1 = vweird.f32 %v677_v40 }
 0x128   :  { %v443_v45 = vsub.f32 %v435_v41, %v439_v37  ;;  %v189_v58 = vmul.f32 %v877_v49, %v877_v49  ;;  %vm215_vm3 = vmor %vm213_vm2, %vm214_vm1  ;;  %v451_v37 = vsub.f32 %v820_v51, %v869_v36 }
 0x129   :  { %v209_v46 = vmul.f32 %v677_v40, %v208_v42 }
 0x12a   :  { %v447_v48 = vmax.f32 %v443_v45, 0.0 }
 0x12b   :  { %v210_v50 = vmul.f32 0.5, %v209_v46 }
 0x12c   :  { %v455_v52 = vadd.f32 1e-05, %v447_v48 }
 0x12d   :  { %v211_v54 = vsub.f32 1.5, %v210_v50  ;;  %v176_v56 = vpop.xlane.xlu0 %175  ;;  %v179_v57 = vpop.xlane.xlu1 %178 }
 0x12e   :  { %678 = vrsqrt.f32 %v455_v52  ;;  %v184_v59 = vmul.f32 0.0625, %v176_v56  ;;  %v185_v60 = vmul.f32 0.0625, %v179_v57  ;;  %vm465_vm6 = vweird.f32 %v455_v52 }
 0x12f   :  { %v212_v63 = vmul.f32 %v677_v40, %v211_v54  ;;  %v182_v0 = vpop.xlane.xlu2 %181 }
 0x130   :  { %v192_v2 = vsub.f32 %v184_v59, %v188_v55  ;;  %v193_v3 = vsub.f32 %v185_v60, %v189_v58  ;;  %v186_v24 = vmul.f32 0.0625, %v182_v0  ;;  %v917_v60 = vmul.f32 0.0625, %v873_v43 }
 0x131   :  { %v216_v4 = vsel %vm215_vm3, %v677_v40, %v212_v63 }
 0x132   :  { %v247_v5 = vmul.f32 %v216_v4, %v199_v1  ;;  %v196_v6 = vmax.f32 %v192_v2, 0.0  ;;  %v197_v7 = vmax.f32 %v193_v3, 0.0  ;;  %v200_v3 = vsub.f32 %v822_v53, %v875_v47 }
 0x133   :  { %v440_v53 = vmul.f32 %v917_v60, %v917_v60 }
 0x134   :  { %v679_v10 = vpop.eup %678  ;;  %v251_v11 = vmax.f32 %v247_v5, 0.0  ;;  %v884_v12 = vadd.f32 1e-05, %v196_v6  ;;  %v886_v13 = vadd.f32 1e-05, %v197_v7  ;;  %v201_v6 = vsub.f32 %v830_v61, %v877_v49 }
 0x135   :  { %v460_v14 = vmul.f32 %v679_v10, %v455_v52  ;;  %v411_v15 = vpop.xlane.xlu0 %410  ;;  %v162_v16 = vpop.xlane.xlu1 %161  ;;  %vm466_vm5 = vweird.f32 %v679_v10 }
 0x136   :  { %v255_v17 = vpack.c.bf16 %v251_v11, %v251_v11  ;;  %680 = vrsqrt.f32 %v884_v12  ;;  %v890_v19 = vmul.f32 0.0625, %v411_v15  ;;  %v892_v20 = vmul.f32 0.0625, %v162_v16  ;;  %vm467_vm7 = vmor %vm465_vm6, %vm466_vm5 }
 0x137   :  { %v461_v44 = vmul.f32 %v679_v10, %v460_v14  ;;  %682 = vrsqrt.f32 %v886_v13  ;;  %v431_v21 = vpop.xlane.xlu2 %430  ;;  %vm223_vm10 = vweird.f32 %v884_v12  ;;  %vm233_vm12 = vweird.f32 %v886_v13 }
 0x138   :  { %260 = vst.msk [vmem:[%s969_s2] sm:$0xf] %vm259_vm4, %v255_v17  ;;  %v437_v22 = vmul.f32 0.0625, %v431_v21  ;;  %v441_v25 = vmul.f32 %v890_v19, %v890_v19  ;;  %v190_v26 = vmul.f32 %v892_v20, %v892_v20 }
 0x139   :  { %v462_v23 = vmul.f32 0.5, %v461_v44 }
 0x13a   :  { %v194_v28 = vsub.f32 %v186_v24, %v190_v26  ;;  %v445_v29 = vsub.f32 %v437_v22, %v441_v25 }
 0x13b   :  { %v463_v27 = vsub.f32 1.5, %v462_v23 }
 0x13c   :  { %v681_v30 = vpop.eup %680  ;;  %v198_v34 = vmax.f32 %v194_v28, 0.0  ;;  %v449_v39 = vmax.f32 %v445_v29, 0.0 }
 0x13d   :  { %v683_v31 = vpop.eup %682  ;;  %v464_v32 = vmul.f32 %v679_v10, %v463_v27  ;;  %v218_v33 = vmul.f32 %v681_v30, %v884_v12  ;;  %v414_v35 = vpop.xlane.xlu1 %413  ;;  %vm224_vm8 = vweird.f32 %v681_v30 }
 0x13e   :  { %v228_v38 = vmul.f32 %v683_v31, %v886_v13  ;;  %v434_v40 = vpop.xlane.xlu0 %433  ;;  %v906_v45 = vadd.f32 1e-05, %v198_v34  ;;  %v908_v46 = vmul.f32 0.0625, %v414_v35  ;;  %v910_v52 = vadd.f32 1e-05, %v449_v39  ;;  %vm225_vm11 = vmor %vm223_vm10, %vm224_vm8 }
 0x13f   :  { %v468_v41 = vsel %vm467_vm7, %v679_v10, %v464_v32  ;;  %v219_v42 = vmul.f32 %v681_v30, %v218_v33  ;;  %v438_v55 = vmul.f32 0.0625, %v434_v40  ;;  %vm234_vm9 = vweird.f32 %v683_v31 }
 0x140   :  { %v499_v48 = vmul.f32 %v468_v41, %v451_v37  ;;  %v229_v50 = vmul.f32 %v683_v31, %v228_v38  ;;  %684 = vrsqrt.f32 %v906_v45  ;;  %v442_v51 = vmul.f32 %v908_v46, %v908_v46  ;;  %vm235_vm13 = vmor %vm233_vm12, %vm234_vm9 }
 0x141   :  { %v220_v54 = vmul.f32 0.5, %v219_v42  ;;  %686 = vrsqrt.f32 %v910_v52  ;;  %vm243_vm0 = vweird.f32 %v906_v45  ;;  %v202_v32 = vsub.f32 %v843_v8, %v892_v20 }
 0x142   :  { %v503_v36 = vmax.f32 %v499_v48, 0.0  ;;  %v230_v56 = vmul.f32 0.5, %v229_v50  ;;  %v446_v58 = vsub.f32 %v438_v55, %v442_v51  ;;  %vm485_vm2 = vweird.f32 %v910_v52 }
 0x143   :  { %v221_v57 = vsub.f32 1.5, %v220_v54  ;;  %v453_v34 = vsub.f32 %v845_v9, %v890_v19  ;;  %v454_v9 = vsub.f32 %v856_v18, %v908_v46 }
 0x144   :  { %v507_v59 = vpack.c.bf16 %v503_v36, %v503_v36  ;;  %v231_v63 = vsub.f32 1.5, %v230_v56  ;;  %v450_v1 = vmax.f32 %v446_v58, 0.0 }
 0x145   :  { %v222_v0 = vmul.f32 %v681_v30, %v221_v57  ;;  %v428_v2 = vpop.xlane.xlu1 %427 }
 0x146   :  { %646 = vst.msk [vmem:[%s969_s2 + $0x10] sm:$0xf] %vm259_vm4, %v507_v59  ;;  %v232_v4 = vmul.f32 %v683_v31, %v231_v63  ;;  %v436_v43 = vmul.f32 0.0625, %v428_v2  ;;  %v685_v5 = vpop.eup %684  ;;  %v458_v10 = vadd.f32 1e-05, %v450_v1  ;;  %v452_v63 = vsub.f32 %v832_v62, %v917_v60 }
 0x147   :  { %v226_v7 = vsel %vm225_vm11, %v681_v30, %v222_v0  ;;  %v687_v11 = vpop.eup %686  ;;  %v238_v14 = vmul.f32 %v685_v5, %v906_v45  ;;  %vm244_vm14 = vweird.f32 %v685_v5 }
 0x148   :  { %v248_v47 = vmul.f32 %v226_v7, %v200_v3  ;;  %v236_v12 = vsel %vm235_vm13, %v683_v31, %v232_v4  ;;  %v480_v16 = vmul.f32 %v687_v11, %v910_v52  ;;  %688 = vrsqrt.f32 %v458_v10  ;;  %vm245_vm1 = vmor %vm243_vm0, %vm244_vm14 }
 0x149   :  { %v249_v15 = vmul.f32 %v236_v12, %v201_v6  ;;  %v239_v17 = vmul.f32 %v685_v5, %v238_v14  ;;  %v444_v44 = vsub.f32 %v436_v43, %v440_v53  ;;  %vm486_vm15 = vweird.f32 %v687_v11 }
 0x14a   :  { %v252_v13 = vmax.f32 %v248_v47, 0.0  ;;  %v481_v61 = vmul.f32 %v687_v11, %v480_v16  ;;  %vm487_vm3 = vmor %vm485_vm2, %vm486_vm15  ;;  %vm495_vm6 = vweird.f32 %v458_v10 }
 0x14b   :  { %v253_v21 = vmax.f32 %v249_v15, 0.0  ;;  %v240_v22 = vmul.f32 0.5, %v239_v17  ;;  %v448_v23 = vmax.f32 %v444_v44, 0.0 }
 0x14c   :  { %v256_v49 = vpack.c.bf16 %v252_v13, %v252_v13  ;;  %v482_v25 = vmul.f32 0.5, %v481_v61 }
 0x14d   :  { %v257_v24 = vpack.c.bf16 %v253_v21, %v253_v21  ;;  %v241_v26 = vsub.f32 1.5, %v240_v22  ;;  %v456_v27 = vadd.f32 1e-05, %v448_v23 }
 0x14e   :  { %261 = vst.msk [vmem:[%s969_s2 + $0x4] sm:$0xf] %vm259_vm4, %v256_v49  ;;  %v689_v28 = vpop.eup %688  ;;  %v483_v29 = vsub.f32 1.5, %v482_v25 }
 0x14f   :  { %262 = vst.msk [vmem:[%s969_s2 + $0x8] sm:$0xf] %vm259_vm4, %v257_v24  ;;  %v242_v30 = vmul.f32 %v685_v5, %v241_v26  ;;  %v490_v31 = vmul.f32 %v689_v28, %v458_v10  ;;  %690 = vrsqrt.f32 %v456_v27  ;;  %vm496_vm5 = vweird.f32 %v689_v28 }
 0x150   :  { %v484_v33 = vmul.f32 %v687_v11, %v483_v29  ;;  %vm497_vm7 = vmor %vm495_vm6, %vm496_vm5  ;;  %vm475_vm9 = vweird.f32 %v456_v27 }
 0x151   :  { %v246_v35 = vsel %vm245_vm1, %v685_v5, %v242_v30  ;;  %v491_v37 = vmul.f32 %v689_v28, %v490_v31 }
 0x152   :  { %v250_v38 = vmul.f32 %v246_v35, %v202_v32  ;;  %v488_v39 = vsel %vm487_vm3, %v687_v11, %v484_v33 }
 0x153   :  { %v501_v40 = vmul.f32 %v488_v39, %v453_v34  ;;  %v492_v41 = vmul.f32 0.5, %v491_v37 }
 0x154   :  { %v254_v42 = vmax.f32 %v250_v38, 0.0 }
 0x155   :  { %v691_v45 = vpop.eup %690  ;;  %v505_v48 = vmax.f32 %v501_v40, 0.0  ;;  %v493_v50 = vsub.f32 1.5, %v492_v41 }
 0x156   :  { %v258_v8 = vpack.c.bf16 %v254_v42, %v254_v42  ;;  %v470_v20 = vmul.f32 %v691_v45, %v456_v27  ;;  %vm476_vm8 = vweird.f32 %v691_v45 }
 0x157   :  { %v509_v54 = vpack.c.bf16 %v505_v48, %v505_v48  ;;  %v494_v55 = vmul.f32 %v689_v28, %v493_v50  ;;  %vm477_vm10 = vmor %vm475_vm9, %vm476_vm8 }
 0x158   :  { %263 = vst.msk [vmem:[%s969_s2 + $0xc] sm:$0xf] %vm259_vm4, %v258_v8  ;;  %v471_v19 = vmul.f32 %v691_v45, %v470_v20 }
 0x159   :  { %648 = vst.msk [vmem:[%s969_s2 + $0x18] sm:$0xf] %vm259_vm4, %v509_v54  ;;  %v498_v52 = vsel %vm497_vm7, %v689_v28, %v494_v55 }
 0x15a   :  { %v502_v51 = vmul.f32 %v498_v52, %v454_v9  ;;  %v472_v36 = vmul.f32 0.5, %v471_v19 }
 0x15c   :  { %v506_v56 = vmax.f32 %v502_v51, 0.0  ;;  %v473_v57 = vsub.f32 1.5, %v472_v36 }
 0x15e   :  { %v510_v58 = vpack.c.bf16 %v506_v56, %v506_v56  ;;  %v474_v59 = vmul.f32 %v691_v45, %v473_v57 }
 0x160   :  { %649 = vst.msk [vmem:[%s969_s2 + $0x1c] sm:$0xf] %vm259_vm4, %v510_v58  ;;  %v478_v18 = vsel %vm477_vm10, %v691_v45, %v474_v59 }
 0x161   :  { %v500_v46 = vmul.f32 %v478_v18, %v452_v63 }
 0x163   :  { %v504_v0 = vmax.f32 %v500_v46, 0.0 }
 0x165   :  { %v508_v1 = vpack.c.bf16 %v504_v0, %v504_v0 }
 0x167   :  { %647 = vst.msk [vmem:[%s969_s2 + $0x14] sm:$0xf] %vm259_vm4, %v508_v1 }

// kernel: _lambda_.12
= control target key start
LH: loop header
LB: loop body
LE: loop exit
PB: predicated region body
PF: predicated region fallthrough
CT: control target
= control target key end

     0   :  { %vm232_vm0 = vcmask 261120   ;;  %vm332_vm1 = vcmask 31744   ;;  %vm549_vm6 = vcmask 27648   ;;  %s2129_s0 = inlined_call_operand.vmem [shape: bf16[2,288,4], index: 0, kind: input, shape index: {}]   ;;  %s2130_s1 = inlined_call_operand.vmem [shape: bf16[64,288], index: 1, kind: input, shape index: {}]   ;;  %s2131_s2 = inlined_call_operand.vmem [shape: bf16[2,64,4], index: 2, kind: output, shape index: {}]  }
   0x1   :  { %v1418_v0 = vld [vmem:[%s2129_s0 + $0x38] sm:$0xff]  ;;  %v1428_v1 = vld [vmem:[%s2129_s0 + $0x88] sm:$0xff]  ;;  %v1417_v2 = vld [vmem:[%s2129_s0 + $0x30] sm:$0xff] }
   0x2   :  { %245 = vmatpush.bf16.msra.mxu0 %v1418_v0  ;;  %1459 = vmatpush.bf16.msra.mxu1 %v1418_v0  ;;  %v1427_v3 = vld [vmem:[%s2129_s0 + $0x80] sm:$0xff]  ;;  %v1117_v4 = vld [vmem:[%s2130_s1 + $0x8] sm:$0xf]  ;;  %v1401_v5 = vld [vmem:[%s2130_s1 + $0x10] sm:$0xf0] }
   0x3   :  { %309 = vmatpush.bf16.msra.mxu2 %v1428_v1  ;;  %1467 = vmatpush.bf16.msra.mxu3 %v1428_v1  ;;  %v1141_v6 = vld [vmem:[%s2130_s1 + $0x38] sm:$0xf]  ;;  %v1407_v7 = vld [vmem:[%s2130_s1 + $0x40] sm:$0xf0]  ;;  %v1448_v8 = vld [vmem:[%s2129_s0 + $0xc8] sm:$0xff]  ;;  %v1118_v11 = vor.u32 %v1401_v5, %v1117_v4 }
   0x4   :  { %v1456_v9 = vld [vmem:[%s2129_s0 + $0x108] sm:$0xff]  ;;  %v1142_v12 = vor.u32 %v1407_v7, %v1141_v6  ;;  %v1447_v13 = vld [vmem:[%s2129_s0 + $0xc0] sm:$0xff]  ;;  %v1446_v16 = vld [vmem:[%s2129_s0 + $0xb8] sm:$0xff] }
   0x5   :  { %v1416_v10 = vld [vmem:[%s2129_s0 + $0x28] sm:$0xff]  ;;  %v1455_v14 = vld [vmem:[%s2129_s0 + $0x100] sm:$0xff]  ;;  %v1454_v17 = vld [vmem:[%s2129_s0 + $0xf8] sm:$0xff] }
   0x6   :  { %246 = vmatpush.bf16.msra.mxu0 %v1417_v2  ;;  %1460 = vmatpush.bf16.msra.mxu1 %v1417_v2  ;;  %v1415_v15 = vld [vmem:[%s2129_s0 + $0x20] sm:$0xff]  ;;  %v1414_v18 = vld [vmem:[%s2129_s0 + $0x18] sm:$0xff]  ;;  %v1445_v19 = vld [vmem:[%s2129_s0 + $0xb0] sm:$0xff] }
   0x7   :  { %310 = vmatpush.bf16.msra.mxu2 %v1427_v3  ;;  %1468 = vmatpush.bf16.msra.mxu3 %v1427_v3  ;;  %v1453_v20 = vld [vmem:[%s2129_s0 + $0xf0] sm:$0xff]  ;;  %v1129_v22 = vld [vmem:[%s2130_s1 + $0x20] sm:$0xf]  ;;  %v1404_v23 = vld [vmem:[%s2130_s1 + $0x28] sm:$0xf0] }
   0x8   :  { %v1413_v21 = vld [vmem:[%s2129_s0 + $0x10] sm:$0xff]  ;;  %v1410_v25 = vld [vmem:[%s2130_s1 + $0x58] sm:$0xf0]  ;;  %v1444_v26 = vld [vmem:[%s2129_s0 + $0xa8] sm:$0xff]  ;;  %v1130_v29 = vor.u32 %v1404_v23, %v1129_v22 }
   0x9   :  { %v1153_v24 = vld [vmem:[%s2130_s1 + $0x50] sm:$0xf]  ;;  %v1452_v27 = vld [vmem:[%s2129_s0 + $0xe8] sm:$0xff]  ;;  %v1443_v31 = vld [vmem:[%s2129_s0 + $0xa0] sm:$0xff] }
   0xa   :  { %247 = vmatpush.bf16.msra.mxu0 %v1416_v10  ;;  %1461 = vmatpush.bf16.msra.mxu1 %v1416_v10  ;;  %v1412_v28 = vld [vmem:[%s2129_s0 + $0x8] sm:$0xff]  ;;  %v1154_v30 = vor.u32 %v1410_v25, %v1153_v24  ;;  %v1451_v32 = vld [vmem:[%s2129_s0 + $0xe0] sm:$0xff]  ;;  %v1133_v36 = vld [vmem:[%s2130_s1 + $0x30] sm:$0xf] }
   0xb   :  { %791 = vmatpush.bf16.msrb.mxu3 %v1448_v8  ;;  %820 = vmatpush.bf16.msrb.mxu2 %v1456_v9  ;;  %v1411_v33 = vld [vmem:[%s2129_s0] sm:$0xff]  ;;  %v1400_v35 = vld [vmem:[%s2130_s1 + $0x8] sm:$0xf0]  ;;  %v1406_v37 = vld [vmem:[%s2130_s1 + $0x38] sm:$0xf0] }
   0xc   :  { %1227 = vmatmul.msk.bf16.vlgmr.msra.gmra.mxu2 %vm232_vm0, %v1118_v11  ;;  %1229 = vmatmul.msk.bf16.vlgmr.msra.gmra.mxu3 %vm232_vm0, %v1142_v12  ;;  %v1109_v34 = vld [vmem:[%s2130_s1] sm:$0xf]  ;;  %v1426_v38 = vld [vmem:[%s2129_s0 + $0x78] sm:$0xff]  ;;  %v1134_v43 = vor.u32 %v1406_v37, %v1133_v36  ;;  %v1425_v44 = vld [vmem:[%s2129_s0 + $0x70] sm:$0xff] }
   0xd   :  { %v1458_v39 = vld [vmem:[%s2129_s0 + $0x118] sm:$0xff]  ;;  %v1110_v42 = vor.u32 %v1400_v35, %v1109_v34  ;;  %v1457_v45 = vld [vmem:[%s2129_s0 + $0x110] sm:$0xff]  ;;  %v1424_v48 = vld [vmem:[%s2129_s0 + $0x68] sm:$0xff] }
   0xe   :  { %248 = vmatpush.bf16.msra.mxu0 %v1415_v15  ;;  %1462 = vmatpush.bf16.msra.mxu1 %v1415_v15  ;;  %v1442_v40 = vld [vmem:[%s2129_s0 + $0x98] sm:$0xff]  ;;  %v1441_v46 = vld [vmem:[%s2129_s0 + $0x90] sm:$0xff]  ;;  %v1269_v49 = vld [vmem:[%s2130_s1] sm:$0xf] }
   0xf   :  { %792 = vmatpush.bf16.msrb.mxu3 %v1447_v13  ;;  %821 = vmatpush.bf16.msrb.mxu2 %v1455_v14  ;;  %v1450_v41 = vld [vmem:[%s2129_s0 + $0xd8] sm:$0xff]  ;;  %v1449_v47 = vld [vmem:[%s2129_s0 + $0xd0] sm:$0xff]  ;;  %v1430_v50 = vld [vmem:[%s2130_s1 + $0x8] sm:$0xf0] }
  0x10   :  { %v1429_v51 = vld [vmem:[%s2130_s1 + $0x4] sm:$0xf]  ;;  %v1271_v52 = vld [vmem:[%s2130_s1 + $0xc] sm:$0xf0]  ;;  %v1270_v54 = vor.u32 %v1430_v50, %v1269_v49  ;;  %v1121_v56 = vld [vmem:[%s2130_s1 + $0x18] sm:$0xf] }
  0x11   :  { %v1423_v53 = vld [vmem:[%s2129_s0 + $0x60] sm:$0xff]  ;;  %v1274_v55 = vor.u32 %v1429_v51, %v1271_v52  ;;  %v1145_v58 = vld [vmem:[%s2130_s1 + $0x48] sm:$0xf]  ;;  %v1409_v59 = vld [vmem:[%s2130_s1 + $0x50] sm:$0xf0] }
  0x12   :  { %249 = vmatpush.bf16.msra.mxu0 %v1414_v18  ;;  %1463 = vmatpush.bf16.msra.mxu1 %v1414_v18  ;;  %v1403_v57 = vld [vmem:[%s2130_s1 + $0x20] sm:$0xf0]  ;;  %v1422_v60 = vld [vmem:[%s2129_s0 + $0x58] sm:$0xff]  ;;  %v1146_v62 = vor.u32 %v1409_v59, %v1145_v58  ;;  %v1421_v63 = vld [vmem:[%s2129_s0 + $0x50] sm:$0xff] }
  0x13   :  { %793 = vmatpush.bf16.msrb.mxu3 %v1446_v16  ;;  %822 = vmatpush.bf16.msrb.mxu2 %v1454_v17  ;;  %v1122_v61 = vor.u32 %v1403_v57, %v1121_v56  ;;  %v1420_v0 = vld [vmem:[%s2129_s0 + $0x48] sm:$0xff]  ;;  %v1281_v1 = vld [vmem:[%s2130_s1 + $0x18] sm:$0xf]  ;;  %v1433_v2 = vld [vmem:[%s2130_s1 + $0x20] sm:$0xf0] }
  0x14   :  { %v1432_v3 = vld [vmem:[%s2130_s1 + $0x1c] sm:$0xf]  ;;  %v1283_v4 = vld [vmem:[%s2130_s1 + $0x24] sm:$0xf0]  ;;  %v1419_v5 = vld [vmem:[%s2129_s0 + $0x40] sm:$0xff]  ;;  %v1282_v6 = vor.u32 %v1433_v2, %v1281_v1 }
  0x15   :  { %v1286_v7 = vor.u32 %v1432_v3, %v1283_v4  ;;  %v1399_v8 = vld [vmem:[%s2130_s1 + $0x4] sm:$0xf]  ;;  %v1111_v9 = vld [vmem:[%s2130_s1 + $0xc] sm:$0xf0]  ;;  %v1277_v10 = vld [vmem:[%s2130_s1 + $0x8] sm:$0xf] }
  0x16   :  { %250 = vmatpush.bf16.msra.mxu0 %v1413_v21  ;;  %1464 = vmatpush.bf16.msra.mxu1 %v1413_v21  ;;  %v1431_v11 = vld [vmem:[%s2130_s1 + $0x10] sm:$0xf0]  ;;  %v1114_v12 = vor.u32 %v1399_v8, %v1111_v9  ;;  %v1293_v14 = vld [vmem:[%s2130_s1 + $0x30] sm:$0xf]  ;;  %v1436_v15 = vld [vmem:[%s2130_s1 + $0x38] sm:$0xf0] }
  0x17   :  { %794 = vmatpush.bf16.msrb.mxu3 %v1445_v19  ;;  %823 = vmatpush.bf16.msrb.mxu2 %v1453_v20  ;;  %v1278_v13 = vor.u32 %v1431_v11, %v1277_v10  ;;  %v1435_v16 = vld [vmem:[%s2130_s1 + $0x34] sm:$0xf]  ;;  %v1295_v17 = vld [vmem:[%s2130_s1 + $0x3c] sm:$0xf0]  ;;  %v1294_v18 = vor.u32 %v1436_v15, %v1293_v14  ;;  %v1402_v20 = vld [vmem:[%s2130_s1 + $0x1c] sm:$0xf] }
  0x18   :  { %v1298_v19 = vor.u32 %v1435_v16, %v1295_v17  ;;  %v1123_v21 = vld [vmem:[%s2130_s1 + $0x24] sm:$0xf0]  ;;  %v1289_v22 = vld [vmem:[%s2130_s1 + $0x20] sm:$0xf]  ;;  %v1434_v23 = vld [vmem:[%s2130_s1 + $0x28] sm:$0xf0] }
  0x19   :  { %v1126_v24 = vor.u32 %v1402_v20, %v1123_v21  ;;  %v1290_v25 = vor.u32 %v1434_v23, %v1289_v22  ;;  %v1301_v34 = vld [vmem:[%s2130_s1 + $0x38] sm:$0xf]  ;;  %v1437_v35 = vld [vmem:[%s2130_s1 + $0x40] sm:$0xf0] }
  0x1a   :  { %251 = vmatpush.bf16.msra.mxu0 %v1412_v28  ;;  %1465 = vmatpush.bf16.msra.mxu1 %v1412_v28  ;;  %v1438_v28 = vld [vmem:[%s2130_s1 + $0x4c] sm:$0xf]  ;;  %v1302_v37 = vor.u32 %v1437_v35, %v1301_v34 }
  0x1b   :  { %795 = vmatpush.bf16.msrb.mxu3 %v1444_v26  ;;  %824 = vmatpush.bf16.msrb.mxu2 %v1452_v27  ;;  %v1305_v26 = vld [vmem:[%s2130_s1 + $0x48] sm:$0xf]  ;;  %v1439_v27 = vld [vmem:[%s2130_s1 + $0x50] sm:$0xf0] }
  0x1c   :  { %1228 = vmatmul.msk.bf16.gmra.mxu2 %vm232_vm0, %v1130_v29  ;;  %1230 = vmatmul.msk.bf16.gmra.mxu3 %vm232_vm0, %v1154_v30  ;;  %v1307_v29 = vld [vmem:[%s2130_s1 + $0x54] sm:$0xf0]  ;;  %v1306_v30 = vor.u32 %v1439_v27, %v1305_v26 }
  0x1e   :  { %252 = vmatpush.bf16.msra.mxu0 %v1411_v33  ;;  %1466 = vmatpush.bf16.msra.mxu1 %v1411_v33  ;;  %v1135_v33 = vld [vmem:[%s2130_s1 + $0x3c] sm:$0xf0] }
  0x1f   :  { %796 = vmatpush.bf16.msrb.mxu3 %v1443_v31  ;;  %825 = vmatpush.bf16.msrb.mxu2 %v1451_v32  ;;  %v1310_v31 = vor.u32 %v1438_v28, %v1307_v29  ;;  %v1405_v32 = vld [vmem:[%s2130_s1 + $0x34] sm:$0xf] }
  0x20   :  { %v1138_v36 = vor.u32 %v1405_v32, %v1135_v33 }
  0x21   :  { %253 = vmatmul.bf16.vlgmr.msra.gmra.mxu0 %v1110_v42  ;;  %263 = vmatmul.bf16.vlgmr.msra.gmra.mxu1 %v1134_v43 }
  0x22   :  { %274 = vmatpush.bf16.msrb.mxu1 %v1426_v38  ;;  %855 = vmatpush.bf16.msrb.mxu0 %v1458_v39  ;;  %v1408_v38 = vld [vmem:[%s2130_s1 + $0x4c] sm:$0xf]  ;;  %v1147_v39 = vld [vmem:[%s2130_s1 + $0x54] sm:$0xf0] }
  0x23   :  { %797 = vmatpush.bf16.msrb.mxu3 %v1442_v40  ;;  %826 = vmatpush.bf16.msrb.mxu2 %v1450_v41  ;;  %v1313_v40 = vld [vmem:[%s2130_s1 + $0x50] sm:$0xf]  ;;  %v1440_v41 = vld [vmem:[%s2130_s1 + $0x58] sm:$0xf0]  ;;  %v1150_v42 = vor.u32 %v1408_v38, %v1147_v39 }
  0x24   :  { %v1314_v43 = vor.u32 %v1440_v41, %v1313_v40 }
  0x26   :  { %275 = vmatpush.bf16.msrb.mxu1 %v1425_v44  ;;  %856 = vmatpush.bf16.msrb.mxu0 %v1457_v45 }
  0x27   :  { %798 = vmatpush.bf16.msrb.mxu3 %v1441_v46  ;;  %827 = vmatpush.bf16.msrb.mxu2 %v1449_v47 }
  0x2a   :  { %276 = vmatpush.bf16.msrb.mxu1 %v1424_v48 }
  0x2c   :  { %799 = vmatmul.bf16.vlgmr.msrb.gmra.mxu3 %v1270_v54  ;;  %828 = vmatmul.bf16.vlgmr.msrb.gmra.mxu2 %v1274_v55 }
  0x2e   :  { %277 = vmatpush.bf16.msrb.mxu1 %v1423_v53 }
  0x31   :  { %258 = vmatmul.bf16.gmra.mxu0 %v1122_v61  ;;  %268 = vmatmul.bf16.gmra.mxu1 %v1146_v62 }
  0x32   :  { %278 = vmatpush.bf16.msrb.mxu1 %v1422_v60 }
  0x36   :  { %279 = vmatpush.bf16.msrb.mxu1 %v1421_v63 }
  0x3a   :  { %280 = vmatpush.bf16.msrb.mxu1 %v1420_v0 }
  0x3c   :  { %804 = vmatmul.bf16.gmra.mxu3 %v1282_v6  ;;  %833 = vmatmul.bf16.gmra.mxu2 %v1286_v7 }
  0x3e   :  { %281 = vmatpush.bf16.msrb.mxu1 %v1419_v5 }
  0x41   :  { %282 = vmatmul.bf16.vlgmr.msrb.gmra.mxu1 %v1114_v12  ;;  %1387 = vmatmul.msk.bf16.vlgmr.msrb.gmra.mxu0 %vm232_vm0, %v1278_v13 }
  0x4c   :  { %809 = vmatmul.bf16.gmra.mxu3 %v1294_v18  ;;  %838 = vmatmul.bf16.gmra.mxu2 %v1298_v19 }
  0x51   :  { %287 = vmatmul.bf16.gmra.mxu1 %v1126_v24  ;;  %1388 = vmatmul.msk.bf16.gmra.mxu0 %vm232_vm0, %v1290_v25 }
  0x5c   :  { %814 = vmatmul.bf16.gmra.mxu3 %v1306_v30  ;;  %843 = vmatmul.bf16.gmra.mxu2 %v1310_v31 }
  0x61   :  { %292 = vmatmul.bf16.gmra.mxu1 %v1138_v36  ;;  %1389 = vmatmul.msk.bf16.gmra.mxu0 %vm232_vm0, %v1302_v37 }
  0x71   :  { %297 = vmatmul.bf16.gmra.mxu1 %v1150_v42  ;;  %1390 = vmatmul.msk.bf16.gmra.mxu0 %vm232_vm0, %v1314_v43 }
  0x8f   :  { %v312_v44 = vpop.f32.mrf.mxu2  ;;  %v1776_v45 = vpop.f32.mrf.mxu3 }
  0x97   :  { %v314_v46 = vpop.f32.mrf.mxu2  ;;  %v1778_v47 = vpop.f32.mrf.mxu3 }
  0x9e   :  { %v254_v48 = vpop.f32.mrf.mxu0  ;;  %v1780_v49 = vpop.f32.mrf.mxu1 }
  0x9f   :  { %v317_v50 = vpop.f32.mrf.mxu2  ;;  %v1782_v51 = vpop.f32.mrf.mxu3 }
  0xa6   :  { %v256_v52 = vpop.f32.mrf.mxu0  ;;  %v1784_v53 = vpop.f32.mrf.mxu1 }
  0xa7   :  { %v1786_v54 = vpop.f32.mrf.mxu2  ;;  %v1788_v55 = vpop.f32.mrf.mxu3 }
  0xae   :  { %v259_v56 = vpop.f32.mrf.mxu0  ;;  %v1790_v57 = vpop.f32.mrf.mxu1 }
  0xaf   :  { %v800_v60 = vpop.f32.mrf.mxu3  ;;  %v829_v61 = vpop.f32.mrf.mxu2 }
  0xb0   :  { %v830_v62 = vadd.f32 %v829_v61, %v800_v60 }
  0xb6   :  { %v261_v58 = vpop.f32.mrf.mxu0  ;;  %v1792_v59 = vpop.f32.mrf.mxu1 }
  0xb7   :  { %v802_v5 = vpop.f32.mrf.mxu3  ;;  %v831_v6 = vpop.f32.mrf.mxu2 }
  0xb8   :  { %v832_v9 = vadd.f32 %v831_v6, %v802_v5 }
  0xbe   :  { %v283_v63 = vpop.f32.mrf.mxu1  ;;  %v858_v0 = vpop.f32.mrf.mxu0 }
  0xbf   :  { %v284_v1 = vadd.f32 %v283_v63, %v254_v48  ;;  %v1794_v2 = vadd.f32 %v858_v0, %v830_v62  ;;  %v805_v18 = vpop.f32.mrf.mxu3  ;;  %v834_v19 = vpop.f32.mrf.mxu2 }
  0xc0   :  { %v835_v20 = vadd.f32 %v834_v19, %v805_v18 }
  0xc1   :  { %v1796_v3 = vadd.f32 %v312_v44, %v284_v1  ;;  %v878_v4 = vsel %vm332_vm1, %v1794_v2, 0.0  ;;  %v910_v15 = vmul.f32 %v1794_v2, %v1794_v2 }
  0xc2   :  { %879 = vadd.xlane.f32.xlu2 %v878_v4 }
  0xc3   :  { %v333_v7 = vsel %vm332_vm1, %v1796_v3, 0.0  ;;  %v365_v8 = vmul.f32 %v1796_v3, %v1796_v3  ;;  %v918_v21 = vsel %vm332_vm1, %v910_v15, 0.0 }
  0xc4   :  { %334 = vadd.xlane.f32.xlu0 %v333_v7 }
  0xc5   :  { %v373_v10 = vsel %vm332_vm1, %v365_v8, 0.0 }
  0xc6   :  { %v285_v11 = vpop.f32.mrf.mxu1  ;;  %374 = vadd.xlane.f32.xlu1 %v373_v10  ;;  %v860_v12 = vpop.f32.mrf.mxu0 }
  0xc7   :  { %v286_v13 = vadd.f32 %v285_v11, %v256_v52  ;;  %v1805_v14 = vadd.f32 %v860_v12, %v832_v9  ;;  %v807_v32 = vpop.f32.mrf.mxu3  ;;  %v836_v33 = vpop.f32.mrf.mxu2 }
  0xc8   :  { %v837_v37 = vadd.f32 %v836_v33, %v807_v32 }
  0xc9   :  { %v1809_v16 = vadd.f32 %v314_v46, %v286_v13  ;;  %v911_v17 = vmul.f32 %v1805_v14, %v1805_v14  ;;  %v881_v29 = vsel %vm332_vm1, %v1805_v14, 0.0 }
  0xcb   :  { %v366_v22 = vmul.f32 %v1809_v16, %v1809_v16  ;;  %v921_v23 = vsel %vm332_vm1, %v911_v17, 0.0  ;;  %v336_v40 = vsel %vm332_vm1, %v1809_v16, 0.0 }
  0xcc   :  { %919 = vadd.xlane.f32.xlu0 %v918_v21 }
  0xcd   :  { %v376_v24 = vsel %vm332_vm1, %v366_v22, 0.0 }
  0xce   :  { %v288_v25 = vpop.f32.mrf.mxu1  ;;  %v863_v26 = vpop.f32.mrf.mxu0  ;;  %922 = vadd.xlane.f32.xlu1 %v921_v23  ;;  %377 = vadd.xlane.f32.xlu2 %v376_v24 }
  0xcf   :  { %v1818_v27 = vadd.f32 %v863_v26, %v835_v20  ;;  %v289_v34 = vadd.f32 %v288_v25, %v259_v56  ;;  %v810_v44 = vpop.f32.mrf.mxu3  ;;  %v839_v48 = vpop.f32.mrf.mxu2 }
  0xd0   :  { %v840_v0 = vadd.f32 %v839_v48, %v810_v44 }
  0xd1   :  { %v912_v28 = vmul.f32 %v1818_v27, %v1818_v27  ;;  %v884_v30 = vsel %vm332_vm1, %v1818_v27, 0.0  ;;  %v1827_v38 = vadd.f32 %v317_v50, %v289_v34 }
  0xd3   :  { %v924_v31 = vsel %vm332_vm1, %v912_v28, 0.0  ;;  %v339_v42 = vsel %vm332_vm1, %v1827_v38, 0.0  ;;  %v367_v52 = vmul.f32 %v1827_v38, %v1827_v38 }
  0xd4   :  { %882 = vadd.xlane.f32.xlu0 %v881_v29 }
  0xd5   :  { %v379_v61 = vsel %vm332_vm1, %v367_v52, 0.0 }
  0xd6   :  { %v290_v35 = vpop.f32.mrf.mxu1  ;;  %v865_v36 = vpop.f32.mrf.mxu0  ;;  %885 = vadd.xlane.f32.xlu1 %v884_v30  ;;  %925 = vadd.xlane.f32.xlu2 %v924_v31 }
  0xd7   :  { %v1829_v39 = vadd.f32 %v865_v36, %v837_v37  ;;  %v291_v41 = vadd.f32 %v290_v35, %v261_v58  ;;  %v812_v1 = vpop.f32.mrf.mxu3 }
  0xd9   :  { %v887_v43 = vsel %vm332_vm1, %v1829_v39, 0.0  ;;  %v1841_v56 = vadd.f32 %v1786_v54, %v291_v41  ;;  %v913_v54 = vmul.f32 %v1829_v39, %v1829_v39 }
  0xdb   :  { %v342_v63 = vsel %vm332_vm1, %v1841_v56, 0.0  ;;  %v368_v5 = vmul.f32 %v1841_v56, %v1841_v56  ;;  %v927_v7 = vsel %vm332_vm1, %v913_v54, 0.0 }
  0xdc   :  { %337 = vadd.xlane.f32.xlu0 %v336_v40 }
  0xdd   :  { %v382_v11 = vsel %vm332_vm1, %v368_v5, 0.0 }
  0xde   :  { %v293_v46 = vpop.f32.mrf.mxu1  ;;  %340 = vadd.xlane.f32.xlu1 %v339_v42  ;;  %888 = vadd.xlane.f32.xlu2 %v887_v43  ;;  %v868_v60 = vpop.f32.mrf.mxu0 }
  0xdf   :  { %v294_v50 = vadd.f32 %v293_v46, %v1780_v49  ;;  %v1857_v6 = vadd.f32 %v868_v60, %v840_v0  ;;  %v815_v15 = vpop.f32.mrf.mxu3 }
  0xe1   :  { %v1844_v58 = vadd.f32 %v1776_v45, %v294_v50  ;;  %v841_v45 = vpop.f32.mrf.mxu2  ;;  %v914_v13 = vmul.f32 %v1857_v6, %v1857_v6  ;;  %v890_v19 = vsel %vm332_vm1, %v1857_v6, 0.0 }
  0xe2   :  { %v842_v22 = vadd.f32 %v841_v45, %v812_v1 }
  0xe3   :  { %v345_v62 = vsel %vm332_vm1, %v1844_v58, 0.0  ;;  %v369_v4 = vmul.f32 %v1844_v58, %v1844_v58 }
  0xe4   :  { %380 = vadd.xlane.f32.xlu0 %v379_v61 }
  0xe5   :  { %v385_v10 = vsel %vm332_vm1, %v369_v4, 0.0 }
  0xe6   :  { %v295_v49 = vpop.f32.mrf.mxu1  ;;  %346 = vadd.xlane.f32.xlu2 %v345_v62  ;;  %343 = vadd.xlane.f32.xlu1 %v342_v63  ;;  %v870_v8 = vpop.f32.mrf.mxu0 }
  0xe7   :  { %v296_v9 = vadd.f32 %v295_v49, %v1784_v53  ;;  %v930_v53 = vsel %vm332_vm1, %v914_v13, 0.0  ;;  %v1878_v28 = vadd.f32 %v870_v8, %v842_v22 }
  0xe9   :  { %v844_v17 = vpop.f32.mrf.mxu2  ;;  %v1866_v18 = vadd.f32 %v1778_v47, %v296_v9  ;;  %v893_v34 = vsel %vm332_vm1, %v1878_v28, 0.0  ;;  %v915_v43 = vmul.f32 %v1878_v28, %v1878_v28 }
  0xea   :  { %v845_v20 = vadd.f32 %v844_v17, %v815_v15 }
  0xeb   :  { %v348_v23 = vsel %vm332_vm1, %v1866_v18, 0.0  ;;  %v370_v47 = vmul.f32 %v1866_v18, %v1866_v18  ;;  %v933_v46 = vsel %vm332_vm1, %v915_v43, 0.0 }
  0xec   :  { %928 = vadd.xlane.f32.xlu0 %v927_v7 }
  0xed   :  { %v388_v30 = vsel %vm332_vm1, %v370_v47, 0.0 }
  0xee   :  { %v298_v12 = vpop.f32.mrf.mxu1  ;;  %386 = vadd.xlane.f32.xlu2 %v385_v10  ;;  %383 = vadd.xlane.f32.xlu1 %v382_v11  ;;  %v873_v21 = vpop.f32.mrf.mxu0 }
  0xef   :  { %v1873_v25 = vadd.f32 %v873_v21, %v845_v20  ;;  %v299_v26 = vadd.f32 %v298_v12, %v1790_v57  ;;  %v817_v57 = vpop.f32.mrf.mxu3 }
  0xf1   :  { %v896_v31 = vsel %vm332_vm1, %v1873_v25, 0.0  ;;  %v1885_v32 = vadd.f32 %v1782_v51, %v299_v26  ;;  %v846_v35 = vpop.f32.mrf.mxu2  ;;  %v916_v50 = vmul.f32 %v1873_v25, %v1873_v25 }
  0xf2   :  { %v847_v37 = vadd.f32 %v846_v35, %v817_v57 }
  0xf3   :  { %v371_v36 = vmul.f32 %v1885_v32, %v1885_v32  ;;  %v351_v51 = vsel %vm332_vm1, %v1885_v32, 0.0  ;;  %v936_v60 = vsel %vm332_vm1, %v916_v50, 0.0 }
  0xf4   :  { %891 = vadd.xlane.f32.xlu0 %v890_v19 }
  0xf5   :  { %v391_v41 = vsel %vm332_vm1, %v371_v36, 0.0 }
  0xf6   :  { %v300_v24 = vpop.f32.mrf.mxu1  ;;  %349 = vadd.xlane.f32.xlu2 %v348_v23  ;;  %931 = vadd.xlane.f32.xlu1 %v930_v53  ;;  %v875_v40 = vpop.f32.mrf.mxu0 }
  0xf7   :  { %v301_v29 = vadd.f32 %v300_v24, %v1792_v59  ;;  %v1900_v42 = vadd.f32 %v875_v40, %v847_v37 }
  0xf9   :  { %v1888_v33 = vadd.f32 %v1788_v55, %v301_v29  ;;  %v899_v44 = vsel %vm332_vm1, %v1900_v42, 0.0  ;;  %v917_v52 = vmul.f32 %v1900_v42, %v1900_v42 }
  0xfb   :  { %v372_v59 = vmul.f32 %v1888_v33, %v1888_v33  ;;  %v354_v48 = vsel %vm332_vm1, %v1888_v33, 0.0  ;;  %v939_v61 = vsel %vm332_vm1, %v917_v52, 0.0 }
  0xfc   :  { %389 = vadd.xlane.f32.xlu0 %v388_v30 }
  0xfd   :  { %v394_v55 = vsel %vm332_vm1, %v372_v59, 0.0 }
  0xfe   :  { %897 = vadd.xlane.f32.xlu2 %v896_v31  ;;  %894 = vadd.xlane.f32.xlu1 %v893_v34 }
 0x104   :  { %352 = vadd.xlane.f32.xlu0 %v351_v51 }
 0x106   :  { %395 = vadd.xlane.f32.xlu2 %v394_v55  ;;  %392 = vadd.xlane.f32.xlu1 %v391_v41 }
 0x10c   :  { %900 = vadd.xlane.f32.xlu0 %v899_v44 }
 0x10e   :  { %934 = vadd.xlane.f32.xlu2 %v933_v46  ;;  %355 = vadd.xlane.f32.xlu1 %v354_v48 }
 0x114   :  { %937 = vadd.xlane.f32.xlu0 %v936_v60 }
 0x116   :  { %940 = vadd.xlane.f32.xlu1 %v939_v61 }
 0x135   :  { %v880_v49 = vpop.xlane.xlu2 %879 }
 0x136   :  { %v1915_v4 = vmul.f32 0.25, %v880_v49 }
 0x137   :  { %v335_v62 = vpop.xlane.xlu0 %334 }
 0x138   :  { %v357_v63 = vmul.f32 0.25, %v335_v62  ;;  %v950_v8 = vmul.f32 %v1915_v4, %v1915_v4 }
 0x139   :  { %v375_v0 = vpop.xlane.xlu1 %374 }
 0x13a   :  { %v405_v54 = vmul.f32 %v357_v63, %v357_v63  ;;  %v397_v1 = vmul.f32 0.25, %v375_v0  ;;  %v429_v44 = vsub.f32 %v1796_v3, %v357_v63 }
 0x13c   :  { %v413_v45 = vsub.f32 %v397_v1, %v405_v54 }
 0x13e   :  { %v421_v5 = vmax.f32 %v413_v45, 0.0 }
 0x13f   :  { %v920_v7 = vpop.xlane.xlu0 %919 }
 0x140   :  { %v437_v9 = vadd.f32 1e-05, %v421_v5  ;;  %v942_v10 = vmul.f32 0.25, %v920_v7  ;;  %v974_v7 = vsub.f32 %v1794_v2, %v1915_v4 }
 0x141   :  { %v923_v11 = vpop.xlane.xlu1 %922  ;;  %v378_v12 = vpop.xlane.xlu2 %377 }
 0x142   :  { %1469 = vrsqrt.f32 %v437_v9  ;;  %v958_v13 = vsub.f32 %v942_v10, %v950_v8  ;;  %v943_v24 = vmul.f32 0.25, %v923_v11  ;;  %vm451_vm3 = vweird.f32 %v437_v9 }
 0x143   :  { %v398_v60 = vmul.f32 0.25, %v378_v12 }
 0x144   :  { %v966_v15 = vmax.f32 %v958_v13, 0.0 }
 0x146   :  { %v982_v17 = vadd.f32 1e-05, %v966_v15 }
 0x147   :  { %v883_v19 = vpop.xlane.xlu0 %882 }
 0x148   :  { %v1470_v53 = vpop.eup %1469  ;;  %1471 = vrsqrt.f32 %v982_v17  ;;  %v1919_v20 = vmul.f32 0.25, %v883_v19  ;;  %vm996_vm7 = vweird.f32 %v982_v17 }
 0x149   :  { %v446_v21 = vmul.f32 %v1470_v53, %v437_v9  ;;  %v886_v22 = vpop.xlane.xlu1 %885  ;;  %v926_v23 = vpop.xlane.xlu2 %925  ;;  %vm452_vm2 = vweird.f32 %v1470_v53 }
 0x14a   :  { %v951_v47 = vmul.f32 %v1919_v20, %v1919_v20  ;;  %v1923_v26 = vmul.f32 0.25, %v886_v22  ;;  %v944_v29 = vmul.f32 0.25, %v926_v23  ;;  %vm453_vm4 = vmor %vm451_vm3, %vm452_vm2 }
 0x14b   :  { %v447_v30 = vmul.f32 %v1470_v53, %v446_v21 }
 0x14c   :  { %v959_v31 = vsub.f32 %v943_v24, %v951_v47  ;;  %v952_v34 = vmul.f32 %v1923_v26, %v1923_v26 }
 0x14d   :  { %v448_v57 = vmul.f32 0.5, %v447_v30 }
 0x14e   :  { %v1472_v35 = vpop.eup %1471  ;;  %v967_v59 = vmax.f32 %v959_v31, 0.0  ;;  %v960_v36 = vsub.f32 %v944_v29, %v952_v34  ;;  %v975_v31 = vsub.f32 %v1805_v14, %v1919_v20 }
 0x14f   :  { %v449_v37 = vsub.f32 1.5, %v448_v57  ;;  %v991_v51 = vmul.f32 %v1472_v35, %v982_v17  ;;  %v338_v40 = vpop.xlane.xlu0 %337  ;;  %vm997_vm5 = vweird.f32 %v1472_v35 }
 0x150   :  { %v1927_v55 = vadd.f32 1e-05, %v967_v59  ;;  %v968_v41 = vmax.f32 %v960_v36, 0.0  ;;  %v1929_v43 = vmul.f32 0.25, %v338_v40  ;;  %vm998_vm8 = vmor %vm996_vm7, %vm997_vm5  ;;  %v976_v36 = vsub.f32 %v1818_v27, %v1923_v26 }
 0x151   :  { %v450_v46 = vmul.f32 %v1470_v53, %v449_v37  ;;  %v992_v48 = vmul.f32 %v1472_v35, %v991_v51  ;;  %v341_v50 = vpop.xlane.xlu1 %340  ;;  %v889_v52 = vpop.xlane.xlu2 %888 }
 0x152   :  { %1473 = vrsqrt.f32 %v1927_v55  ;;  %v1933_v61 = vadd.f32 1e-05, %v968_v41  ;;  %v406_v62 = vmul.f32 %v1929_v43, %v1929_v43  ;;  %v1938_v63 = vmul.f32 0.25, %v341_v50 }
 0x153   :  { %v454_v49 = vsel %vm453_vm4, %v1470_v53, %v450_v46  ;;  %v993_v0 = vmul.f32 0.5, %v992_v48  ;;  %v1953_v29 = vmul.f32 0.25, %v889_v52  ;;  %vm1006_vm9 = vweird.f32 %v1927_v55 }
 0x154   :  { %v525_v54 = vmul.f32 %v454_v49, %v429_v44  ;;  %1475 = vrsqrt.f32 %v1933_v61  ;;  %v414_v3 = vsub.f32 %v398_v60, %v406_v62  ;;  %v407_v13 = vmul.f32 %v1938_v63, %v1938_v63 }
 0x155   :  { %v994_v1 = vsub.f32 1.5, %v993_v0  ;;  %v953_v14 = vmul.f32 %v1953_v29, %v1953_v29  ;;  %vm1016_vm13 = vweird.f32 %v1933_v61 }
 0x156   :  { %v533_v45 = vmax.f32 %v525_v54, 0.0  ;;  %v422_v5 = vmax.f32 %v414_v3, 0.0 }
 0x157   :  { %v995_v8 = vmul.f32 %v1472_v35, %v994_v1  ;;  %v381_v9 = vpop.xlane.xlu0 %380 }
 0x158   :  { %v1474_v10 = vpop.eup %1473  ;;  %v541_v11 = vpack.c.bf16 %v533_v45, %v533_v45  ;;  %v1942_v12 = vadd.f32 1e-05, %v422_v5  ;;  %v399_v15 = vmul.f32 0.25, %v381_v9 }
 0x159   :  { %v999_v19 = vsel %vm998_vm8, %v1472_v35, %v995_v8  ;;  %v1001_v53 = vmul.f32 %v1474_v10, %v1927_v55  ;;  %v347_v21 = vpop.xlane.xlu2 %346  ;;  %v344_v22 = vpop.xlane.xlu1 %343  ;;  %vm1007_vm10 = vweird.f32 %v1474_v10 }
 0x15a   :  { %v1476_v23 = vpop.eup %1475  ;;  %550 = vst.msk [vmem:[%s2131_s2] sm:$0xf] %vm549_vm6, %v541_v11  ;;  %v1070_v2 = vmul.f32 %v999_v19, %v974_v7  ;;  %1477 = vrsqrt.f32 %v1942_v12  ;;  %v415_v4 = vsub.f32 %v399_v15, %v407_v13  ;;  %v1957_v35 = vmul.f32 0.25, %v347_v21  ;;  %vm1008_vm12 = vmor %vm1006_vm9, %vm1007_vm10 }
 0x15b   :  { %v1002_v17 = vmul.f32 %v1474_v10, %v1001_v53  ;;  %v1011_v24 = vmul.f32 %v1476_v23, %v1933_v61  ;;  %v1963_v51 = vmul.f32 0.25, %v344_v22  ;;  %vm1017_vm11 = vweird.f32 %v1476_v23 }
 0x15c   :  { %v1078_v47 = vmax.f32 %v1070_v2, 0.0  ;;  %v423_v30 = vmax.f32 %v415_v4, 0.0  ;;  %v409_v50 = vmul.f32 %v1957_v35, %v1957_v35  ;;  %vm1018_vm14 = vmor %vm1016_vm13, %vm1017_vm11  ;;  %vm461_vm0 = vweird.f32 %v1942_v12 }
 0x15d   :  { %v1003_v34 = vmul.f32 0.5, %v1002_v17  ;;  %v1012_v57 = vmul.f32 %v1476_v23, %v1011_v24  ;;  %v408_v62 = vmul.f32 %v1963_v51, %v1963_v51 }
 0x15e   :  { %v1086_v59 = vpack.c.bf16 %v1078_v47, %v1078_v47  ;;  %v1961_v37 = vadd.f32 1e-05, %v423_v30 }
 0x15f   :  { %v1004_v40 = vsub.f32 1.5, %v1003_v34  ;;  %v1013_v41 = vmul.f32 0.5, %v1012_v57  ;;  %v929_v44 = vpop.xlane.xlu0 %928 }
 0x160   :  { %v1478_v46 = vpop.eup %1477  ;;  %1391 = vst.msk [vmem:[%s2131_s2 + $0x20] sm:$0xf] %vm549_vm6, %v1086_v59  ;;  %1479 = vrsqrt.f32 %v1961_v37  ;;  %v945_v27 = vmul.f32 0.25, %v929_v44  ;;  %v430_v59 = vsub.f32 %v1809_v16, %v1929_v43  ;;  %vm471_vm3 = vweird.f32 %v1961_v37 }
 0x161   :  { %v1005_v20 = vmul.f32 %v1474_v10, %v1004_v40  ;;  %v1014_v26 = vsub.f32 1.5, %v1013_v41  ;;  %v456_v48 = vmul.f32 %v1478_v46, %v1942_v12  ;;  %v387_v52 = vpop.xlane.xlu2 %386  ;;  %v384_v60 = vpop.xlane.xlu1 %383  ;;  %vm462_vm15 = vweird.f32 %v1478_v46 }
 0x162   :  { %v961_v49 = vsub.f32 %v945_v27, %v953_v14  ;;  %v401_v0 = vmul.f32 0.25, %v387_v52  ;;  %v400_v54 = vmul.f32 0.25, %v384_v60  ;;  %vm463_vm1 = vmor %vm461_vm0, %vm462_vm15  ;;  %v431_v60 = vsub.f32 %v1827_v38, %v1938_v63 }
 0x163   :  { %v1009_v3 = vsel %vm1008_vm12, %v1474_v10, %v1005_v20  ;;  %v1015_v1 = vmul.f32 %v1476_v23, %v1014_v26  ;;  %v457_v45 = vmul.f32 %v1478_v46, %v456_v48 }
 0x164   :  { %v1071_v5 = vmul.f32 %v1009_v3, %v975_v31  ;;  %v969_v7 = vmax.f32 %v961_v49, 0.0  ;;  %v417_v8 = vsub.f32 %v401_v0, %v409_v50  ;;  %v416_v9 = vsub.f32 %v400_v54, %v408_v62 }
 0x165   :  { %v1019_v11 = vsel %vm1018_vm14, %v1476_v23, %v1015_v1  ;;  %v458_v55 = vmul.f32 0.5, %v457_v45 }
 0x166   :  { %v1480_v13 = vpop.eup %1479  ;;  %v1079_v15 = vmax.f32 %v1071_v5, 0.0  ;;  %v1072_v19 = vmul.f32 %v1019_v11, %v976_v36  ;;  %v1983_v53 = vadd.f32 1e-05, %v969_v7  ;;  %v425_v21 = vmax.f32 %v417_v8, 0.0 }
 0x167   :  { %v459_v22 = vsub.f32 1.5, %v458_v55  ;;  %v466_v10 = vmul.f32 %v1480_v13, %v1961_v37  ;;  %v424_v61 = vmax.f32 %v416_v9, 0.0  ;;  %v892_v2 = vpop.xlane.xlu0 %891  ;;  %vm472_vm2 = vweird.f32 %v1480_v13 }
 0x168   :  { %v1087_v4 = vpack.c.bf16 %v1079_v15, %v1079_v15  ;;  %v1080_v17 = vmax.f32 %v1072_v19, 0.0  ;;  %1481 = vrsqrt.f32 %v1983_v53  ;;  %v1988_v47 = vadd.f32 1e-05, %v425_v21  ;;  %vm473_vm4 = vmor %vm471_vm3, %vm472_vm2 }
 0x169   :  { %v460_v23 = vmul.f32 %v1478_v46, %v459_v22  ;;  %v467_v24 = vmul.f32 %v1480_v13, %v466_v10  ;;  %v1990_v30 = vadd.f32 1e-05, %v424_v61  ;;  %v350_v31 = vpop.xlane.xlu2 %349  ;;  %v932_v34 = vpop.xlane.xlu1 %931  ;;  %v1999_v12 = vmul.f32 0.25, %v892_v2 }
 0x16a   :  { %1392 = vst.msk [vmem:[%s2131_s2 + $0x24] sm:$0xf] %vm549_vm6, %v1087_v4  ;;  %v1088_v57 = vpack.c.bf16 %v1080_v17, %v1080_v17  ;;  %v946_v36 = vmul.f32 0.25, %v932_v34  ;;  %1483 = vrsqrt.f32 %v1988_v47  ;;  %v2009_v14 = vmul.f32 0.25, %v350_v31 }
 0x16b   :  { %v464_v40 = vsel %vm463_vm1, %v1478_v46, %v460_v23  ;;  %v468_v41 = vmul.f32 0.5, %v467_v24  ;;  %1485 = vrsqrt.f32 %v1990_v30  ;;  %v954_v16 = vmul.f32 %v1999_v12, %v1999_v12 }
 0x16c   :  { %1393 = vst.msk [vmem:[%s2131_s2 + $0x28] sm:$0xf] %vm549_vm6, %v1088_v57  ;;  %v526_v44 = vmul.f32 %v464_v40, %v430_v59  ;;  %v410_v1 = vmul.f32 %v2009_v14, %v2009_v14  ;;  %vm1026_vm7 = vweird.f32 %v1983_v53  ;;  %v977_v23 = vsub.f32 %v1829_v39, %v1953_v29 }
 0x16d   :  { %v469_v43 = vsub.f32 1.5, %v468_v41  ;;  %v962_v20 = vsub.f32 %v946_v36, %v954_v16  ;;  %v433_v24 = vsub.f32 %v1844_v58, %v1957_v35  ;;  %vm491_vm11 = vweird.f32 %v1988_v47 }
 0x16e   :  { %v1482_v27 = vpop.eup %1481  ;;  %v534_v46 = vmax.f32 %v526_v44, 0.0  ;;  %vm481_vm13 = vweird.f32 %v1990_v30  ;;  %v432_v44 = vsub.f32 %v1841_v56, %v1963_v51 }
 0x16f   :  { %v470_v26 = vmul.f32 %v1480_v13, %v469_v43  ;;  %v1021_v48 = vmul.f32 %v1482_v27, %v1983_v53  ;;  %v390_v50 = vpop.xlane.xlu0 %389  ;;  %v970_v62 = vmax.f32 %v962_v20, 0.0  ;;  %vm1027_vm5 = vweird.f32 %v1482_v27 }
 0x170   :  { %v542_v52 = vpack.c.bf16 %v534_v46, %v534_v46  ;;  %v402_v49 = vmul.f32 0.25, %v390_v50  ;;  %v1484_v0 = vpop.eup %1483  ;;  %vm1028_vm8 = vmor %vm1026_vm7, %vm1027_vm5 }
 0x171   :  { %v474_v54 = vsel %vm473_vm4, %v1480_v13, %v470_v26  ;;  %v1022_v3 = vmul.f32 %v1482_v27, %v1021_v48  ;;  %v2017_v45 = vpop.xlane.xlu2 %897  ;;  %v895_v5 = vpop.xlane.xlu1 %894  ;;  %v486_v38 = vmul.f32 %v1484_v0, %v1988_v47  ;;  %v2024_v63 = vadd.f32 1e-05, %v970_v62 }
 0x172   :  { %v1486_v37 = vpop.eup %1485  ;;  %551 = vst.msk [vmem:[%s2131_s2 + $0x4] sm:$0xf] %vm549_vm6, %v542_v52  ;;  %v527_v7 = vmul.f32 %v474_v54, %v431_v60  ;;  %v418_v11 = vsub.f32 %v402_v49, %v410_v1  ;;  %vm492_vm9 = vweird.f32 %v1484_v0  ;;  %v2050_v26 = vmul.f32 0.25, %v895_v5 }
 0x173   :  { %v1023_v8 = vmul.f32 0.5, %v1022_v3  ;;  %v476_v9 = vmul.f32 %v1486_v37, %v1990_v30  ;;  %v487_v13 = vmul.f32 %v1484_v0, %v486_v38  ;;  %1487 = vrsqrt.f32 %v2024_v63  ;;  %vm493_vm12 = vmor %vm491_vm11, %vm492_vm9 }
 0x174   :  { %v535_v55 = vmax.f32 %v527_v7, 0.0  ;;  %v426_v21 = vmax.f32 %v418_v11, 0.0  ;;  %vm482_vm10 = vweird.f32 %v1486_v37  ;;  %v955_v1 = vmul.f32 %v2050_v26, %v2050_v26 }
 0x175   :  { %v1024_v15 = vsub.f32 1.5, %v1023_v8  ;;  %v477_v19 = vmul.f32 %v1486_v37, %v476_v9  ;;  %v488_v10 = vmul.f32 0.5, %v487_v13  ;;  %vm483_vm14 = vmor %vm481_vm13, %vm482_vm10  ;;  %vm1036_vm0 = vweird.f32 %v2024_v63 }
 0x176   :  { %v543_v22 = vpack.c.bf16 %v535_v55, %v535_v55  ;;  %v2029_v4 = vadd.f32 1e-05, %v426_v21  ;;  %v978_v13 = vsub.f32 %v1857_v6, %v1999_v12 }
 0x177   :  { %v1025_v61 = vmul.f32 %v1482_v27, %v1024_v15  ;;  %v478_v2 = vmul.f32 0.5, %v477_v19  ;;  %v353_v17 = vpop.xlane.xlu0 %352  ;;  %v489_v31 = vsub.f32 1.5, %v488_v10 }
 0x178   :  { %552 = vst.msk [vmem:[%s2131_s2 + $0x8] sm:$0xf] %vm549_vm6, %v543_v22  ;;  %1489 = vrsqrt.f32 %v2029_v4  ;;  %v2041_v40 = vmul.f32 0.25, %v353_v17  ;;  %vm501_vm3 = vweird.f32 %v2029_v4  ;;  %v2079_v17 = vmul.f32 0.25, %v2017_v45 }
 0x179   :  { %v1029_v34 = vsel %vm1028_vm8, %v1482_v27, %v1025_v61  ;;  %v479_v53 = vsub.f32 1.5, %v478_v2  ;;  %v396_v57 = vpop.xlane.xlu2 %395  ;;  %v393_v59 = vpop.xlane.xlu1 %392  ;;  %v490_v29 = vmul.f32 %v1484_v0, %v489_v31 }
 0x17a   :  { %v1488_v36 = vpop.eup %1487  ;;  %v1073_v39 = vmul.f32 %v1029_v34, %v977_v23  ;;  %v403_v35 = vmul.f32 0.25, %v393_v59  ;;  %v411_v27 = vmul.f32 %v2041_v40, %v2041_v40  ;;  %v404_v22 = vmul.f32 0.25, %v396_v57 }
 0x17b   :  { %v480_v41 = vmul.f32 %v1486_v37, %v479_v53  ;;  %v1031_v58 = vmul.f32 %v1488_v36, %v2024_v63  ;;  %v494_v43 = vsel %vm493_vm12, %v1484_v0, %v490_v29  ;;  %vm1037_vm15 = vweird.f32 %v1488_v36 }
 0x17c   :  { %v1081_v16 = vmax.f32 %v1073_v39, 0.0  ;;  %v529_v47 = vmul.f32 %v494_v43, %v433_v24  ;;  %v419_v50 = vsub.f32 %v403_v35, %v411_v27  ;;  %vm1038_vm1 = vmor %vm1036_vm0, %vm1037_vm15  ;;  %v434_v57 = vsub.f32 %v1866_v18, %v2009_v14 }
 0x17d   :  { %v484_v46 = vsel %vm483_vm14, %v1486_v37, %v480_v41  ;;  %v1032_v20 = vmul.f32 %v1488_v36, %v1031_v58  ;;  %v956_v45 = vmul.f32 %v2079_v17, %v2079_v17 }
 0x17e   :  { %v1089_v48 = vpack.c.bf16 %v1081_v16, %v1081_v16  ;;  %v528_v30 = vmul.f32 %v484_v46, %v432_v44  ;;  %v1490_v52 = vpop.eup %1489  ;;  %v537_v60 = vmax.f32 %v529_v47, 0.0  ;;  %v427_v0 = vmax.f32 %v419_v50, 0.0 }
 0x17f   :  { %v1033_v62 = vmul.f32 0.5, %v1032_v20  ;;  %v901_v49 = vpop.xlane.xlu0 %900  ;;  %v496_v51 = vmul.f32 %v1490_v52, %v2029_v4  ;;  %vm502_vm2 = vweird.f32 %v1490_v52 }
 0x180   :  { %1394 = vst.msk [vmem:[%s2131_s2 + $0x2c] sm:$0xf] %vm549_vm6, %v1089_v48  ;;  %v536_v56 = vmax.f32 %v528_v30, 0.0  ;;  %v545_v54 = vpack.c.bf16 %v537_v60, %v537_v60  ;;  %v2059_v8 = vadd.f32 1e-05, %v427_v0  ;;  %v2081_v6 = vmul.f32 0.25, %v901_v49  ;;  %vm503_vm4 = vmor %vm501_vm3, %vm502_vm2 }
 0x181   :  { %v1034_v3 = vsub.f32 1.5, %v1033_v62  ;;  %v935_v5 = vpop.xlane.xlu2 %934  ;;  %v356_v37 = vpop.xlane.xlu1 %355  ;;  %v497_v38 = vmul.f32 %v1490_v52, %v496_v51  ;;  %v435_v0 = vsub.f32 %v1885_v32, %v2041_v40 }
 0x182   :  { %v544_v7 = vpack.c.bf16 %v536_v56, %v536_v56  ;;  %v947_v9 = vmul.f32 0.25, %v935_v5  ;;  %554 = vst.msk [vmem:[%s2131_s2 + $0x10] sm:$0xf] %vm549_vm6, %v545_v54  ;;  %v2066_v55 = vmul.f32 0.25, %v356_v37  ;;  %1491 = vrsqrt.f32 %v2059_v8 }
 0x183   :  { %v1035_v11 = vmul.f32 %v1488_v36, %v1034_v3  ;;  %v498_v15 = vmul.f32 0.5, %v497_v38  ;;  %v957_v18 = vmul.f32 %v2081_v6, %v2081_v6  ;;  %vm511_vm7 = vweird.f32 %v2059_v8 }
 0x184   :  { %553 = vst.msk [vmem:[%s2131_s2 + $0xc] sm:$0xf] %vm549_vm6, %v544_v7  ;;  %v963_v19 = vsub.f32 %v947_v9, %v955_v1  ;;  %v412_v63 = vmul.f32 %v2066_v55, %v2066_v55 }
 0x185   :  { %v1039_v21 = vsel %vm1038_vm1, %v1488_v36, %v1035_v11  ;;  %v499_v61 = vsub.f32 1.5, %v498_v15 }
 0x186   :  { %v1074_v10 = vmul.f32 %v1039_v21, %v978_v13  ;;  %v971_v2 = vmax.f32 %v963_v19, 0.0  ;;  %v420_v12 = vsub.f32 %v404_v22, %v412_v63  ;;  %v979_v19 = vsub.f32 %v1878_v28, %v2050_v26 }
 0x187   :  { %v938_v23 = vpop.xlane.xlu0 %937  ;;  %v500_v31 = vmul.f32 %v1490_v52, %v499_v61 }
 0x188   :  { %v1082_v24 = vmax.f32 %v1074_v10, 0.0  ;;  %v987_v34 = vadd.f32 1e-05, %v971_v2  ;;  %v948_v53 = vmul.f32 0.25, %v938_v23  ;;  %v428_v59 = vmax.f32 %v420_v12, 0.0  ;;  %v1492_v39 = vpop.eup %1491 }
 0x189   :  { %v941_v36 = vpop.xlane.xlu1 %940  ;;  %v504_v4 = vsel %vm503_vm4, %v1490_v52, %v500_v31  ;;  %v506_v58 = vmul.f32 %v1492_v39, %v2059_v8  ;;  %vm512_vm5 = vweird.f32 %v1492_v39  ;;  %v436_v2 = vsub.f32 %v1888_v33, %v2066_v55 }
 0x18a   :  { %v1090_v29 = vpack.c.bf16 %v1082_v24, %v1082_v24  ;;  %1493 = vrsqrt.f32 %v987_v34  ;;  %v530_v41 = vmul.f32 %v504_v4, %v434_v57  ;;  %v444_v35 = vadd.f32 1e-05, %v428_v59  ;;  %vm513_vm8 = vmor %vm511_vm7, %vm512_vm5 }
 0x18b   :  { %v964_v14 = vsub.f32 %v948_v53, %v956_v45  ;;  %v949_v44 = vmul.f32 0.25, %v941_v36  ;;  %v507_v43 = vmul.f32 %v1492_v39, %v506_v58  ;;  %vm1046_vm10 = vweird.f32 %v987_v34 }
 0x18c   :  { %1395 = vst.msk [vmem:[%s2131_s2 + $0x30] sm:$0xf] %vm549_vm6, %v1090_v29  ;;  %v538_v16 = vmax.f32 %v530_v41, 0.0  ;;  %1495 = vrsqrt.f32 %v444_v35  ;;  %vm521_vm13 = vweird.f32 %v444_v35  ;;  %v981_v4 = vsub.f32 %v1900_v42, %v2081_v6 }
 0x18d   :  { %v972_v27 = vmax.f32 %v964_v14, 0.0  ;;  %v965_v47 = vsub.f32 %v949_v44, %v957_v18  ;;  %v508_v20 = vmul.f32 0.5, %v507_v43 }
 0x18e   :  { %v546_v46 = vpack.c.bf16 %v538_v16, %v538_v16 }
 0x18f   :  { %v988_v30 = vadd.f32 1e-05, %v972_v27  ;;  %v973_v50 = vmax.f32 %v965_v47, 0.0  ;;  %v509_v52 = vsub.f32 1.5, %v508_v20 }
 0x190   :  { %v1494_v48 = vpop.eup %1493  ;;  %555 = vst.msk [vmem:[%s2131_s2 + $0x14] sm:$0xf] %vm549_vm6, %v546_v46 }
 0x191   :  { %v1041_v60 = vmul.f32 %v1494_v48, %v987_v34  ;;  %1497 = vrsqrt.f32 %v988_v30  ;;  %v989_v62 = vadd.f32 1e-05, %v973_v50  ;;  %v510_v56 = vmul.f32 %v1492_v39, %v509_v52 }
 0x192   :  { %v1496_v49 = vpop.eup %1495  ;;  %vm1047_vm9 = vweird.f32 %v1494_v48  ;;  %vm1056_vm0 = vweird.f32 %v988_v30 }
 0x193   :  { %v1042_v51 = vmul.f32 %v1494_v48, %v1041_v60  ;;  %v516_v54 = vmul.f32 %v1496_v49, %v444_v35  ;;  %1499 = vrsqrt.f32 %v989_v62  ;;  %v514_v3 = vsel %vm513_vm8, %v1492_v39, %v510_v56  ;;  %vm1048_vm11 = vmor %vm1046_vm10, %vm1047_vm9 }
 0x194   :  { %v531_v5 = vmul.f32 %v514_v3, %v435_v0  ;;  %vm522_vm12 = vweird.f32 %v1496_v49  ;;  %v980_v39 = vsub.f32 %v1873_v25, %v2079_v17  ;;  %vm1066_vm3 = vweird.f32 %v989_v62 }
 0x195   :  { %v1043_v1 = vmul.f32 0.5, %v1042_v51  ;;  %v517_v37 = vmul.f32 %v1496_v49, %v516_v54  ;;  %vm523_vm14 = vmor %vm521_vm13, %vm522_vm12 }
 0x196   :  { %v539_v9 = vmax.f32 %v531_v5, 0.0 }
 0x197   :  { %v1044_v7 = vsub.f32 1.5, %v1043_v1  ;;  %v1498_v38 = vpop.eup %1497  ;;  %v518_v11 = vmul.f32 0.5, %v517_v37 }
 0x198   :  { %v1051_v15 = vmul.f32 %v1498_v38, %v988_v30  ;;  %v547_v32 = vpack.c.bf16 %v539_v9, %v539_v9  ;;  %vm1057_vm15 = vweird.f32 %v1498_v38 }
 0x199   :  { %v1045_v13 = vmul.f32 %v1494_v48, %v1044_v7  ;;  %v1500_v8 = vpop.eup %1499  ;;  %v519_v40 = vsub.f32 1.5, %v518_v11  ;;  %vm1058_vm2 = vmor %vm1056_vm0, %vm1057_vm15 }
 0x19a   :  { %v1052_v22 = vmul.f32 %v1498_v38, %v1051_v15  ;;  %v1061_v63 = vmul.f32 %v1500_v8, %v989_v62  ;;  %556 = vst.msk [vmem:[%s2131_s2 + $0x18] sm:$0xf] %vm549_vm6, %v547_v32  ;;  %vm1067_vm1 = vweird.f32 %v1500_v8 }
 0x19b   :  { %v1049_v21 = vsel %vm1048_vm11, %v1494_v48, %v1045_v13  ;;  %v520_v61 = vmul.f32 %v1496_v49, %v519_v40  ;;  %vm1068_vm4 = vmor %vm1066_vm3, %vm1067_vm1 }
 0x19c   :  { %v1075_v10 = vmul.f32 %v1049_v21, %v979_v19  ;;  %v1053_v28 = vmul.f32 0.5, %v1052_v22  ;;  %v1062_v26 = vmul.f32 %v1500_v8, %v1061_v63 }
 0x19d   :  { %v524_v23 = vsel %vm523_vm14, %v1496_v49, %v520_v61 }
 0x19e   :  { %v1083_v12 = vmax.f32 %v1075_v10, 0.0  ;;  %v532_v24 = vmul.f32 %v524_v23, %v436_v2  ;;  %v1054_v31 = vsub.f32 1.5, %v1053_v28  ;;  %v1063_v34 = vmul.f32 0.5, %v1062_v26 }
 0x1a0   :  { %v1091_v53 = vpack.c.bf16 %v1083_v12, %v1083_v12  ;;  %v540_v57 = vmax.f32 %v532_v24, 0.0  ;;  %v1055_v59 = vmul.f32 %v1498_v38, %v1054_v31  ;;  %v1064_v36 = vsub.f32 1.5, %v1063_v34 }
 0x1a2   :  { %1396 = vst.msk [vmem:[%s2131_s2 + $0x34] sm:$0xf] %vm549_vm6, %v1091_v53  ;;  %v548_v33 = vpack.c.bf16 %v540_v57, %v540_v57  ;;  %v1059_v55 = vsel %vm1058_vm2, %v1498_v38, %v1055_v59  ;;  %v1065_v29 = vmul.f32 %v1500_v8, %v1064_v36 }
 0x1a3   :  { %v1076_v45 = vmul.f32 %v1059_v55, %v980_v39 }
 0x1a4   :  { %557 = vst.msk [vmem:[%s2131_s2 + $0x1c] sm:$0xf] %vm549_vm6, %v548_v33  ;;  %v1069_v25 = vsel %vm1068_vm4, %v1500_v8, %v1065_v29 }
 0x1a5   :  { %v1084_v17 = vmax.f32 %v1076_v45, 0.0  ;;  %v1077_v41 = vmul.f32 %v1069_v25, %v981_v4 }
 0x1a7   :  { %v1092_v58 = vpack.c.bf16 %v1084_v17, %v1084_v17  ;;  %v1085_v35 = vmax.f32 %v1077_v41, 0.0 }
 0x1a9   :  { %1397 = vst.msk [vmem:[%s2131_s2 + $0x38] sm:$0xf] %vm549_vm6, %v1092_v58  ;;  %v1093_v18 = vpack.c.bf16 %v1085_v35, %v1085_v35 }
 0x1ab   :  { %1398 = vst.msk [vmem:[%s2131_s2 + $0x3c] sm:$0xf] %vm549_vm6, %v1093_v18 }

// kernel: _lambda_.13
= control target key start
LH: loop header
LB: loop body
LE: loop exit
PB: predicated region body
PF: predicated region fallthrough
CT: control target
= control target key end

     0   :  { %vm380_vm0 = vcmask 523264   ;;  %vm482_vm1 = vcmask 130048   ;;  %vm639_vm2 = vcmask 15360   ;;  %vm591_vm6 = vcmask 125952   ;;  %s2900_s0 = inlined_call_operand.vmem [shape: bf16[2,576,16], index: 0, kind: input, shape index: {}]   ;;  %s2901_s3 = inlined_call_operand.vmem [shape: bf16[32,576], index: 3, kind: input, shape index: {}]   ;;  %s2902_s1 = inlined_call_operand.vmem [shape: f32[2,16,2], index: 1, kind: input, shape index: {}]   ;;  %s2903_s2 = inlined_call_operand.vmem [shape: f32[32,2], index: 2, kind: input, shape index: {}]   ;;  %s2904_s6 = inlined_call_operand.vmem [shape: bf16[2,32,16], index: 6, kind: output, shape index: {0}]   ;;  %s2905_s4 = inlined_call_operand.vmem [shape: f32[16,32], index: 4, kind: input, shape index: {}]   ;;  %s2906_s5 = inlined_call_operand.vmem [shape: f32[16,1], index: 5, kind: input, shape index: {}]   ;;  %s2907_s7 = inlined_call_operand.vmem [shape: f32[2,16,1], index: 7, kind: output, shape index: {1}]  }
   0x1   :  { %v2025_v0 = vld [vmem:[%s2900_s0 + $0x38] sm:$0xff]  ;;  %v2024_v4 = vld [vmem:[%s2900_s0 + $0x30] sm:$0xff]  ;;  %v2023_v8 = vld [vmem:[%s2900_s0 + $0x28] sm:$0xff] }
   0x2   :  { %v2033_v1 = vld [vmem:[%s2900_s0 + $0x78] sm:$0xff]  ;;  %387 = vmatpush.bf16.msra.mxu0 %v2025_v0  ;;  %v2032_v5 = vld [vmem:[%s2900_s0 + $0x70] sm:$0xff]  ;;  %v2031_v9 = vld [vmem:[%s2900_s0 + $0x68] sm:$0xff] }
   0x3   :  { %v2041_v2 = vld [vmem:[%s2900_s0 + $0xb8] sm:$0xff]  ;;  %406 = vmatpush.bf16.msra.mxu1 %v2033_v1  ;;  %v2040_v6 = vld [vmem:[%s2900_s0 + $0xb0] sm:$0xff]  ;;  %v2039_v10 = vld [vmem:[%s2900_s0 + $0xa8] sm:$0xff] }
   0x4   :  { %v2049_v3 = vld [vmem:[%s2900_s0 + $0xf8] sm:$0xff]  ;;  %425 = vmatpush.bf16.msra.mxu2 %v2041_v2  ;;  %v2048_v7 = vld [vmem:[%s2900_s0 + $0xf0] sm:$0xff]  ;;  %v2047_v11 = vld [vmem:[%s2900_s0 + $0xe8] sm:$0xff] }
   0x5   :  { %444 = vmatpush.bf16.msra.mxu3 %v2049_v3  ;;  %v2022_v12 = vld [vmem:[%s2900_s0 + $0x20] sm:$0xff]  ;;  %v2021_v16 = vld [vmem:[%s2900_s0 + $0x18] sm:$0xff]  ;;  %v2020_v20 = vld [vmem:[%s2900_s0 + $0x10] sm:$0xff] }
   0x6   :  { %388 = vmatpush.bf16.msra.mxu0 %v2024_v4  ;;  %v2030_v13 = vld [vmem:[%s2900_s0 + $0x60] sm:$0xff]  ;;  %v2029_v17 = vld [vmem:[%s2900_s0 + $0x58] sm:$0xff]  ;;  %v2028_v21 = vld [vmem:[%s2900_s0 + $0x50] sm:$0xff] }
   0x7   :  { %407 = vmatpush.bf16.msra.mxu1 %v2032_v5  ;;  %v2038_v14 = vld [vmem:[%s2900_s0 + $0xa0] sm:$0xff]  ;;  %v2037_v18 = vld [vmem:[%s2900_s0 + $0x98] sm:$0xff]  ;;  %v2036_v22 = vld [vmem:[%s2900_s0 + $0x90] sm:$0xff] }
   0x8   :  { %426 = vmatpush.bf16.msra.mxu2 %v2040_v6  ;;  %v2046_v15 = vld [vmem:[%s2900_s0 + $0xe0] sm:$0xff]  ;;  %v2045_v19 = vld [vmem:[%s2900_s0 + $0xd8] sm:$0xff]  ;;  %v2044_v23 = vld [vmem:[%s2900_s0 + $0xd0] sm:$0xff] }
   0x9   :  { %445 = vmatpush.bf16.msra.mxu3 %v2048_v7  ;;  %v2019_v24 = vld [vmem:[%s2900_s0 + $0x8] sm:$0xff]  ;;  %v2018_v28 = vld [vmem:[%s2900_s0] sm:$0xff]  ;;  %v2010_v33 = vld [vmem:[%s2901_s3 + $0x10] sm:$0xf0] }
   0xa   :  { %389 = vmatpush.bf16.msra.mxu0 %v2023_v8  ;;  %v2027_v25 = vld [vmem:[%s2900_s0 + $0x48] sm:$0xff]  ;;  %v2026_v29 = vld [vmem:[%s2900_s0 + $0x40] sm:$0xff]  ;;  %v1548_v35 = vld [vmem:[%s2901_s3 + $0x14] sm:$0xf0] }
   0xb   :  { %408 = vmatpush.bf16.msra.mxu1 %v2031_v9  ;;  %v2035_v26 = vld [vmem:[%s2900_s0 + $0x88] sm:$0xff]  ;;  %v2034_v30 = vld [vmem:[%s2900_s0 + $0x80] sm:$0xff]  ;;  %v2011_v37 = vld [vmem:[%s2901_s3 + $0x18] sm:$0xf0] }
   0xc   :  { %427 = vmatpush.bf16.msra.mxu2 %v2039_v10  ;;  %v2043_v27 = vld [vmem:[%s2900_s0 + $0xc8] sm:$0xff]  ;;  %v2042_v31 = vld [vmem:[%s2900_s0 + $0xc0] sm:$0xff]  ;;  %v2053_v40 = vld [vmem:[%s2900_s0 + $0x118] sm:$0xff] }
   0xd   :  { %446 = vmatpush.bf16.msra.mxu3 %v2047_v11  ;;  %v1546_v32 = vld [vmem:[%s2901_s3] sm:$0xf]  ;;  %v2008_v34 = vld [vmem:[%s2901_s3 + $0x4] sm:$0xf]  ;;  %v1554_v36 = vld [vmem:[%s2901_s3 + $0x8] sm:$0xf] }
   0xe   :  { %390 = vmatpush.bf16.msra.mxu0 %v2022_v12  ;;  %v2009_v38 = vld [vmem:[%s2901_s3 + $0xc] sm:$0xf]  ;;  %v1556_v39 = vld [vmem:[%s2901_s3 + $0x1c] sm:$0xf0]  ;;  %v1547_v41 = vor.u32 %v2010_v33, %v1546_v32  ;;  %v1551_v42 = vor.u32 %v2008_v34, %v1548_v35  ;;  %v1555_v43 = vor.u32 %v2011_v37, %v1554_v36  ;;  %v2052_v45 = vld [vmem:[%s2900_s0 + $0x110] sm:$0xff] }
   0xf   :  { %409 = vmatpush.bf16.msra.mxu1 %v2030_v13  ;;  %v1559_v44 = vor.u32 %v2009_v38, %v1556_v39  ;;  %v2051_v46 = vld [vmem:[%s2900_s0 + $0x108] sm:$0xff]  ;;  %v2050_v47 = vld [vmem:[%s2900_s0 + $0x100] sm:$0xff]  ;;  %v2015_v49 = vld [vmem:[%s2901_s3 + $0x38] sm:$0xf0] }
  0x10   :  { %428 = vmatpush.bf16.msra.mxu2 %v2038_v14  ;;  %v1566_v48 = vld [vmem:[%s2901_s3 + $0x28] sm:$0xf]  ;;  %v2013_v50 = vld [vmem:[%s2901_s3 + $0x2c] sm:$0xf]  ;;  %v1568_v51 = vld [vmem:[%s2901_s3 + $0x3c] sm:$0xf0] }
  0x11   :  { %447 = vmatpush.bf16.msra.mxu3 %v2046_v15  ;;  %v1574_v52 = vld [vmem:[%s2901_s3 + $0x30] sm:$0xf]  ;;  %v2016_v53 = vld [vmem:[%s2901_s3 + $0x40] sm:$0xf0]  ;;  %v2014_v54 = vld [vmem:[%s2901_s3 + $0x34] sm:$0xf]  ;;  %v1567_v56 = vor.u32 %v2015_v49, %v1566_v48  ;;  %v1571_v57 = vor.u32 %v2013_v50, %v1568_v51 }
  0x12   :  { %391 = vmatpush.bf16.msra.mxu0 %v2021_v16  ;;  %v1576_v55 = vld [vmem:[%s2901_s3 + $0x44] sm:$0xf0]  ;;  %v1575_v58 = vor.u32 %v2016_v53, %v1574_v52  ;;  %v1562_v60 = vld [vmem:[%s2901_s3 + $0x10] sm:$0xf]  ;;  %v2012_v61 = vld [vmem:[%s2901_s3 + $0x20] sm:$0xf0] }
  0x13   :  { %410 = vmatpush.bf16.msra.mxu1 %v2029_v17  ;;  %v1579_v59 = vor.u32 %v2014_v54, %v1576_v55  ;;  %v1563_v62 = vor.u32 %v2012_v61, %v1562_v60  ;;  %v1582_v63 = vld [vmem:[%s2901_s3 + $0x38] sm:$0xf]  ;;  %v2017_v0 = vld [vmem:[%s2901_s3 + $0x48] sm:$0xf0]  ;;  %v596_v53 = vld [vmem:[%s2902_s1] sm:$0xff] }
  0x14   :  { %429 = vmatpush.bf16.msra.mxu2 %v2037_v18  ;;  %v1583_v1 = vor.u32 %v2017_v0, %v1582_v63  ;;  %v597_v51 = vld [vmem:[%s2902_s1 + $0x8] sm:$0xff] }
  0x15   :  { %448 = vmatpush.bf16.msra.mxu3 %v2045_v19 }
  0x16   :  { %392 = vmatpush.bf16.msra.mxu0 %v2020_v20 }
  0x17   :  { %411 = vmatpush.bf16.msra.mxu1 %v2028_v21 }
  0x18   :  { %430 = vmatpush.bf16.msra.mxu2 %v2036_v22 }
  0x19   :  { %449 = vmatpush.bf16.msra.mxu3 %v2044_v23 }
  0x1a   :  { %393 = vmatpush.bf16.msra.mxu0 %v2019_v24 }
  0x1b   :  { %412 = vmatpush.bf16.msra.mxu1 %v2027_v25 }
  0x1c   :  { %431 = vmatpush.bf16.msra.mxu2 %v2035_v26 }
  0x1d   :  { %450 = vmatpush.bf16.msra.mxu3 %v2043_v27 }
  0x1e   :  { %394 = vmatpush.bf16.msra.mxu0 %v2018_v28 }
  0x1f   :  { %413 = vmatpush.bf16.msra.mxu1 %v2026_v29 }
  0x20   :  { %432 = vmatpush.bf16.msra.mxu2 %v2034_v30 }
  0x21   :  { %451 = vmatpush.bf16.msra.mxu3 %v2042_v31  ;;  %395 = vmatmul.bf16.vlgmr.msra.gmra.mxu0 %v1547_v41 }
  0x22   :  { %467 = vmatpush.bf16.msrb.mxu0 %v2053_v40  ;;  %414 = vmatmul.bf16.vlgmr.msra.gmra.mxu1 %v1551_v42 }
  0x23   :  { %433 = vmatmul.bf16.vlgmr.msra.gmra.mxu2 %v1555_v43  ;;  %624 = vmatpush.msrb.mxu1 %v597_v51 }
  0x24   :  { %452 = vmatmul.bf16.vlgmr.msra.gmra.mxu3 %v1559_v44 }
  0x25   :  { %625 = vmatpush.msrb.mxu1 %v596_v53 }
  0x26   :  { %468 = vmatpush.bf16.msrb.mxu0 %v2052_v45 }
  0x2a   :  { %469 = vmatpush.bf16.msrb.mxu0 %v2051_v46 }
  0x2e   :  { %470 = vmatpush.bf16.msrb.mxu0 %v2050_v47 }
  0x31   :  { %400 = vmatmul.bf16.gmra.mxu0 %v1567_v56 }
  0x32   :  { %419 = vmatmul.bf16.gmra.mxu1 %v1571_v57 }
  0x33   :  { %438 = vmatmul.bf16.gmra.mxu2 %v1575_v58 }
  0x34   :  { %457 = vmatmul.bf16.gmra.mxu3 %v1579_v59 }
  0x41   :  { %1728 = vmatmul.msk.bf16.vlgmr.msrb.gmra.mxu0 %vm380_vm0, %v1563_v62 }
  0x51   :  { %1729 = vmatmul.msk.bf16.gmra.mxu0 %vm380_vm0, %v1583_v1 }
  0x9e   :  { %v396_v2 = vpop.f32.mrf.mxu0 }
  0x9f   :  { %v415_v4 = vpop.f32.mrf.mxu1 }
  0xa0   :  { %v416_v9 = vadd.f32 %v415_v4, %v396_v2  ;;  %v641_v2 = vsel %vm639_vm2, %v597_v51, 0.0 }
  0xa6   :  { %v398_v3 = vpop.f32.mrf.mxu0  ;;  %v434_v6 = vpop.f32.mrf.mxu2 }
  0xa7   :  { %v453_v7 = vpop.f32.mrf.mxu3  ;;  %v417_v10 = vpop.f32.mrf.mxu1  ;;  %v435_v11 = vadd.f32 %v434_v6, %v416_v9 }
  0xa8   :  { %v418_v16 = vadd.f32 %v417_v10, %v398_v3  ;;  %v640_v3 = vsel %vm639_vm2, %v596_v53, 0.0 }
  0xa9   :  { %v454_v13 = vadd.f32 %v453_v7, %v435_v11 }
  0xae   :  { %v401_v5 = vpop.f32.mrf.mxu0  ;;  %v436_v12 = vpop.f32.mrf.mxu2 }
  0xaf   :  { %v455_v14 = vpop.f32.mrf.mxu3  ;;  %v437_v18 = vadd.f32 %v436_v12, %v418_v16  ;;  %v420_v20 = vpop.f32.mrf.mxu1 }
  0xb0   :  { %v421_v25 = vadd.f32 %v420_v20, %v401_v5  ;;  %v642_v5 = vadd.f32 %v641_v2, %v640_v3 }
  0xb1   :  { %v456_v22 = vadd.f32 %v455_v14, %v437_v18 }
  0xb6   :  { %v403_v8 = vpop.f32.mrf.mxu0  ;;  %v439_v21 = vpop.f32.mrf.mxu2 }
  0xb7   :  { %v458_v27 = vpop.f32.mrf.mxu3  ;;  %v440_v28 = vadd.f32 %v439_v21, %v421_v25  ;;  %v422_v31 = vpop.f32.mrf.mxu1 }
  0xb8   :  { %v423_v36 = vadd.f32 %v422_v31, %v403_v8  ;;  %v643_v8 = vrot.slane %v642_v5, 4 }
  0xb9   :  { %v459_v32 = vadd.f32 %v458_v27, %v440_v28 }
  0xba   :  { %v644_v11 = vadd.f32 %v643_v8, %v642_v5 }
  0xbc   :  { %v645_v21 = vrot.slane %v644_v11, 2 }
  0xbe   :  { %v472_v15 = vpop.f32.mrf.mxu0  ;;  %v441_v34 = vpop.f32.mrf.mxu2  ;;  %v646_v27 = vadd.f32 %v645_v21, %v644_v11 }
  0xbf   :  { %v2354_v17 = vadd.f32 %v472_v15, %v454_v13  ;;  %v442_v38 = vadd.f32 %v441_v34, %v423_v36  ;;  %v460_v41 = vpop.f32.mrf.mxu3  ;;  %v2414_v36 = vld [vmem:[%s2903_s2 + $0x18] sm:$0xff] }
  0xc0   :  { %v647_v31 = vrot.slane %v646_v27, 1 }
  0xc1   :  { %v483_v19 = vsel %vm482_vm1, %v2354_v17, 0.0  ;;  %v499_v23 = vmul.f32 %v2354_v17, %v2354_v17  ;;  %v461_v42 = vadd.f32 %v460_v41, %v442_v38 }
  0xc2   :  { %484 = vadd.xlane.f32.xlu0 %v483_v19 }
  0xc3   :  { %v503_v30 = vsel %vm482_vm1, %v499_v23, 0.0 }
  0xc6   :  { %v474_v24 = vpop.f32.mrf.mxu0 }
  0xc7   :  { %v2360_v26 = vadd.f32 %v474_v24, %v456_v22 }
  0xc9   :  { %v486_v29 = vsel %vm482_vm1, %v2360_v26, 0.0  ;;  %v500_v33 = vmul.f32 %v2360_v26, %v2360_v26 }
  0xca   :  { %487 = vadd.xlane.f32.xlu1 %v486_v29  ;;  %504 = vadd.xlane.f32.xlu0 %v503_v30 }
  0xcb   :  { %v506_v40 = vsel %vm482_vm1, %v500_v33, 0.0 }
  0xce   :  { %v477_v35 = vpop.f32.mrf.mxu0 }
  0xcf   :  { %v2367_v37 = vadd.f32 %v477_v35, %v459_v32  ;;  %v2409_v35 = vld [vmem:[%s2903_s2 + $0x8] sm:$0xff] }
  0xd1   :  { %v489_v39 = vsel %vm482_vm1, %v2367_v37, 0.0  ;;  %v501_v43 = vmul.f32 %v2367_v37, %v2367_v37 }
  0xd2   :  { %490 = vadd.xlane.f32.xlu2 %v489_v39  ;;  %507 = vadd.xlane.f32.xlu1 %v506_v40  ;;  %v2416_v40 = vadd.f32 %v647_v31, %v646_v27 }
  0xd3   :  { %v509_v46 = vsel %vm482_vm1, %v501_v43, 0.0 }
  0xd6   :  { %v479_v44 = vpop.f32.mrf.mxu0 }
  0xd7   :  { %v2374_v45 = vadd.f32 %v479_v44, %v461_v42 }
  0xd9   :  { %v492_v47 = vsel %vm482_vm1, %v2374_v45, 0.0  ;;  %v502_v48 = vmul.f32 %v2374_v45, %v2374_v45 }
  0xda   :  { %510 = vadd.xlane.f32.xlu2 %v509_v46  ;;  %493 = vadd.xlane.f32.xlu0 %v492_v47  ;;  %v666_v46 = vmul.f32 %v2416_v40, %v2409_v35  ;;  %v668_v47 = vmul.f32 %v2416_v40, %v2414_v36 }
  0xdb   :  { %v512_v49 = vsel %vm482_vm1, %v502_v48, 0.0 }
  0xdc   :  { %513 = vadd.xlane.f32.xlu1 %v512_v49  ;;  %v678_v51 = vsel %vm639_vm2, %v668_v47, 0.0  ;;  %v2077_v47 = vld [vmem:[%s2900_s0 + $0x188] sm:$0xff] }
  0xe2   :  { %679 = vadd.xlane.f32.xlu2 %v678_v51  ;;  %v2066_v51 = vld [vmem:[%s2900_s0 + $0x130] sm:$0xff] }
 0x135   :  { %v485_v50 = vpop.xlane.xlu0 %484 }
 0x136   :  { %v2385_v52 = vmul.f32 0.0625, %v485_v50  ;;  %v672_v50 = vsel %vm639_vm2, %v666_v46, 0.0  ;;  %v2086_v46 = vld [vmem:[%s2900_s0 + $0x1d0] sm:$0xff] }
 0x137   :  { %673 = vadd.xlane.f32.xlu1 %v672_v50  ;;  %v2076_v50 = vld [vmem:[%s2900_s0 + $0x180] sm:$0xff] }
 0x138   :  { %v519_v56 = vmul.f32 %v2385_v52, %v2385_v52  ;;  %v531_v41 = vsub.f32 %v2354_v17, %v2385_v52 }
 0x13d   :  { %v488_v54 = vpop.xlane.xlu1 %487  ;;  %v505_v55 = vpop.xlane.xlu0 %504 }
 0x13e   :  { %v515_v57 = vmul.f32 0.0625, %v505_v55  ;;  %v2392_v59 = vmul.f32 0.0625, %v488_v54 }
 0x140   :  { %v523_v58 = vsub.f32 %v515_v57, %v519_v56  ;;  %v520_v0 = vmul.f32 %v2392_v59, %v2392_v59 }
 0x142   :  { %v527_v60 = vmax.f32 %v523_v58, 0.0  ;;  %v532_v58 = vsub.f32 %v2360_v26, %v2392_v59 }
 0x144   :  { %v535_v61 = vadd.f32 1e-05, %v527_v60 }
 0x145   :  { %v491_v62 = vpop.xlane.xlu2 %490  ;;  %v508_v63 = vpop.xlane.xlu1 %507 }
 0x146   :  { %2104 = vrsqrt.f32 %v535_v61  ;;  %v516_v1 = vmul.f32 0.0625, %v508_v63  ;;  %v2398_v6 = vmul.f32 0.0625, %v491_v62  ;;  %vm545_vm4 = vweird.f32 %v535_v61 }
 0x148   :  { %v524_v4 = vsub.f32 %v516_v1, %v520_v0  ;;  %v521_v15 = vmul.f32 %v2398_v6, %v2398_v6 }
 0x14a   :  { %v528_v7 = vmax.f32 %v524_v4, 0.0 }
 0x14c   :  { %v2105_v9 = vpop.eup %2104  ;;  %v536_v10 = vadd.f32 1e-05, %v528_v7  ;;  %v533_v7 = vsub.f32 %v2367_v37, %v2398_v6 }
 0x14d   :  { %v540_v12 = vmul.f32 %v2105_v9, %v535_v61  ;;  %v511_v13 = vpop.xlane.xlu2 %510  ;;  %v494_v14 = vpop.xlane.xlu0 %493  ;;  %vm546_vm3 = vweird.f32 %v2105_v9 }
 0x14e   :  { %2106 = vrsqrt.f32 %v536_v10  ;;  %v517_v16 = vmul.f32 0.0625, %v511_v13  ;;  %v2402_v18 = vmul.f32 0.0625, %v494_v14  ;;  %vm547_vm5 = vmor %vm545_vm4, %vm546_vm3  ;;  %vm555_vm8 = vweird.f32 %v536_v10 }
 0x14f   :  { %v541_v19 = vmul.f32 %v2105_v9, %v540_v12  ;;  %v514_v20 = vpop.xlane.xlu1 %513 }
 0x150   :  { %v525_v22 = vsub.f32 %v517_v16, %v521_v15  ;;  %v522_v23 = vmul.f32 %v2402_v18, %v2402_v18  ;;  %v518_v24 = vmul.f32 0.0625, %v514_v20  ;;  %v2460_v16 = vld [vmem:[%s2903_s2] sm:$0xff] }
 0x151   :  { %v542_v25 = vmul.f32 0.5, %v541_v19  ;;  %v665_v20 = vmul.f32 %v2416_v40, %v2460_v16 }
 0x152   :  { %v529_v28 = vmax.f32 %v525_v22, 0.0  ;;  %v526_v29 = vsub.f32 %v518_v24, %v522_v23 }
 0x153   :  { %v543_v30 = vsub.f32 1.5, %v542_v25  ;;  %v669_v21 = vsel %vm639_vm2, %v665_v20, 0.0 }
 0x154   :  { %v2107_v32 = vpop.eup %2106  ;;  %v537_v33 = vadd.f32 1e-05, %v529_v28  ;;  %v530_v34 = vmax.f32 %v526_v29, 0.0  ;;  %670 = vadd.xlane.f32.xlu2 %v669_v21 }
 0x155   :  { %v544_v38 = vmul.f32 %v2105_v9, %v543_v30  ;;  %v550_v39 = vmul.f32 %v2107_v32, %v536_v10  ;;  %vm556_vm7 = vweird.f32 %v2107_v32  ;;  %v534_v10 = vsub.f32 %v2374_v45, %v2402_v18  ;;  %v2455_v45 = vld [vmem:[%s2903_s2 + $0x10] sm:$0xff] }
 0x156   :  { %2108 = vrsqrt.f32 %v537_v33  ;;  %v538_v42 = vadd.f32 1e-05, %v530_v34  ;;  %vm557_vm9 = vmor %vm555_vm8, %vm556_vm7  ;;  %vm565_vm11 = vweird.f32 %v537_v33  ;;  %v667_v18 = vmul.f32 %v2416_v40, %v2455_v45  ;;  %v2079_v40 = vld [vmem:[%s2900_s0 + $0x198] sm:$0xff] }
 0x157   :  { %v551_v43 = vmul.f32 %v2107_v32, %v550_v39  ;;  %v548_v44 = vsel %vm547_vm5, %v2105_v9, %v544_v38  ;;  %v2071_v38 = vld [vmem:[%s2900_s0 + $0x158] sm:$0xff]  ;;  %v2070_v39 = vld [vmem:[%s2900_s0 + $0x150] sm:$0xff]  ;;  %1160 = vmatpush.bf16.msra.mxu0 %v2079_v40 }
 0x158   :  { %2110 = vrsqrt.f32 %v538_v42  ;;  %v579_v48 = vmul.f32 %v548_v44, %v531_v41  ;;  %vm575_vm14 = vweird.f32 %v538_v42  ;;  %v675_v19 = vsel %vm639_vm2, %v667_v18, 0.0  ;;  %1141 = vmatpush.bf16.msrb.mxu3 %v2071_v38  ;;  %v2087_v41 = vld [vmem:[%s2900_s0 + $0x1d8] sm:$0xff]  ;;  %v2068_v44 = vld [vmem:[%s2900_s0 + $0x140] sm:$0xff] }
 0x159   :  { %v552_v49 = vmul.f32 0.5, %v551_v43  ;;  %676 = vadd.xlane.f32.xlu0 %v675_v19  ;;  %v2069_v43 = vld [vmem:[%s2900_s0 + $0x148] sm:$0xff]  ;;  %1179 = vmatpush.bf16.msra.mxu1 %v2087_v41  ;;  %v2098_v41 = vld [vmem:[%s2900_s0 + $0x230] sm:$0xff] }
 0x15a   :  { %v583_v53 = vmax.f32 %v579_v48, 0.0  ;;  %v2067_v48 = vld [vmem:[%s2900_s0 + $0x138] sm:$0xff] }
 0x15b   :  { %v553_v17 = vsub.f32 1.5, %v552_v49  ;;  %v2085_v49 = vld [vmem:[%s2900_s0 + $0x1c8] sm:$0xff] }
 0x15c   :  { %v2109_v52 = vpop.eup %2108  ;;  %v587_v54 = vpack.c.bf16 %v583_v53, %v583_v53  ;;  %1730 = vmatmul.msk.f32.vlgmr.msrb.gmra.mxu1 %vm482_vm1, %v583_v53  ;;  %1142 = vmatpush.bf16.msrb.mxu3 %v2070_v39  ;;  %v2084_v53 = vld [vmem:[%s2900_s0 + $0x1c0] sm:$0xff] }
 0x15d   :  { %v560_v55 = vmul.f32 %v2109_v52, %v537_v33  ;;  %v554_v56 = vmul.f32 %v2107_v32, %v553_v17  ;;  %vm566_vm10 = vweird.f32 %v2109_v52  ;;  %1180 = vmatpush.bf16.msra.mxu1 %v2086_v46  ;;  %v2075_v17 = vld [vmem:[%s2900_s0 + $0x178] sm:$0xff] }
 0x15e   :  { %v2111_v57 = vpop.eup %2110  ;;  %592 = vst.msk [vmem:[%s2904_s6] sm:$0xf] %vm591_vm6, %v587_v54  ;;  %vm567_vm13 = vmor %vm565_vm11, %vm566_vm10  ;;  %v2065_v54 = vld [vmem:[%s2900_s0 + $0x128] sm:$0xff] }
 0x15f   :  { %v561_v60 = vmul.f32 %v2109_v52, %v560_v55  ;;  %v570_v61 = vmul.f32 %v2111_v57, %v538_v42  ;;  %v558_v62 = vsel %vm557_vm9, %v2107_v32, %v554_v56  ;;  %vm576_vm12 = vweird.f32 %v2111_v57  ;;  %v2078_v42 = vld [vmem:[%s2900_s0 + $0x190] sm:$0xff]  ;;  %v2083_v55 = vld [vmem:[%s2900_s0 + $0x1b8] sm:$0xff] }
 0x160   :  { %v580_v63 = vmul.f32 %v558_v62, %v532_v58  ;;  %vm577_vm15 = vmor %vm575_vm14, %vm576_vm12  ;;  %1161 = vmatpush.bf16.msra.mxu0 %v2078_v42  ;;  %1143 = vmatpush.bf16.msrb.mxu3 %v2069_v43  ;;  %v2074_v56 = vld [vmem:[%s2900_s0 + $0x170] sm:$0xff]  ;;  %v2064_v62 = vld [vmem:[%s2900_s0 + $0x120] sm:$0xff] }
 0x161   :  { %v562_v0 = vmul.f32 0.5, %v561_v60  ;;  %v571_v1 = vmul.f32 %v2111_v57, %v570_v61  ;;  %1181 = vmatpush.bf16.msra.mxu1 %v2085_v49  ;;  %v2059_v42 = vld [vmem:[%s2901_s3 + $0x2c] sm:$0xf] }
 0x162   :  { %v584_v2 = vmax.f32 %v580_v63, 0.0  ;;  %v2082_v63 = vld [vmem:[%s2900_s0 + $0x1b0] sm:$0xff] }
 0x163   :  { %v563_v3 = vsub.f32 1.5, %v562_v0  ;;  %v572_v4 = vmul.f32 0.5, %v571_v1  ;;  %v2073_v1 = vld [vmem:[%s2900_s0 + $0x168] sm:$0xff] }
 0x164   :  { %v588_v5 = vpack.c.bf16 %v584_v2, %v584_v2  ;;  %1731 = vmatmul.msk.f32.gmra.mxu1 %vm482_vm1, %v584_v2  ;;  %1144 = vmatpush.bf16.msrb.mxu3 %v2068_v44  ;;  %v1810_v2 = vld [vmem:[%s2901_s3] sm:$0xf] }
 0x165   :  { %v573_v26 = vsub.f32 1.5, %v572_v4  ;;  %v564_v59 = vmul.f32 %v2109_v52, %v563_v3  ;;  %1162 = vmatpush.bf16.msra.mxu0 %v2077_v47  ;;  %1182 = vmatpush.bf16.msra.mxu1 %v2084_v53  ;;  %v2056_v3 = vld [vmem:[%s2901_s3 + $0x10] sm:$0xf0] }
 0x166   :  { %593 = vst.msk [vmem:[%s2904_s6 + $0x4] sm:$0xf] %vm591_vm6, %v588_v5  ;;  %v1811_v4 = vor.u32 %v2056_v3, %v1810_v2 }
 0x167   :  { %v568_v8 = vsel %vm567_vm13, %v2109_v52, %v564_v59  ;;  %v574_v9 = vmul.f32 %v2111_v57, %v573_v26  ;;  %v680_v52 = vpop.xlane.xlu2 %679  ;;  %v2081_v26 = vld [vmem:[%s2900_s0 + $0x1a8] sm:$0xff]  ;;  %v2072_v59 = vld [vmem:[%s2900_s0 + $0x160] sm:$0xff] }
 0x168   :  { %v581_v11 = vmul.f32 %v568_v8, %v533_v7  ;;  %1145 = vmatpush.bf16.msrb.mxu3 %v2067_v48  ;;  %v2530_v60 = vadd.f32 1e-05, %v680_v52  ;;  %v1832_v48 = vld [vmem:[%s2901_s3 + $0x3c] sm:$0xf0]  ;;  %v1838_v52 = vld [vmem:[%s2901_s3 + $0x30] sm:$0xf] }
 0x169   :  { %v578_v12 = vsel %vm577_vm15, %v2111_v57, %v574_v9  ;;  %1163 = vmatpush.bf16.msra.mxu0 %v2076_v50  ;;  %1183 = vmatpush.bf16.msra.mxu1 %v2083_v55  ;;  %v2080_v9 = vld [vmem:[%s2900_s0 + $0x1a0] sm:$0xff] }
 0x16a   :  { %v585_v13 = vmax.f32 %v581_v11, 0.0  ;;  %v582_v14 = vmul.f32 %v578_v12, %v534_v10  ;;  %2112 = vrcp.f32 %v2530_v60  ;;  %v2054_v10 = vld [vmem:[%s2901_s3 + $0x4] sm:$0xf]  ;;  %v1812_v11 = vld [vmem:[%s2901_s3 + $0x14] sm:$0xf0]  ;;  %vm735_vm3 = vweird.f32 %v2530_v60 }
 0x16b   :  { %v739_v40 = vand.u32 2147483647, %v2530_v60 }
 0x16c   :  { %v589_v15 = vpack.c.bf16 %v585_v13, %v585_v13  ;;  %1732 = vmatmul.msk.f32.gmra.mxu1 %vm482_vm1, %v585_v13  ;;  %v586_v37 = vmax.f32 %v582_v14, 0.0  ;;  %1146 = vmatpush.bf16.msrb.mxu3 %v2066_v51  ;;  %v1815_v13 = vor.u32 %v2054_v10, %v1812_v11  ;;  %v1818_v14 = vld [vmem:[%s2901_s3 + $0x8] sm:$0xf]  ;;  %v1835_v51 = vor.u32 %v2059_v42, %v1832_v48 }
 0x16d   :  { %1164 = vmatpush.bf16.msra.mxu0 %v2075_v17  ;;  %1184 = vmatpush.bf16.msra.mxu1 %v2082_v63  ;;  %vm740_vm14 = vcmp.eq.f32.partialorder %v739_v40, 8.507059e+37  ;;  %v2055_v40 = vld [vmem:[%s2901_s3 + $0xc] sm:$0xf] }
 0x16e   :  { %594 = vst.msk [vmem:[%s2904_s6 + $0x8] sm:$0xf] %vm591_vm6, %v589_v15  ;;  %v590_v6 = vpack.c.bf16 %v586_v37, %v586_v37  ;;  %v2057_v15 = vld [vmem:[%s2901_s3 + $0x18] sm:$0xf0] }
 0x16f   :  { %v1819_v18 = vor.u32 %v2057_v15, %v1818_v14  ;;  %v1826_v15 = vld [vmem:[%s2901_s3 + $0x10] sm:$0xf] }
 0x170   :  { %595 = vst.msk [vmem:[%s2904_s6 + $0xc] sm:$0xf] %vm591_vm6, %v590_v6  ;;  %1147 = vmatpush.bf16.msrb.mxu3 %v2065_v54  ;;  %v2562_v8 = vpop.eup %2112  ;;  %v2062_v54 = vld [vmem:[%s2901_s3 + $0x40] sm:$0xf0] }
 0x171   :  { %1165 = vmatpush.bf16.msra.mxu0 %v2074_v56  ;;  %1185 = vmatpush.bf16.msra.mxu1 %v2081_v26  ;;  %v731_v6 = vmul.f32 %v2562_v8, %v2530_v60  ;;  %vm736_vm4 = vweird.f32 %v2562_v8 }
 0x172   :  { %vm2628_vm10 = vmor %vm735_vm3, %vm736_vm4 }
 0x173   :  { %v732_v21 = vsub.f32 1.0, %v731_v6 }
 0x174   :  { %1733 = vmatmul.msk.f32.gmra.mxu1 %vm482_vm1, %v586_v37  ;;  %1148 = vmatpush.bf16.msrb.mxu3 %v2064_v62 }
 0x175   :  { %1166 = vmatpush.bf16.msra.mxu0 %v2073_v1  ;;  %1186 = vmatpush.bf16.msra.mxu1 %v2080_v9 }
 0x177   :  { %1149 = vmatmul.bf16.vlgmr.msrb.gmra.mxu3 %v1811_v4 }
 0x179   :  { %1167 = vmatpush.bf16.msra.mxu0 %v2072_v59  ;;  %v2096_v59 = vld [vmem:[%s2900_s0 + $0x220] sm:$0xff] }
 0x17c   :  { %1168 = vmatmul.bf16.vlgmr.msra.gmra.mxu0 %v1815_v13  ;;  %1187 = vmatmul.bf16.vlgmr.msra.gmra.mxu1 %v1819_v18 }
 0x18c   :  { %1173 = vmatmul.bf16.gmra.mxu0 %v1835_v51 }
 0x1aa   :  { %v674_v58 = vpop.xlane.xlu1 %673 }
 0x1ab   :  { %v2540_v0 = vadd.f32 1e-05, %v674_v58 }
 0x1ad   :  { %vm705_vm8 = vweird.f32 %v2540_v0  ;;  %v711_v49 = vand.u32 2147483648, %v2540_v0  ;;  %v709_v17 = vand.u32 2147483647, %v2540_v0 }
 0x1af   :  { %vm710_vm15 = vcmp.eq.f32.partialorder %v709_v17, 8.507059e+37  ;;  %v2759_v17 = vld [vmem:[%s2906_s5 + $0x8] sm:$0xff] }
 0x1c7   :  { %v671_v5 = vpop.xlane.xlu2 %670 }
 0x1c8   :  { %v2560_v7 = vadd.f32 1e-05, %v671_v5 }
 0x1ca   :  { %vm690_vm3 = vweird.f32 %v2560_v7  ;;  %v696_v26 = vand.u32 2147483648, %v2560_v7  ;;  %v694_v10 = vand.u32 2147483647, %v2560_v7 }
 0x1cc   :  { %v677_v57 = vpop.xlane.xlu0 %676  ;;  %v697_v6 = vor.u32 1.1754944e-38, %v696_v26 }
 0x1cd   :  { %v2532_v61 = vadd.f32 1e-05, %v677_v57 }
 0x1cf   :  { %2114 = vrcp.f32 %v2532_v61  ;;  %vm720_vm5 = vweird.f32 %v2532_v61  ;;  %v726_v38 = vand.u32 2147483648, %v2532_v61  ;;  %v724_v44 = vand.u32 2147483647, %v2532_v61 }
 0x1d0   :  { %2116 = vrcp.f32 %v2540_v0 }
 0x1d1   :  { %2118 = vrcp.f32 %v2560_v7  ;;  %v727_v56 = vor.u32 1.1754944e-38, %v726_v38  ;;  %vm725_vm13 = vcmp.eq.f32.partialorder %v724_v44, 8.507059e+37  ;;  %v2089_v38 = vld [vmem:[%s2900_s0 + $0x1e8] sm:$0xff] }
 0x1d2   :  { %v1840_v44 = vld [vmem:[%s2901_s3 + $0x44] sm:$0xf0] }
 0x1d5   :  { %v2573_v12 = vpop.eup %2114 }
 0x1d6   :  { %v2581_v37 = vpop.eup %2116  ;;  %v716_v19 = vmul.f32 %v2573_v12, %v2532_v61  ;;  %vm721_vm7 = vweird.f32 %v2573_v12  ;;  %v2097_v61 = vld [vmem:[%s2900_s0 + $0x228] sm:$0xff] }
 0x1d7   :  { %v701_v20 = vmul.f32 %v2581_v37, %v2540_v0  ;;  %vm706_vm9 = vweird.f32 %v2581_v37  ;;  %vm2640_vm11 = vmor %vm720_vm5, %vm721_vm7  ;;  %v712_v0 = vor.u32 1.1754944e-38, %v711_v49  ;;  %vm695_vm7 = vcmp.eq.f32.partialorder %v694_v10, 8.507059e+37  ;;  %v2753_v49 = vld [vmem:[%s2906_s5] sm:$0xff] }
 0x1d8   :  { %vm2654_vm12 = vmor %vm705_vm8, %vm706_vm9  ;;  %vm749_vm8 = vcmask 261120  }
 0x1d9   :  { %v627_v22 = vpop.f32.mrf.mxu1 }
 0x1da   :  { %v649_v33 = vmul.f32 %v627_v22, %v2460_v16  ;;  %v717_v22 = vsub.f32 1.0, %v716_v19 }
 0x1dc   :  { %v653_v34 = vsel %vm639_vm2, %v649_v33, 0.0 }
 0x1e1   :  { %v630_v23 = vpop.f32.mrf.mxu1 }
 0x1e2   :  { %v650_v24 = vmul.f32 %v630_v23, %v2409_v35  ;;  %v2590_v23 = vpop.eup %2118 }
 0x1e3   :  { %vm691_vm4 = vweird.f32 %v2590_v23 }
 0x1e4   :  { %v656_v25 = vsel %vm639_vm2, %v650_v24, 0.0  ;;  %v702_v24 = vsub.f32 1.0, %v701_v20  ;;  %vm2679_vm5 = vmor %vm690_vm3, %vm691_vm4 }
 0x1e5   :  { %657 = vadd.xlane.f32.xlu2 %v656_v25  ;;  %v1830_v25 = vld [vmem:[%s2901_s3 + $0x28] sm:$0xf] }
 0x1e6   :  { %v703_v33 = vmul.f32 %v2581_v37, %v702_v24 }
 0x1e8   :  { %v704_v53 = vadd.f32 %v2581_v37, %v703_v33  ;;  %v2091_v33 = vld [vmem:[%s2900_s0 + $0x1f8] sm:$0xff] }
 0x1e9   :  { %v633_v27 = vpop.f32.mrf.mxu1 }
 0x1ea   :  { %v651_v28 = vmul.f32 %v633_v27, %v2455_v45  ;;  %v2061_v27 = vld [vmem:[%s2901_s3 + $0x38] sm:$0xf0]  ;;  %v708_v1 = vsel %vm2654_vm12, %v2581_v37, %v704_v53  ;;  %v2058_v37 = vld [vmem:[%s2901_s3 + $0x20] sm:$0xf0] }
 0x1eb   :  { %v1827_v18 = vor.u32 %v2058_v37, %v1826_v15 }
 0x1ec   :  { %v659_v29 = vsel %vm639_vm2, %v651_v28, 0.0  ;;  %v733_v28 = vmul.f32 %v2562_v8, %v732_v21 }
 0x1ed   :  { %660 = vadd.xlane.f32.xlu1 %v659_v29  ;;  %v1831_v29 = vor.u32 %v2061_v27, %v1830_v25  ;;  %v2699_v25 = vld [vmem:[%s2905_s4] sm:$0xff]  ;;  %v1846_v27 = vld [vmem:[%s2901_s3 + $0x38] sm:$0xf] }
 0x1ee   :  { %v734_v39 = vadd.f32 %v2562_v8, %v733_v28  ;;  %v2063_v28 = vld [vmem:[%s2901_s3 + $0x48] sm:$0xf0] }
 0x1ef   :  { %1154 = vmatmul.bf16.gmra.mxu3 %v1831_v29  ;;  %v2093_v29 = vld [vmem:[%s2900_s0 + $0x208] sm:$0xff] }
 0x1f0   :  { %v738_v57 = vsel %vm2628_vm10, %v2562_v8, %v734_v39  ;;  %v2088_v39 = vld [vmem:[%s2900_s0 + $0x1e0] sm:$0xff] }
 0x1f1   :  { %v636_v30 = vpop.f32.mrf.mxu1 }
 0x1f2   :  { %v652_v31 = vmul.f32 %v636_v30, %v2414_v36  ;;  %v2099_v30 = vld [vmem:[%s2900_s0 + $0x238] sm:$0xff] }
 0x1f3   :  { %1221 = vmatpush.bf16.msra.mxu3 %v2099_v30  ;;  %v2718_v30 = vld [vmem:[%s2905_s4 + $0x8] sm:$0xff] }
 0x1f4   :  { %v662_v32 = vsel %vm639_vm2, %v652_v31, 0.0  ;;  %v718_v31 = vmul.f32 %v2573_v12, %v717_v22  ;;  %v2095_v22 = vld [vmem:[%s2900_s0 + $0x218] sm:$0xff] }
 0x1f5   :  { %663 = vadd.xlane.f32.xlu0 %v662_v32  ;;  %v686_v32 = vmul.f32 %v2590_v23, %v2560_v7 }
 0x1f6   :  { %v719_v43 = vadd.f32 %v2573_v12, %v718_v31  ;;  %v1847_v31 = vor.u32 %v2063_v28, %v1846_v27 }
 0x1f7   :  { %v687_v47 = vsub.f32 1.0, %v686_v32  ;;  %1222 = vmatpush.bf16.msra.mxu3 %v2098_v41  ;;  %v2092_v32 = vld [vmem:[%s2900_s0 + $0x200] sm:$0xff] }
 0x1f8   :  { %v723_v62 = vsel %vm2640_vm11, %v2573_v12, %v719_v43  ;;  %v713_v12 = vsel %vm710_vm15, %v712_v0, %v708_v1  ;;  %v1820_v41 = vld [vmem:[%s2901_s3 + $0x1c] sm:$0xf0]  ;;  %v2060_v43 = vld [vmem:[%s2901_s3 + $0x34] sm:$0xf] }
 0x1f9   :  { %v688_v63 = vmul.f32 %v2590_v23, %v687_v47  ;;  %v728_v3 = vsel %vm725_vm13, %v727_v56, %v723_v62  ;;  %v1823_v42 = vor.u32 %v2055_v40, %v1820_v41  ;;  %v1843_v46 = vor.u32 %v2060_v43, %v1840_v44  ;;  %v1169_v56 = vpop.f32.mrf.mxu0  ;;  %v1999_v44 = vld [vmem:[%s2902_s1 + $0x18] sm:$0xff] }
 0x1fa   :  { %v1150_v47 = vpop.f32.mrf.mxu3  ;;  %1378 = vmatpush.msrb.mxu0 %v1999_v44 }
 0x1fb   :  { %1223 = vmatpush.bf16.msra.mxu3 %v2097_v61  ;;  %v689_v9 = vadd.f32 %v2590_v23, %v688_v63 }
 0x1fd   :  { %654 = vadd.xlane.f32.xlu0 %v653_v34  ;;  %v741_v34 = vand.u32 2147483648, %v2530_v60  ;;  %v1839_v60 = vor.u32 %v2062_v54, %v1838_v52  ;;  %v693_v19 = vsel %vm2679_vm5, %v2590_v23, %v689_v9  ;;  %v2094_v23 = vld [vmem:[%s2900_s0 + $0x210] sm:$0xff] }
 0x1fe   :  { %v698_v20 = vsel %vm695_vm7, %v697_v6, %v693_v19 }
 0x1ff   :  { %v742_v58 = vor.u32 1.1754944e-38, %v741_v34  ;;  %1192 = vmatmul.bf16.gmra.mxu1 %v1839_v60  ;;  %1224 = vmatpush.bf16.msra.mxu3 %v2096_v59  ;;  %v2090_v34 = vld [vmem:[%s2900_s0 + $0x1f0] sm:$0xff]  ;;  %v1188_v60 = vpop.f32.mrf.mxu1 }
 0x201   :  { %v743_v4 = vsel %vm740_vm14, %v742_v58, %v738_v57  ;;  %v1171_v61 = vpop.f32.mrf.mxu0 }
 0x202   :  { %1992 = vmatmul.msk.bf16.vlgmr.msra.gmra.mxu3 %vm380_vm0, %v1827_v18  ;;  %v1152_v48 = vpop.f32.mrf.mxu3 }
 0x203   :  { %v1172_v1 = vadd.f32 %v1171_v61, %v1152_v48  ;;  %2101 = vmatpush.msrb.mxu3 %v1999_v44 }
 0x207   :  { %v1190_v63 = vpop.f32.mrf.mxu1 }
 0x212   :  { %1993 = vmatmul.msk.bf16.gmra.mxu3 %vm380_vm0, %v1847_v31  ;;  %vm781_vm0 = vcmask 7168  }
 0x258   :  { %v658_v11 = vpop.xlane.xlu2 %657 }
 0x259   :  { %v714_v7 = vmul.f32 %v713_v12, %v658_v11  ;;  %v1170_v12 = vadd.f32 %v1169_v56, %v1150_v47  ;;  %v1998_v47 = vld [vmem:[%s2902_s1 + $0x10] sm:$0xff] }
 0x25a   :  { %2103 = vmatpush.msrb.mxu3 %v1998_v47  ;;  %1379 = vmatpush.msrb.mxu0 %v1998_v47 }
 0x260   :  { %v661_v2 = vpop.xlane.xlu1 %660 }
 0x261   :  { %v729_v14 = vmul.f32 %v728_v3, %v661_v2  ;;  %v1174_v2 = vpop.f32.mrf.mxu0 }
 0x268   :  { %v664_v5 = vpop.xlane.xlu0 %663 }
 0x269   :  { %v744_v8 = vmul.f32 %v743_v4, %v664_v5  ;;  %v1191_v4 = vadd.f32 %v1190_v63, %v1172_v1 }
 0x26b   :  { %768 = vmatpush.msrb.mxu2 %v744_v8 }
 0x26d   :  { %769 = vmatpush.msrb.mxu2 %v729_v14  ;;  %v1176_v14 = vpop.f32.mrf.mxu0 }
 0x26f   :  { %770 = vmatpush.msrb.mxu2 %v714_v7  ;;  %v1189_v7 = vadd.f32 %v1188_v60, %v1170_v12 }
 0x270   :  { %v655_v21 = vpop.xlane.xlu0 %654 }
 0x271   :  { %v699_v24 = vmul.f32 %v698_v20, %v655_v21 }
 0x272   :  { %v1155_v53 = vpop.f32.mrf.mxu3 }
 0x273   :  { %771 = vmatpush.msrb.mxu2 %v699_v24  ;;  %v1175_v8 = vadd.f32 %v1174_v2, %v1155_v53 }
 0x274   :  { %1734 = vmatmul.msk.f32.vlgmr.msrb.gmra.mxu2 %vm749_vm8, %v2699_v25 }
 0x275   :  { %1198 = vmatpush.bf16.msra.mxu2 %v2095_v22 }
 0x279   :  { %1199 = vmatpush.bf16.msra.mxu2 %v2094_v23 }
 0x27a   :  { %v1157_v57 = vpop.f32.mrf.mxu3 }
 0x27b   :  { %v1177_v19 = vadd.f32 %v1176_v14, %v1157_v57 }
 0x27c   :  { %1735 = vmatmul.msk.f32.gmra.mxu2 %vm749_vm8, %v2718_v30  ;;  %v1193_v59 = vpop.f32.mrf.mxu1 }
 0x27d   :  { %1200 = vmatpush.bf16.msra.mxu2 %v2093_v29  ;;  %v1194_v13 = vadd.f32 %v1193_v59, %v1175_v8 }
 0x281   :  { %1201 = vmatpush.bf16.msra.mxu2 %v2092_v32 }
 0x284   :  { %v1195_v21 = vpop.f32.mrf.mxu1 }
 0x285   :  { %1202 = vmatpush.bf16.msra.mxu2 %v2091_v33  ;;  %v1226_v62 = vpop.f32.mrf.mxu3  ;;  %v1196_v23 = vadd.f32 %v1195_v21, %v1177_v19 }
 0x289   :  { %1203 = vmatpush.bf16.msra.mxu2 %v2090_v34 }
 0x28d   :  { %1204 = vmatpush.bf16.msra.mxu2 %v2089_v38  ;;  %v1228_v3 = vpop.f32.mrf.mxu3 }
 0x291   :  { %1205 = vmatpush.bf16.msra.mxu2 %v2088_v39 }
 0x294   :  { %1206 = vmatmul.bf16.vlgmr.msra.gmra.mxu2 %v1823_v42 }
 0x295   :  { %v1231_v37 = vpop.f32.mrf.mxu3  ;;  %2100 = vmatpush.msrb.mxu2 %v1999_v44 }
 0x297   :  { %2102 = vmatpush.msrb.mxu2 %v1998_v47 }
 0x29d   :  { %v1233_v31 = vpop.f32.mrf.mxu3 }
 0x2a4   :  { %1211 = vmatmul.bf16.gmra.mxu2 %v1843_v46 }
 0x2f7   :  { %v773_v50 = vpop.f32.mrf.mxu2 }
 0x2f8   :  { %v774_v51 = vadd.f32 %v773_v50, %v2753_v49 }
 0x2fa   :  { %2120 = vtanh.f32 %v774_v51 }
 0x2ff   :  { %v776_v52 = vpop.f32.mrf.mxu2 }
 0x300   :  { %v2121_v54 = vpop.eup %2120  ;;  %v777_v55 = vadd.f32 %v776_v52, %v2759_v17 }
 0x301   :  { %782 = vst.msk [vmem:[%s2907_s7] sm:$0xff] %vm781_vm0, %v2121_v54 }
 0x302   :  { %2122 = vtanh.f32 %v777_v55 }
 0x308   :  { %v2123_v58 = vpop.eup %2122 }
 0x309   :  { %783 = vst.msk [vmem:[%s2907_s7 + $0x8] sm:$0xff] %vm781_vm0, %v2123_v58 }
 0x317   :  { %v1207_v0 = vpop.f32.mrf.mxu2 }
 0x318   :  { %v1208_v22 = vadd.f32 %v1207_v0, %v1189_v7 }
 0x31a   :  { %v2781_v28 = vadd.f32 %v1226_v62, %v1208_v22 }
 0x31c   :  { %v1236_v34 = vsel %vm482_vm1, %v2781_v28, 0.0  ;;  %v1252_v41 = vmul.f32 %v2781_v28, %v2781_v28 }
 0x31e   :  { %v1256_v43 = vsel %vm482_vm1, %v1252_v41, 0.0 }
 0x31f   :  { %v1209_v5 = vpop.f32.mrf.mxu2 }
 0x320   :  { %v1210_v26 = vadd.f32 %v1209_v5, %v1191_v4  ;;  %v1394_v4 = vsel %vm639_vm2, %v1999_v44, 0.0  ;;  %v1393_v5 = vsel %vm639_vm2, %v1998_v47, 0.0 }
 0x321   :  { %v1395_v8 = vadd.f32 %v1394_v4, %v1393_v5 }
 0x322   :  { %v2770_v9 = vadd.f32 %v1228_v3, %v1210_v26 }
 0x323   :  { %v1396_v14 = vrot.slane %v1395_v8, 4 }
 0x324   :  { %v1239_v10 = vsel %vm482_vm1, %v2770_v9, 0.0  ;;  %v1253_v11 = vmul.f32 %v2770_v9, %v2770_v9 }
 0x325   :  { %1240 = vadd.xlane.f32.xlu1 %v1239_v10  ;;  %v1397_v19 = vadd.f32 %v1396_v14, %v1395_v8 }
 0x326   :  { %v1259_v15 = vsel %vm482_vm1, %v1253_v11, 0.0 }
 0x327   :  { %v1212_v6 = vpop.f32.mrf.mxu2  ;;  %1260 = vadd.xlane.f32.xlu2 %v1259_v15 }
 0x328   :  { %v1213_v18 = vadd.f32 %v1212_v6, %v1194_v13 }
 0x32a   :  { %v2777_v20 = vadd.f32 %v1231_v37, %v1213_v18 }
 0x32c   :  { %v1242_v24 = vsel %vm482_vm1, %v2777_v20, 0.0  ;;  %v1254_v40 = vmul.f32 %v2777_v20, %v2777_v20 }
 0x32d   :  { %1243 = vadd.xlane.f32.xlu1 %v1242_v24 }
 0x32e   :  { %v1262_v42 = vsel %vm482_vm1, %v1254_v40, 0.0 }
 0x32f   :  { %v1214_v27 = vpop.f32.mrf.mxu2 }
 0x330   :  { %v1215_v29 = vadd.f32 %v1214_v27, %v1196_v23 }
 0x332   :  { %v2783_v32 = vadd.f32 %v1233_v31, %v1215_v29  ;;  %v1398_v29 = vrot.slane %v1397_v19, 2 }
 0x334   :  { %v1245_v33 = vsel %vm482_vm1, %v2783_v32, 0.0  ;;  %v1255_v38 = vmul.f32 %v2783_v32, %v2783_v32 }
 0x335   :  { %1246 = vadd.xlane.f32.xlu0 %v1245_v33  ;;  %1237 = vadd.xlane.f32.xlu1 %v1236_v34 }
 0x336   :  { %v1265_v39 = vsel %vm482_vm1, %v1255_v38, 0.0  ;;  %v1399_v38 = vadd.f32 %v1398_v29, %v1397_v19 }
 0x337   :  { %1266 = vadd.xlane.f32.xlu2 %v1265_v39 }
 0x33d   :  { %1263 = vadd.xlane.f32.xlu0 %v1262_v42  ;;  %v1400_v42 = vrot.slane %v1399_v38, 1 }
 0x33f   :  { %1257 = vadd.xlane.f32.xlu2 %v1256_v43 }
 0x398   :  { %v1241_v46 = vpop.xlane.xlu1 %1240 }
 0x399   :  { %v1249_v48 = vmul.f32 0.0625, %v1241_v46  ;;  %v1401_v46 = vadd.f32 %v1400_v42, %v1399_v38 }
 0x39a   :  { %v1261_v50 = vpop.xlane.xlu2 %1260 }
 0x39b   :  { %v1273_v51 = vmul.f32 %v1249_v48, %v1249_v48  ;;  %v1269_v53 = vmul.f32 0.0625, %v1261_v50  ;;  %v1285_v21 = vsub.f32 %v2770_v9, %v1249_v48  ;;  %v1419_v48 = vmul.f32 %v1401_v46, %v2409_v35 }
 0x39c   :  { %v1421_v50 = vmul.f32 %v1401_v46, %v2414_v36 }
 0x39d   :  { %v1277_v52 = vsub.f32 %v1269_v53, %v1273_v51  ;;  %v1420_v51 = vmul.f32 %v1401_v46, %v2455_v45 }
 0x39f   :  { %v1281_v54 = vmax.f32 %v1277_v52, 0.0  ;;  %v1425_v52 = vsel %vm639_vm2, %v1419_v48, 0.0 }
 0x3a0   :  { %v1244_v56 = vpop.xlane.xlu1 %1243  ;;  %1426 = vadd.xlane.f32.xlu2 %v1425_v52 }
 0x3a1   :  { %v1289_v55 = vadd.f32 1e-05, %v1281_v54  ;;  %v2808_v3 = vmul.f32 0.0625, %v1244_v56  ;;  %v1431_v54 = vsel %vm639_vm2, %v1421_v50, 0.0 }
 0x3a2   :  { %1432 = vadd.xlane.f32.xlu0 %v1431_v54 }
 0x3a3   :  { %2124 = vrsqrt.f32 %v1289_v55  ;;  %v1274_v15 = vmul.f32 %v2808_v3, %v2808_v3  ;;  %vm1308_vm10 = vweird.f32 %v1289_v55 }
 0x3a8   :  { %v1247_v57 = vpop.xlane.xlu0 %1246  ;;  %v1238_v1 = vpop.xlane.xlu1 %1237 }
 0x3a9   :  { %v2125_v58 = vpop.eup %2124  ;;  %v2804_v60 = vmul.f32 0.0625, %v1247_v57  ;;  %v2812_v10 = vmul.f32 0.0625, %v1238_v1 }
 0x3aa   :  { %v1303_v61 = vmul.f32 %v2125_v58, %v1289_v55  ;;  %v1267_v62 = vpop.xlane.xlu2 %1266  ;;  %vm1309_vm9 = vweird.f32 %v2125_v58  ;;  %v1428_v55 = vsel %vm639_vm2, %v1420_v51, 0.0 }
 0x3ab   :  { %v1275_v63 = vmul.f32 %v2804_v60, %v2804_v60  ;;  %v1271_v2 = vmul.f32 0.0625, %v1267_v62  ;;  %vm1310_vm11 = vmor %vm1308_vm10, %vm1309_vm9  ;;  %v1272_v22 = vmul.f32 %v2812_v10, %v2812_v10  ;;  %1429 = vadd.xlane.f32.xlu1 %v1428_v55  ;;  %v1287_v4 = vsub.f32 %v2783_v32, %v2804_v60 }
 0x3ac   :  { %v1304_v0 = vmul.f32 %v2125_v58, %v1303_v61  ;;  %v1418_v61 = vmul.f32 %v1401_v46, %v2460_v16 }
 0x3ad   :  { %v1279_v59 = vsub.f32 %v1271_v2, %v1275_v63 }
 0x3ae   :  { %v1305_v26 = vmul.f32 0.5, %v1304_v0 }
 0x3af   :  { %v1283_v12 = vmax.f32 %v1279_v59, 0.0  ;;  %v1422_v59 = vsel %vm639_vm2, %v1418_v61, 0.0 }
 0x3b0   :  { %v1306_v11 = vsub.f32 1.5, %v1305_v26  ;;  %v1264_v13 = vpop.xlane.xlu0 %1263  ;;  %1423 = vadd.xlane.f32.xlu0 %v1422_v59 }
 0x3b1   :  { %v1270_v37 = vmul.f32 0.0625, %v1264_v13  ;;  %v1291_v18 = vadd.f32 1e-05, %v1283_v12 }
 0x3b2   :  { %v1307_v6 = vmul.f32 %v2125_v58, %v1306_v11  ;;  %v1258_v7 = vpop.xlane.xlu2 %1257 }
 0x3b3   :  { %v1278_v24 = vsub.f32 %v1270_v37, %v1274_v15  ;;  %v1268_v23 = vmul.f32 0.0625, %v1258_v7  ;;  %2126 = vrsqrt.f32 %v1291_v18  ;;  %vm1328_vm13 = vweird.f32 %v1291_v18 }
 0x3b4   :  { %v1311_v27 = vsel %vm1310_vm11, %v2125_v58, %v1307_v6  ;;  %v1286_v6 = vsub.f32 %v2777_v20, %v2808_v3  ;;  %v1284_v7 = vsub.f32 %v2781_v28, %v2812_v10 }
 0x3b5   :  { %v1333_v31 = vmul.f32 %v1311_v27, %v1285_v21  ;;  %v1282_v33 = vmax.f32 %v1278_v24, 0.0  ;;  %v1276_v34 = vsub.f32 %v1268_v23, %v1272_v22 }
 0x3b7   :  { %v1290_v39 = vadd.f32 1e-05, %v1282_v33  ;;  %v1280_v40 = vmax.f32 %v1276_v34, 0.0  ;;  %v1337_v41 = vmax.f32 %v1333_v31, 0.0 }
 0x3b9   :  { %2128 = vrsqrt.f32 %v1290_v39  ;;  %v1288_v43 = vadd.f32 1e-05, %v1280_v40  ;;  %v1341_v9 = vpack.c.bf16 %v1337_v41, %v1337_v41  ;;  %2001 = vmatmul.msk.f32.vlgmr.msrb.gmra.mxu2 %vm482_vm1, %v1337_v41  ;;  %v2127_v44 = vpop.eup %2126  ;;  %vm1318_vm3 = vweird.f32 %v1290_v39 }
 0x3ba   :  { %v1323_v47 = vmul.f32 %v2127_v44, %v1291_v18  ;;  %vm1329_vm12 = vweird.f32 %v2127_v44 }
 0x3bb   :  { %2130 = vrsqrt.f32 %v1288_v43  ;;  %1995 = vst.msk [vmem:[%s2904_s6 + $0x14] sm:$0xf] %vm591_vm6, %v1341_v9  ;;  %vm1330_vm14 = vmor %vm1328_vm13, %vm1329_vm12  ;;  %vm1298_vm7 = vweird.f32 %v1288_v43 }
 0x3bc   :  { %v1324_v53 = vmul.f32 %v2127_v44, %v1323_v47 }
 0x3be   :  { %v1325_v57 = vmul.f32 0.5, %v1324_v53 }
 0x3bf   :  { %v2129_v56 = vpop.eup %2128 }
 0x3c0   :  { %v1313_v58 = vmul.f32 %v2129_v56, %v1290_v39  ;;  %v1326_v63 = vsub.f32 1.5, %v1325_v57  ;;  %vm1319_vm15 = vweird.f32 %v2129_v56 }
 0x3c1   :  { %v2131_v62 = vpop.eup %2130  ;;  %vm1320_vm5 = vmor %vm1318_vm3, %vm1319_vm15 }
 0x3c2   :  { %v1314_v0 = vmul.f32 %v2129_v56, %v1313_v58  ;;  %v1293_v1 = vmul.f32 %v2131_v62, %v1288_v43  ;;  %v1327_v2 = vmul.f32 %v2127_v44, %v1326_v63  ;;  %vm1299_vm4 = vweird.f32 %v2131_v62 }
 0x3c3   :  { %vm1300_vm9 = vmor %vm1298_vm7, %vm1299_vm4 }
 0x3c4   :  { %v1315_v5 = vmul.f32 0.5, %v1314_v0  ;;  %v1294_v26 = vmul.f32 %v2131_v62, %v1293_v1  ;;  %v1331_v8 = vsel %vm1330_vm14, %v2127_v44, %v1327_v2 }
 0x3c5   :  { %v1335_v11 = vmul.f32 %v1331_v8, %v1287_v4 }
 0x3c6   :  { %v1316_v12 = vsub.f32 1.5, %v1315_v5  ;;  %v1295_v13 = vmul.f32 0.5, %v1294_v26 }
 0x3c7   :  { %v1339_v15 = vmax.f32 %v1335_v11, 0.0 }
 0x3c8   :  { %v1296_v14 = vsub.f32 1.5, %v1295_v13  ;;  %v1317_v37 = vmul.f32 %v2129_v56, %v1316_v12 }
 0x3c9   :  { %v1343_v60 = vpack.c.bf16 %v1339_v15, %v1339_v15  ;;  %2003 = vmatmul.msk.f32.vlgmr.msrb.gmra.mxu3 %vm482_vm1, %v1339_v15 }
 0x3ca   :  { %v1297_v32 = vmul.f32 %v2131_v62, %v1296_v14  ;;  %v1321_v18 = vsel %vm1320_vm5, %v2129_v56, %v1317_v37 }
 0x3cb   :  { %v1334_v19 = vmul.f32 %v1321_v18, %v1286_v6  ;;  %1997 = vst.msk [vmem:[%s2904_s6 + $0x1c] sm:$0xf] %vm591_vm6, %v1343_v60 }
 0x3cc   :  { %v1301_v21 = vsel %vm1300_vm9, %v2131_v62, %v1297_v32 }
 0x3cd   :  { %v1332_v22 = vmul.f32 %v1301_v21, %v1284_v7  ;;  %v1338_v20 = vmax.f32 %v1334_v19, 0.0 }
 0x3cf   :  { %v1342_v3 = vpack.c.bf16 %v1338_v20, %v1338_v20  ;;  %2002 = vmatmul.msk.f32.gmra.mxu2 %vm482_vm1, %v1338_v20  ;;  %v1336_v24 = vmax.f32 %v1332_v22, 0.0 }
 0x3d1   :  { %1996 = vst.msk [vmem:[%s2904_s6 + $0x18] sm:$0xf] %vm591_vm6, %v1342_v3  ;;  %v1340_v28 = vpack.c.bf16 %v1336_v24, %v1336_v24  ;;  %2000 = vmatmul.msk.f32.vlgmr.msrb.gmra.mxu0 %vm482_vm1, %v1336_v24 }
 0x3d3   :  { %1994 = vst.msk [vmem:[%s2904_s6 + $0x10] sm:$0xf] %vm591_vm6, %v1340_v28 }
 0x413   :  { %v1427_v43 = vpop.xlane.xlu2 %1426 }
 0x415   :  { %v1433_v42 = vpop.xlane.xlu0 %1432 }
 0x416   :  { %v1437_v9 = vadd.f32 1e-05, %v1433_v42 }
 0x418   :  { %2132 = vrcp.f32 %v1437_v9  ;;  %vm1488_vm1 = vweird.f32 %v1437_v9  ;;  %v1494_v63 = vand.u32 2147483648, %v1437_v9  ;;  %v1492_v1 = vand.u32 2147483647, %v1437_v9 }
 0x41a   :  { %v1495_v8 = vor.u32 1.1754944e-38, %v1494_v63  ;;  %vm1493_vm15 = vcmp.eq.f32.partialorder %v1492_v1, 8.507059e+37 }
 0x41e   :  { %v1430_v44 = vpop.xlane.xlu1 %1429 }
 0x41f   :  { %v1436_v46 = vadd.f32 1e-05, %v1430_v44 }
 0x421   :  { %vm1473_vm12 = vweird.f32 %v1436_v46  ;;  %v1479_v14 = vand.u32 2147483648, %v1436_v46  ;;  %v1477_v37 = vand.u32 2147483647, %v1436_v46 }
 0x423   :  { %v1424_v47 = vpop.xlane.xlu0 %1423  ;;  %v1480_v22 = vor.u32 1.1754944e-38, %v1479_v14  ;;  %vm1478_vm9 = vcmp.eq.f32.partialorder %v1477_v37, 8.507059e+37 }
 0x424   :  { %v2861_v48 = vadd.f32 1e-05, %v1424_v47 }
 0x426   :  { %vm1443_vm4 = vweird.f32 %v2861_v48  ;;  %v1449_v20 = vand.u32 2147483648, %v2861_v48  ;;  %v1447_v28 = vand.u32 2147483647, %v2861_v48 }
 0x43c   :  { %v1384_v10 = vpop.f32.mrf.mxu2 }
 0x43d   :  { %v1403_v23 = vmul.f32 %v1384_v10, %v2409_v35 }
 0x43f   :  { %v1409_v27 = vsel %vm639_vm2, %v1403_v23, 0.0 }
 0x440   :  { %1410 = vadd.xlane.f32.xlu0 %v1409_v27 }
 0x44c   :  { %v1390_v29 = vpop.f32.mrf.mxu3 }
 0x44d   :  { %v1405_v31 = vmul.f32 %v1390_v29, %v2414_v36  ;;  %v1435_v36 = vadd.f32 1e-05, %v1427_v43 }
 0x44e   :  { %v1381_v34 = vpop.f32.mrf.mxu0 }
 0x44f   :  { %v1415_v33 = vsel %vm639_vm2, %v1405_v31, 0.0  ;;  %v1402_v40 = vmul.f32 %v1381_v34, %v2460_v16  ;;  %2134 = vrcp.f32 %v1435_v36  ;;  %vm1458_vm6 = vweird.f32 %v1435_v36 }
 0x450   :  { %1416 = vadd.xlane.f32.xlu1 %v1415_v33  ;;  %2136 = vrcp.f32 %v1436_v46  ;;  %v1464_v26 = vand.u32 2147483648, %v1435_v36  ;;  %v1462_v12 = vand.u32 2147483647, %v1435_v36  ;;  %v1450_v31 = vor.u32 1.1754944e-38, %v1449_v20 }
 0x451   :  { %v1406_v35 = vsel %vm639_vm2, %v1402_v40, 0.0  ;;  %2138 = vrcp.f32 %v2861_v48 }
 0x452   :  { %v1387_v38 = vpop.f32.mrf.mxu2  ;;  %v1465_v32 = vor.u32 1.1754944e-38, %v1464_v26  ;;  %vm1463_vm7 = vcmp.eq.f32.partialorder %v1462_v12, 8.507059e+37 }
 0x453   :  { %v1404_v39 = vmul.f32 %v1387_v38, %v2455_v45  ;;  %v2133_v45 = vpop.eup %2132 }
 0x454   :  { %v1484_v50 = vmul.f32 %v2133_v45, %v1437_v9 }
 0x455   :  { %v1412_v41 = vsel %vm639_vm2, %v1404_v39, 0.0  ;;  %v2135_v16 = vpop.eup %2134  ;;  %vm1489_vm2 = vweird.f32 %v2133_v45 }
 0x456   :  { %1413 = vadd.xlane.f32.xlu2 %v1412_v41  ;;  %v2137_v51 = vpop.eup %2136  ;;  %v1454_v53 = vmul.f32 %v2135_v16, %v1435_v36  ;;  %v1485_v52 = vsub.f32 1.0, %v1484_v50  ;;  %vm1459_vm10 = vweird.f32 %v2135_v16  ;;  %vm2865_vm11 = vmor %vm1488_vm1, %vm1489_vm2  ;;  %vm1448_vm2 = vcmp.eq.f32.partialorder %v1447_v28, 8.507059e+37 }
 0x457   :  { %v1469_v54 = vmul.f32 %v2137_v51, %v1436_v46  ;;  %v2139_v55 = vpop.eup %2138  ;;  %vm1474_vm13 = vweird.f32 %v2137_v51  ;;  %vm2869_vm14 = vmor %vm1458_vm6, %vm1459_vm10 }
 0x458   :  { %1407 = vadd.xlane.f32.xlu1 %v1406_v35  ;;  %v1455_v56 = vsub.f32 1.0, %v1454_v53  ;;  %v1486_v57 = vmul.f32 %v2133_v45, %v1485_v52  ;;  %v1439_v61 = vmul.f32 %v2139_v55, %v2861_v48  ;;  %vm2875_vm3 = vmor %vm1473_vm12, %vm1474_vm13  ;;  %vm1444_vm5 = vweird.f32 %v2139_v55 }
 0x459   :  { %v1470_v58 = vsub.f32 1.0, %v1469_v54  ;;  %vm1445_vm1 = vmor %vm1443_vm4, %vm1444_vm5 }
 0x45a   :  { %v1456_v62 = vmul.f32 %v2135_v16, %v1455_v56  ;;  %v1487_v0 = vadd.f32 %v2133_v45, %v1486_v57  ;;  %v1440_v5 = vsub.f32 1.0, %v1439_v61 }
 0x45b   :  { %v1471_v4 = vmul.f32 %v2137_v51, %v1470_v58 }
 0x45c   :  { %v1457_v59 = vadd.f32 %v2135_v16, %v1456_v62  ;;  %v1491_v13 = vsel %vm2865_vm11, %v2133_v45, %v1487_v0  ;;  %v1441_v6 = vmul.f32 %v2139_v55, %v1440_v5 }
 0x45d   :  { %v1472_v15 = vadd.f32 %v2137_v51, %v1471_v4  ;;  %v1496_v7 = vsel %vm1493_vm15, %v1495_v8, %v1491_v13 }
 0x45e   :  { %v1461_v18 = vsel %vm2869_vm14, %v2135_v16, %v1457_v59  ;;  %v1442_v24 = vadd.f32 %v2139_v55, %v1441_v6 }
 0x45f   :  { %v1476_v3 = vsel %vm2875_vm3, %v2137_v51, %v1472_v15  ;;  %v1466_v23 = vsel %vm1463_vm7, %v1465_v32, %v1461_v18 }
 0x460   :  { %v1481_v29 = vsel %vm1478_vm9, %v1480_v22, %v1476_v3  ;;  %v1446_v34 = vsel %vm1445_vm1, %v2139_v55, %v1442_v24 }
 0x461   :  { %v1451_v40 = vsel %vm1448_vm2, %v1450_v31, %v1446_v34 }
 0x4b3   :  { %v1411_v10 = vpop.xlane.xlu0 %1410 }
 0x4b4   :  { %v1467_v38 = vmul.f32 %v1466_v23, %v1411_v10 }
 0x4c3   :  { %v1417_v19 = vpop.xlane.xlu1 %1416 }
 0x4c4   :  { %v1497_v21 = vmul.f32 %v1496_v7, %v1417_v19 }
 0x4c6   :  { %1520 = vmatpush.msrb.mxu1 %v1497_v21 }
 0x4c9   :  { %v1414_v27 = vpop.xlane.xlu2 %1413 }
 0x4ca   :  { %v1482_v33 = vmul.f32 %v1481_v29, %v1414_v27 }
 0x4cb   :  { %v1408_v39 = vpop.xlane.xlu1 %1407 }
 0x4cc   :  { %1521 = vmatpush.msrb.mxu1 %v1482_v33  ;;  %v1452_v41 = vmul.f32 %v1451_v40, %v1408_v39 }
 0x4ce   :  { %1522 = vmatpush.msrb.mxu1 %v1467_v38 }
 0x4d0   :  { %1523 = vmatpush.msrb.mxu1 %v1452_v41 }
 0x4d1   :  { %2004 = vmatmul.msk.f32.vlgmr.msrb.gmra.mxu1 %vm749_vm8, %v2699_v25 }
 0x4d9   :  { %2005 = vmatmul.msk.f32.gmra.mxu1 %vm749_vm8, %v2718_v30 }
 0x54e   :  { %v1525_v35 = vpop.f32.mrf.mxu1 }
 0x54f   :  { %v1526_v42 = vadd.f32 %v1525_v35, %v2753_v49 }
 0x551   :  { %2140 = vtanh.f32 %v1526_v42 }
 0x556   :  { %v1528_v43 = vpop.f32.mrf.mxu1 }
 0x557   :  { %v2141_v9 = vpop.eup %2140  ;;  %v1529_v44 = vadd.f32 %v1528_v43, %v2759_v17 }
 0x558   :  { %2006 = vst.msk [vmem:[%s2907_s7 + $0x10] sm:$0xff] %vm781_vm0, %v2141_v9 }
 0x559   :  { %2142 = vtanh.f32 %v1529_v44 }
 0x55f   :  { %v2143_v36 = vpop.eup %2142 }
 0x560   :  { %2007 = vst.msk [vmem:[%s2907_s7 + $0x18] sm:$0xff] %vm781_vm0, %v2143_v36 }

// kernel: _lambda_.14
= control target key start
LH: loop header
LB: loop body
LE: loop exit
PB: predicated region body
PF: predicated region fallthrough
CT: control target
= control target key end

     0   :  { %vm237_vm0 = vcmask 261120   ;;  %vm451_vm1 = vcmask 523264   ;;  %vm546_vm2 = vcmask 15360   ;;  %vm506_vm6 = vcmask 519168   ;;  %s2388_s1 = inlined_call_operand.vmem [shape: bf16[2,288,64], index: 1, kind: input, shape index: {}]   ;;  %s2389_s0 = inlined_call_operand.vmem [shape: bf16[2,288,64], index: 0, kind: input, shape index: {}]   ;;  %s2390_s5 = inlined_call_operand.vmem [shape: bf16[16,288], index: 5, kind: input, shape index: {}]   ;;  %s2391_s4 = inlined_call_operand.vmem [shape: bf16[16,288], index: 4, kind: input, shape index: {}]   ;;  %s2392_s2 = inlined_call_operand.vmem [shape: f32[2,64,2], index: 2, kind: input, shape index: {}]   ;;  %s2393_s3 = inlined_call_operand.vmem [shape: f32[16,2], index: 3, kind: input, shape index: {}]   ;;  %s2394_s8 = inlined_call_operand.vmem [shape: bf16[2,16,64], index: 8, kind: output, shape index: {0}]   ;;  %s2395_s6 = inlined_call_operand.vmem [shape: f32[16,16], index: 6, kind: input, shape index: {}]   ;;  %s2396_s7 = inlined_call_operand.vmem [shape: f32[16,1], index: 7, kind: input, shape index: {}]   ;;  %s2397_s9 = inlined_call_operand.vmem [shape: f32[2,16,1], index: 9, kind: output, shape index: {1}]  }
   0x1   :  { %v1746_v0 = vld [vmem:[%s2388_s1 + $0x38] sm:$0xff]  ;;  %v1756_v2 = vld [vmem:[%s2388_s1 + $0x88] sm:$0xff]  ;;  %v1745_v4 = vld [vmem:[%s2388_s1 + $0x30] sm:$0xff] }
   0x2   :  { %v1754_v1 = vld [vmem:[%s2388_s1 + $0x78] sm:$0xff]  ;;  %241 = vmatpush.bf16.msra.mxu0 %v1746_v0  ;;  %v1753_v5 = vld [vmem:[%s2388_s1 + $0x70] sm:$0xff]  ;;  %275 = vmatpush.bf16.msra.mxu2 %v1756_v2  ;;  %v1755_v6 = vld [vmem:[%s2388_s1 + $0x80] sm:$0xff] }
   0x3   :  { %v1725_v3 = vld [vmem:[%s2389_s0 + $0x38] sm:$0xff]  ;;  %255 = vmatpush.bf16.msra.mxu1 %v1754_v1  ;;  %v1724_v7 = vld [vmem:[%s2389_s0 + $0x30] sm:$0xff]  ;;  %v1293_v9 = vld [vmem:[%s2390_s5 + $0x8] sm:$0xf] }
   0x4   :  { %409 = vmatpush.bf16.msra.mxu3 %v1725_v3  ;;  %v1733_v8 = vld [vmem:[%s2389_s0 + $0x78] sm:$0xff]  ;;  %v1744_v10 = vld [vmem:[%s2388_s1 + $0x28] sm:$0xff]  ;;  %v1738_v12 = vld [vmem:[%s2390_s5 + $0x10] sm:$0xf0] }
   0x5   :  { %v1752_v11 = vld [vmem:[%s2388_s1 + $0x68] sm:$0xff]  ;;  %v1294_v14 = vor.u32 %v1738_v12, %v1293_v9  ;;  %v1732_v15 = vld [vmem:[%s2389_s0 + $0x70] sm:$0xff]  ;;  %v1743_v16 = vld [vmem:[%s2388_s1 + $0x20] sm:$0xff] }
   0x6   :  { %242 = vmatpush.bf16.msra.mxu0 %v1745_v4  ;;  %276 = vmatpush.bf16.msra.mxu2 %v1755_v6  ;;  %v1723_v13 = vld [vmem:[%s2389_s0 + $0x28] sm:$0xff]  ;;  %v1751_v17 = vld [vmem:[%s2388_s1 + $0x60] sm:$0xff]  ;;  %v1742_v20 = vld [vmem:[%s2388_s1 + $0x18] sm:$0xff] }
   0x7   :  { %256 = vmatpush.bf16.msra.mxu1 %v1753_v5  ;;  %v1722_v18 = vld [vmem:[%s2389_s0 + $0x20] sm:$0xff]  ;;  %v1731_v19 = vld [vmem:[%s2389_s0 + $0x68] sm:$0xff]  ;;  %v1750_v21 = vld [vmem:[%s2388_s1 + $0x58] sm:$0xff] }
   0x8   :  { %410 = vmatpush.bf16.msra.mxu3 %v1724_v7  ;;  %v1721_v22 = vld [vmem:[%s2389_s0 + $0x18] sm:$0xff]  ;;  %v1730_v23 = vld [vmem:[%s2389_s0 + $0x60] sm:$0xff]  ;;  %v1741_v24 = vld [vmem:[%s2388_s1 + $0x10] sm:$0xff] }
   0x9   :  { %1367 = vmatmul.msk.bf16.vlgmr.msra.gmra.mxu2 %vm237_vm0, %v1294_v14  ;;  %v1749_v25 = vld [vmem:[%s2388_s1 + $0x50] sm:$0xff]  ;;  %v1729_v27 = vld [vmem:[%s2389_s0 + $0x58] sm:$0xff]  ;;  %v1740_v28 = vld [vmem:[%s2388_s1 + $0x8] sm:$0xff] }
   0xa   :  { %423 = vmatpush.bf16.msrb.mxu2 %v1733_v8  ;;  %243 = vmatpush.bf16.msra.mxu0 %v1744_v10  ;;  %v1720_v26 = vld [vmem:[%s2389_s0 + $0x10] sm:$0xff]  ;;  %v1748_v29 = vld [vmem:[%s2388_s1 + $0x48] sm:$0xff]  ;;  %v1739_v32 = vld [vmem:[%s2388_s1] sm:$0xff] }
   0xb   :  { %257 = vmatpush.bf16.msra.mxu1 %v1752_v11  ;;  %v1719_v30 = vld [vmem:[%s2389_s0 + $0x8] sm:$0xff]  ;;  %v1728_v31 = vld [vmem:[%s2389_s0 + $0x50] sm:$0xff]  ;;  %v1747_v33 = vld [vmem:[%s2388_s1 + $0x40] sm:$0xff] }
   0xc   :  { %411 = vmatpush.bf16.msra.mxu3 %v1723_v13  ;;  %v1718_v34 = vld [vmem:[%s2389_s0] sm:$0xff]  ;;  %v1737_v36 = vld [vmem:[%s2390_s5 + $0x8] sm:$0xf0]  ;;  %v1287_v38 = vld [vmem:[%s2390_s5 + $0xc] sm:$0xf0] }
   0xd   :  { %v1285_v35 = vld [vmem:[%s2390_s5] sm:$0xf]  ;;  %v1736_v37 = vld [vmem:[%s2390_s5 + $0x4] sm:$0xf]  ;;  %v1716_v40 = vld [vmem:[%s2391_s4 + $0x8] sm:$0xf0] }
   0xe   :  { %424 = vmatpush.bf16.msrb.mxu2 %v1732_v15  ;;  %244 = vmatpush.bf16.msra.mxu0 %v1743_v16  ;;  %v1370_v39 = vld [vmem:[%s2391_s4] sm:$0xf]  ;;  %v1735_v41 = vld [vmem:[%s2389_s0 + $0x88] sm:$0xff]  ;;  %v1286_v43 = vor.u32 %v1737_v36, %v1285_v35  ;;  %v1290_v44 = vor.u32 %v1736_v37, %v1287_v38  ;;  %v1715_v48 = vld [vmem:[%s2391_s4 + $0x4] sm:$0xf] }
   0xf   :  { %258 = vmatpush.bf16.msra.mxu1 %v1751_v17  ;;  %v1727_v42 = vld [vmem:[%s2389_s0 + $0x48] sm:$0xff]  ;;  %v1371_v45 = vor.u32 %v1716_v40, %v1370_v39  ;;  %v1734_v46 = vld [vmem:[%s2389_s0 + $0x80] sm:$0xff]  ;;  %v1372_v49 = vld [vmem:[%s2391_s4 + $0xc] sm:$0xf0] }
  0x10   :  { %412 = vmatpush.bf16.msra.mxu3 %v1722_v18  ;;  %v1726_v47 = vld [vmem:[%s2389_s0 + $0x40] sm:$0xff]  ;;  %v1375_v50 = vor.u32 %v1715_v48, %v1372_v49  ;;  %v1378_v51 = vld [vmem:[%s2391_s4 + $0x8] sm:$0xf]  ;;  %v1717_v52 = vld [vmem:[%s2391_s4 + $0x10] sm:$0xf0] }
  0x11   :  { %v1379_v53 = vor.u32 %v1717_v52, %v1378_v51  ;;  %v516_v18 = vld [vmem:[%s2392_s2 + $0x38] sm:$0xff] }
  0x12   :  { %425 = vmatpush.bf16.msrb.mxu2 %v1731_v19  ;;  %245 = vmatpush.bf16.msra.mxu0 %v1742_v20  ;;  %v515_v19 = vld [vmem:[%s2392_s2 + $0x30] sm:$0xff]  ;;  %v514_v20 = vld [vmem:[%s2392_s2 + $0x28] sm:$0xff]  ;;  %v560_v51 = vsel %vm546_vm2, %v516_v18, 0.0 }
  0x13   :  { %259 = vmatpush.bf16.msra.mxu1 %v1750_v21  ;;  %v513_v21 = vld [vmem:[%s2392_s2 + $0x20] sm:$0xff] }
  0x14   :  { %413 = vmatpush.bf16.msra.mxu3 %v1721_v22  ;;  %v554_v39 = vsel %vm546_vm2, %v513_v21, 0.0 }
  0x16   :  { %426 = vmatpush.bf16.msrb.mxu2 %v1730_v23  ;;  %246 = vmatpush.bf16.msra.mxu0 %v1741_v24  ;;  %v512_v23 = vld [vmem:[%s2392_s2 + $0x18] sm:$0xff]  ;;  %v511_v24 = vld [vmem:[%s2392_s2 + $0x10] sm:$0xff] }
  0x17   :  { %260 = vmatpush.bf16.msra.mxu1 %v1749_v25  ;;  %v510_v25 = vld [vmem:[%s2392_s2 + $0x8] sm:$0xff]  ;;  %v552_v36 = vsel %vm546_vm2, %v512_v23, 0.0 }
  0x18   :  { %414 = vmatpush.bf16.msra.mxu3 %v1720_v26 }
  0x1a   :  { %427 = vmatpush.bf16.msrb.mxu2 %v1729_v27  ;;  %247 = vmatpush.bf16.msra.mxu0 %v1740_v28  ;;  %v509_v27 = vld [vmem:[%s2392_s2] sm:$0xff] }
  0x1b   :  { %261 = vmatpush.bf16.msra.mxu1 %v1748_v29 }
  0x1c   :  { %415 = vmatpush.bf16.msra.mxu3 %v1719_v30  ;;  %v550_v30 = vsel %vm546_vm2, %v511_v24, 0.0 }
  0x1e   :  { %428 = vmatpush.bf16.msrb.mxu2 %v1728_v31  ;;  %248 = vmatpush.bf16.msra.mxu0 %v1739_v32  ;;  %v548_v31 = vsel %vm546_vm2, %v510_v25, 0.0  ;;  %v547_v32 = vsel %vm546_vm2, %v509_v27, 0.0 }
  0x1f   :  { %262 = vmatpush.bf16.msra.mxu1 %v1747_v33  ;;  %v549_v35 = vadd.f32 %v548_v31, %v547_v32  ;;  %v1786_v31 = vld [vmem:[%s2388_s1 + $0xb8] sm:$0xff] }
  0x20   :  { %416 = vmatpush.bf16.msra.mxu3 %v1718_v34 }
  0x21   :  { %249 = vmatmul.bf16.vlgmr.msra.gmra.mxu0 %v1286_v43  ;;  %v551_v38 = vadd.f32 %v550_v30, %v549_v35  ;;  %v556_v43 = vsel %vm546_vm2, %v514_v20, 0.0  ;;  %v1795_v30 = vld [vmem:[%s2388_s1 + $0x100] sm:$0xff] }
  0x22   :  { %443 = vmatpush.bf16.msrb.mxu0 %v1735_v41  ;;  %429 = vmatpush.bf16.msrb.mxu2 %v1727_v42 }
  0x23   :  { %263 = vmatmul.bf16.vlgmr.msra.gmra.mxu1 %v1290_v44  ;;  %417 = vmatmul.bf16.vlgmr.msra.gmra.mxu3 %v1371_v45  ;;  %v553_v42 = vadd.f32 %v552_v36, %v551_v38 }
  0x24   :  { %531 = vmatpush.msrb.mxu1 %v516_v18 }
  0x25   :  { %v555_v45 = vadd.f32 %v554_v39, %v553_v42  ;;  %v1785_v39 = vld [vmem:[%s2388_s1 + $0xb0] sm:$0xff] }
  0x26   :  { %444 = vmatpush.bf16.msrb.mxu0 %v1734_v46  ;;  %430 = vmatpush.bf16.msrb.mxu2 %v1726_v47  ;;  %v558_v47 = vsel %vm546_vm2, %v515_v19, 0.0  ;;  %v1793_v42 = vld [vmem:[%s2388_s1 + $0xf0] sm:$0xff] }
  0x27   :  { %532 = vmatpush.msrb.mxu1 %v515_v19 }
  0x29   :  { %431 = vmatmul.bf16.vlgmr.msrb.gmra.mxu2 %v1375_v50  ;;  %533 = vmatpush.msrb.mxu1 %v514_v20  ;;  %v557_v50 = vadd.f32 %v556_v43, %v555_v45  ;;  %v1798_v45 = vld [vmem:[%s2388_s1 + $0x118] sm:$0xff] }
  0x2b   :  { %534 = vmatpush.msrb.mxu1 %v513_v21 }
  0x2d   :  { %535 = vmatpush.msrb.mxu1 %v512_v23 }
  0x2f   :  { %536 = vmatpush.msrb.mxu1 %v511_v24 }
  0x31   :  { %1452 = vmatmul.msk.bf16.vlgmr.msrb.gmra.mxu0 %vm237_vm0, %v1379_v53  ;;  %537 = vmatpush.msrb.mxu1 %v510_v25  ;;  %v559_v53 = vadd.f32 %v558_v47, %v557_v50  ;;  %v1782_v50 = vld [vmem:[%s2388_s1 + $0x98] sm:$0xff] }
  0x33   :  { %538 = vmatpush.msrb.mxu1 %v509_v27 }
  0x35   :  { %897 = vmatpush.bf16.msra.mxu1 %v1798_v45 }
  0x8c   :  { %v278_v54 = vpop.f32.mrf.mxu2 }
  0x94   :  { %v280_v57 = vpop.f32.mrf.mxu2 }
  0x9e   :  { %v250_v55 = vpop.f32.mrf.mxu0 }
  0xa0   :  { %v264_v56 = vpop.f32.mrf.mxu1 }
  0xa1   :  { %v265_v58 = vadd.f32 %v264_v56, %v250_v55  ;;  %v561_v55 = vadd.f32 %v560_v51, %v559_v53  ;;  %v1775_v51 = vld [vmem:[%s2389_s0 + $0x108] sm:$0xff]  ;;  %v1781_v53 = vld [vmem:[%s2388_s1 + $0x90] sm:$0xff] }
  0xa3   :  { %v279_v61 = vadd.f32 %v278_v54, %v265_v58  ;;  %v562_v58 = vrot.slane %v561_v55, 4 }
  0xa6   :  { %v418_v59 = vpop.f32.mrf.mxu3  ;;  %v252_v60 = vpop.f32.mrf.mxu0 }
  0xa7   :  { %v419_v0 = vadd.f32 %v418_v59, %v279_v61 }
  0xa8   :  { %v266_v62 = vpop.f32.mrf.mxu1 }
  0xa9   :  { %v267_v1 = vadd.f32 %v266_v62, %v252_v60  ;;  %v563_v60 = vadd.f32 %v562_v58, %v561_v55  ;;  %v1779_v58 = vld [vmem:[%s2390_s5 + $0x8] sm:$0xf0] }
  0xab   :  { %v281_v6 = vadd.f32 %v280_v57, %v267_v1  ;;  %v564_v62 = vrot.slane %v563_v60, 2 }
  0xac   :  { %v432_v63 = vpop.f32.mrf.mxu2 }
  0xad   :  { %v433_v2 = vadd.f32 %v432_v63, %v419_v0  ;;  %v565_v0 = vadd.f32 %v564_v62, %v563_v60  ;;  %v1773_v62 = vld [vmem:[%s2389_s0 + $0xf8] sm:$0xff] }
  0xae   :  { %v446_v3 = vpop.f32.mrf.mxu0  ;;  %v420_v5 = vpop.f32.mrf.mxu3 }
  0xaf   :  { %v2019_v4 = vadd.f32 %v446_v3, %v433_v2  ;;  %v421_v9 = vadd.f32 %v420_v5, %v281_v6  ;;  %v566_v3 = vrot.slane %v565_v0, 1 }
  0xb1   :  { %v452_v7 = vsel %vm451_vm1, %v2019_v4, 0.0  ;;  %v460_v11 = vmul.f32 %v2019_v4, %v2019_v4 }
  0xb2   :  { %453 = vadd.xlane.f32.xlu0 %v452_v7  ;;  %v2068_v7 = vld [vmem:[%s2393_s3 + $0x8] sm:$0xff] }
  0xb3   :  { %v462_v15 = vsel %vm451_vm1, %v460_v11, 0.0 }
  0xb4   :  { %v434_v8 = vpop.f32.mrf.mxu2 }
  0xb5   :  { %v435_v10 = vadd.f32 %v434_v8, %v421_v9  ;;  %v567_v9 = vadd.f32 %v566_v3, %v565_v0  ;;  %v1778_v3 = vld [vmem:[%s2390_s5 + $0x4] sm:$0xf] }
  0xb6   :  { %v448_v12 = vpop.f32.mrf.mxu0 }
  0xb7   :  { %v2025_v13 = vadd.f32 %v448_v12, %v435_v10 }
  0xb9   :  { %v455_v14 = vsel %vm451_vm1, %v2025_v13, 0.0  ;;  %v461_v16 = vmul.f32 %v2025_v13, %v2025_v13 }
  0xba   :  { %456 = vadd.xlane.f32.xlu1 %v455_v14  ;;  %463 = vadd.xlane.f32.xlu0 %v462_v15  ;;  %v577_v14 = vmul.f32 %v567_v9, %v2068_v7 }
  0xbb   :  { %v465_v17 = vsel %vm451_vm1, %v461_v16, 0.0  ;;  %v2075_v16 = vld [vmem:[%s2393_s3] sm:$0xff] }
  0xbc   :  { %v581_v18 = vsel %vm546_vm2, %v577_v14, 0.0  ;;  %v576_v20 = vmul.f32 %v567_v9, %v2075_v16  ;;  %v1780_v9 = vld [vmem:[%s2390_s5 + $0x10] sm:$0xf0]  ;;  %v1771_v14 = vld [vmem:[%s2389_s0 + $0xe8] sm:$0xff] }
  0xbd   :  { %582 = vadd.xlane.f32.xlu2 %v581_v18 }
  0xbe   :  { %v578_v25 = vsel %vm546_vm2, %v576_v20, 0.0  ;;  %v1777_v20 = vld [vmem:[%s2389_s0 + $0x118] sm:$0xff] }
  0xc2   :  { %466 = vadd.xlane.f32.xlu1 %v465_v17 }
  0xc5   :  { %579 = vadd.xlane.f32.xlu2 %v578_v25 }
 0x125   :  { %v454_v22 = vpop.xlane.xlu0 %453 }
 0x126   :  { %v458_v26 = vmul.f32 0.015625, %v454_v22 }
 0x128   :  { %v470_v33 = vmul.f32 %v458_v26, %v458_v26  ;;  %v476_v8 = vsub.f32 %v2019_v4, %v458_v26 }
 0x12d   :  { %v457_v28 = vpop.xlane.xlu1 %456  ;;  %v464_v29 = vpop.xlane.xlu0 %463 }
 0x12e   :  { %v468_v34 = vmul.f32 0.015625, %v464_v29  ;;  %v459_v40 = vmul.f32 0.015625, %v457_v28  ;;  %v1796_v28 = vld [vmem:[%s2388_s1 + $0x108] sm:$0xff]  ;;  %v1787_v29 = vld [vmem:[%s2388_s1 + $0xc0] sm:$0xff] }
 0x12f   :  { %877 = vmatpush.bf16.msra.mxu0 %v1796_v28  ;;  %v1776_v28 = vld [vmem:[%s2389_s0 + $0x110] sm:$0xff] }
 0x130   :  { %v472_v37 = vsub.f32 %v468_v34, %v470_v33  ;;  %v471_v48 = vmul.f32 %v459_v40, %v459_v40  ;;  %v477_v22 = vsub.f32 %v2025_v13, %v459_v40  ;;  %v1788_v13 = vld [vmem:[%s2388_s1 + $0xc8] sm:$0xff]  ;;  %v583_v38 = vpop.xlane.xlu2 %582  ;;  %v1794_v40 = vld [vmem:[%s2388_s1 + $0xf8] sm:$0xff] }
 0x131   :  { %863 = vmatpush.bf16.msra.mxu2 %v1788_v13  ;;  %v1769_v13 = vld [vmem:[%s2389_s0 + $0xd8] sm:$0xff] }
 0x132   :  { %v474_v41 = vmax.f32 %v472_v37, 0.0 }
 0x133   :  { %878 = vmatpush.bf16.msra.mxu0 %v1795_v30  ;;  %v1624_v30 = vld [vmem:[%s2391_s4 + $0x8] sm:$0xf] }
 0x134   :  { %v478_v44 = vadd.f32 1e-05, %v474_v41  ;;  %v1784_v41 = vld [vmem:[%s2388_s1 + $0xa8] sm:$0xff] }
 0x135   :  { %v467_v46 = vpop.xlane.xlu1 %466  ;;  %864 = vmatpush.bf16.msra.mxu2 %v1787_v29 }
 0x136   :  { %1799 = vrsqrt.f32 %v478_v44  ;;  %v469_v49 = vmul.f32 0.015625, %v467_v46  ;;  %vm486_vm4 = vweird.f32 %v478_v44  ;;  %v1783_v46 = vld [vmem:[%s2388_s1 + $0xa0] sm:$0xff] }
 0x137   :  { %879 = vmatpush.bf16.msra.mxu0 %v1794_v40  ;;  %v1767_v40 = vld [vmem:[%s2389_s0 + $0xc8] sm:$0xff] }
 0x138   :  { %v473_v52 = vsub.f32 %v469_v49, %v471_v48  ;;  %v580_v43 = vpop.xlane.xlu2 %579  ;;  %v1792_v48 = vld [vmem:[%s2388_s1 + $0xe8] sm:$0xff]  ;;  %v1797_v49 = vld [vmem:[%s2388_s1 + $0x110] sm:$0xff] }
 0x139   :  { %865 = vmatpush.bf16.msra.mxu2 %v1786_v31  ;;  %v2130_v47 = vadd.f32 1e-05, %v580_v43  ;;  %898 = vmatpush.bf16.msra.mxu1 %v1797_v49  ;;  %v1759_v31 = vld [vmem:[%s2391_s4 + $0x10] sm:$0xf0]  ;;  %v1618_v43 = vld [vmem:[%s2391_s4 + $0xc] sm:$0xf0] }
 0x13a   :  { %v475_v54 = vmax.f32 %v473_v52, 0.0  ;;  %v1791_v52 = vld [vmem:[%s2388_s1 + $0xe0] sm:$0xff]  ;;  %v1764_v49 = vld [vmem:[%s2389_s0 + $0xb0] sm:$0xff] }
 0x13b   :  { %880 = vmatpush.bf16.msra.mxu0 %v1793_v42  ;;  %vm591_vm12 = vweird.f32 %v2130_v47  ;;  %v1757_v42 = vld [vmem:[%s2391_s4 + $0x4] sm:$0xf] }
 0x13c   :  { %v1800_v56 = vpop.eup %1799  ;;  %v479_v57 = vadd.f32 1e-05, %v475_v54  ;;  %v1774_v54 = vld [vmem:[%s2389_s0 + $0x100] sm:$0xff]  ;;  %v1621_v45 = vor.u32 %v1757_v42, %v1618_v43 }
 0x13d   :  { %v481_v59 = vmul.f32 %v1800_v56, %v478_v44  ;;  %vm487_vm3 = vweird.f32 %v1800_v56  ;;  %866 = vmatpush.bf16.msra.mxu2 %v1785_v39  ;;  %v2122_v44 = vadd.f32 1e-05, %v583_v38  ;;  %v1768_v38 = vld [vmem:[%s2389_s0 + $0xd0] sm:$0xff] }
 0x13e   :  { %1801 = vrsqrt.f32 %v479_v57  ;;  %vm488_vm5 = vmor %vm486_vm4, %vm487_vm3  ;;  %vm496_vm8 = vweird.f32 %v479_v57 }
 0x13f   :  { %v482_v61 = vmul.f32 %v1800_v56, %v481_v59  ;;  %1803 = vrcp.f32 %v2122_v44  ;;  %881 = vmatpush.bf16.msra.mxu0 %v1792_v48  ;;  %vm606_vm10 = vweird.f32 %v2122_v44  ;;  %v2263_v48 = vld [vmem:[%s2395_s6 + $0x8] sm:$0xff] }
 0x140   :  { %1805 = vrcp.f32 %v2130_v47 }
 0x141   :  { %v483_v63 = vmul.f32 0.5, %v482_v61  ;;  %867 = vmatpush.bf16.msra.mxu2 %v1784_v41 }
 0x143   :  { %v484_v1 = vsub.f32 1.5, %v483_v63  ;;  %882 = vmatpush.bf16.msra.mxu0 %v1791_v52  ;;  %v1789_v63 = vld [vmem:[%s2388_s1 + $0xd0] sm:$0xff]  ;;  %v1761_v52 = vld [vmem:[%s2389_s0 + $0x98] sm:$0xff] }
 0x144   :  { %v1802_v2 = vpop.eup %1801 }
 0x145   :  { %v485_v5 = vmul.f32 %v1800_v56, %v484_v1  ;;  %v491_v6 = vmul.f32 %v1802_v2, %v479_v57  ;;  %vm497_vm7 = vweird.f32 %v1802_v2  ;;  %868 = vmatpush.bf16.msra.mxu2 %v1783_v46  ;;  %v2155_v55 = vpop.eup %1803  ;;  %v1531_v57 = vld [vmem:[%s2390_s5] sm:$0xf] }
 0x146   :  { %vm498_vm9 = vmor %vm496_vm8, %vm497_vm7  ;;  %v1532_v59 = vor.u32 %v1779_v58, %v1531_v57  ;;  %v1806_v60 = vpop.eup %1805  ;;  %v602_v61 = vmul.f32 %v2155_v55, %v2122_v44  ;;  %vm607_vm11 = vweird.f32 %v2155_v55  ;;  %v1766_v46 = vld [vmem:[%s2389_s0 + $0xc0] sm:$0xff] }
 0x147   :  { %v492_v10 = vmul.f32 %v1802_v2, %v491_v6  ;;  %v489_v11 = vsel %vm488_vm5, %v1800_v56, %v485_v5  ;;  %v1790_v56 = vld [vmem:[%s2388_s1 + $0xd8] sm:$0xff]  ;;  %v587_v0 = vmul.f32 %v1806_v60, %v2130_v47  ;;  %v1533_v5 = vld [vmem:[%s2390_s5 + $0xc] sm:$0xf0]  ;;  %vm592_vm13 = vweird.f32 %v1806_v60  ;;  %vm2208_vm14 = vmor %vm606_vm10, %vm607_vm11 }
 0x148   :  { %v500_v12 = vmul.f32 %v489_v11, %v476_v8  ;;  %883 = vmatpush.bf16.msra.mxu0 %v1790_v56  ;;  %v603_v1 = vsub.f32 1.0, %v602_v61  ;;  %v1536_v6 = vor.u32 %v1778_v3, %v1533_v5  ;;  %v1539_v8 = vld [vmem:[%s2390_s5 + $0x8] sm:$0xf]  ;;  %vm2213_vm15 = vmor %vm591_vm12, %vm592_vm13  ;;  %vm620_vm5 = vcmask 130048   ;;  %v2291_v57 = vld [vmem:[%s2396_s7] sm:$0xff] }
 0x149   :  { %v493_v15 = vmul.f32 0.5, %v492_v10  ;;  %869 = vmatpush.bf16.msra.mxu2 %v1782_v50  ;;  %v588_v10 = vsub.f32 1.0, %v587_v0  ;;  %v1540_v11 = vor.u32 %v1780_v9, %v1539_v8  ;;  %v1763_v50 = vld [vmem:[%s2389_s0 + $0xa8] sm:$0xff] }
 0x14a   :  { %v502_v17 = vmax.f32 %v500_v12, 0.0  ;;  %v604_v12 = vmul.f32 %v2155_v55, %v603_v1 }
 0x14b   :  { %v494_v19 = vsub.f32 1.5, %v493_v15  ;;  %v589_v15 = vmul.f32 %v1806_v60, %v588_v10 }
 0x14c   :  { %v504_v4 = vpack.c.bf16 %v502_v17, %v502_v17  ;;  %1453 = vmatmul.msk.f32.vlgmr.msrb.gmra.mxu1 %vm451_vm1, %v502_v17  ;;  %884 = vmatpush.bf16.msra.mxu0 %v1789_v63  ;;  %v612_v17 = vand.u32 2147483648, %v2122_v44  ;;  %v605_v18 = vadd.f32 %v2155_v55, %v604_v12 }
 0x14d   :  { %v495_v21 = vmul.f32 %v1802_v2, %v494_v19  ;;  %1045 = vmatpush.bf16.msrb.mxu1 %v1775_v51  ;;  %870 = vmatpush.bf16.msra.mxu2 %v1781_v53  ;;  %v610_v19 = vand.u32 2147483647, %v2122_v44  ;;  %v2250_v44 = vld [vmem:[%s2395_s6] sm:$0xff]  ;;  %v1760_v53 = vld [vmem:[%s2389_s0 + $0x90] sm:$0xff] }
 0x14e   :  { %507 = vst.msk [vmem:[%s2394_s8] sm:$0xf] %vm506_vm6, %v504_v4  ;;  %v1770_v4 = vld [vmem:[%s2389_s0 + $0xe0] sm:$0xff] }
 0x14f   :  { %v499_v23 = vsel %vm498_vm9, %v1802_v2, %v495_v21  ;;  %v1772_v2 = vld [vmem:[%s2389_s0 + $0xf0] sm:$0xff]  ;;  %885 = vmatmul.bf16.vlgmr.msra.gmra.mxu0 %v1536_v6  ;;  %v597_v21 = vand.u32 2147483648, %v2130_v47  ;;  %vm611_vm3 = vcmp.eq.f32.partialorder %v610_v19, 8.507059e+37  ;;  %v1762_v51 = vld [vmem:[%s2389_s0 + $0xa0] sm:$0xff] }
 0x150   :  { %v501_v24 = vmul.f32 %v499_v23, %v477_v22  ;;  %871 = vmatmul.bf16.vlgmr.msra.gmra.mxu2 %v1532_v59  ;;  %v590_v23 = vadd.f32 %v1806_v60, %v589_v15 }
 0x151   :  { %1046 = vmatpush.bf16.msrb.mxu1 %v1774_v54  ;;  %1065 = vmatpush.bf16.msrb.mxu2 %v1777_v20  ;;  %v598_v29 = vor.u32 1.1754944e-38, %v597_v21  ;;  %v1616_v54 = vld [vmem:[%s2391_s4] sm:$0xf] }
 0x152   :  { %v503_v26 = vmax.f32 %v501_v24, 0.0  ;;  %v595_v24 = vand.u32 2147483647, %v2130_v47  ;;  %v1765_v47 = vld [vmem:[%s2389_s0 + $0xb8] sm:$0xff] }
 0x154   :  { %v505_v27 = vpack.c.bf16 %v503_v26, %v503_v26  ;;  %1454 = vmatmul.msk.f32.gmra.mxu1 %vm451_vm1, %v503_v26  ;;  %v613_v26 = vor.u32 1.1754944e-38, %v612_v17  ;;  %vm596_vm4 = vcmp.eq.f32.partialorder %v595_v24, 8.507059e+37 }
 0x155   :  { %1047 = vmatpush.bf16.msrb.mxu1 %v1773_v62  ;;  %1066 = vmatpush.bf16.msrb.mxu2 %v1776_v28 }
 0x156   :  { %508 = vst.msk [vmem:[%s2394_s8 + $0x4] sm:$0xf] %vm506_vm6, %v505_v27  ;;  %v609_v27 = vsel %vm2208_vm14, %v2155_v55, %v605_v18  ;;  %v1758_v55 = vld [vmem:[%s2391_s4 + $0x8] sm:$0xf0] }
 0x157   :  { %v1617_v56 = vor.u32 %v1758_v55, %v1616_v54 }
 0x159   :  { %1048 = vmatpush.bf16.msrb.mxu1 %v1772_v2 }
 0x15c   :  { %1613 = vmatmul.msk.bf16.vlgmr.msra.gmra.mxu1 %vm237_vm0, %v1540_v11 }
 0x15d   :  { %1049 = vmatpush.bf16.msrb.mxu1 %v1771_v14 }
 0x161   :  { %1050 = vmatpush.bf16.msrb.mxu1 %v1770_v4 }
 0x165   :  { %1051 = vmatpush.bf16.msrb.mxu1 %v1769_v13 }
 0x169   :  { %1052 = vmatpush.bf16.msrb.mxu1 %v1768_v38 }
 0x16c   :  { %1053 = vmatmul.bf16.vlgmr.msrb.gmra.mxu1 %v1621_v45 }
 0x1c9   :  { %v540_v32 = vpop.f32.mrf.mxu1 }
 0x1ca   :  { %v568_v33 = vmul.f32 %v540_v32, %v2075_v16  ;;  %v594_v32 = vsel %vm2213_vm15, %v1806_v60, %v590_v23  ;;  %v2297_v60 = vld [vmem:[%s2396_s7 + $0x8] sm:$0xff] }
 0x1cb   :  { %v599_v39 = vsel %vm596_vm4, %v598_v29, %v594_v32  ;;  %v1707_v32 = vld [vmem:[%s2392_s2 + $0x70] sm:$0xff] }
 0x1cc   :  { %v570_v34 = vsel %vm546_vm2, %v568_v33, 0.0  ;;  %v1625_v33 = vor.u32 %v1759_v31, %v1624_v30  ;;  %v886_v3 = vpop.f32.mrf.mxu0  ;;  %v1708_v31 = vld [vmem:[%s2392_s2 + $0x78] sm:$0xff] }
 0x1cd   :  { %571 = vadd.xlane.f32.xlu1 %v570_v34  ;;  %1153 = vmatpush.msrb.mxu0 %v1708_v31 }
 0x1ce   :  { %1698 = vmatmul.msk.bf16.vlgmr.msrb.gmra.mxu2 %vm237_vm0, %v1625_v33  ;;  %vm652_vm0 = vcmask 7168   ;;  %v1706_v33 = vld [vmem:[%s2392_s2 + $0x68] sm:$0xff] }
 0x1cf   :  { %1154 = vmatpush.msrb.mxu0 %v1707_v32 }
 0x1d1   :  { %v543_v35 = vpop.f32.mrf.mxu1  ;;  %1155 = vmatpush.msrb.mxu0 %v1706_v33 }
 0x1d2   :  { %v569_v36 = vmul.f32 %v543_v35, %v2068_v7  ;;  %v614_v35 = vsel %vm611_vm3, %v613_v26, %v609_v27 }
 0x1d3   :  { %v872_v1 = vpop.f32.mrf.mxu2 }
 0x1d4   :  { %v573_v37 = vsel %vm546_vm2, %v569_v36, 0.0  ;;  %v887_v8 = vadd.f32 %v886_v3, %v872_v1  ;;  %v888_v10 = vpop.f32.mrf.mxu0  ;;  %v1179_v1 = vsel %vm546_vm2, %v1707_v32, 0.0 }
 0x1d5   :  { %574 = vadd.xlane.f32.xlu0 %v573_v37 }
 0x1d9   :  { %v900_v0 = vpop.f32.mrf.mxu1 }
 0x1da   :  { %v901_v9 = vadd.f32 %v900_v0, %v887_v8 }
 0x1db   :  { %v874_v6 = vpop.f32.mrf.mxu2 }
 0x1dc   :  { %v889_v17 = vadd.f32 %v888_v10, %v874_v6 }
 0x1e1   :  { %v902_v5 = vpop.f32.mrf.mxu1 }
 0x1e2   :  { %v903_v4 = vadd.f32 %v902_v5, %v889_v17  ;;  %v1181_v5 = vsel %vm546_vm2, %v1708_v31, 0.0 }
 0x1e9   :  { %v1054_v11 = vpop.f32.mrf.mxu1 }
 0x1f1   :  { %v1056_v25 = vpop.f32.mrf.mxu1 }
 0x240   :  { %v572_v34 = vpop.xlane.xlu1 %571 }
 0x241   :  { %v600_v41 = vmul.f32 %v599_v39, %v572_v34  ;;  %v1705_v34 = vld [vmem:[%s2392_s2 + $0x60] sm:$0xff] }
 0x242   :  { %1156 = vmatpush.msrb.mxu0 %v1705_v34  ;;  %v1701_v39 = vld [vmem:[%s2392_s2 + $0x40] sm:$0xff]  ;;  %v1175_v54 = vsel %vm546_vm2, %v1705_v34, 0.0 }
 0x248   :  { %v575_v36 = vpop.xlane.xlu0 %574 }
 0x249   :  { %v615_v37 = vmul.f32 %v614_v35, %v575_v36  ;;  %v1704_v35 = vld [vmem:[%s2392_s2 + $0x58] sm:$0xff]  ;;  %v1703_v36 = vld [vmem:[%s2392_s2 + $0x50] sm:$0xff] }
 0x24a   :  { %1157 = vmatpush.msrb.mxu0 %v1704_v35 }
 0x24b   :  { %641 = vmatpush.msrb.mxu3 %v615_v37  ;;  %v1702_v37 = vld [vmem:[%s2392_s2 + $0x48] sm:$0xff] }
 0x24c   :  { %1158 = vmatpush.msrb.mxu0 %v1703_v36  ;;  %v1169_v42 = vsel %vm546_vm2, %v1702_v37, 0.0 }
 0x24d   :  { %642 = vmatpush.msrb.mxu3 %v600_v41 }
 0x24e   :  { %1455 = vmatmul.msk.f32.vlgmr.msrb.gmra.mxu3 %vm620_vm5, %v2250_v44  ;;  %1159 = vmatpush.msrb.mxu0 %v1702_v37 }
 0x24f   :  { %1031 = vmatpush.bf16.msra.mxu3 %v1767_v40 }
 0x250   :  { %1160 = vmatpush.msrb.mxu0 %v1701_v39 }
 0x251   :  { %v1068_v15 = vpop.f32.mrf.mxu2 }
 0x253   :  { %1032 = vmatpush.bf16.msra.mxu3 %v1766_v46  ;;  %v1171_v46 = vsel %vm546_vm2, %v1703_v36, 0.0 }
 0x256   :  { %1456 = vmatmul.msk.f32.gmra.mxu3 %vm620_vm5, %v2263_v48 }
 0x257   :  { %1033 = vmatpush.bf16.msra.mxu3 %v1765_v47  ;;  %v1168_v47 = vsel %vm546_vm2, %v1701_v39, 0.0 }
 0x259   :  { %v1070_v27 = vpop.f32.mrf.mxu2 }
 0x25b   :  { %1034 = vmatpush.bf16.msra.mxu3 %v1764_v49  ;;  %v1170_v49 = vadd.f32 %v1169_v42, %v1168_v47 }
 0x25f   :  { %1035 = vmatpush.bf16.msra.mxu3 %v1763_v50 }
 0x263   :  { %1036 = vmatpush.bf16.msra.mxu3 %v1762_v51  ;;  %v1173_v51 = vsel %vm546_vm2, %v1704_v35, 0.0 }
 0x267   :  { %1037 = vmatpush.bf16.msra.mxu3 %v1761_v52  ;;  %v1172_v52 = vadd.f32 %v1171_v46, %v1170_v49 }
 0x26b   :  { %1038 = vmatpush.bf16.msra.mxu3 %v1760_v53 }
 0x26e   :  { %1039 = vmatmul.bf16.vlgmr.msra.gmra.mxu3 %v1617_v56  ;;  %v1174_v56 = vadd.f32 %v1173_v51, %v1172_v52 }
 0x2d1   :  { %v644_v58 = vpop.f32.mrf.mxu3 }
 0x2d2   :  { %v645_v59 = vadd.f32 %v644_v58, %v2291_v57 }
 0x2d4   :  { %1807 = vtanh.f32 %v645_v59 }
 0x2d9   :  { %v647_v61 = vpop.f32.mrf.mxu3 }
 0x2da   :  { %v1808_v62 = vpop.eup %1807  ;;  %v648_v63 = vadd.f32 %v647_v61, %v2297_v60  ;;  %v1177_v61 = vsel %vm546_vm2, %v1706_v33, 0.0 }
 0x2db   :  { %653 = vst.msk [vmem:[%s2397_s9] sm:$0xff] %vm652_vm0, %v1808_v62 }
 0x2dc   :  { %1809 = vtanh.f32 %v648_v63  ;;  %v1176_v63 = vadd.f32 %v1175_v54, %v1174_v56 }
 0x2de   :  { %v1178_v3 = vadd.f32 %v1177_v61, %v1176_v63 }
 0x2e0   :  { %v1180_v8 = vadd.f32 %v1179_v1, %v1178_v3 }
 0x2e2   :  { %v1810_v2 = vpop.eup %1809  ;;  %v1182_v10 = vadd.f32 %v1181_v5, %v1180_v8 }
 0x2e3   :  { %654 = vst.msk [vmem:[%s2397_s9 + $0x8] sm:$0xff] %vm652_vm0, %v1810_v2 }
 0x2f1   :  { %v1040_v12 = vpop.f32.mrf.mxu3 }
 0x2f2   :  { %v1041_v14 = vadd.f32 %v1040_v12, %v901_v9 }
 0x2f4   :  { %v1055_v18 = vadd.f32 %v1054_v11, %v1041_v14 }
 0x2f6   :  { %v2308_v19 = vadd.f32 %v1068_v15, %v1055_v18  ;;  %v1183_v15 = vrot.slane %v1182_v10, 4 }
 0x2f8   :  { %v1073_v20 = vsel %vm451_vm1, %v2308_v19, 0.0  ;;  %v1081_v21 = vmul.f32 %v2308_v19, %v2308_v19  ;;  %v1184_v18 = vadd.f32 %v1183_v15, %v1182_v10 }
 0x2f9   :  { %v1042_v22 = vpop.f32.mrf.mxu3  ;;  %1074 = vadd.xlane.f32.xlu2 %v1073_v20 }
 0x2fa   :  { %v1043_v23 = vadd.f32 %v1042_v22, %v903_v4  ;;  %v1083_v24 = vsel %vm451_vm1, %v1081_v21, 0.0  ;;  %v1185_v20 = vrot.slane %v1184_v18, 2 }
 0x2fb   :  { %1084 = vadd.xlane.f32.xlu0 %v1083_v24 }
 0x2fc   :  { %v1057_v26 = vadd.f32 %v1056_v25, %v1043_v23  ;;  %v1186_v22 = vadd.f32 %v1185_v20, %v1184_v18 }
 0x2fe   :  { %v2315_v13 = vadd.f32 %v1070_v27, %v1057_v26  ;;  %v1187_v25 = vrot.slane %v1186_v22, 1 }
 0x300   :  { %v1076_v28 = vsel %vm451_vm1, %v2315_v13, 0.0  ;;  %v1082_v29 = vmul.f32 %v2315_v13, %v2315_v13 }
 0x301   :  { %1077 = vadd.xlane.f32.xlu1 %v1076_v28 }
 0x302   :  { %v1086_v30 = vsel %vm451_vm1, %v1082_v29, 0.0  ;;  %v1188_v29 = vadd.f32 %v1187_v25, %v1186_v22 }
 0x303   :  { %1087 = vadd.xlane.f32.xlu2 %v1086_v30 }
 0x304   :  { %v1198_v32 = vmul.f32 %v1188_v29, %v2068_v7  ;;  %v1197_v33 = vmul.f32 %v1188_v29, %v2075_v16 }
 0x306   :  { %v1202_v36 = vsel %vm546_vm2, %v1198_v32, 0.0  ;;  %v1199_v37 = vsel %vm546_vm2, %v1197_v33, 0.0 }
 0x307   :  { %1203 = vadd.xlane.f32.xlu0 %v1202_v36 }
 0x309   :  { %1200 = vadd.xlane.f32.xlu1 %v1199_v37 }
 0x36c   :  { %v1075_v38 = vpop.xlane.xlu2 %1074 }
 0x36d   :  { %v1079_v40 = vmul.f32 0.015625, %v1075_v38 }
 0x36e   :  { %v1085_v41 = vpop.xlane.xlu0 %1084 }
 0x36f   :  { %v1091_v43 = vmul.f32 %v1079_v40, %v1079_v40  ;;  %v1089_v45 = vmul.f32 0.015625, %v1085_v41  ;;  %v1097_v26 = vsub.f32 %v2308_v19, %v1079_v40 }
 0x371   :  { %v1093_v50 = vsub.f32 %v1089_v45, %v1091_v43 }
 0x373   :  { %v1095_v53 = vmax.f32 %v1093_v50, 0.0 }
 0x374   :  { %v1078_v55 = vpop.xlane.xlu1 %1077 }
 0x375   :  { %v1099_v58 = vadd.f32 1e-05, %v1095_v53  ;;  %v1080_v59 = vmul.f32 0.015625, %v1078_v55 }
 0x376   :  { %v1088_v62 = vpop.xlane.xlu2 %1087 }
 0x377   :  { %1811 = vrsqrt.f32 %v1099_v58  ;;  %v1092_v0 = vmul.f32 %v1080_v59, %v1080_v59  ;;  %v1090_v2 = vmul.f32 0.015625, %v1088_v62  ;;  %vm1107_vm8 = vweird.f32 %v1099_v58 }
 0x378   :  { %v1098_v40 = vsub.f32 %v2315_v13, %v1080_v59 }
 0x379   :  { %v1094_v6 = vsub.f32 %v1090_v2, %v1092_v0 }
 0x37a   :  { %v1204_v52 = vpop.xlane.xlu0 %1203 }
 0x37b   :  { %v1096_v9 = vmax.f32 %v1094_v6, 0.0  ;;  %v1206_v54 = vadd.f32 1e-05, %v1204_v52 }
 0x37c   :  { %v1201_v53 = vpop.xlane.xlu1 %1200 }
 0x37d   :  { %v1812_v11 = vpop.eup %1811  ;;  %v1100_v14 = vadd.f32 1e-05, %v1096_v9  ;;  %v1205_v55 = vadd.f32 1e-05, %v1201_v53  ;;  %v1231_v2 = vand.u32 2147483647, %v1206_v54 }
 0x37e   :  { %v1102_v12 = vmul.f32 %v1812_v11, %v1099_v58  ;;  %vm1108_vm7 = vweird.f32 %v1812_v11 }
 0x37f   :  { %1813 = vrsqrt.f32 %v1100_v14  ;;  %vm1109_vm9 = vmor %vm1107_vm8, %vm1108_vm7  ;;  %vm1117_vm11 = vweird.f32 %v1100_v14  ;;  %vm1212_vm13 = vweird.f32 %v1205_v55  ;;  %v1218_v3 = vand.u32 2147483648, %v1205_v55 }
 0x380   :  { %v1103_v17 = vmul.f32 %v1812_v11, %v1102_v12  ;;  %1815 = vrcp.f32 %v1206_v54  ;;  %v1216_v6 = vand.u32 2147483647, %v1205_v55  ;;  %vm1232_vm3 = vcmp.eq.f32.partialorder %v1231_v2, 8.507059e+37 }
 0x381   :  { %1817 = vrcp.f32 %v1205_v55  ;;  %v1219_v10 = vor.u32 1.1754944e-38, %v1218_v3 }
 0x382   :  { %v1104_v4 = vmul.f32 0.5, %v1103_v17  ;;  %vm1217_vm4 = vcmp.eq.f32.partialorder %v1216_v6, 8.507059e+37 }
 0x384   :  { %v1105_v21 = vsub.f32 1.5, %v1104_v4 }
 0x385   :  { %v1814_v23 = vpop.eup %1813 }
 0x386   :  { %v1106_v24 = vmul.f32 %v1812_v11, %v1105_v21  ;;  %v1112_v27 = vmul.f32 %v1814_v23, %v1100_v14  ;;  %vm1118_vm10 = vweird.f32 %v1814_v23  ;;  %v1816_v56 = vpop.eup %1815 }
 0x387   :  { %vm1119_vm12 = vmor %vm1117_vm11, %vm1118_vm10  ;;  %v1818_v58 = vpop.eup %1817  ;;  %v1223_v59 = vmul.f32 %v1816_v56, %v1206_v54 }
 0x388   :  { %v1110_v28 = vsel %vm1109_vm9, %v1812_v11, %v1106_v24  ;;  %v1113_v31 = vmul.f32 %v1814_v23, %v1112_v27  ;;  %v1208_v61 = vmul.f32 %v1818_v58, %v1205_v55 }
 0x389   :  { %v1121_v30 = vmul.f32 %v1110_v28, %v1097_v26 }
 0x38a   :  { %v1114_v34 = vmul.f32 0.5, %v1113_v31  ;;  %v1209_v62 = vsub.f32 1.0, %v1208_v61 }
 0x38b   :  { %v1123_v35 = vmax.f32 %v1121_v30, 0.0 }
 0x38c   :  { %v1115_v38 = vsub.f32 1.5, %v1114_v34  ;;  %v1210_v0 = vmul.f32 %v1818_v58, %v1209_v62 }
 0x38d   :  { %v1125_v39 = vpack.c.bf16 %v1123_v35, %v1123_v35  ;;  %1709 = vmatmul.msk.f32.vlgmr.msrb.gmra.mxu0 %vm451_vm1, %v1123_v35 }
 0x38e   :  { %v1116_v19 = vmul.f32 %v1814_v23, %v1115_v38  ;;  %v1211_v5 = vadd.f32 %v1818_v58, %v1210_v0 }
 0x38f   :  { %1699 = vst.msk [vmem:[%s2394_s8 + $0x8] sm:$0xf] %vm506_vm6, %v1125_v39 }
 0x390   :  { %v1120_v41 = vsel %vm1119_vm12, %v1814_v23, %v1116_v19 }
 0x391   :  { %v1122_v42 = vmul.f32 %v1120_v41, %v1098_v40 }
 0x393   :  { %v1124_v43 = vmax.f32 %v1122_v42, 0.0 }
 0x395   :  { %v1126_v45 = vpack.c.bf16 %v1124_v43, %v1124_v43  ;;  %1710 = vmatmul.msk.f32.gmra.mxu0 %vm451_vm1, %v1124_v43  ;;  %vm1227_vm1 = vweird.f32 %v1206_v54 }
 0x397   :  { %1700 = vst.msk [vmem:[%s2394_s8 + $0xc] sm:$0xf] %vm506_vm6, %v1126_v45  ;;  %vm1228_vm6 = vweird.f32 %v1816_v56 }
 0x398   :  { %vm1229_vm14 = vmor %vm1227_vm1, %vm1228_vm6 }
 0x40a   :  { %v1162_v46 = vpop.f32.mrf.mxu0 }
 0x40b   :  { %v1189_v47 = vmul.f32 %v1162_v46, %v2075_v16  ;;  %v1224_v16 = vsub.f32 1.0, %v1223_v59 }
 0x40d   :  { %v1191_v49 = vsel %vm546_vm2, %v1189_v47, 0.0  ;;  %v1225_v63 = vmul.f32 %v1816_v56, %v1224_v16 }
 0x40e   :  { %1192 = vadd.xlane.f32.xlu0 %v1191_v49 }
 0x40f   :  { %v1226_v1 = vadd.f32 %v1816_v56, %v1225_v63 }
 0x411   :  { %v1230_v9 = vsel %vm1229_vm14, %v1816_v56, %v1226_v1 }
 0x412   :  { %v1165_v50 = vpop.f32.mrf.mxu0 }
 0x413   :  { %v1190_v13 = vmul.f32 %v1165_v50, %v2068_v7  ;;  %v1233_v7 = vand.u32 2147483648, %v1206_v54 }
 0x415   :  { %v1194_v51 = vsel %vm546_vm2, %v1190_v13, 0.0  ;;  %vm1213_vm2 = vweird.f32 %v1818_v58  ;;  %v1234_v8 = vor.u32 1.1754944e-38, %v1233_v7 }
 0x416   :  { %1195 = vadd.xlane.f32.xlu2 %v1194_v51  ;;  %vm1214_vm15 = vmor %vm1212_vm13, %vm1213_vm2 }
 0x417   :  { %v1215_v11 = vsel %vm1214_vm15, %v1818_v58, %v1211_v5  ;;  %v1235_v14 = vsel %vm1232_vm3, %v1234_v8, %v1230_v9 }
 0x418   :  { %v1220_v18 = vsel %vm1217_vm4, %v1219_v10, %v1215_v11 }
 0x481   :  { %v1193_v12 = vpop.xlane.xlu0 %1192 }
 0x482   :  { %v1221_v4 = vmul.f32 %v1220_v18, %v1193_v12 }
 0x489   :  { %v1196_v15 = vpop.xlane.xlu2 %1195 }
 0x48a   :  { %v1236_v17 = vmul.f32 %v1235_v14, %v1196_v15 }
 0x48c   :  { %1261 = vmatpush.msrb.mxu3 %v1236_v17 }
 0x48e   :  { %1262 = vmatpush.msrb.mxu3 %v1221_v4 }
 0x48f   :  { %1711 = vmatmul.msk.f32.vlgmr.msrb.gmra.mxu3 %vm620_vm5, %v2250_v44 }
 0x497   :  { %1712 = vmatmul.msk.f32.gmra.mxu3 %vm620_vm5, %v2263_v48 }
 0x512   :  { %v1264_v20 = vpop.f32.mrf.mxu3 }
 0x513   :  { %v1265_v21 = vadd.f32 %v1264_v20, %v2291_v57 }
 0x515   :  { %1819 = vtanh.f32 %v1265_v21 }
 0x51a   :  { %v1267_v22 = vpop.f32.mrf.mxu3 }
 0x51b   :  { %v1820_v23 = vpop.eup %1819  ;;  %v1268_v24 = vadd.f32 %v1267_v22, %v2297_v60 }
 0x51c   :  { %1713 = vst.msk [vmem:[%s2397_s9 + $0x10] sm:$0xff] %vm652_vm0, %v1820_v23 }
 0x51d   :  { %1821 = vtanh.f32 %v1268_v24 }
 0x523   :  { %v1822_v25 = vpop.eup %1821 }
 0x524   :  { %1714 = vst.msk [vmem:[%s2397_s9 + $0x18] sm:$0xff] %vm652_vm0, %v1822_v25 }

// kernel: _lambda_.15
= control target key start
LH: loop header
LB: loop body
LE: loop exit
PB: predicated region body
PF: predicated region fallthrough
CT: control target
= control target key end

     0   :  { %s1856_s0 = inlined_call_operand.vmem [shape: bf16[2,144,256], index: 0, kind: input, shape index: {}]   ;;  %s1857_s1 = inlined_call_operand.vmem [shape: bf16[2,144,256], index: 1, kind: input, shape index: {}]   ;;  %s1858_s2 = inlined_call_operand.vmem [shape: f32[2,256,2], index: 2, kind: input, shape index: {}]   ;;  %s1859_s3 = inlined_call_operand.vmem [shape: f32[8,2], index: 3, kind: input, shape index: {}]   ;;  %s1860_s4 = inlined_call_operand.vmem [shape: bf16[8,144], index: 4, kind: input, shape index: {}]   ;;  %s1861_s5 = inlined_call_operand.vmem [shape: bf16[8,144], index: 5, kind: input, shape index: {}]   ;;  %s1862_s6 = inlined_call_operand.vmem [shape: f32[16,8], index: 6, kind: input, shape index: {}]   ;;  %s1863_s7 = inlined_call_operand.vmem [shape: f32[16,1], index: 7, kind: input, shape index: {}]   ;;  %s1864_s8 = inlined_call_operand.hbm [shape: bf16[2,8,256], index: 8, kind: output, shape index: {0}]   ;;  %s1865_s9 = inlined_call_operand.vmem [shape: f32[2,16,1], index: 9, kind: output, shape index: {1}]  }
   0x1   :  { %1867 = sst [smem:[#allocation5_spill]] %s1856_s0 }
   0x2   :  { %1868 = sst [smem:[#allocation6_spill]] %s1857_s1 }
   0x3   :  { %1869 = sst [smem:[#allocation7_spill]] %s1858_s2 }
   0x4   :  { %15 = vsyncpa [#allocation3], 0 }
   0x5   :  { %17 = vsyncpa [#allocation3 + $0x1], 0  ;;  %s1465_s30 = smov 0   ;;  %s1467_s10 = smov 0  }
   0x6   :  { %s1469_s11 = smov 0   ;;  %s1471_s12 = smov 0  }
   0x7 LB: > { %s1486_s13 = sadd.s32 4294967295, %s1413_s12   ;;  %s1097_s14 = sadd.s32 4294967294, %s1413_s12   ;;  %s1413_s12 = sphi %s1471_s12, %s1879_s12   ;;  %s1409_s11 = sphi %s1469_s11, %s1878_s11   ;;  %s1405_s10 = sphi %s1467_s10, %s1877_s10   ;;  %s1401_s30 = sphi %s1465_s30, %s1876_s30  }
   0x8   : > { %s1490_s15 = sadd.s32 1, %s1413_s12   ;;  %s213_s16 = sadd.s32 1, %s1409_s11 }
   0x9   : > { %s210_s17 = ssub.s32 %s1413_s12, %s1490_s15  ;;  %p223_p0 = scmp.ne.s32.totalorder %s1409_s11, %s1405_s10 }
   0xa   : > { %p211_p1 = scmp.eq.s32.totalorder %s210_s17, 0  ;;  %p224_p2 = scmp.eq.s32.totalorder %s1486_s13, 1 }
   0xb   : > { %p229_p3 = scmp.ne.s32.totalorder %s1405_s10, %s1401_s30  ;;  %p230_p4 = scmp.eq.s32.totalorder %s1097_s14, 1 }
   0xc   : > { %s1501_s18 = scalar_select %p211_p1, %s1409_s11, %s213_s16  }
   0xd   : > { %p1503_p5 = por %p224_p2, %p223_p0  ;;  %p1507_p6 = por %p230_p4, %p229_p3 }
   0xe   : > { %p1100_p7 = scmp.ge.s32.totalorder %s1413_s12, 1  ;;  %p313_p8 = scmp.lt.s32.totalorder %s1413_s12, 3 }
  0x10   : > { %p314_p9 = pnand %p1100_p7, %p313_p8 }
  0x11   : > { %p364_p10 = scmp.lt.s32.totalorder (!%p314_p9), %s1486_s13, 1  ;;  %s1872_s1 = sld [smem:[#allocation6_spill]] (!%p314_p9) }
  0x12   : > { %317 = sbr.rel (%p314_p9) target bundleno = 761 (0x2f9), region = 52  ;;  %s1873_s0 = sld [smem:[#allocation5_spill]] (!%p314_p9) }
  0x13   : > { %s1874_s2 = sld [smem:[#allocation7_spill]] (!%p314_p9)  ;;  %s1866_s26 = sand.u32 (!%p314_p9), 1, %s1405_s10  }
  0x14   : > { %s1875_s16 = sand.u32 (!%p314_p9), 1, %s1405_s10  }
  0x15   : > { %s965_s17 = scalar_lea.sflag (!%p314_p9), [#allocation3], %s1875_s16 }
  0x17   : > { %s1515_s21 = scalar_select %p364_p10, %s1486_s13, 1  ;;  %v1520_v0 = vld [vmem:[%s1861_s5] sm:$0xff]  ;;  %vm520_vm0 = vcmask 130048   ;;  %vm831_vm1 = vcmask 15360   ;;  %vm929_vm9 = vcmask 64512  }
  0x18   : > { %v426_v1 = vunpack.c.h.b16 %v1520_v0  ;;  %v1572_v50 = vld [vmem:[%s1860_s4] sm:$0xff] }
  0x19   : > { %s1303_s24 = smul.u32 144, %s1515_s21  ;;  %s1263_s22 = sshll.u32 %s1515_s21, 8 }
  0x1a   : > { %v428_v16 = vpack.c.b16 %v426_v1, %v426_v1  ;;  %s1636_s25 = scalar_lea.vmem %s1874_s2, %s1263_s22  ;;  %s1371_s2 = scalar_lea.hbm %s1864_s8, 16 }
  0x1b   : > { %s1526_s27 = scalar_lea.vmem %s1872_s1, %s1303_s24  ;;  %s1531_s14 = scalar_lea.vmem %s1873_s0, %s1303_s24 }
  0x1c   : > { %v1166_v2 = vld [vmem:[%s1526_s27 + $0x70] sm:$0xf]  ;;  %v1298_v3 = vld [vmem:[%s1526_s27 + $0x74] sm:$0xf0]  ;;  %v1297_v4 = vld [vmem:[%s1526_s27 + $0x74] sm:$0xf] }
  0x1d   : > { %v1167_v5 = vor.u32 %v1298_v3, %v1166_v2  ;;  %v1168_v6 = vld [vmem:[%s1526_s27 + $0x78] sm:$0xf0]  ;;  %v1299_v7 = vld [vmem:[%s1526_s27 + $0x84] sm:$0xf]  ;;  %v1176_v8 = vld [vmem:[%s1526_s27 + $0x88] sm:$0xf0] }
  0x1e   : > { %v1171_v9 = vor.u32 %v1297_v4, %v1168_v6  ;;  %v1179_v10 = vor.u32 %v1299_v7, %v1176_v8  ;;  %v1174_v11 = vld [vmem:[%s1526_s27 + $0x80] sm:$0xf]  ;;  %v1300_v12 = vld [vmem:[%s1526_s27 + $0x84] sm:$0xf0]  ;;  %v1240_v13 = vld [vmem:[%s1531_s14 + $0x70] sm:$0xf]  ;;  %v578_v4 = vunpack.c.h.b16 %v1572_v50 }
  0x1f   : > { %524 = vmatpush.bf16.msra.mxu0 %v1167_v5  ;;  %v1175_v14 = vor.u32 %v1300_v12, %v1174_v11  ;;  %v1280_v15 = vld [vmem:[%s1531_s14 + $0x74] sm:$0xf0]  ;;  %v1248_v17 = vld [vmem:[%s1531_s14 + $0x80] sm:$0xf]  ;;  %v1282_v18 = vld [vmem:[%s1531_s14 + $0x84] sm:$0xf0] }
  0x20   : > { %550 = vmatpush.bf16.msra.mxu2 %v1171_v9  ;;  %570 = vmatpush.bf16.msra.mxu3 %v1179_v10  ;;  %v1241_v19 = vor.u32 %v1280_v15, %v1240_v13  ;;  %v1249_v20 = vor.u32 %v1282_v18, %v1248_v17  ;;  %v1158_v21 = vld [vmem:[%s1526_s27 + $0x60] sm:$0xf]  ;;  %v1296_v22 = vld [vmem:[%s1526_s27 + $0x64] sm:$0xf0]  ;;  %v1295_v23 = vld [vmem:[%s1526_s27 + $0x64] sm:$0xf] }
  0x21   : > { %544 = vmatpush.bf16.msra.mxu1 %v1175_v14  ;;  %v1159_v24 = vor.u32 %v1296_v22, %v1158_v21  ;;  %v1160_v25 = vld [vmem:[%s1526_s27 + $0x68] sm:$0xf0]  ;;  %v1279_v26 = vld [vmem:[%s1531_s14 + $0x74] sm:$0xf]  ;;  %v1242_v27 = vld [vmem:[%s1531_s14 + $0x78] sm:$0xf0]  ;;  %v1592_v14 = vpack.c.b16 %v578_v4, %v578_v4 }
  0x22   : > { %v1163_v28 = vor.u32 %v1295_v23, %v1160_v25  ;;  %v1245_v29 = vor.u32 %v1279_v26, %v1242_v27  ;;  %v1232_v30 = vld [vmem:[%s1531_s14 + $0x60] sm:$0xf]  ;;  %v1278_v31 = vld [vmem:[%s1531_s14 + $0x64] sm:$0xf0]  ;;  %v1150_v32 = vld [vmem:[%s1526_s27 + $0x50] sm:$0xf] }
  0x23   : > { %1181 = vmatmul.msk.bf16.vlgmr.msra.gmra.mxu3 %vm520_vm0, %v428_v16  ;;  %525 = vmatpush.bf16.msra.mxu0 %v1159_v24  ;;  %v1233_v33 = vor.u32 %v1278_v31, %v1232_v30  ;;  %v1294_v34 = vld [vmem:[%s1526_s27 + $0x54] sm:$0xf0]  ;;  %v1293_v35 = vld [vmem:[%s1526_s27 + $0x54] sm:$0xf]  ;;  %v1152_v36 = vld [vmem:[%s1526_s27 + $0x58] sm:$0xf0] }
  0x24   : > { %695 = vmatpush.bf16.msrb.mxu3 %v1249_v20  ;;  %551 = vmatpush.bf16.msra.mxu2 %v1163_v28  ;;  %v1151_v37 = vor.u32 %v1294_v34, %v1150_v32  ;;  %v1155_v38 = vor.u32 %v1293_v35, %v1152_v36  ;;  %v1277_v39 = vld [vmem:[%s1531_s14 + $0x64] sm:$0xf]  ;;  %v1234_v40 = vld [vmem:[%s1531_s14 + $0x68] sm:$0xf0]  ;;  %v1224_v41 = vld [vmem:[%s1531_s14 + $0x50] sm:$0xf] }
  0x25   : > { %675 = vmatpush.bf16.msrb.mxu1 %v1241_v19  ;;  %v1237_v42 = vor.u32 %v1277_v39, %v1234_v40  ;;  %v1276_v43 = vld [vmem:[%s1531_s14 + $0x54] sm:$0xf0]  ;;  %v1142_v44 = vld [vmem:[%s1526_s27 + $0x40] sm:$0xf]  ;;  %v1292_v45 = vld [vmem:[%s1526_s27 + $0x44] sm:$0xf0]  ;;  %v425_v39 = vunpack.c.l.b16 %v1520_v0 }
  0x26   : > { %1180 = vmatmul.msk.bf16.vlgmr.msra.gmra.mxu1 %vm520_vm0, %v428_v16  ;;  %v1225_v46 = vor.u32 %v1276_v43, %v1224_v41  ;;  %v1291_v47 = vld [vmem:[%s1526_s27 + $0x44] sm:$0xf]  ;;  %v1144_v48 = vld [vmem:[%s1526_s27 + $0x48] sm:$0xf0]  ;;  %v1275_v49 = vld [vmem:[%s1531_s14 + $0x54] sm:$0xf]  ;;  %v1143_v51 = vor.u32 %v1292_v45, %v1142_v44 }
  0x27   : > { %526 = vmatpush.bf16.msra.mxu0 %v1151_v37  ;;  %v1226_v52 = vld [vmem:[%s1531_s14 + $0x58] sm:$0xf0]  ;;  %v1216_v53 = vld [vmem:[%s1531_s14 + $0x40] sm:$0xf]  ;;  %v1274_v54 = vld [vmem:[%s1531_s14 + $0x44] sm:$0xf0]  ;;  %v1147_v55 = vor.u32 %v1291_v47, %v1144_v48 }
  0x28   : > { %701 = vmatpush.bf16.msra.mxu3 %v1245_v29  ;;  %552 = vmatpush.bf16.msra.mxu2 %v1155_v38  ;;  %v1229_v56 = vor.u32 %v1275_v49, %v1226_v52  ;;  %v1134_v57 = vld [vmem:[%s1526_s27 + $0x30] sm:$0xf]  ;;  %v1290_v58 = vld [vmem:[%s1526_s27 + $0x34] sm:$0xf0]  ;;  %v1289_v59 = vld [vmem:[%s1526_s27 + $0x34] sm:$0xf]  ;;  %v1217_v63 = vor.u32 %v1274_v54, %v1216_v53  ;;  %v577_v49 = vunpack.c.l.b16 %v1572_v50  ;;  %v427_v53 = vpack.c.b16 %v425_v39, %v425_v39 }
  0x29   : > { %676 = vmatpush.bf16.msrb.mxu1 %v1233_v33  ;;  %v1136_v60 = vld [vmem:[%s1526_s27 + $0x38] sm:$0xf0]  ;;  %v1273_v61 = vld [vmem:[%s1531_s14 + $0x44] sm:$0xf]  ;;  %v1218_v62 = vld [vmem:[%s1531_s14 + $0x48] sm:$0xf0]  ;;  %v1135_v1 = vor.u32 %v1290_v58, %v1134_v57 }
  0x2a   : > { %v1208_v2 = vld [vmem:[%s1531_s14 + $0x30] sm:$0xf]  ;;  %v1272_v3 = vld [vmem:[%s1531_s14 + $0x34] sm:$0xf0]  ;;  %v1139_v5 = vor.u32 %v1289_v59, %v1136_v60  ;;  %v1221_v6 = vor.u32 %v1273_v61, %v1218_v62  ;;  %v1126_v7 = vld [vmem:[%s1526_s27 + $0x20] sm:$0xf]  ;;  %v579_v54 = vpack.c.b16 %v577_v49, %v577_v49 }
  0x2b   : > { %527 = vmatpush.bf16.msra.mxu0 %v1143_v51  ;;  %v1288_v8 = vld [vmem:[%s1526_s27 + $0x24] sm:$0xf0]  ;;  %v1287_v9 = vld [vmem:[%s1526_s27 + $0x24] sm:$0xf]  ;;  %v1128_v10 = vld [vmem:[%s1526_s27 + $0x28] sm:$0xf0]  ;;  %v1209_v13 = vor.u32 %v1272_v3, %v1208_v2 }
  0x2c   : > { %702 = vmatpush.bf16.msra.mxu3 %v1237_v42  ;;  %553 = vmatpush.bf16.msra.mxu2 %v1147_v55  ;;  %v1271_v11 = vld [vmem:[%s1531_s14 + $0x34] sm:$0xf]  ;;  %v1210_v12 = vld [vmem:[%s1531_s14 + $0x38] sm:$0xf0]  ;;  %v1127_v15 = vor.u32 %v1288_v8, %v1126_v7  ;;  %v1200_v16 = vld [vmem:[%s1531_s14 + $0x20] sm:$0xf]  ;;  %v1131_v18 = vor.u32 %v1287_v9, %v1128_v10 }
  0x2d   : > { %677 = vmatpush.bf16.msrb.mxu1 %v1225_v46  ;;  %v1270_v17 = vld [vmem:[%s1531_s14 + $0x24] sm:$0xf0]  ;;  %v1213_v19 = vor.u32 %v1271_v11, %v1210_v12  ;;  %v1118_v20 = vld [vmem:[%s1526_s27 + $0x10] sm:$0xf]  ;;  %v1286_v21 = vld [vmem:[%s1526_s27 + $0x14] sm:$0xf0] }
  0x2e   : > { %v1285_v22 = vld [vmem:[%s1526_s27 + $0x14] sm:$0xf]  ;;  %v1120_v23 = vld [vmem:[%s1526_s27 + $0x18] sm:$0xf0]  ;;  %v1269_v24 = vld [vmem:[%s1531_s14 + $0x24] sm:$0xf]  ;;  %v1201_v26 = vor.u32 %v1270_v17, %v1200_v16  ;;  %v1119_v27 = vor.u32 %v1286_v21, %v1118_v20 }
  0x2f   : > { %528 = vmatpush.bf16.msra.mxu0 %v1135_v1  ;;  %v1202_v25 = vld [vmem:[%s1531_s14 + $0x28] sm:$0xf0]  ;;  %v1192_v28 = vld [vmem:[%s1531_s14 + $0x10] sm:$0xf]  ;;  %v1268_v29 = vld [vmem:[%s1531_s14 + $0x14] sm:$0xf0]  ;;  %v1123_v30 = vor.u32 %v1285_v22, %v1120_v23 }
  0x30   : > { %703 = vmatpush.bf16.msra.mxu3 %v1229_v56  ;;  %554 = vmatpush.bf16.msra.mxu2 %v1139_v5  ;;  %v1205_v31 = vor.u32 %v1269_v24, %v1202_v25  ;;  %v1110_v32 = vld [vmem:[%s1526_s27] sm:$0xf]  ;;  %v1284_v33 = vld [vmem:[%s1526_s27 + $0x4] sm:$0xf0]  ;;  %v1283_v34 = vld [vmem:[%s1526_s27 + $0x4] sm:$0xf]  ;;  %v1193_v38 = vor.u32 %v1268_v29, %v1192_v28 }
  0x31   : > { %678 = vmatpush.bf16.msrb.mxu1 %v1217_v63  ;;  %v1112_v35 = vld [vmem:[%s1526_s27 + $0x8] sm:$0xf0]  ;;  %v1267_v36 = vld [vmem:[%s1531_s14 + $0x14] sm:$0xf]  ;;  %v1194_v37 = vld [vmem:[%s1531_s14 + $0x18] sm:$0xf0]  ;;  %v1111_v42 = vor.u32 %v1284_v33, %v1110_v32 }
  0x32   : > { %v1281_v40 = vld [vmem:[%s1531_s14 + $0x84] sm:$0xf]  ;;  %v1250_v41 = vld [vmem:[%s1531_s14 + $0x88] sm:$0xf0]  ;;  %v1184_v43 = vld [vmem:[%s1531_s14] sm:$0xf]  ;;  %v1115_v45 = vor.u32 %v1283_v34, %v1112_v35  ;;  %v1197_v46 = vor.u32 %v1267_v36, %v1194_v37 }
  0x33   : > { %1254 = vmatmul.msk.bf16.vlgmr.msrb.gmra.mxu3 %vm520_vm0, %v1592_v14  ;;  %529 = vmatpush.bf16.msra.mxu0 %v1127_v15  ;;  %v1266_v44 = vld [vmem:[%s1531_s14 + $0x4] sm:$0xf0]  ;;  %v1265_v47 = vld [vmem:[%s1531_s14 + $0x4] sm:$0xf]  ;;  %v1186_v48 = vld [vmem:[%s1531_s14 + $0x8] sm:$0xf0]  ;;  %v1253_v51 = vor.u32 %v1281_v40, %v1250_v41 }
  0x34   : > { %704 = vmatpush.bf16.msra.mxu3 %v1221_v6  ;;  %555 = vmatpush.bf16.msra.mxu2 %v1131_v18  ;;  %v1185_v52 = vor.u32 %v1266_v44, %v1184_v43  ;;  %v1189_v0 = vor.u32 %v1265_v47, %v1186_v48  ;;  %v1639_v17 = vld [vmem:[%s1636_s25 + $0x78] sm:$0xff]  ;;  %v1650_v20 = vld [vmem:[%s1636_s25 + $0xf0] sm:$0xff]  ;;  %v1655_v21 = vld [vmem:[%s1636_s25 + $0x68] sm:$0xff]  ;;  %s1765_s27 = sshll.u32 %s1866_s26, 3  ;;  %s1301_s24 = sshll.u32 %s1486_s13, 3 }
  0x35   : > { %679 = vmatpush.bf16.msrb.mxu1 %v1209_v13  ;;  %v1642_v18 = vld [vmem:[%s1636_s25 + $0xf8] sm:$0xff]  ;;  %v1658_v22 = vld [vmem:[%s1636_s25 + $0xe8] sm:$0xff]  ;;  %v1663_v23 = vld [vmem:[%s1636_s25 + $0x60] sm:$0xff]  ;;  %s356_s28 = scalar_lea.vmem [#allocation2], %s1765_s27  ;;  %s981_s14 = scalar_lea.hbm %s1864_s8, %s1301_s24 }
  0x36   : > { %v1666_v24 = vld [vmem:[%s1636_s25 + $0xe0] sm:$0xff]  ;;  %v1671_v25 = vld [vmem:[%s1636_s25 + $0x58] sm:$0xff]  ;;  %v1682_v28 = vld [vmem:[%s1636_s25 + $0xd0] sm:$0xff]  ;;  %s983_s26 = sshll.u32 %s356_s28, 4  ;;  %s985_s0 = sshll.u32 %s981_s14, 4  ;;  %s984_s26 = int_to_ptr.vmem [resolvable:$true] %s983_s26  ;;  %s986_s0 = int_to_ptr.hbm [resolvable:$true] %s985_s0 }
  0x37   : > { %530 = vmatpush.bf16.msra.mxu0 %v1119_v27  ;;  %v1679_v27 = vld [vmem:[%s1636_s25 + $0x50] sm:$0xff]  ;;  %v1687_v29 = vld [vmem:[%s1636_s25 + $0x48] sm:$0xff]  ;;  %v1696_v32 = vld [vmem:[%s1636_s25 + $0xc0] sm:$0xff]  ;;  %s1365_s1 = sshra.s32 %s986_s0, 4  ;;  %s1366_s1 = int_to_ptr.hbm [resolvable:$true] %s1365_s1 }
  0x38   : > { %705 = vmatpush.bf16.msra.mxu3 %v1213_v19  ;;  %556 = vmatpush.bf16.msra.mxu2 %v1123_v30  ;;  %v1647_v19 = vld [vmem:[%s1636_s25 + $0x70] sm:$0xff]  ;;  %v1690_v30 = vld [vmem:[%s1636_s25 + $0xc8] sm:$0xff]  ;;  %v766_v33 = vld [vmem:[%s1636_s25 + $0x38] sm:$0xff]  ;;  %s1367_s22 = scalar_lea.hbm %s1366_s1, 8  ;;  %p1372_p0 = scmp.lt.s32.totalorder %s1366_s1, %s1864_s8 }
  0x39   : > { %680 = vmatpush.bf16.msrb.mxu1 %v1201_v26  ;;  %v1674_v26 = vld [vmem:[%s1636_s25 + $0xd8] sm:$0xff]  ;;  %v765_v35 = vld [vmem:[%s1636_s25 + $0x30] sm:$0xff]  ;;  %v764_v37 = vld [vmem:[%s1636_s25 + $0x28] sm:$0xff]  ;;  %p1368_p11 = scmp.ne.s32.totalorder %s1366_s1, %s1367_s22  ;;  %p1373_p1 = scmp.lt.s32.totalorder %s1371_s2, %s1367_s22 }
  0x3a   : > { %v1701_v34 = vld [vmem:[%s1636_s25 + $0xb8] sm:$0xff]  ;;  %v1706_v36 = vld [vmem:[%s1636_s25 + $0xb0] sm:$0xff]  ;;  %v763_v39 = vld [vmem:[%s1636_s25 + $0x20] sm:$0xff] }
  0x3b   : > { %531 = vmatpush.bf16.msra.mxu0 %v1111_v42  ;;  %v1716_v40 = vld [vmem:[%s1636_s25 + $0xa0] sm:$0xff]  ;;  %v762_v41 = vld [vmem:[%s1636_s25 + $0x18] sm:$0xff]  ;;  %v761_v44 = vld [vmem:[%s1636_s25 + $0x10] sm:$0xff]  ;;  %p1369_p12 = pnand %p1368_p11, %p1503_p5  ;;  %p1374_p2 = por %p1373_p1, %p1372_p0 }
  0x3c   : > { %706 = vmatpush.bf16.msra.mxu3 %v1205_v31  ;;  %557 = vmatpush.bf16.msra.mxu2 %v1115_v45  ;;  %v767_v31 = vld [vmem:[%s1636_s25 + $0x40] sm:$0xff]  ;;  %v1721_v42 = vld [vmem:[%s1636_s25 + $0x98] sm:$0xff]  ;;  %v1725_v45 = vld [vmem:[%s1636_s25 + $0x90] sm:$0xff] }
  0x3d   : > { %681 = vmatpush.bf16.msrb.mxu1 %v1193_v38  ;;  %v1711_v38 = vld [vmem:[%s1636_s25 + $0xa8] sm:$0xff]  ;;  %v759_v48 = vld [vmem:[%s1636_s25] sm:$0xff]  ;;  %p1370_p13 = pneg %p1369_p12 }
  0x3e   : > { %532 = vmatmul.bf16.vlgmr.msra.gmra.mxu0 %v427_v53  ;;  %v1730_v47 = vld [vmem:[%s1636_s25 + $0x88] sm:$0xff]  ;;  %v775_v49 = vld [vmem:[%s1636_s25 + $0x80] sm:$0xff] }
  0x3f   : > { %721 = vmatpush.bf16.msrb.mxu0 %v1253_v51  ;;  %558 = vmatmul.bf16.vlgmr.msra.gmra.mxu2 %v427_v53  ;;  %v835_v53 = vsel %vm831_vm1, %v761_v44, 0.0  ;;  %p1375_p3 = pnand %p1374_p2, %p1370_p13 }
  0x40   : > { %707 = vmatpush.bf16.msra.mxu3 %v1197_v46  ;;  %791 = vmatpush.msrb.mxu2 %v1639_v17  ;;  %v760_v46 = vld [vmem:[%s1636_s25 + $0x8] sm:$0xff] }
  0x41   : > { %682 = vmatpush.bf16.msrb.mxu1 %v1185_v52  ;;  %v833_v52 = vsel %vm831_vm1, %v760_v46, 0.0 }
  0x42   : > { %792 = vmatpush.msrb.mxu2 %v1647_v19 }
  0x44   : > { %708 = vmatpush.bf16.msra.mxu3 %v1189_v0  ;;  %683 = vmatmul.bf16.vlgmr.msrb.gmra.mxu1 %v579_v54  ;;  %v832_v0 = vsel %vm831_vm1, %v759_v48, 0.0 }
  0x45   : > { %811 = vmatpush.msra.mxu1 %v1642_v18  ;;  %793 = vmatpush.msrb.mxu2 %v1655_v21 }
  0x47   : > { %709 = vmatmul.bf16.vlgmr.msra.gmra.mxu3 %v579_v54  ;;  %812 = vmatpush.msra.mxu1 %v1650_v20  ;;  %v834_v54 = vadd.f32 %v833_v52, %v832_v0 }
  0x48   : > { %794 = vmatpush.msrb.mxu2 %v1663_v23 }
  0x49   : > { %813 = vmatpush.msra.mxu1 %v1658_v22 }
  0x4a   : > { %795 = vmatpush.msrb.mxu2 %v1671_v25 }
  0x4b   : > { %814 = vmatpush.msra.mxu1 %v1666_v24 }
  0x4c   : > { %796 = vmatpush.msrb.mxu2 %v1679_v27 }
  0x4d   : > { %815 = vmatpush.msra.mxu1 %v1674_v26 }
  0x4e   : > { %1255 = vmatmul.msk.bf16.vlgmr.msrb.gmra.mxu0 %vm520_vm0, %v1592_v14  ;;  %797 = vmatpush.msrb.mxu2 %v1687_v29 }
  0x4f   : > { %816 = vmatpush.msra.mxu1 %v1682_v28 }
  0x50   : > { %798 = vmatpush.msrb.mxu2 %v767_v31 }
  0x51   : > { %817 = vmatpush.msra.mxu1 %v1690_v30 }
  0x52   : > { %799 = vmatpush.msrb.mxu2 %v766_v33 }
  0x53   : > { %818 = vmatpush.msra.mxu1 %v1696_v32 }
  0x54   : > { %800 = vmatpush.msrb.mxu2 %v765_v35 }
  0x55   : > { %819 = vmatpush.msra.mxu1 %v1701_v34 }
  0x56   : > { %801 = vmatpush.msrb.mxu2 %v764_v37 }
  0x57   : > { %820 = vmatpush.msra.mxu1 %v1706_v36 }
  0x58   : > { %802 = vmatpush.msrb.mxu2 %v763_v39 }
  0x59   : > { %821 = vmatpush.msra.mxu1 %v1711_v38 }
  0x5a   : > { %803 = vmatpush.msrb.mxu2 %v762_v41 }
  0x5b   : > { %822 = vmatpush.msra.mxu1 %v1716_v40 }
  0x5c   : > { %804 = vmatpush.msrb.mxu2 %v761_v44 }
  0x5d   : > { %823 = vmatpush.msra.mxu1 %v1721_v42 }
  0x5e   : > { %805 = vmatpush.msrb.mxu2 %v760_v46 }
  0x5f   : > { %824 = vmatpush.msra.mxu1 %v1725_v45 }
  0x60   : > { %806 = vmatpush.msrb.mxu2 %v759_v48 }
  0x61   : > { %825 = vmatpush.msra.mxu1 %v1730_v47 }
  0x63   : > { %826 = vmatpush.msra.mxu1 %v775_v49 }
  0xa3   : > { %v546_v50 = vpop.f32.mrf.mxu1 }
  0xa6   : > { %v572_v55 = vpop.f32.mrf.mxu3 }
  0xab   : > { %v548_v56 = vpop.f32.mrf.mxu1 }
  0xae   : > { %v574_v57 = vpop.f32.mrf.mxu3 }
  0xb6   : > { %v697_v58 = vpop.f32.mrf.mxu3 }
  0xbb   : > { %v533_v59 = vpop.f32.mrf.mxu0 }
  0xbc   : > { %v547_v1 = vadd.f32 %v546_v50, %v533_v59  ;;  %v839_v59 = vsel %vm831_vm1, %v763_v39, 0.0 }
  0xbe   : > { %v699_v61 = vpop.f32.mrf.mxu3 }
  0xc1   : > { %v684_v60 = vpop.f32.mrf.mxu1 }
  0xc2   : > { %v559_v62 = vpop.f32.mrf.mxu2  ;;  %v685_v4 = vadd.f32 %v684_v60, %v547_v1 }
  0xc3   : > { %v535_v63 = vpop.f32.mrf.mxu0  ;;  %v573_v5 = vadd.f32 %v572_v55, %v559_v62  ;;  %v837_v55 = vsel %vm831_vm1, %v762_v41, 0.0  ;;  %v841_v62 = vsel %vm831_vm1, %v764_v37, 0.0 }
  0xc4   : > { %v1622_v9 = vadd.f32 %v697_v58, %v685_v4  ;;  %v836_v58 = vadd.f32 %v835_v53, %v834_v54 }
  0xc6   : > { %v731_v15 = vmul.f32 %v1622_v9, %v1622_v9  ;;  %v838_v61 = vadd.f32 %v837_v55, %v836_v58 }
  0xc8   : > { %v840_v1 = vadd.f32 %v839_v59, %v838_v61 }
  0xc9   : > { %v686_v3 = vpop.f32.mrf.mxu1 }
  0xca   : > { %v710_v2 = vpop.f32.mrf.mxu3  ;;  %v561_v7 = vpop.f32.mrf.mxu2  ;;  %v842_v4 = vadd.f32 %v841_v62, %v840_v1  ;;  %v879_v1 = vsel %vm831_vm1, %v1696_v32, 0.0  ;;  %v889_v32 = vsel %vm831_vm1, %v1658_v22, 0.0 }
  0xcb   : > { %v711_v6 = vadd.f32 %v710_v2, %v573_v5  ;;  %v723_v8 = vpop.f32.mrf.mxu0  ;;  %v843_v2 = vsel %vm831_vm1, %v765_v35, 0.0  ;;  %v845_v5 = vsel %vm831_vm1, %v766_v33, 0.0  ;;  %v847_v7 = vsel %vm831_vm1, %v767_v31, 0.0 }
  0xcc   : > { %v853_v35 = vsel %vm831_vm1, %v1671_v25, 0.0  ;;  %v855_v31 = vsel %vm831_vm1, %v1663_v23, 0.0  ;;  %v861_v25 = vsel %vm831_vm1, %v1639_v17, 0.0  ;;  %v865_v17 = vsel %vm831_vm1, %v1730_v47, 0.0 }
  0xcd   : > { %v1624_v10 = vadd.f32 %v723_v8, %v711_v6  ;;  %v844_v6 = vadd.f32 %v843_v2, %v842_v4  ;;  %v871_v47 = vsel %vm831_vm1, %v1716_v40, 0.0  ;;  %v881_v40 = vsel %vm831_vm1, %v1690_v30, 0.0 }
  0xce   : > { %v891_v30 = vsel %vm831_vm1, %v1650_v20, 0.0 }
  0xcf   : > { %v727_v12 = vadd.f32 %v1624_v10, %v1622_v9  ;;  %v732_v13 = vmul.f32 %v1624_v10, %v1624_v10  ;;  %v846_v8 = vadd.f32 %v845_v5, %v844_v6 }
  0xd1   : > { %728 = vadd.xlane.f32.xlu0 %v727_v12  ;;  %v733_v16 = vadd.f32 %v732_v13, %v731_v15  ;;  %v848_v12 = vadd.f32 %v847_v7, %v846_v8  ;;  %v851_v13 = vsel %vm831_vm1, %v1679_v27, 0.0  ;;  %v859_v27 = vsel %vm831_vm1, %v1647_v19, 0.0 }
  0xd2   : > { %v712_v11 = vpop.f32.mrf.mxu3 }
  0xd3   : > { %v725_v14 = vpop.f32.mrf.mxu0  ;;  %v849_v11 = vsel %vm831_vm1, %v1687_v29, 0.0  ;;  %v857_v29 = vsel %vm831_vm1, %v1655_v21, 0.0  ;;  %v863_v21 = vsel %vm831_vm1, %v775_v49, 0.0 }
  0xd4   : > { %v850_v15 = vadd.f32 %v849_v11, %v848_v12 }
  0xd6   : > { %v852_v33 = vadd.f32 %v851_v13, %v850_v15 }
  0xd8   : > { %v854_v39 = vadd.f32 %v853_v35, %v852_v33 }
  0xd9   : > { %734 = vadd.xlane.f32.xlu0 %v733_v16 }
 0x144   : > { %v729_v43 = vpop.xlane.xlu0 %728 }
 0x145   : > { %v730_v51 = vmul.f32 0.00390625, %v729_v43  ;;  %v856_v43 = vadd.f32 %v855_v31, %v854_v39 }
 0x147   : > { %v737_v56 = vmul.f32 %v730_v51, %v730_v51  ;;  %v858_v46 = vadd.f32 %v857_v29, %v856_v43  ;;  %v740_v23 = vsub.f32 %v1622_v9, %v730_v51  ;;  %v741_v52 = vsub.f32 %v1624_v10, %v730_v51 }
 0x148   : > { %v867_v10 = vsel %vm831_vm1, %v1725_v45, 0.0  ;;  %v875_v45 = vsel %vm831_vm1, %v1706_v36, 0.0  ;;  %v885_v36 = vsel %vm831_vm1, %v1674_v26, 0.0 }
 0x149   : > { %v860_v53 = vadd.f32 %v859_v27, %v858_v46 }
 0x14b   : > { %v862_v54 = vadd.f32 %v861_v25, %v860_v53 }
 0x14c   : > { %v735_v50 = vpop.xlane.xlu0 %734 }
 0x14d   : > { %v736_v57 = vmul.f32 0.00390625, %v735_v50  ;;  %v864_v55 = vadd.f32 %v863_v21, %v862_v54 }
 0x14f   : > { %v738_v60 = vsub.f32 %v736_v57, %v737_v56  ;;  %v866_v51 = vadd.f32 %v865_v17, %v864_v55  ;;  %v869_v57 = vsel %vm831_vm1, %v1721_v42, 0.0 }
 0x151   : > { %v739_v63 = vmax.f32 %v738_v60, 0.0  ;;  %v868_v58 = vadd.f32 %v867_v10, %v866_v51  ;;  %v873_v60 = vsel %vm831_vm1, %v1711_v38, 0.0  ;;  %v883_v38 = vsel %vm831_vm1, %v1682_v28, 0.0 }
 0x152   : > { %v893_v28 = vsel %vm831_vm1, %v1642_v18, 0.0 }
 0x153   : > { %v742_v3 = vadd.f32 1e-05, %v739_v63  ;;  %v870_v59 = vadd.f32 %v869_v57, %v868_v58  ;;  %v877_v63 = vsel %vm831_vm1, %v1701_v34, 0.0  ;;  %v887_v34 = vsel %vm831_vm1, %v1666_v24, 0.0  ;;  %v385_v24 = vld [vmem:[%s1859_s3] sm:$0xff] }
 0x155   : > { %1343 = vrsqrt.f32 %v742_v3  ;;  %vm749_vm3 = vweird.f32 %v742_v3  ;;  %v872_v61 = vadd.f32 %v871_v47, %v870_v59 }
 0x157   : > { %v874_v62 = vadd.f32 %v873_v60, %v872_v61 }
 0x159   : > { %v876_v42 = vadd.f32 %v875_v45, %v874_v62 }
 0x15b   : > { %v1344_v14 = vpop.eup %1343  ;;  %v878_v2 = vadd.f32 %v877_v63, %v876_v42 }
 0x15c   : > { %v744_v16 = vmul.f32 %v1344_v14, %v742_v3  ;;  %vm750_vm2 = vweird.f32 %v1344_v14 }
 0x15d   : > { %vm751_vm4 = vmor %vm749_vm3, %vm750_vm2  ;;  %v880_v3 = vadd.f32 %v879_v1, %v878_v2 }
 0x15e   : > { %v745_v37 = vmul.f32 %v1344_v14, %v744_v16 }
 0x15f   : > { %v882_v4 = vadd.f32 %v881_v40, %v880_v3 }
 0x160   : > { %v746_v41 = vmul.f32 0.5, %v745_v37 }
 0x161   : > { %v884_v5 = vadd.f32 %v883_v38, %v882_v4 }
 0x162   : > { %v747_v44 = vsub.f32 1.5, %v746_v41 }
 0x163   : > { %v886_v6 = vadd.f32 %v885_v36, %v884_v5 }
 0x164   : > { %v748_v48 = vmul.f32 %v1344_v14, %v747_v44 }
 0x165   : > { %v888_v7 = vadd.f32 %v887_v34, %v886_v6 }
 0x166   : > { %v752_v0 = vsel %vm751_vm4, %v1344_v14, %v748_v48 }
 0x167   : > { %v753_v19 = vmul.f32 %v752_v0, %v740_v23  ;;  %v754_v50 = vmul.f32 %v752_v0, %v741_v52  ;;  %v890_v8 = vadd.f32 %v889_v32, %v888_v7 }
 0x169   : > { %v755_v9 = vmax.f32 %v753_v19, 0.0  ;;  %v756_v56 = vmax.f32 %v754_v50, 0.0  ;;  %v892_v11 = vadd.f32 %v891_v30, %v890_v8  ;;  %v926_v19 = vld [vmem:[%s1862_s6 + $0x8] sm:$0xff]  ;;  %v925_v50 = vld [vmem:[%s1862_s6] sm:$0xff] }
 0x16b   : > { %807 = vmatmul.f32.vlgmr.msrb.gmra.mxu2 %v755_v9  ;;  %827 = vmatmul.f32.vlgmr.msra.gmra.mxu1 %v756_v56  ;;  %v757_v49 = vpack.c.bf16 %v756_v56, %v755_v9  ;;  %v894_v12 = vadd.f32 %v893_v28, %v892_v11 }
 0x16d   : > { %758 = vst [vmem:[%s356_s28] sm:$0xff] %v757_v49  ;;  %v895_v13 = vrot.slane %v894_v12, 4 }
 0x16f   : > { %v896_v26 = vadd.f32 %v895_v13, %v894_v12 }
 0x171   : > { %v897_v14 = vrot.slane %v896_v26, 2 }
 0x173   : > { %v898_v15 = vadd.f32 %v897_v14, %v896_v26 }
 0x175   : > { %v899_v16 = vrot.slane %v898_v15, 1 }
 0x177   : > { %v900_v22 = vadd.f32 %v899_v16, %v898_v15 }
 0x179   : > { %v905_v35 = vmul.f32 %v900_v22, %v385_v24 }
 0x17b   : > { %v906_v33 = vsel %vm831_vm1, %v905_v35, 0.0 }
 0x17c   : > { %907 = vadd.xlane.f32.xlu1 %v906_v33 }
 0x1e8   : > { %v828_v20 = vpop.f32.mrf.mxu1 }
 0x1ee   : > { %v808_v37 = vpop.f32.mrf.mxu2 }
 0x1ef   : > { %v829_v31 = vadd.f32 %v828_v20, %v808_v37  ;;  %v908_v41 = vpop.xlane.xlu1 %907 }
 0x1f0   : > { %v909_v29 = vadd.f32 1e-05, %v908_v41 }
 0x1f1   : > { %v901_v18 = vmul.f32 %v829_v31, %v385_v24 }
 0x1f2   : > { %1345 = vrcp.f32 %v909_v29  ;;  %vm915_vm5 = vweird.f32 %v909_v29  ;;  %v921_v25 = vand.u32 2147483648, %v909_v29  ;;  %v919_v23 = vand.u32 2147483647, %v909_v29 }
 0x1f3   : > { %v902_v39 = vsel %vm831_vm1, %v901_v18, 0.0 }
 0x1f4   : > { %903 = vadd.xlane.f32.xlu1 %v902_v39  ;;  %v922_v52 = vor.u32 1.1754944e-38, %v921_v25  ;;  %vm920_vm8 = vcmp.eq.f32.partialorder %v919_v23, 8.507059e+37 }
 0x1f8   : > { %v1346_v43 = vpop.eup %1345 }
 0x1f9   : > { %v911_v44 = vmul.f32 %v1346_v43, %v909_v29  ;;  %vm916_vm6 = vweird.f32 %v1346_v43 }
 0x1fa   : > { %vm917_vm7 = vmor %vm915_vm5, %vm916_vm6 }
 0x1fb   : > { %v912_v27 = vsub.f32 1.0, %v911_v44 }
 0x1fd   : > { %v913_v46 = vmul.f32 %v1346_v43, %v912_v27 }
 0x1ff   : > { %v914_v48 = vadd.f32 %v1346_v43, %v913_v46 }
 0x201   : > { %v918_v53 = vsel %vm917_vm7, %v1346_v43, %v914_v48 }
 0x202   : > { %v923_v21 = vsel %vm920_vm8, %v922_v52, %v918_v53 }
 0x267   : > { %v904_v0 = vpop.xlane.xlu1 %903 }
 0x268   : > { %v924_v54 = vmul.f32 %v923_v21, %v904_v0 }
 0x26a   : > { %951 = vmatpush.msra.mxu0 %v924_v54  ;;  %1302 = vmatpush.msrb.mxu3 %v924_v54 }
 0x26b   : > { %1257 = vmatmul.msk.f32.vlgmr.msrb.gmra.mxu3 %vm929_vm9, %v926_v19  ;;  %1256 = vmatmul.msk.f32.vlgmr.msra.gmra.mxu0 %vm929_vm9, %v925_v50 }
 0x26c   : > { %1378 = shalt.err (!%p1375_p3)
}
 0x26d   : > { %1304 = dma.vmem_to_hbm [thread:$0]  (%p1503_p5), %s984_s26, 128, %s986_s0, %s965_s17   ;;  %v927_v17 = vld [vmem:[%s1863_s7] sm:$0xff]  ;;  %v928_v56 = vld [vmem:[%s1863_s7 + $0x8] sm:$0xff]  ;;  %vm961_vm10 = vcmask 7168  }
 0x26e   : > { %s1264_s29 = sshll.u32 %s1515_s21, 4 }
 0x26f   : > { %s383_s22 = scalar_lea.vmem %s1865_s9, %s1264_s29 }
 0x2e8   : > { %v953_v55 = vpop.f32.mrf.mxu0 }
 0x2e9   : > { %v954_v9 = vadd.f32 %v953_v55, %v927_v17 }
 0x2eb   : > { %1347 = vtanh.f32 %v954_v9 }
 0x2ee   : > { %v956_v10 = vpop.f32.mrf.mxu3 }
 0x2ef   : > { %v957_v51 = vadd.f32 %v956_v10, %v928_v56 }
 0x2f1   : > { %v1348_v49 = vpop.eup %1347  ;;  %1349 = vtanh.f32 %v957_v51 }
 0x2f2   : > { %962 = vst.msk [vmem:[%s383_s22] sm:$0xff] %vm961_vm10, %v1348_v49 }
 0x2f7   : > { %v1350_v57 = vpop.eup %1349 }
 0x2f8   : > { %963 = vst.msk [vmem:[%s383_s22 + $0x8] sm:$0xff] %vm961_vm10, %v1350_v57 }
 0x2f9 PF: > { %p1310_p4 = scmp.ge.s32.totalorder %s1413_s12, 2  ;;  %s1000_s0 = sand.u32 1, %s1401_s30  }
 0x2fa   : > { %s1001_s19 = scalar_lea.sflag [#allocation3], %s1000_s0 }
 0x2fb   : > { %p1307_p5 = pnand %p1310_p4, %p1507_p6 }
 0x2fd   : > { %p1308_p7 = pneg %p1307_p5 }
 0x2ff   : > { %1396 = dma.done.wait (%p1308_p7), %s1001_s19, 128  }
 0x300   : > { %1398 = vsyncadd (%p1308_p7), %s1001_s19, 4294967168  ;;  %p20_p8 = scmp.ge.s32.totalorder %s1490_s15, 4   ;;  %s1876_s30 = smov %s1405_s10 }
 0x301   : > { %s1877_s10 = smov %s1409_s11  ;;  %s1878_s11 = smov %s1501_s18 }
 0x302   : > { %s1879_s12 = smov %s1490_s15  ;;  %22 = sbr.rel (!%p20_p8) target bundleno = 7 (0x7), region = 105 }
 0x307   :  { %1015 = vsyncpa [#allocation3], 1 }
 0x308   :  { %1017 = vsyncpa [#allocation3 + $0x1], 1 }

</bundles_post_ra>
